<compile_context>
chip_gen: v5e
topology: v5e:2x2
jax: 0.10.0
libtpu: 0.0.40
codegen_flags: <defaults>
</compile_context>

<pallas_src>
import math

import numpy as np
import jax
import jax.numpy as jnp
from jax.experimental import pallas as pl
from jax.experimental.pallas import tpu as pltpu

# ----------------------------- model dimensions -----------------------------
B = 2              # batch
T_PNR = 4          # temporal length of PNR middle features
T_OSCC = 4         # temporal length of OSCC middle features
K_IN = 8192        # proj1 / proj2 input features (hard-coded in the module)
D = 128            # cfg.MODEL.TRANSLATION_INPUT_FEATURES (feature_dim)
NUM_HEADS = 8
HEAD_DIM = D // NUM_HEADS
FF = 2 * D         # dim_feedforward = feature_dim * 2
SEQ = 3            # sequence_len
NUM_LAYERS = 2     # cfg.MODEL.TRANSLATION_LAYERS
NUM_CLASSES = 16   # 'keyframe_localization' task
LN_EPS = 1e-5

TK = 2048          # K chunk for the pipelined projection reduction
NK = K_IN // TK

# packed bf16 transformer-weight slab: per layer (D, TW_COLS), columns are
#   [ in_w(3D) | out_w(D) | ffn_w1(FF) | ffn_w2[:D,:](D) | ffn_w2[D:,:](D) ]
TW_COLS = 3 * D + D + FF + FF          # 1024

# ---- packed f32 "vector slab" layout: rows of width D=128 -------------------
R_B1 = 0                                # proj1 bias
R_B2 = 1                                # proj2 bias
R_PE = 2                                # B*SEQ rows of task-major tiled PE
R_LNW = R_PE + B * SEQ                  # shared ln weight
R_LNB = R_LNW + 1                       # shared ln bias
R_HEADB = R_LNB + 1                     # head bias padded to 128 lanes
R_LAYER = R_HEADB + 1                   # per-layer block start
ROWS_PER_LAYER = 11                     # in_b(3) out_b ffn_b1(2) ffn_b2 ln1(2) ln2(2)
R_MASK = R_LAYER + NUM_LAYERS * ROWS_PER_LAYER   # B*SEQ rows additive mask
R_HEADW = R_MASK + B * SEQ              # D rows: head weight padded to 128 lanes
VEC_ROWS = R_HEADW + D


# --------------------------- fused forward kernel ---------------------------
def fused_forward_kernel(x_pnr_ref, x_oscc_ref, act_ref, w12_ref, tw_ref,
                         vec_ref, o_ref, acc_ref):
    k = pl.program_id(0)

    @pl.when(k == 0)
    def _():
        acc_ref[...] = jnp.zeros_like(acc_ref)

    # ---- K-chunked proj1||proj2: ONE (2B,TK)@(TK,2D) bf16 MXU matmul --------
    # mean stays f32 (VPU); only MXU operands are bf16, accumulation is f32.
    mp = jnp.mean(x_pnr_ref[...], axis=1)             # (B, TK) f32
    mo = jnp.mean(x_oscc_ref[...], axis=1)            # (B, TK) f32
    lhs = jnp.concatenate([mp, mo], axis=0).astype(jnp.bfloat16)   # (2B, TK)
    acc_ref[...] += jnp.dot(lhs, w12_ref[...],
                            preferred_element_type=jnp.float32)    # (2B, 2D)

    # ---- epilogue: stack + LN/PE + transformer + pool + head ----------------
    @pl.when(k == NK - 1)
    def _():
        vec = vec_ref[...]                            # (VEC_ROWS, D) f32

        def row(i):                                   # (1, D)
            return vec[i:i + 1, :]

        def layer_norm(x, w, b):
            mu = jnp.mean(x, axis=-1, keepdims=True)
            var = jnp.mean(jnp.square(x - mu), axis=-1, keepdims=True)
            return (x - mu) * jax.lax.rsqrt(var + LN_EPS) * w + b

        acc = acc_ref[...]                            # (2B, 2D) f32
        pnr = acc[0:B, 0:D] + row(R_B1)               # diagonal block: mp@w1
        osc = acc[B:2 * B, D:2 * D] + row(R_B2)       # diagonal block: mo@w2
        act = act_ref[...]                            # (B, D)
        # feature dropout = identity (eval mode)

        # task-major stack: row index = s*B + b (s: 0=pnr, 1=oscc, 2=action)
        x = jnp.concatenate([pnr, osc, act], axis=0)  # (B*SEQ, D)
        pe = vec[R_PE:R_PE + B * SEQ, :]              # pre-tiled PE
        x = layer_norm(x, row(R_LNW), row(R_LNB)) + pe

        # precomputed additive cross-batch mask (0 same batch, -1e9 otherwise)
        amask = vec[R_MASK:R_MASK + B * SEQ, 0:B * SEQ]

        scale = 1.0 / math.sqrt(HEAD_DIM)
        for l in range(NUM_LAYERS):                   # static unroll
            base = R_LAYER + ROWS_PER_LAYER * l
            twl = tw_ref[l]                           # (D, TW_COLS) bf16
            in_w = twl[:, 0:3 * D]
            out_w = twl[:, 3 * D:4 * D]
            f1w = twl[:, 4 * D:4 * D + FF]
            f2w_a = twl[:, 4 * D + FF:4 * D + FF + D]
            f2w_b = twl[:, 4 * D + FF + D:4 * D + 2 * FF]

            # fused qkv projection: single bf16 MXU matmul, f32 accumulate
            qkv = jnp.dot(x.astype(jnp.bfloat16), in_w,
                          preferred_element_type=jnp.float32)
            q = (qkv[:, 0:D] + row(base + 0)) * scale
            kk = qkv[:, D:2 * D] + row(base + 1)
            v = qkv[:, 2 * D:3 * D] + row(base + 2)

            # per-head scores (tiny f32 matmuls), ONE softmax pass for all heads
            s_list = []
            for h in range(NUM_HEADS):
                lo = h * HEAD_DIM
                sh = jnp.einsum('qd,kd->qk', q[:, lo:lo + HEAD_DIM],
                                kk[:, lo:lo + HEAD_DIM],
                                preferred_element_type=jnp.float32)
                s_list.append(sh + amask)
            s = jnp.concatenate(s_list, axis=0)       # (H*B*SEQ, B*SEQ) f32
            s = s - jnp.max(s, axis=-1, keepdims=True)
            p = jnp.exp(s)
            p = p / jnp.sum(p, axis=-1, keepdims=True)

            # per-head contexts, concatenated once, then ONE output projection
            ctx_list = []
            for h in range(NUM_HEADS):
                lo = h * HEAD_DIM
                ph = p[h * B * SEQ:(h + 1) * B * SEQ, :]
                ctx_list.append(jnp.dot(ph, v[:, lo:lo + HEAD_DIM],
                                        preferred_element_type=jnp.float32))
            ctx = jnp.concatenate(ctx_list, axis=-1)  # (B*SEQ, D)
            attn = jnp.dot(ctx.astype(jnp.bfloat16), out_w,
                           preferred_element_type=jnp.float32) + row(base + 3)

            # post-norm TransformerEncoderLayer (norm_first=False, act=relu)
            x = layer_norm(x + attn, row(base + 7), row(base + 8))

            ffn_b1 = jnp.concatenate([row(base + 4), row(base + 5)], axis=1)
            ff = jnp.dot(x.astype(jnp.bfloat16), f1w,
                         preferred_element_type=jnp.float32) + ffn_b1
            ff = jnp.maximum(ff, 0.0)
            ff2 = (jnp.dot(ff[:, 0:D].astype(jnp.bfloat16), f2w_a,
                           preferred_element_type=jnp.float32)
                   + jnp.dot(ff[:, D:FF].astype(jnp.bfloat16), f2w_b,
                             preferred_element_type=jnp.float32)
                   + row(base + 6))
            x = layer_norm(x + ff2, row(base + 9), row(base + 10))

        # mean over sequence (strided rows b, B+b, 2B+b), shared ln, head
        pooled = (x[0:B, :] + x[B:2 * B, :] + x[2 * B:3 * B, :]) * (1.0 / SEQ)
        pooled = layer_norm(pooled, row(R_LNW), row(R_LNB))
        head_w = vec[R_HEADW:R_HEADW + D, :]          # (D, 128) f32, padded
        out = jnp.dot(pooled, head_w,
                      preferred_element_type=jnp.float32) + row(R_HEADB)
        o_ref[...] = out.astype(o_ref.dtype)          # (B, 128), lane-dense


def forward(x_pnr_mid, x_oscc_mid, action_feat, pk):
    grid_spec = pltpu.PrefetchScalarGridSpec(
        num_scalar_prefetch=0,
        grid=(NK,),
        in_specs=[
            pl.BlockSpec((B, T_PNR, TK), lambda k: (0, 0, k)),     # K-tiled
            pl.BlockSpec((B, T_OSCC, TK), lambda k: (0, 0, k)),    # K-tiled
            pl.BlockSpec((B, D), lambda k: (0, 0)),                # resident
            pl.BlockSpec((TK, 2 * D), lambda k: (k, 0)),           # K-tiled
            pl.BlockSpec((NUM_LAYERS, D, TW_COLS), lambda k: (0, 0, 0)),
            pl.BlockSpec((VEC_ROWS, D), lambda k: (0, 0)),
        ],
        out_specs=pl.BlockSpec((B, D), lambda k: (0, 0)),
        scratch_shapes=[pltpu.VMEM((2 * B, 2 * D), jnp.float32)],
    )
    out = pl.pallas_call(
        fused_forward_kernel,
        out_shape=jax.ShapeDtypeStruct((B, D), jnp.float32),
        grid_spec=grid_spec,
        compiler_params=pltpu.CompilerParams(
            dimension_semantics=("arbitrary",),
            vmem_limit_bytes=32 * 1024 * 1024),
    )(x_pnr_mid, x_oscc_mid, action_feat, pk["w12"], pk["tw"], pk["vec"])
    return out[:, :NUM_CLASSES][:, None, :]                        # unsqueeze(1)


# ----------------------------- parameter init -------------------------------
def init_params(key):
    ks = iter(jax.random.split(key, 40))

    def w(shape, fan_in):
        return jax.random.normal(next(ks), shape, jnp.float32) / math.sqrt(fan_in)

    p = {
        # large weights stored bf16 (HBM read is the dominant cost of the fwd)
        "w1": w((K_IN, D), K_IN).astype(jnp.bfloat16),
        "b1": w((1, D), K_IN),
        "w2": w((K_IN, D), K_IN).astype(jnp.bfloat16),
        "b2": w((1, D), K_IN),
        "pe": jax.random.normal(next(ks), (SEQ, D), jnp.float32),
        "ln_w": jnp.ones((1, D), jnp.float32),
        "ln_b": jnp.zeros((1, D), jnp.float32),
        "head_w": w((D, NUM_CLASSES), D),
        "head_b": w((1, NUM_CLASSES), D),
        "ln1_w": jnp.ones((NUM_LAYERS, 1, D), jnp.float32),
        "ln1_b": jnp.zeros((NUM_LAYERS, 1, D), jnp.float32),
        "ln2_w": jnp.ones((NUM_LAYERS, 1, D), jnp.float32),
        "ln2_b": jnp.zeros((NUM_LAYERS, 1, D), jnp.float32),
    }
    in_w, in_b, out_w, out_b = [], [], [], []
    f1w, f1b, f2w, f2b = [], [], [], []
    for _ in range(NUM_LAYERS):
        in_w.append(w((D, 3 * D), D)); in_b.append(w((1, 3 * D), D))
        out_w.append(w((D, D), D));    out_b.append(w((1, D), D))
        f1w.append(w((D, FF), D));     f1b.append(w((1, FF), D))
        f2w.append(w((FF, D), FF));    f2b.append(w((1, D), FF))
    p.update(
        in_w=jnp.stack(in_w).astype(jnp.bfloat16), in_b=jnp.stack(in_b),
        out_w=jnp.stack(out_w).astype(jnp.bfloat16), out_b=jnp.stack(out_b),
        ffn_w1=jnp.stack(f1w).astype(jnp.bfloat16), ffn_b1=jnp.stack(f1b),
        ffn_w2=jnp.stack(f2w).astype(jnp.bfloat16), ffn_b2=jnp.stack(f2b),
    )
    return p


def pack_params(p):
    """Pack params into: w12 (bf16), tw weight slab (bf16), vec slab (f32)."""
    # fused proj weight: w1 lane-concat w2 -> (K_IN, 2D) bf16
    w12 = jnp.concatenate([p["w1"], p["w2"]], axis=1)

    # transformer weight slab (NUM_LAYERS, D, TW_COLS) bf16
    layers = []
    for l in range(NUM_LAYERS):
        f2 = p["ffn_w2"][l]                                    # (FF, D)
        layers.append(jnp.concatenate(
            [p["in_w"][l], p["out_w"][l], p["ffn_w1"][l],
             f2[0:D, :], f2[D:2 * D, :]], axis=1))             # (D, TW_COLS)
    tw = jnp.stack(layers)

    # f32 vector slab
    rows = [p["b1"], p["b2"],
            jnp.repeat(p["pe"], B, axis=0),                    # task-major PE
            p["ln_w"], p["ln_b"],
            jnp.pad(p["head_b"], ((0, 0), (0, D - NUM_CLASSES)))]
    for l in range(NUM_LAYERS):
        rows += [p["in_b"][l].reshape(3, D),
                 p["out_b"][l],
                 p["ffn_b1"][l].reshape(2, D),
                 p["ffn_b2"][l],
                 p["ln1_w"][l], p["ln1_b"][l], p["ln2_w"][l], p["ln2_b"][l]]
    mask = np.full((B * SEQ, D), -1e9, np.float32)             # task-major order
    for i in range(B * SEQ):
        for j in range(B * SEQ):
            if i % B == j % B:
                mask[i, j] = 0.0
    rows.append(jnp.asarray(mask))
    rows.append(jnp.pad(p["head_w"], ((0, 0), (0, D - NUM_CLASSES))))
    vec = jnp.concatenate(rows, axis=0)
    assert vec.shape == (VEC_ROWS, D), vec.shape
    return {"w12": w12, "tw": tw, "vec": vec}


# ----------------------------- pure-JAX reference ---------------------------
def reference_forward(x_pnr, x_oscc, act, p):
    hp = jax.lax.Precision.HIGHEST

    def ln(x, w, b):
        mu = x.mean(-1, keepdims=True)
        var = ((x - mu) ** 2).mean(-1, keepdims=True)
        return (x - mu) / jnp.sqrt(var + LN_EPS) * w + b

    w1 = p["w1"].astype(jnp.float32)
    w2 = p["w2"].astype(jnp.float32)
    pnr = jnp.matmul(x_pnr.mean(axis=1), w1, precision=hp) + p["b1"]
    osc = jnp.matmul(x_oscc.mean(axis=1), w2, precision=hp) + p["b2"]
    x = jnp.stack([pnr, osc, act], axis=1)
    x = ln(x, p["ln_w"], p["ln_b"]) + p["pe"][None]
    for l in range(NUM_LAYERS):
        in_w = p["in_w"][l].astype(jnp.float32)
        out_w = p["out_w"][l].astype(jnp.float32)
        f1w = p["ffn_w1"][l].astype(jnp.float32)
        f2w = p["ffn_w2"][l].astype(jnp.float32)
        qkv = jnp.einsum('bsd,de->bse', x, in_w, precision=hp) + p["in_b"][l]
        q, k, v = qkv[..., :D], qkv[..., D:2 * D], qkv[..., 2 * D:]
        qh = q.reshape(B, SEQ, NUM_HEADS, HEAD_DIM)
        kh = k.reshape(B, SEQ, NUM_HEADS, HEAD_DIM)
        vh = v.reshape(B, SEQ, NUM_HEADS, HEAD_DIM)
        s = jnp.einsum('bqhd,bkhd->bhqk', qh, kh, precision=hp) / math.sqrt(HEAD_DIM)
        pm = jax.nn.softmax(s, axis=-1)
        ctx = jnp.einsum('bhqk,bkhd->bqhd', pm, vh, precision=hp).reshape(B, SEQ, D)
        attn = jnp.einsum('bqd,de->bqe', ctx, out_w, precision=hp) + p["out_b"][l]
        x = ln(x + attn, p["ln1_w"][l], p["ln1_b"][l])
        ff = jax.nn.relu(jnp.einsum('bsd,df->bsf', x, f1w, precision=hp)
                         + p["ffn_b1"][l])
        ff = jnp.einsum('bsf,fd->bsd', ff, f2w, precision=hp) + p["ffn_b2"][l]
        x = ln(x + ff, p["ln2_w"][l], p["ln2_b"][l])
    pooled = ln(x.mean(axis=1), p["ln_w"], p["ln_b"])
    out = jnp.matmul(pooled, p["head_w"], precision=hp) + p["head_b"]
    return out[:, None, :]


# ----------------------------------- main ------------------------------------
if __name__ == "__main__":
    key = jax.random.PRNGKey(0)
    k_in, k_par = jax.random.split(key)
    k1, k2, k3 = jax.random.split(k_in, 3)

    x_pnr_mid = jax.random.normal(k1, (B, T_PNR, K_IN), jnp.float32)
    x_oscc_mid = jax.random.normal(k2, (B, T_OSCC, K_IN), jnp.float32)
    action_feat = jax.random.normal(k3, (B, D), jnp.float32)

    params = init_params(k_par)
    packed = pack_params(params)          # packed once, outside the jitted call

    out = jax.jit(forward)(x_pnr_mid, x_oscc_mid, action_feat, packed)
    out = jax.block_until_ready(out)

    assert out.shape == (B, 1, NUM_CLASSES), out.shape
    ref = reference_forward(x_pnr_mid, x_oscc_mid, action_feat, params)
    assert jnp.allclose(out, ref, rtol=2e-2, atol=2e-2), (
        float(jnp.max(jnp.abs(out - ref))))

    print("KERNEL_OK")
</pallas_src>

<mosaic_0001>
module attributes {stable_mosaic.version = 11 : i64} {
  func.func @fused_forward_kernel(%arg0: i32, %arg1: memref<2x4x2048xf32, #tpu.memory_space<vmem>>, %arg2: memref<2x4x2048xf32, #tpu.memory_space<vmem>>, %arg3: memref<2x128xf32, #tpu.memory_space<vmem>>, %arg4: memref<2048x256xbf16, #tpu.memory_space<vmem>>, %arg5: memref<2x128x1024xbf16, #tpu.memory_space<vmem>>, %arg6: memref<167x128xf32, #tpu.memory_space<vmem>>, %arg7: memref<2x128xf32, #tpu.memory_space<vmem>>, %arg8: memref<4x256xf32, #tpu.memory_space<vmem>>) attributes {dimension_semantics = [#tpu.dimension_semantics<arbitrary>], iteration_bounds = array<i64: 4>, scalar_prefetch = 0 : i64, scratch_operands = 1 : i64, tpu.core_type = #tpu.core_type<tc>, window_params = [{transform_indices = @transform_0, window_bounds = array<i64: 2, 4, 2048>}, {transform_indices = @transform_1, window_bounds = array<i64: 2, 4, 2048>}, {pipeline_mode = #tpu.pipeline_mode<synchronous>, transform_indices = @transform_2, window_bounds = array<i64: 2, 128>}, {transform_indices = @transform_3, window_bounds = array<i64: 2048, 256>}, {pipeline_mode = #tpu.pipeline_mode<synchronous>, transform_indices = @transform_4, window_bounds = array<i64: 2, 128, 1024>}, {pipeline_mode = #tpu.pipeline_mode<synchronous>, transform_indices = @transform_5, window_bounds = array<i64: 167, 128>}, {pipeline_mode = #tpu.pipeline_mode<synchronous>, transform_indices = @transform_6, window_bounds = array<i64: 2, 128>}]} {
    %c0_i32 = arith.constant 0 : i32
    %0 = arith.cmpi eq, %arg0, %c0_i32 : i32
    %1 = arith.extui %0 : i1 to i32
    %c0_i32_0 = arith.constant 0 : i32
    %2 = arith.cmpi ne, %1, %c0_i32_0 : i32
    scf.if %2 {
      %cst_17 = arith.constant 0.000000e+00 : f32
      %21 = vector.broadcast %cst_17 : f32 to vector<4x256xf32>
      %c0_18 = arith.constant 0 : index
      %c0_19 = arith.constant 0 : index
      %22 = vector.load %arg8[%c0_18, %c0_19] : memref<4x256xf32, #tpu.memory_space<vmem>>, vector<4x256xf32>
      tpu.vector_store %arg8[%c0_18, %c0_19], %21 {strides = array<i32>} : memref<4x256xf32, #tpu.memory_space<vmem>>, vector<4x256xf32>,
    } else {
    }
    %c0 = arith.constant 0 : index
    %c0_1 = arith.constant 0 : index
    %c0_2 = arith.constant 0 : index
    %3 = vector.load %arg1[%c0, %c0_1, %c0_2] : memref<2x4x2048xf32, #tpu.memory_space<vmem>>, vector<2x4x2048xf32>
    %cst = arith.constant dense<0.000000e+00> : vector<2x2048xf32>
    %4 = vector.multi_reduction <add>, %3, %cst [1] : vector<2x4x2048xf32> to vector<2x2048xf32>
    %cst_3 = arith.constant 4.000000e+00 : f32
    %5 = vector.broadcast %cst_3 : f32 to vector<2x2048xf32>
    %6 = arith.divf %4, %5 : vector<2x2048xf32>
    %c0_4 = arith.constant 0 : index
    %c0_5 = arith.constant 0 : index
    %c0_6 = arith.constant 0 : index
    %7 = vector.load %arg2[%c0_4, %c0_5, %c0_6] : memref<2x4x2048xf32, #tpu.memory_space<vmem>>, vector<2x4x2048xf32>
    %cst_7 = arith.constant dense<0.000000e+00> : vector<2x2048xf32>
    %8 = vector.multi_reduction <add>, %7, %cst_7 [1] : vector<2x4x2048xf32> to vector<2x2048xf32>
    %cst_8 = arith.constant 4.000000e+00 : f32
    %9 = vector.broadcast %cst_8 : f32 to vector<2x2048xf32>
    %10 = arith.divf %8, %9 : vector<2x2048xf32>
    %11 = tpu.concatenate %6, %10 in 0 : vector<2x2048xf32>, vector<2x2048xf32> -> vector<4x2048xf32>
    %12 = arith.truncf %11 : vector<4x2048xf32> to vector<4x2048xbf16>
    %c0_9 = arith.constant 0 : index
    %c0_10 = arith.constant 0 : index
    %13 = vector.load %arg8[%c0_9, %c0_10] : memref<4x256xf32, #tpu.memory_space<vmem>>, vector<4x256xf32>
    %c0_11 = arith.constant 0 : index
    %c0_12 = arith.constant 0 : index
    %14 = vector.load %arg4[%c0_11, %c0_12] : memref<2048x256xbf16, #tpu.memory_space<vmem>>, vector<2048x256xbf16>
    %cst_13 = arith.constant dense<0.000000e+00> : vector<4x256xf32>
    %15 = tpu.matmul %12, %14, %cst_13 {dimension_numbers = #tpu.dot_dimension_numbers<[1], [0], [0], [1], [0, 0, 1, 1], [], []>} : vector<4x2048xbf16>, vector<2048x256xbf16>, vector<4x256xf32> -> vector<4x256xf32>
    %16 = arith.addf %13, %15 : vector<4x256xf32>
    %c0_14 = arith.constant 0 : index
    %c0_15 = arith.constant 0 : index
    %17 = vector.load %arg8[%c0_14, %c0_15] : memref<4x256xf32, #tpu.memory_space<vmem>>, vector<4x256xf32>
    tpu.vector_store %arg8[%c0_14, %c0_15], %16 {strides = array<i32>} : memref<4x256xf32, #tpu.memory_space<vmem>>, vector<4x256xf32>,
    %c3_i32 = arith.constant 3 : i32
    %18 = arith.cmpi eq, %arg0, %c3_i32 : i32
    %19 = arith.extui %18 : i1 to i32
    %c0_i32_16 = arith.constant 0 : i32
    %20 = arith.cmpi ne, %19, %c0_i32_16 : i32
    scf.if %20 {
      %c0_17 = arith.constant 0 : index
      %c0_18 = arith.constant 0 : index
      %21 = vector.load %arg6[%c0_17, %c0_18] : memref<167x128xf32, #tpu.memory_space<vmem>>, vector<167x128xf32>
      %c0_19 = arith.constant 0 : index
      %c0_20 = arith.constant 0 : index
      %22 = vector.load %arg8[%c0_19, %c0_20] : memref<4x256xf32, #tpu.memory_space<vmem>>, vector<4x256xf32>
      %23 = vector.extract_strided_slice %22 {offsets = [0, 0], sizes = [2, 128], strides = [1, 1]} : vector<4x256xf32> to vector<2x128xf32>
      %24 = vector.extract_strided_slice %21 {offsets = [0, 0], sizes = [1, 128], strides = [1, 1]} : vector<167x128xf32> to vector<1x128xf32>
      %25 = vector.broadcast %24 : vector<1x128xf32> to vector<2x128xf32>
      %26 = arith.addf %23, %25 : vector<2x128xf32>
      %27 = vector.extract_strided_slice %22 {offsets = [2, 128], sizes = [2, 128], strides = [1, 1]} : vector<4x256xf32> to vector<2x128xf32>
      %28 = vector.extract_strided_slice %21 {offsets = [1, 0], sizes = [1, 128], strides = [1, 1]} : vector<167x128xf32> to vector<1x128xf32>
      %29 = vector.broadcast %28 : vector<1x128xf32> to vector<2x128xf32>
      %30 = arith.addf %27, %29 : vector<2x128xf32>
      %c0_21 = arith.constant 0 : index
      %c0_22 = arith.constant 0 : index
      %31 = vector.load %arg3[%c0_21, %c0_22] : memref<2x128xf32, #tpu.memory_space<vmem>>, vector<2x128xf32>
      %32 = tpu.concatenate %26, %30, %31 in 0 : vector<2x128xf32>, vector<2x128xf32>, vector<2x128xf32> -> vector<6x128xf32>
      %33 = vector.extract_strided_slice %21 {offsets = [2, 0], sizes = [6, 128], strides = [1, 1]} : vector<167x128xf32> to vector<6x128xf32>
      %34 = vector.extract_strided_slice %21 {offsets = [8, 0], sizes = [1, 128], strides = [1, 1]} : vector<167x128xf32> to vector<1x128xf32>
      %35 = vector.extract_strided_slice %21 {offsets = [9, 0], sizes = [1, 128], strides = [1, 1]} : vector<167x128xf32> to vector<1x128xf32>
      %cst_23 = arith.constant dense<0.000000e+00> : vector<6xf32>
      %36 = vector.multi_reduction <add>, %32, %cst_23 [1] : vector<6x128xf32> to vector<6xf32>
      %37 = vector.shape_cast %36 : vector<6xf32> to vector<6x1xf32>
      %cst_24 = arith.constant 1.280000e+02 : f32
      %38 = vector.broadcast %cst_24 : f32 to vector<6x1xf32>
      %39 = arith.divf %37, %38 : vector<6x1xf32>
      %40 = vector.broadcast %39 : vector<6x1xf32> to vector<6x128xf32>
      %41 = arith.subf %32, %40 : vector<6x128xf32>
      %42 = arith.mulf %41, %41 : vector<6x128xf32>
      %cst_25 = arith.constant dense<0.000000e+00> : vector<6xf32>
      %43 = vector.multi_reduction <add>, %42, %cst_25 [1] : vector<6x128xf32> to vector<6xf32>
      %44 = vector.shape_cast %43 : vector<6xf32> to vector<6x1xf32>
      %cst_26 = arith.constant 1.280000e+02 : f32
      %45 = vector.broadcast %cst_26 : f32 to vector<6x1xf32>
      %46 = arith.divf %44, %45 : vector<6x1xf32>
      %47 = vector.broadcast %39 : vector<6x1xf32> to vector<6x128xf32>
      %48 = arith.subf %32, %47 : vector<6x128xf32>
      %cst_27 = arith.constant 9.99999974E-6 : f32
      %49 = vector.broadcast %cst_27 : f32 to vector<6x1xf32>
      %50 = arith.addf %46, %49 : vector<6x1xf32>
      %51 = math.rsqrt %50 : vector<6x1xf32>
      %52 = vector.broadcast %51 : vector<6x1xf32> to vector<6x128xf32>
      %53 = arith.mulf %48, %52 : vector<6x128xf32>
      %54 = vector.broadcast %34 : vector<1x128xf32> to vector<6x128xf32>
      %55 = arith.mulf %53, %54 : vector<6x128xf32>
      %56 = vector.broadcast %35 : vector<1x128xf32> to vector<6x128xf32>
      %57 = arith.addf %55, %56 : vector<6x128xf32>
      %58 = arith.addf %57, %33 : vector<6x128xf32>
      %59 = vector.extract_strided_slice %21 {offsets = [33, 0], sizes = [6, 6], strides = [1, 1]} : vector<167x128xf32> to vector<6x6xf32>
      %c0_28 = arith.constant 0 : index
      %c0_29 = arith.constant 0 : index
      %c0_30 = arith.constant 0 : index
      %60 = vector.load %arg5[%c0_28, %c0_29, %c0_30] : memref<2x128x1024xbf16, #tpu.memory_space<vmem>>, vector<1x128x1024xbf16>
      %61 = vector.shape_cast %60 : vector<1x128x1024xbf16> to vector<128x1024xbf16>
      %62 = vector.extract_strided_slice %61 {offsets = [0, 0], sizes = [128, 384], strides = [1, 1]} : vector<128x1024xbf16> to vector<128x384xbf16>
      %63 = vector.extract_strided_slice %61 {offsets = [0, 384], sizes = [128, 128], strides = [1, 1]} : vector<128x1024xbf16> to vector<128x128xbf16>
      %64 = vector.extract_strided_slice %61 {offsets = [0, 512], sizes = [128, 256], strides = [1, 1]} : vector<128x1024xbf16> to vector<128x256xbf16>
      %65 = vector.extract_strided_slice %61 {offsets = [0, 768], sizes = [128, 128], strides = [1, 1]} : vector<128x1024xbf16> to vector<128x128xbf16>
      %66 = vector.extract_strided_slice %61 {offsets = [0, 896], sizes = [128, 128], strides = [1, 1]} : vector<128x1024xbf16> to vector<128x128xbf16>
      %67 = arith.truncf %58 : vector<6x128xf32> to vector<6x128xbf16>
      %cst_31 = arith.constant dense<0.000000e+00> : vector<6x384xf32>
      %68 = tpu.matmul %67, %62, %cst_31 {dimension_numbers = #tpu.dot_dimension_numbers<[1], [0], [0], [1], [0, 0, 1, 1], [], []>} : vector<6x128xbf16>, vector<128x384xbf16>, vector<6x384xf32> -> vector<6x384xf32>
      %69 = vector.extract_strided_slice %68 {offsets = [0, 0], sizes = [6, 128], strides = [1, 1]} : vector<6x384xf32> to vector<6x128xf32>
      %70 = vector.extract_strided_slice %21 {offsets = [11, 0], sizes = [1, 128], strides = [1, 1]} : vector<167x128xf32> to vector<1x128xf32>
      %71 = vector.broadcast %70 : vector<1x128xf32> to vector<6x128xf32>
      %72 = arith.addf %69, %71 : vector<6x128xf32>
      %cst_32 = arith.constant 2.500000e-01 : f32
      %73 = vector.broadcast %cst_32 : f32 to vector<6x128xf32>
      %74 = arith.mulf %72, %73 : vector<6x128xf32>
      %75 = vector.extract_strided_slice %68 {offsets = [0, 128], sizes = [6, 128], strides = [1, 1]} : vector<6x384xf32> to vector<6x128xf32>
      %76 = vector.extract_strided_slice %21 {offsets = [12, 0], sizes = [1, 128], strides = [1, 1]} : vector<167x128xf32> to vector<1x128xf32>
      %77 = vector.broadcast %76 : vector<1x128xf32> to vector<6x128xf32>
      %78 = arith.addf %75, %77 : vector<6x128xf32>
      %79 = vector.extract_strided_slice %68 {offsets = [0, 256], sizes = [6, 128], strides = [1, 1]} : vector<6x384xf32> to vector<6x128xf32>
      %80 = vector.extract_strided_slice %21 {offsets = [13, 0], sizes = [1, 128], strides = [1, 1]} : vector<167x128xf32> to vector<1x128xf32>
      %81 = vector.broadcast %80 : vector<1x128xf32> to vector<6x128xf32>
      %82 = arith.addf %79, %81 : vector<6x128xf32>
      %83 = vector.extract_strided_slice %74 {offsets = [0, 0], sizes = [6, 16], strides = [1, 1]} : vector<6x128xf32> to vector<6x16xf32>
      %84 = vector.extract_strided_slice %78 {offsets = [0, 0], sizes = [6, 16], strides = [1, 1]} : vector<6x128xf32> to vector<6x16xf32>
      "tpu.trace_start"() <{level = 10 : i32, message = "qd,kd->qk"}> : () -> ()
      %cst_33 = arith.constant dense<0.000000e+00> : vector<6x6xf32>
      %85 = tpu.matmul %83, %84, %cst_33 {dimension_numbers = #tpu.dot_dimension_numbers<[1], [1], [0], [0], [0, 0, 1, 0], [], []>} : vector<6x16xf32>, vector<6x16xf32>, vector<6x6xf32> -> vector<6x6xf32>
      "tpu.trace_stop"() : () -> ()
      %86 = arith.addf %85, %59 : vector<6x6xf32>
      %87 = vector.extract_strided_slice %74 {offsets = [0, 16], sizes = [6, 16], strides = [1, 1]} : vector<6x128xf32> to vector<6x16xf32>
      %88 = vector.extract_strided_slice %78 {offsets = [0, 16], sizes = [6, 16], strides = [1, 1]} : vector<6x128xf32> to vector<6x16xf32>
      "tpu.trace_start"() <{level = 10 : i32, message = "qd,kd->qk"}> : () -> ()
      %cst_34 = arith.constant dense<0.000000e+00> : vector<6x6xf32>
      %89 = tpu.matmul %87, %88, %cst_34 {dimension_numbers = #tpu.dot_dimension_numbers<[1], [1], [0], [0], [0, 0, 1, 0], [], []>} : vector<6x16xf32>, vector<6x16xf32>, vector<6x6xf32> -> vector<6x6xf32>
      "tpu.trace_stop"() : () -> ()
      %90 = arith.addf %89, %59 : vector<6x6xf32>
      %91 = vector.extract_strided_slice %74 {offsets = [0, 32], sizes = [6, 16], strides = [1, 1]} : vector<6x128xf32> to vector<6x16xf32>
      %92 = vector.extract_strided_slice %78 {offsets = [0, 32], sizes = [6, 16], strides = [1, 1]} : vector<6x128xf32> to vector<6x16xf32>
      "tpu.trace_start"() <{level = 10 : i32, message = "qd,kd->qk"}> : () -> ()
      %cst_35 = arith.constant dense<0.000000e+00> : vector<6x6xf32>
      %93 = tpu.matmul %91, %92, %cst_35 {dimension_numbers = #tpu.dot_dimension_numbers<[1], [1], [0], [0], [0, 0, 1, 0], [], []>} : vector<6x16xf32>, vector<6x16xf32>, vector<6x6xf32> -> vector<6x6xf32>
      "tpu.trace_stop"() : () -> ()
      %94 = arith.addf %93, %59 : vector<6x6xf32>
      %95 = vector.extract_strided_slice %74 {offsets = [0, 48], sizes = [6, 16], strides = [1, 1]} : vector<6x128xf32> to vector<6x16xf32>
      %96 = vector.extract_strided_slice %78 {offsets = [0, 48], sizes = [6, 16], strides = [1, 1]} : vector<6x128xf32> to vector<6x16xf32>
      "tpu.trace_start"() <{level = 10 : i32, message = "qd,kd->qk"}> : () -> ()
      %cst_36 = arith.constant dense<0.000000e+00> : vector<6x6xf32>
      %97 = tpu.matmul %95, %96, %cst_36 {dimension_numbers = #tpu.dot_dimension_numbers<[1], [1], [0], [0], [0, 0, 1, 0], [], []>} : vector<6x16xf32>, vector<6x16xf32>, vector<6x6xf32> -> vector<6x6xf32>
      "tpu.trace_stop"() : () -> ()
      %98 = arith.addf %97, %59 : vector<6x6xf32>
      %99 = vector.extract_strided_slice %74 {offsets = [0, 64], sizes = [6, 16], strides = [1, 1]} : vector<6x128xf32> to vector<6x16xf32>
      %100 = vector.extract_strided_slice %78 {offsets = [0, 64], sizes = [6, 16], strides = [1, 1]} : vector<6x128xf32> to vector<6x16xf32>
      "tpu.trace_start"() <{level = 10 : i32, message = "qd,kd->qk"}> : () -> ()
      %cst_37 = arith.constant dense<0.000000e+00> : vector<6x6xf32>
      %101 = tpu.matmul %99, %100, %cst_37 {dimension_numbers = #tpu.dot_dimension_numbers<[1], [1], [0], [0], [0, 0, 1, 0], [], []>} : vector<6x16xf32>, vector<6x16xf32>, vector<6x6xf32> -> vector<6x6xf32>
      "tpu.trace_stop"() : () -> ()
      %102 = arith.addf %101, %59 : vector<6x6xf32>
      %103 = vector.extract_strided_slice %74 {offsets = [0, 80], sizes = [6, 16], strides = [1, 1]} : vector<6x128xf32> to vector<6x16xf32>
      %104 = vector.extract_strided_slice %78 {offsets = [0, 80], sizes = [6, 16], strides = [1, 1]} : vector<6x128xf32> to vector<6x16xf32>
      "tpu.trace_start"() <{level = 10 : i32, message = "qd,kd->qk"}> : () -> ()
      %cst_38 = arith.constant dense<0.000000e+00> : vector<6x6xf32>
      %105 = tpu.matmul %103, %104, %cst_38 {dimension_numbers = #tpu.dot_dimension_numbers<[1], [1], [0], [0], [0, 0, 1, 0], [], []>} : vector<6x16xf32>, vector<6x16xf32>, vector<6x6xf32> -> vector<6x6xf32>
      "tpu.trace_stop"() : () -> ()
      %106 = arith.addf %105, %59 : vector<6x6xf32>
      %107 = vector.extract_strided_slice %74 {offsets = [0, 96], sizes = [6, 16], strides = [1, 1]} : vector<6x128xf32> to vector<6x16xf32>
      %108 = vector.extract_strided_slice %78 {offsets = [0, 96], sizes = [6, 16], strides = [1, 1]} : vector<6x128xf32> to vector<6x16xf32>
      "tpu.trace_start"() <{level = 10 : i32, message = "qd,kd->qk"}> : () -> ()
      %cst_39 = arith.constant dense<0.000000e+00> : vector<6x6xf32>
      %109 = tpu.matmul %107, %108, %cst_39 {dimension_numbers = #tpu.dot_dimension_numbers<[1], [1], [0], [0], [0, 0, 1, 0], [], []>} : vector<6x16xf32>, vector<6x16xf32>, vector<6x6xf32> -> vector<6x6xf32>
      "tpu.trace_stop"() : () -> ()
      %110 = arith.addf %109, %59 : vector<6x6xf32>
      %111 = vector.extract_strided_slice %74 {offsets = [0, 112], sizes = [6, 16], strides = [1, 1]} : vector<6x128xf32> to vector<6x16xf32>
      %112 = vector.extract_strided_slice %78 {offsets = [0, 112], sizes = [6, 16], strides = [1, 1]} : vector<6x128xf32> to vector<6x16xf32>
      "tpu.trace_start"() <{level = 10 : i32, message = "qd,kd->qk"}> : () -> ()
      %cst_40 = arith.constant dense<0.000000e+00> : vector<6x6xf32>
      %113 = tpu.matmul %111, %112, %cst_40 {dimension_numbers = #tpu.dot_dimension_numbers<[1], [1], [0], [0], [0, 0, 1, 0], [], []>} : vector<6x16xf32>, vector<6x16xf32>, vector<6x6xf32> -> vector<6x6xf32>
      "tpu.trace_stop"() : () -> ()
      %114 = arith.addf %113, %59 : vector<6x6xf32>
      %115 = tpu.concatenate %86, %90, %94, %98, %102, %106, %110, %114 in 0 : vector<6x6xf32>, vector<6x6xf32>, vector<6x6xf32>, vector<6x6xf32>, vector<6x6xf32>, vector<6x6xf32>, vector<6x6xf32>, vector<6x6xf32> -> vector<48x6xf32>
      %cst_41 = arith.constant dense<0xFF800000> : vector<48xf32>
      %116 = vector.multi_reduction <maximumf>, %115, %cst_41 [1] : vector<48x6xf32> to vector<48xf32>
      %117 = vector.shape_cast %116 : vector<48xf32> to vector<48x1xf32>
      %118 = vector.broadcast %117 : vector<48x1xf32> to vector<48x6xf32>
      %119 = arith.subf %115, %118 : vector<48x6xf32>
      %120 = math.exp %119 : vector<48x6xf32>
      %cst_42 = arith.constant dense<0.000000e+00> : vector<48xf32>
      %121 = vector.multi_reduction <add>, %120, %cst_42 [1] : vector<48x6xf32> to vector<48xf32>
      %122 = vector.shape_cast %121 : vector<48xf32> to vector<48x1xf32>
      %123 = vector.broadcast %122 : vector<48x1xf32> to vector<48x6xf32>
      %124 = arith.divf %120, %123 : vector<48x6xf32>
      %125 = vector.extract_strided_slice %124 {offsets = [0, 0], sizes = [6, 6], strides = [1, 1]} : vector<48x6xf32> to vector<6x6xf32>
      %126 = vector.extract_strided_slice %82 {offsets = [0, 0], sizes = [6, 16], strides = [1, 1]} : vector<6x128xf32> to vector<6x16xf32>
      %cst_43 = arith.constant dense<0.000000e+00> : vector<6x16xf32>
      %127 = tpu.matmul %125, %126, %cst_43 {dimension_numbers = #tpu.dot_dimension_numbers<[1], [0], [0], [1], [0, 0, 1, 1], [], []>} : vector<6x6xf32>, vector<6x16xf32>, vector<6x16xf32> -> vector<6x16xf32>
      %128 = vector.extract_strided_slice %124 {offsets = [6, 0], sizes = [6, 6], strides = [1, 1]} : vector<48x6xf32> to vector<6x6xf32>
      %129 = vector.extract_strided_slice %82 {offsets = [0, 16], sizes = [6, 16], strides = [1, 1]} : vector<6x128xf32> to vector<6x16xf32>
      %cst_44 = arith.constant dense<0.000000e+00> : vector<6x16xf32>
      %130 = tpu.matmul %128, %129, %cst_44 {dimension_numbers = #tpu.dot_dimension_numbers<[1], [0], [0], [1], [0, 0, 1, 1], [], []>} : vector<6x6xf32>, vector<6x16xf32>, vector<6x16xf32> -> vector<6x16xf32>
      %131 = vector.extract_strided_slice %124 {offsets = [12, 0], sizes = [6, 6], strides = [1, 1]} : vector<48x6xf32> to vector<6x6xf32>
      %132 = vector.extract_strided_slice %82 {offsets = [0, 32], sizes = [6, 16], strides = [1, 1]} : vector<6x128xf32> to vector<6x16xf32>
      %cst_45 = arith.constant dense<0.000000e+00> : vector<6x16xf32>
      %133 = tpu.matmul %131, %132, %cst_45 {dimension_numbers = #tpu.dot_dimension_numbers<[1], [0], [0], [1], [0, 0, 1, 1], [], []>} : vector<6x6xf32>, vector<6x16xf32>, vector<6x16xf32> -> vector<6x16xf32>
      %134 = vector.extract_strided_slice %124 {offsets = [18, 0], sizes = [6, 6], strides = [1, 1]} : vector<48x6xf32> to vector<6x6xf32>
      %135 = vector.extract_strided_slice %82 {offsets = [0, 48], sizes = [6, 16], strides = [1, 1]} : vector<6x128xf32> to vector<6x16xf32>
      %cst_46 = arith.constant dense<0.000000e+00> : vector<6x16xf32>
      %136 = tpu.matmul %134, %135, %cst_46 {dimension_numbers = #tpu.dot_dimension_numbers<[1], [0], [0], [1], [0, 0, 1, 1], [], []>} : vector<6x6xf32>, vector<6x16xf32>, vector<6x16xf32> -> vector<6x16xf32>
      %137 = vector.extract_strided_slice %124 {offsets = [24, 0], sizes = [6, 6], strides = [1, 1]} : vector<48x6xf32> to vector<6x6xf32>
      %138 = vector.extract_strided_slice %82 {offsets = [0, 64], sizes = [6, 16], strides = [1, 1]} : vector<6x128xf32> to vector<6x16xf32>
      %cst_47 = arith.constant dense<0.000000e+00> : vector<6x16xf32>
      %139 = tpu.matmul %137, %138, %cst_47 {dimension_numbers = #tpu.dot_dimension_numbers<[1], [0], [0], [1], [0, 0, 1, 1], [], []>} : vector<6x6xf32>, vector<6x16xf32>, vector<6x16xf32> -> vector<6x16xf32>
      %140 = vector.extract_strided_slice %124 {offsets = [30, 0], sizes = [6, 6], strides = [1, 1]} : vector<48x6xf32> to vector<6x6xf32>
      %141 = vector.extract_strided_slice %82 {offsets = [0, 80], sizes = [6, 16], strides = [1, 1]} : vector<6x128xf32> to vector<6x16xf32>
      %cst_48 = arith.constant dense<0.000000e+00> : vector<6x16xf32>
      %142 = tpu.matmul %140, %141, %cst_48 {dimension_numbers = #tpu.dot_dimension_numbers<[1], [0], [0], [1], [0, 0, 1, 1], [], []>} : vector<6x6xf32>, vector<6x16xf32>, vector<6x16xf32> -> vector<6x16xf32>
      %143 = vector.extract_strided_slice %124 {offsets = [36, 0], sizes = [6, 6], strides = [1, 1]} : vector<48x6xf32> to vector<6x6xf32>
      %144 = vector.extract_strided_slice %82 {offsets = [0, 96], sizes = [6, 16], strides = [1, 1]} : vector<6x128xf32> to vector<6x16xf32>
      %cst_49 = arith.constant dense<0.000000e+00> : vector<6x16xf32>
      %145 = tpu.matmul %143, %144, %cst_49 {dimension_numbers = #tpu.dot_dimension_numbers<[1], [0], [0], [1], [0, 0, 1, 1], [], []>} : vector<6x6xf32>, vector<6x16xf32>, vector<6x16xf32> -> vector<6x16xf32>
      %146 = vector.extract_strided_slice %124 {offsets = [42, 0], sizes = [6, 6], strides = [1, 1]} : vector<48x6xf32> to vector<6x6xf32>
      %147 = vector.extract_strided_slice %82 {offsets = [0, 112], sizes = [6, 16], strides = [1, 1]} : vector<6x128xf32> to vector<6x16xf32>
      %cst_50 = arith.constant dense<0.000000e+00> : vector<6x16xf32>
      %148 = tpu.matmul %146, %147, %cst_50 {dimension_numbers = #tpu.dot_dimension_numbers<[1], [0], [0], [1], [0, 0, 1, 1], [], []>} : vector<6x6xf32>, vector<6x16xf32>, vector<6x16xf32> -> vector<6x16xf32>
      %149 = tpu.concatenate %127, %130, %133, %136, %139, %142, %145, %148 in 1 : vector<6x16xf32>, vector<6x16xf32>, vector<6x16xf32>, vector<6x16xf32>, vector<6x16xf32>, vector<6x16xf32>, vector<6x16xf32>, vector<6x16xf32> -> vector<6x128xf32>
      %150 = arith.truncf %149 : vector<6x128xf32> to vector<6x128xbf16>
      %cst_51 = arith.constant dense<0.000000e+00> : vector<6x128xf32>
      %151 = tpu.matmul %150, %63, %cst_51 {dimension_numbers = #tpu.dot_dimension_numbers<[1], [0], [0], [1], [0, 0, 1, 1], [], []>} : vector<6x128xbf16>, vector<128x128xbf16>, vector<6x128xf32> -> vector<6x128xf32>
      %152 = vector.extract_strided_slice %21 {offsets = [14, 0], sizes = [1, 128], strides = [1, 1]} : vector<167x128xf32> to vector<1x128xf32>
      %153 = vector.broadcast %152 : vector<1x128xf32> to vector<6x128xf32>
      %154 = arith.addf %151, %153 : vector<6x128xf32>
      %155 = arith.addf %58, %154 : vector<6x128xf32>
      %156 = vector.extract_strided_slice %21 {offsets = [18, 0], sizes = [1, 128], strides = [1, 1]} : vector<167x128xf32> to vector<1x128xf32>
      %157 = vector.extract_strided_slice %21 {offsets = [19, 0], sizes = [1, 128], strides = [1, 1]} : vector<167x128xf32> to vector<1x128xf32>
      %cst_52 = arith.constant dense<0.000000e+00> : vector<6xf32>
      %158 = vector.multi_reduction <add>, %155, %cst_52 [1] : vector<6x128xf32> to vector<6xf32>
      %159 = vector.shape_cast %158 : vector<6xf32> to vector<6x1xf32>
      %cst_53 = arith.constant 1.280000e+02 : f32
      %160 = vector.broadcast %cst_53 : f32 to vector<6x1xf32>
      %161 = arith.divf %159, %160 : vector<6x1xf32>
      %162 = vector.broadcast %161 : vector<6x1xf32> to vector<6x128xf32>
      %163 = arith.subf %155, %162 : vector<6x128xf32>
      %164 = arith.mulf %163, %163 : vector<6x128xf32>
      %cst_54 = arith.constant dense<0.000000e+00> : vector<6xf32>
      %165 = vector.multi_reduction <add>, %164, %cst_54 [1] : vector<6x128xf32> to vector<6xf32>
      %166 = vector.shape_cast %165 : vector<6xf32> to vector<6x1xf32>
      %cst_55 = arith.constant 1.280000e+02 : f32
      %167 = vector.broadcast %cst_55 : f32 to vector<6x1xf32>
      %168 = arith.divf %166, %167 : vector<6x1xf32>
      %169 = vector.broadcast %161 : vector<6x1xf32> to vector<6x128xf32>
      %170 = arith.subf %155, %169 : vector<6x128xf32>
      %cst_56 = arith.constant 9.99999974E-6 : f32
      %171 = vector.broadcast %cst_56 : f32 to vector<6x1xf32>
      %172 = arith.addf %168, %171 : vector<6x1xf32>
      %173 = math.rsqrt %172 : vector<6x1xf32>
      %174 = vector.broadcast %173 : vector<6x1xf32> to vector<6x128xf32>
      %175 = arith.mulf %170, %174 : vector<6x128xf32>
      %176 = vector.broadcast %156 : vector<1x128xf32> to vector<6x128xf32>
      %177 = arith.mulf %175, %176 : vector<6x128xf32>
      %178 = vector.broadcast %157 : vector<1x128xf32> to vector<6x128xf32>
      %179 = arith.addf %177, %178 : vector<6x128xf32>
      %180 = vector.extract_strided_slice %21 {offsets = [15, 0], sizes = [1, 128], strides = [1, 1]} : vector<167x128xf32> to vector<1x128xf32>
      %181 = vector.extract_strided_slice %21 {offsets = [16, 0], sizes = [1, 128], strides = [1, 1]} : vector<167x128xf32> to vector<1x128xf32>
      %182 = tpu.concatenate %180, %181 in 1 : vector<1x128xf32>, vector<1x128xf32> -> vector<1x256xf32>
      %183 = arith.truncf %179 : vector<6x128xf32> to vector<6x128xbf16>
      %cst_57 = arith.constant dense<0.000000e+00> : vector<6x256xf32>
      %184 = tpu.matmul %183, %64, %cst_57 {dimension_numbers = #tpu.dot_dimension_numbers<[1], [0], [0], [1], [0, 0, 1, 1], [], []>} : vector<6x128xbf16>, vector<128x256xbf16>, vector<6x256xf32> -> vector<6x256xf32>
      %185 = vector.broadcast %182 : vector<1x256xf32> to vector<6x256xf32>
      %186 = arith.addf %184, %185 : vector<6x256xf32>
      %cst_58 = arith.constant 0.000000e+00 : f32
      %187 = vector.broadcast %cst_58 : f32 to vector<6x256xf32>
      %188 = arith.maximumf %186, %187 : vector<6x256xf32>
      %189 = vector.extract_strided_slice %188 {offsets = [0, 0], sizes = [6, 128], strides = [1, 1]} : vector<6x256xf32> to vector<6x128xf32>
      %190 = arith.truncf %189 : vector<6x128xf32> to vector<6x128xbf16>
      %cst_59 = arith.constant dense<0.000000e+00> : vector<6x128xf32>
      %191 = tpu.matmul %190, %65, %cst_59 {dimension_numbers = #tpu.dot_dimension_numbers<[1], [0], [0], [1], [0, 0, 1, 1], [], []>} : vector<6x128xbf16>, vector<128x128xbf16>, vector<6x128xf32> -> vector<6x128xf32>
      %192 = vector.extract_strided_slice %188 {offsets = [0, 128], sizes = [6, 128], strides = [1, 1]} : vector<6x256xf32> to vector<6x128xf32>
      %193 = arith.truncf %192 : vector<6x128xf32> to vector<6x128xbf16>
      %cst_60 = arith.constant dense<0.000000e+00> : vector<6x128xf32>
      %194 = tpu.matmul %193, %66, %cst_60 {dimension_numbers = #tpu.dot_dimension_numbers<[1], [0], [0], [1], [0, 0, 1, 1], [], []>} : vector<6x128xbf16>, vector<128x128xbf16>, vector<6x128xf32> -> vector<6x128xf32>
      %195 = arith.addf %191, %194 : vector<6x128xf32>
      %196 = vector.extract_strided_slice %21 {offsets = [17, 0], sizes = [1, 128], strides = [1, 1]} : vector<167x128xf32> to vector<1x128xf32>
      %197 = vector.broadcast %196 : vector<1x128xf32> to vector<6x128xf32>
      %198 = arith.addf %195, %197 : vector<6x128xf32>
      %199 = arith.addf %179, %198 : vector<6x128xf32>
      %200 = vector.extract_strided_slice %21 {offsets = [20, 0], sizes = [1, 128], strides = [1, 1]} : vector<167x128xf32> to vector<1x128xf32>
      %201 = vector.extract_strided_slice %21 {offsets = [21, 0], sizes = [1, 128], strides = [1, 1]} : vector<167x128xf32> to vector<1x128xf32>
      %cst_61 = arith.constant dense<0.000000e+00> : vector<6xf32>
      %202 = vector.multi_reduction <add>, %199, %cst_61 [1] : vector<6x128xf32> to vector<6xf32>
      %203 = vector.shape_cast %202 : vector<6xf32> to vector<6x1xf32>
      %cst_62 = arith.constant 1.280000e+02 : f32
      %204 = vector.broadcast %cst_62 : f32 to vector<6x1xf32>
      %205 = arith.divf %203, %204 : vector<6x1xf32>
      %206 = vector.broadcast %205 : vector<6x1xf32> to vector<6x128xf32>
      %207 = arith.subf %199, %206 : vector<6x128xf32>
      %208 = arith.mulf %207, %207 : vector<6x128xf32>
      %cst_63 = arith.constant dense<0.000000e+00> : vector<6xf32>
      %209 = vector.multi_reduction <add>, %208, %cst_63 [1] : vector<6x128xf32> to vector<6xf32>
      %210 = vector.shape_cast %209 : vector<6xf32> to vector<6x1xf32>
      %cst_64 = arith.constant 1.280000e+02 : f32
      %211 = vector.broadcast %cst_64 : f32 to vector<6x1xf32>
      %212 = arith.divf %210, %211 : vector<6x1xf32>
      %213 = vector.broadcast %205 : vector<6x1xf32> to vector<6x128xf32>
      %214 = arith.subf %199, %213 : vector<6x128xf32>
      %cst_65 = arith.constant 9.99999974E-6 : f32
      %215 = vector.broadcast %cst_65 : f32 to vector<6x1xf32>
      %216 = arith.addf %212, %215 : vector<6x1xf32>
      %217 = math.rsqrt %216 : vector<6x1xf32>
      %218 = vector.broadcast %217 : vector<6x1xf32> to vector<6x128xf32>
      %219 = arith.mulf %214, %218 : vector<6x128xf32>
      %220 = vector.broadcast %200 : vector<1x128xf32> to vector<6x128xf32>
      %221 = arith.mulf %219, %220 : vector<6x128xf32>
      %222 = vector.broadcast %201 : vector<1x128xf32> to vector<6x128xf32>
      %223 = arith.addf %221, %222 : vector<6x128xf32>
      %c1 = arith.constant 1 : index
      %c0_66 = arith.constant 0 : index
      %c0_67 = arith.constant 0 : index
      %224 = vector.load %arg5[%c1, %c0_66, %c0_67] : memref<2x128x1024xbf16, #tpu.memory_space<vmem>>, vector<1x128x1024xbf16>
      %225 = vector.shape_cast %224 : vector<1x128x1024xbf16> to vector<128x1024xbf16>
      %226 = vector.extract_strided_slice %225 {offsets = [0, 0], sizes = [128, 384], strides = [1, 1]} : vector<128x1024xbf16> to vector<128x384xbf16>
      %227 = vector.extract_strided_slice %225 {offsets = [0, 384], sizes = [128, 128], strides = [1, 1]} : vector<128x1024xbf16> to vector<128x128xbf16>
      %228 = vector.extract_strided_slice %225 {offsets = [0, 512], sizes = [128, 256], strides = [1, 1]} : vector<128x1024xbf16> to vector<128x256xbf16>
      %229 = vector.extract_strided_slice %225 {offsets = [0, 768], sizes = [128, 128], strides = [1, 1]} : vector<128x1024xbf16> to vector<128x128xbf16>
      %230 = vector.extract_strided_slice %225 {offsets = [0, 896], sizes = [128, 128], strides = [1, 1]} : vector<128x1024xbf16> to vector<128x128xbf16>
      %231 = arith.truncf %223 : vector<6x128xf32> to vector<6x128xbf16>
      %cst_68 = arith.constant dense<0.000000e+00> : vector<6x384xf32>
      %232 = tpu.matmul %231, %226, %cst_68 {dimension_numbers = #tpu.dot_dimension_numbers<[1], [0], [0], [1], [0, 0, 1, 1], [], []>} : vector<6x128xbf16>, vector<128x384xbf16>, vector<6x384xf32> -> vector<6x384xf32>
      %233 = vector.extract_strided_slice %232 {offsets = [0, 0], sizes = [6, 128], strides = [1, 1]} : vector<6x384xf32> to vector<6x128xf32>
      %234 = vector.extract_strided_slice %21 {offsets = [22, 0], sizes = [1, 128], strides = [1, 1]} : vector<167x128xf32> to vector<1x128xf32>
      %235 = vector.broadcast %234 : vector<1x128xf32> to vector<6x128xf32>
      %236 = arith.addf %233, %235 : vector<6x128xf32>
      %cst_69 = arith.constant 2.500000e-01 : f32
      %237 = vector.broadcast %cst_69 : f32 to vector<6x128xf32>
      %238 = arith.mulf %236, %237 : vector<6x128xf32>
      %239 = vector.extract_strided_slice %232 {offsets = [0, 128], sizes = [6, 128], strides = [1, 1]} : vector<6x384xf32> to vector<6x128xf32>
      %240 = vector.extract_strided_slice %21 {offsets = [23, 0], sizes = [1, 128], strides = [1, 1]} : vector<167x128xf32> to vector<1x128xf32>
      %241 = vector.broadcast %240 : vector<1x128xf32> to vector<6x128xf32>
      %242 = arith.addf %239, %241 : vector<6x128xf32>
      %243 = vector.extract_strided_slice %232 {offsets = [0, 256], sizes = [6, 128], strides = [1, 1]} : vector<6x384xf32> to vector<6x128xf32>
      %244 = vector.extract_strided_slice %21 {offsets = [24, 0], sizes = [1, 128], strides = [1, 1]} : vector<167x128xf32> to vector<1x128xf32>
      %245 = vector.broadcast %244 : vector<1x128xf32> to vector<6x128xf32>
      %246 = arith.addf %243, %245 : vector<6x128xf32>
      %247 = vector.extract_strided_slice %238 {offsets = [0, 0], sizes = [6, 16], strides = [1, 1]} : vector<6x128xf32> to vector<6x16xf32>
      %248 = vector.extract_strided_slice %242 {offsets = [0, 0], sizes = [6, 16], strides = [1, 1]} : vector<6x128xf32> to vector<6x16xf32>
      "tpu.trace_start"() <{level = 10 : i32, message = "qd,kd->qk"}> : () -> ()
      %cst_70 = arith.constant dense<0.000000e+00> : vector<6x6xf32>
      %249 = tpu.matmul %247, %248, %cst_70 {dimension_numbers = #tpu.dot_dimension_numbers<[1], [1], [0], [0], [0, 0, 1, 0], [], []>} : vector<6x16xf32>, vector<6x16xf32>, vector<6x6xf32> -> vector<6x6xf32>
      "tpu.trace_stop"() : () -> ()
      %250 = arith.addf %249, %59 : vector<6x6xf32>
      %251 = vector.extract_strided_slice %238 {offsets = [0, 16], sizes = [6, 16], strides = [1, 1]} : vector<6x128xf32> to vector<6x16xf32>
      %252 = vector.extract_strided_slice %242 {offsets = [0, 16], sizes = [6, 16], strides = [1, 1]} : vector<6x128xf32> to vector<6x16xf32>
      "tpu.trace_start"() <{level = 10 : i32, message = "qd,kd->qk"}> : () -> ()
      %cst_71 = arith.constant dense<0.000000e+00> : vector<6x6xf32>
      %253 = tpu.matmul %251, %252, %cst_71 {dimension_numbers = #tpu.dot_dimension_numbers<[1], [1], [0], [0], [0, 0, 1, 0], [], []>} : vector<6x16xf32>, vector<6x16xf32>, vector<6x6xf32> -> vector<6x6xf32>
      "tpu.trace_stop"() : () -> ()
      %254 = arith.addf %253, %59 : vector<6x6xf32>
      %255 = vector.extract_strided_slice %238 {offsets = [0, 32], sizes = [6, 16], strides = [1, 1]} : vector<6x128xf32> to vector<6x16xf32>
      %256 = vector.extract_strided_slice %242 {offsets = [0, 32], sizes = [6, 16], strides = [1, 1]} : vector<6x128xf32> to vector<6x16xf32>
      "tpu.trace_start"() <{level = 10 : i32, message = "qd,kd->qk"}> : () -> ()
      %cst_72 = arith.constant dense<0.000000e+00> : vector<6x6xf32>
      %257 = tpu.matmul %255, %256, %cst_72 {dimension_numbers = #tpu.dot_dimension_numbers<[1], [1], [0], [0], [0, 0, 1, 0], [], []>} : vector<6x16xf32>, vector<6x16xf32>, vector<6x6xf32> -> vector<6x6xf32>
      "tpu.trace_stop"() : () -> ()
      %258 = arith.addf %257, %59 : vector<6x6xf32>
      %259 = vector.extract_strided_slice %238 {offsets = [0, 48], sizes = [6, 16], strides = [1, 1]} : vector<6x128xf32> to vector<6x16xf32>
      %260 = vector.extract_strided_slice %242 {offsets = [0, 48], sizes = [6, 16], strides = [1, 1]} : vector<6x128xf32> to vector<6x16xf32>
      "tpu.trace_start"() <{level = 10 : i32, message = "qd,kd->qk"}> : () -> ()
      %cst_73 = arith.constant dense<0.000000e+00> : vector<6x6xf32>
      %261 = tpu.matmul %259, %260, %cst_73 {dimension_numbers = #tpu.dot_dimension_numbers<[1], [1], [0], [0], [0, 0, 1, 0], [], []>} : vector<6x16xf32>, vector<6x16xf32>, vector<6x6xf32> -> vector<6x6xf32>
      "tpu.trace_stop"() : () -> ()
      %262 = arith.addf %261, %59 : vector<6x6xf32>
      %263 = vector.extract_strided_slice %238 {offsets = [0, 64], sizes = [6, 16], strides = [1, 1]} : vector<6x128xf32> to vector<6x16xf32>
      %264 = vector.extract_strided_slice %242 {offsets = [0, 64], sizes = [6, 16], strides = [1, 1]} : vector<6x128xf32> to vector<6x16xf32>
      "tpu.trace_start"() <{level = 10 : i32, message = "qd,kd->qk"}> : () -> ()
      %cst_74 = arith.constant dense<0.000000e+00> : vector<6x6xf32>
      %265 = tpu.matmul %263, %264, %cst_74 {dimension_numbers = #tpu.dot_dimension_numbers<[1], [1], [0], [0], [0, 0, 1, 0], [], []>} : vector<6x16xf32>, vector<6x16xf32>, vector<6x6xf32> -> vector<6x6xf32>
      "tpu.trace_stop"() : () -> ()
      %266 = arith.addf %265, %59 : vector<6x6xf32>
      %267 = vector.extract_strided_slice %238 {offsets = [0, 80], sizes = [6, 16], strides = [1, 1]} : vector<6x128xf32> to vector<6x16xf32>
      %268 = vector.extract_strided_slice %242 {offsets = [0, 80], sizes = [6, 16], strides = [1, 1]} : vector<6x128xf32> to vector<6x16xf32>
      "tpu.trace_start"() <{level = 10 : i32, message = "qd,kd->qk"}> : () -> ()
      %cst_75 = arith.constant dense<0.000000e+00> : vector<6x6xf32>
      %269 = tpu.matmul %267, %268, %cst_75 {dimension_numbers = #tpu.dot_dimension_numbers<[1], [1], [0], [0], [0, 0, 1, 0], [], []>} : vector<6x16xf32>, vector<6x16xf32>, vector<6x6xf32> -> vector<6x6xf32>
      "tpu.trace_stop"() : () -> ()
      %270 = arith.addf %269, %59 : vector<6x6xf32>
      %271 = vector.extract_strided_slice %238 {offsets = [0, 96], sizes = [6, 16], strides = [1, 1]} : vector<6x128xf32> to vector<6x16xf32>
      %272 = vector.extract_strided_slice %242 {offsets = [0, 96], sizes = [6, 16], strides = [1, 1]} : vector<6x128xf32> to vector<6x16xf32>
      "tpu.trace_start"() <{level = 10 : i32, message = "qd,kd->qk"}> : () -> ()
      %cst_76 = arith.constant dense<0.000000e+00> : vector<6x6xf32>
      %273 = tpu.matmul %271, %272, %cst_76 {dimension_numbers = #tpu.dot_dimension_numbers<[1], [1], [0], [0], [0, 0, 1, 0], [], []>} : vector<6x16xf32>, vector<6x16xf32>, vector<6x6xf32> -> vector<6x6xf32>
      "tpu.trace_stop"() : () -> ()
      %274 = arith.addf %273, %59 : vector<6x6xf32>
      %275 = vector.extract_strided_slice %238 {offsets = [0, 112], sizes = [6, 16], strides = [1, 1]} : vector<6x128xf32> to vector<6x16xf32>
      %276 = vector.extract_strided_slice %242 {offsets = [0, 112], sizes = [6, 16], strides = [1, 1]} : vector<6x128xf32> to vector<6x16xf32>
      "tpu.trace_start"() <{level = 10 : i32, message = "qd,kd->qk"}> : () -> ()
      %cst_77 = arith.constant dense<0.000000e+00> : vector<6x6xf32>
      %277 = tpu.matmul %275, %276, %cst_77 {dimension_numbers = #tpu.dot_dimension_numbers<[1], [1], [0], [0], [0, 0, 1, 0], [], []>} : vector<6x16xf32>, vector<6x16xf32>, vector<6x6xf32> -> vector<6x6xf32>
      "tpu.trace_stop"() : () -> ()
      %278 = arith.addf %277, %59 : vector<6x6xf32>
      %279 = tpu.concatenate %250, %254, %258, %262, %266, %270, %274, %278 in 0 : vector<6x6xf32>, vector<6x6xf32>, vector<6x6xf32>, vector<6x6xf32>, vector<6x6xf32>, vector<6x6xf32>, vector<6x6xf32>, vector<6x6xf32> -> vector<48x6xf32>
      %cst_78 = arith.constant dense<0xFF800000> : vector<48xf32>
      %280 = vector.multi_reduction <maximumf>, %279, %cst_78 [1] : vector<48x6xf32> to vector<48xf32>
      %281 = vector.shape_cast %280 : vector<48xf32> to vector<48x1xf32>
      %282 = vector.broadcast %281 : vector<48x1xf32> to vector<48x6xf32>
      %283 = arith.subf %279, %282 : vector<48x6xf32>
      %284 = math.exp %283 : vector<48x6xf32>
      %cst_79 = arith.constant dense<0.000000e+00> : vector<48xf32>
      %285 = vector.multi_reduction <add>, %284, %cst_79 [1] : vector<48x6xf32> to vector<48xf32>
      %286 = vector.shape_cast %285 : vector<48xf32> to vector<48x1xf32>
      %287 = vector.broadcast %286 : vector<48x1xf32> to vector<48x6xf32>
      %288 = arith.divf %284, %287 : vector<48x6xf32>
      %289 = vector.extract_strided_slice %288 {offsets = [0, 0], sizes = [6, 6], strides = [1, 1]} : vector<48x6xf32> to vector<6x6xf32>
      %290 = vector.extract_strided_slice %246 {offsets = [0, 0], sizes = [6, 16], strides = [1, 1]} : vector<6x128xf32> to vector<6x16xf32>
      %cst_80 = arith.constant dense<0.000000e+00> : vector<6x16xf32>
      %291 = tpu.matmul %289, %290, %cst_80 {dimension_numbers = #tpu.dot_dimension_numbers<[1], [0], [0], [1], [0, 0, 1, 1], [], []>} : vector<6x6xf32>, vector<6x16xf32>, vector<6x16xf32> -> vector<6x16xf32>
      %292 = vector.extract_strided_slice %288 {offsets = [6, 0], sizes = [6, 6], strides = [1, 1]} : vector<48x6xf32> to vector<6x6xf32>
      %293 = vector.extract_strided_slice %246 {offsets = [0, 16], sizes = [6, 16], strides = [1, 1]} : vector<6x128xf32> to vector<6x16xf32>
      %cst_81 = arith.constant dense<0.000000e+00> : vector<6x16xf32>
      %294 = tpu.matmul %292, %293, %cst_81 {dimension_numbers = #tpu.dot_dimension_numbers<[1], [0], [0], [1], [0, 0, 1, 1], [], []>} : vector<6x6xf32>, vector<6x16xf32>, vector<6x16xf32> -> vector<6x16xf32>
      %295 = vector.extract_strided_slice %288 {offsets = [12, 0], sizes = [6, 6], strides = [1, 1]} : vector<48x6xf32> to vector<6x6xf32>
      %296 = vector.extract_strided_slice %246 {offsets = [0, 32], sizes = [6, 16], strides = [1, 1]} : vector<6x128xf32> to vector<6x16xf32>
      %cst_82 = arith.constant dense<0.000000e+00> : vector<6x16xf32>
      %297 = tpu.matmul %295, %296, %cst_82 {dimension_numbers = #tpu.dot_dimension_numbers<[1], [0], [0], [1], [0, 0, 1, 1], [], []>} : vector<6x6xf32>, vector<6x16xf32>, vector<6x16xf32> -> vector<6x16xf32>
      %298 = vector.extract_strided_slice %288 {offsets = [18, 0], sizes = [6, 6], strides = [1, 1]} : vector<48x6xf32> to vector<6x6xf32>
      %299 = vector.extract_strided_slice %246 {offsets = [0, 48], sizes = [6, 16], strides = [1, 1]} : vector<6x128xf32> to vector<6x16xf32>
      %cst_83 = arith.constant dense<0.000000e+00> : vector<6x16xf32>
      %300 = tpu.matmul %298, %299, %cst_83 {dimension_numbers = #tpu.dot_dimension_numbers<[1], [0], [0], [1], [0, 0, 1, 1], [], []>} : vector<6x6xf32>, vector<6x16xf32>, vector<6x16xf32> -> vector<6x16xf32>
      %301 = vector.extract_strided_slice %288 {offsets = [24, 0], sizes = [6, 6], strides = [1, 1]} : vector<48x6xf32> to vector<6x6xf32>
      %302 = vector.extract_strided_slice %246 {offsets = [0, 64], sizes = [6, 16], strides = [1, 1]} : vector<6x128xf32> to vector<6x16xf32>
      %cst_84 = arith.constant dense<0.000000e+00> : vector<6x16xf32>
      %303 = tpu.matmul %301, %302, %cst_84 {dimension_numbers = #tpu.dot_dimension_numbers<[1], [0], [0], [1], [0, 0, 1, 1], [], []>} : vector<6x6xf32>, vector<6x16xf32>, vector<6x16xf32> -> vector<6x16xf32>
      %304 = vector.extract_strided_slice %288 {offsets = [30, 0], sizes = [6, 6], strides = [1, 1]} : vector<48x6xf32> to vector<6x6xf32>
      %305 = vector.extract_strided_slice %246 {offsets = [0, 80], sizes = [6, 16], strides = [1, 1]} : vector<6x128xf32> to vector<6x16xf32>
      %cst_85 = arith.constant dense<0.000000e+00> : vector<6x16xf32>
      %306 = tpu.matmul %304, %305, %cst_85 {dimension_numbers = #tpu.dot_dimension_numbers<[1], [0], [0], [1], [0, 0, 1, 1], [], []>} : vector<6x6xf32>, vector<6x16xf32>, vector<6x16xf32> -> vector<6x16xf32>
      %307 = vector.extract_strided_slice %288 {offsets = [36, 0], sizes = [6, 6], strides = [1, 1]} : vector<48x6xf32> to vector<6x6xf32>
      %308 = vector.extract_strided_slice %246 {offsets = [0, 96], sizes = [6, 16], strides = [1, 1]} : vector<6x128xf32> to vector<6x16xf32>
      %cst_86 = arith.constant dense<0.000000e+00> : vector<6x16xf32>
      %309 = tpu.matmul %307, %308, %cst_86 {dimension_numbers = #tpu.dot_dimension_numbers<[1], [0], [0], [1], [0, 0, 1, 1], [], []>} : vector<6x6xf32>, vector<6x16xf32>, vector<6x16xf32> -> vector<6x16xf32>
      %310 = vector.extract_strided_slice %288 {offsets = [42, 0], sizes = [6, 6], strides = [1, 1]} : vector<48x6xf32> to vector<6x6xf32>
      %311 = vector.extract_strided_slice %246 {offsets = [0, 112], sizes = [6, 16], strides = [1, 1]} : vector<6x128xf32> to vector<6x16xf32>
      %cst_87 = arith.constant dense<0.000000e+00> : vector<6x16xf32>
      %312 = tpu.matmul %310, %311, %cst_87 {dimension_numbers = #tpu.dot_dimension_numbers<[1], [0], [0], [1], [0, 0, 1, 1], [], []>} : vector<6x6xf32>, vector<6x16xf32>, vector<6x16xf32> -> vector<6x16xf32>
      %313 = tpu.concatenate %291, %294, %297, %300, %303, %306, %309, %312 in 1 : vector<6x16xf32>, vector<6x16xf32>, vector<6x16xf32>, vector<6x16xf32>, vector<6x16xf32>, vector<6x16xf32>, vector<6x16xf32>, vector<6x16xf32> -> vector<6x128xf32>
      %314 = arith.truncf %313 : vector<6x128xf32> to vector<6x128xbf16>
      %cst_88 = arith.constant dense<0.000000e+00> : vector<6x128xf32>
      %315 = tpu.matmul %314, %227, %cst_88 {dimension_numbers = #tpu.dot_dimension_numbers<[1], [0], [0], [1], [0, 0, 1, 1], [], []>} : vector<6x128xbf16>, vector<128x128xbf16>, vector<6x128xf32> -> vector<6x128xf32>
      %316 = vector.extract_strided_slice %21 {offsets = [25, 0], sizes = [1, 128], strides = [1, 1]} : vector<167x128xf32> to vector<1x128xf32>
      %317 = vector.broadcast %316 : vector<1x128xf32> to vector<6x128xf32>
      %318 = arith.addf %315, %317 : vector<6x128xf32>
      %319 = arith.addf %223, %318 : vector<6x128xf32>
      %320 = vector.extract_strided_slice %21 {offsets = [29, 0], sizes = [1, 128], strides = [1, 1]} : vector<167x128xf32> to vector<1x128xf32>
      %321 = vector.extract_strided_slice %21 {offsets = [30, 0], sizes = [1, 128], strides = [1, 1]} : vector<167x128xf32> to vector<1x128xf32>
      %cst_89 = arith.constant dense<0.000000e+00> : vector<6xf32>
      %322 = vector.multi_reduction <add>, %319, %cst_89 [1] : vector<6x128xf32> to vector<6xf32>
      %323 = vector.shape_cast %322 : vector<6xf32> to vector<6x1xf32>
      %cst_90 = arith.constant 1.280000e+02 : f32
      %324 = vector.broadcast %cst_90 : f32 to vector<6x1xf32>
      %325 = arith.divf %323, %324 : vector<6x1xf32>
      %326 = vector.broadcast %325 : vector<6x1xf32> to vector<6x128xf32>
      %327 = arith.subf %319, %326 : vector<6x128xf32>
      %328 = arith.mulf %327, %327 : vector<6x128xf32>
      %cst_91 = arith.constant dense<0.000000e+00> : vector<6xf32>
      %329 = vector.multi_reduction <add>, %328, %cst_91 [1] : vector<6x128xf32> to vector<6xf32>
      %330 = vector.shape_cast %329 : vector<6xf32> to vector<6x1xf32>
      %cst_92 = arith.constant 1.280000e+02 : f32
      %331 = vector.broadcast %cst_92 : f32 to vector<6x1xf32>
      %332 = arith.divf %330, %331 : vector<6x1xf32>
      %333 = vector.broadcast %325 : vector<6x1xf32> to vector<6x128xf32>
      %334 = arith.subf %319, %333 : vector<6x128xf32>
      %cst_93 = arith.constant 9.99999974E-6 : f32
      %335 = vector.broadcast %cst_93 : f32 to vector<6x1xf32>
      %336 = arith.addf %332, %335 : vector<6x1xf32>
      %337 = math.rsqrt %336 : vector<6x1xf32>
      %338 = vector.broadcast %337 : vector<6x1xf32> to vector<6x128xf32>
      %339 = arith.mulf %334, %338 : vector<6x128xf32>
      %340 = vector.broadcast %320 : vector<1x128xf32> to vector<6x128xf32>
      %341 = arith.mulf %339, %340 : vector<6x128xf32>
      %342 = vector.broadcast %321 : vector<1x128xf32> to vector<6x128xf32>
      %343 = arith.addf %341, %342 : vector<6x128xf32>
      %344 = vector.extract_strided_slice %21 {offsets = [26, 0], sizes = [1, 128], strides = [1, 1]} : vector<167x128xf32> to vector<1x128xf32>
      %345 = vector.extract_strided_slice %21 {offsets = [27, 0], sizes = [1, 128], strides = [1, 1]} : vector<167x128xf32> to vector<1x128xf32>
      %346 = tpu.concatenate %344, %345 in 1 : vector<1x128xf32>, vector<1x128xf32> -> vector<1x256xf32>
      %347 = arith.truncf %343 : vector<6x128xf32> to vector<6x128xbf16>
      %cst_94 = arith.constant dense<0.000000e+00> : vector<6x256xf32>
      %348 = tpu.matmul %347, %228, %cst_94 {dimension_numbers = #tpu.dot_dimension_numbers<[1], [0], [0], [1], [0, 0, 1, 1], [], []>} : vector<6x128xbf16>, vector<128x256xbf16>, vector<6x256xf32> -> vector<6x256xf32>
      %349 = vector.broadcast %346 : vector<1x256xf32> to vector<6x256xf32>
      %350 = arith.addf %348, %349 : vector<6x256xf32>
      %cst_95 = arith.constant 0.000000e+00 : f32
      %351 = vector.broadcast %cst_95 : f32 to vector<6x256xf32>
      %352 = arith.maximumf %350, %351 : vector<6x256xf32>
      %353 = vector.extract_strided_slice %352 {offsets = [0, 0], sizes = [6, 128], strides = [1, 1]} : vector<6x256xf32> to vector<6x128xf32>
      %354 = arith.truncf %353 : vector<6x128xf32> to vector<6x128xbf16>
      %cst_96 = arith.constant dense<0.000000e+00> : vector<6x128xf32>
      %355 = tpu.matmul %354, %229, %cst_96 {dimension_numbers = #tpu.dot_dimension_numbers<[1], [0], [0], [1], [0, 0, 1, 1], [], []>} : vector<6x128xbf16>, vector<128x128xbf16>, vector<6x128xf32> -> vector<6x128xf32>
      %356 = vector.extract_strided_slice %352 {offsets = [0, 128], sizes = [6, 128], strides = [1, 1]} : vector<6x256xf32> to vector<6x128xf32>
      %357 = arith.truncf %356 : vector<6x128xf32> to vector<6x128xbf16>
      %cst_97 = arith.constant dense<0.000000e+00> : vector<6x128xf32>
      %358 = tpu.matmul %357, %230, %cst_97 {dimension_numbers = #tpu.dot_dimension_numbers<[1], [0], [0], [1], [0, 0, 1, 1], [], []>} : vector<6x128xbf16>, vector<128x128xbf16>, vector<6x128xf32> -> vector<6x128xf32>
      %359 = arith.addf %355, %358 : vector<6x128xf32>
      %360 = vector.extract_strided_slice %21 {offsets = [28, 0], sizes = [1, 128], strides = [1, 1]} : vector<167x128xf32> to vector<1x128xf32>
      %361 = vector.broadcast %360 : vector<1x128xf32> to vector<6x128xf32>
      %362 = arith.addf %359, %361 : vector<6x128xf32>
      %363 = arith.addf %343, %362 : vector<6x128xf32>
      %364 = vector.extract_strided_slice %21 {offsets = [31, 0], sizes = [1, 128], strides = [1, 1]} : vector<167x128xf32> to vector<1x128xf32>
      %365 = vector.extract_strided_slice %21 {offsets = [32, 0], sizes = [1, 128], strides = [1, 1]} : vector<167x128xf32> to vector<1x128xf32>
      %cst_98 = arith.constant dense<0.000000e+00> : vector<6xf32>
      %366 = vector.multi_reduction <add>, %363, %cst_98 [1] : vector<6x128xf32> to vector<6xf32>
      %367 = vector.shape_cast %366 : vector<6xf32> to vector<6x1xf32>
      %cst_99 = arith.constant 1.280000e+02 : f32
      %368 = vector.broadcast %cst_99 : f32 to vector<6x1xf32>
      %369 = arith.divf %367, %368 : vector<6x1xf32>
      %370 = vector.broadcast %369 : vector<6x1xf32> to vector<6x128xf32>
      %371 = arith.subf %363, %370 : vector<6x128xf32>
      %372 = arith.mulf %371, %371 : vector<6x128xf32>
      %cst_100 = arith.constant dense<0.000000e+00> : vector<6xf32>
      %373 = vector.multi_reduction <add>, %372, %cst_100 [1] : vector<6x128xf32> to vector<6xf32>
      %374 = vector.shape_cast %373 : vector<6xf32> to vector<6x1xf32>
      %cst_101 = arith.constant 1.280000e+02 : f32
      %375 = vector.broadcast %cst_101 : f32 to vector<6x1xf32>
      %376 = arith.divf %374, %375 : vector<6x1xf32>
      %377 = vector.broadcast %369 : vector<6x1xf32> to vector<6x128xf32>
      %378 = arith.subf %363, %377 : vector<6x128xf32>
      %cst_102 = arith.constant 9.99999974E-6 : f32
      %379 = vector.broadcast %cst_102 : f32 to vector<6x1xf32>
      %380 = arith.addf %376, %379 : vector<6x1xf32>
      %381 = math.rsqrt %380 : vector<6x1xf32>
      %382 = vector.broadcast %381 : vector<6x1xf32> to vector<6x128xf32>
      %383 = arith.mulf %378, %382 : vector<6x128xf32>
      %384 = vector.broadcast %364 : vector<1x128xf32> to vector<6x128xf32>
      %385 = arith.mulf %383, %384 : vector<6x128xf32>
      %386 = vector.broadcast %365 : vector<1x128xf32> to vector<6x128xf32>
      %387 = arith.addf %385, %386 : vector<6x128xf32>
      %388 = vector.extract_strided_slice %387 {offsets = [0, 0], sizes = [2, 128], strides = [1, 1]} : vector<6x128xf32> to vector<2x128xf32>
      %389 = vector.extract_strided_slice %387 {offsets = [2, 0], sizes = [2, 128], strides = [1, 1]} : vector<6x128xf32> to vector<2x128xf32>
      %390 = arith.addf %388, %389 : vector<2x128xf32>
      %391 = vector.extract_strided_slice %387 {offsets = [4, 0], sizes = [2, 128], strides = [1, 1]} : vector<6x128xf32> to vector<2x128xf32>
      %392 = arith.addf %390, %391 : vector<2x128xf32>
      %cst_103 = arith.constant 0.333333343 : f32
      %393 = vector.broadcast %cst_103 : f32 to vector<2x128xf32>
      %394 = arith.mulf %392, %393 : vector<2x128xf32>
      %395 = vector.extract_strided_slice %21 {offsets = [8, 0], sizes = [1, 128], strides = [1, 1]} : vector<167x128xf32> to vector<1x128xf32>
      %396 = vector.extract_strided_slice %21 {offsets = [9, 0], sizes = [1, 128], strides = [1, 1]} : vector<167x128xf32> to vector<1x128xf32>
      %cst_104 = arith.constant dense<0.000000e+00> : vector<2xf32>
      %397 = vector.multi_reduction <add>, %394, %cst_104 [1] : vector<2x128xf32> to vector<2xf32>
      %398 = vector.shape_cast %397 : vector<2xf32> to vector<2x1xf32>
      %cst_105 = arith.constant 1.280000e+02 : f32
      %399 = vector.broadcast %cst_105 : f32 to vector<2x1xf32>
      %400 = arith.divf %398, %399 : vector<2x1xf32>
      %401 = vector.broadcast %400 : vector<2x1xf32> to vector<2x128xf32>
      %402 = arith.subf %394, %401 : vector<2x128xf32>
      %403 = arith.mulf %402, %402 : vector<2x128xf32>
      %cst_106 = arith.constant dense<0.000000e+00> : vector<2xf32>
      %404 = vector.multi_reduction <add>, %403, %cst_106 [1] : vector<2x128xf32> to vector<2xf32>
      %405 = vector.shape_cast %404 : vector<2xf32> to vector<2x1xf32>
      %cst_107 = arith.constant 1.280000e+02 : f32
      %406 = vector.broadcast %cst_107 : f32 to vector<2x1xf32>
      %407 = arith.divf %405, %406 : vector<2x1xf32>
      %408 = vector.broadcast %400 : vector<2x1xf32> to vector<2x128xf32>
      %409 = arith.subf %394, %408 : vector<2x128xf32>
      %cst_108 = arith.constant 9.99999974E-6 : f32
      %410 = vector.broadcast %cst_108 : f32 to vector<2x1xf32>
      %411 = arith.addf %407, %410 : vector<2x1xf32>
      %412 = math.rsqrt %411 : vector<2x1xf32>
      %413 = vector.broadcast %412 : vector<2x1xf32> to vector<2x128xf32>
      %414 = arith.mulf %409, %413 : vector<2x128xf32>
      %415 = vector.broadcast %395 : vector<1x128xf32> to vector<2x128xf32>
      %416 = arith.mulf %414, %415 : vector<2x128xf32>
      %417 = vector.broadcast %396 : vector<1x128xf32> to vector<2x128xf32>
      %418 = arith.addf %416, %417 : vector<2x128xf32>
      %419 = vector.extract_strided_slice %21 {offsets = [39, 0], sizes = [128, 128], strides = [1, 1]} : vector<167x128xf32> to vector<128x128xf32>
      %cst_109 = arith.constant dense<0.000000e+00> : vector<2x128xf32>
      %420 = tpu.matmul %418, %419, %cst_109 {dimension_numbers = #tpu.dot_dimension_numbers<[1], [0], [0], [1], [0, 0, 1, 1], [], []>} : vector<2x128xf32>, vector<128x128xf32>, vector<2x128xf32> -> vector<2x128xf32>
      %421 = vector.extract_strided_slice %21 {offsets = [10, 0], sizes = [1, 128], strides = [1, 1]} : vector<167x128xf32> to vector<1x128xf32>
      %422 = vector.broadcast %421 : vector<1x128xf32> to vector<2x128xf32>
      %423 = arith.addf %420, %422 : vector<2x128xf32>
      %c0_110 = arith.constant 0 : index
      %c0_111 = arith.constant 0 : index
      %424 = vector.load %arg7[%c0_110, %c0_111] : memref<2x128xf32, #tpu.memory_space<vmem>>, vector<2x128xf32>
      tpu.vector_store %arg7[%c0_110, %c0_111], %423 {strides = array<i32>} : memref<2x128xf32, #tpu.memory_space<vmem>>, vector<2x128xf32>,
    } else {
    }
    return
  }
  func.func @transform_0(%arg0: i32) -> (i32, i32, i32) {
    %c0_i32 = arith.constant 0 : i32
    %c0_i32_0 = arith.constant 0 : i32
    %c0_i32_1 = arith.constant 0 : i32
    return %c0_i32, %c0_i32_0, %arg0 : i32, i32, i32
  }
  func.func @transform_1(%arg0: i32) -> (i32, i32, i32) {
    %c0_i32 = arith.constant 0 : i32
    %c0_i32_0 = arith.constant 0 : i32
    %c0_i32_1 = arith.constant 0 : i32
    return %c0_i32, %c0_i32_0, %arg0 : i32, i32, i32
  }
  func.func @transform_2(%arg0: i32) -> (i32, i32) {
    %c0_i32 = arith.constant 0 : i32
    %c0_i32_0 = arith.constant 0 : i32
    %c0_i32_1 = arith.constant 0 : i32
    return %c0_i32, %c0_i32_0 : i32, i32
  }
  func.func @transform_3(%arg0: i32) -> (i32, i32) {
    %c0_i32 = arith.constant 0 : i32
    %c0_i32_0 = arith.constant 0 : i32
    return %arg0, %c0_i32 : i32, i32
  }
  func.func @transform_4(%arg0: i32) -> (i32, i32, i32) {
    %c0_i32 = arith.constant 0 : i32
    %c0_i32_0 = arith.constant 0 : i32
    %c0_i32_1 = arith.constant 0 : i32
    %c0_i32_2 = arith.constant 0 : i32
    return %c0_i32, %c0_i32_0, %c0_i32_1 : i32, i32, i32
  }
  func.func @transform_5(%arg0: i32) -> (i32, i32) {
    %c0_i32 = arith.constant 0 : i32
    %c0_i32_0 = arith.constant 0 : i32
    %c0_i32_1 = arith.constant 0 : i32
    return %c0_i32, %c0_i32_0 : i32, i32
  }
  func.func @transform_6(%arg0: i32) -> (i32, i32) {
    %c0_i32 = arith.constant 0 : i32
    %c0_i32_0 = arith.constant 0 : i32
    %c0_i32_1 = arith.constant 0 : i32
    return %c0_i32, %c0_i32_0 : i32, i32
  }
}

</mosaic_0001>

<bundles_post_ra>
// kernel: forward.1
= control target key start
LH: loop header
LB: loop body
LE: loop exit
PB: predicated region body
PF: predicated region fallthrough
CT: control target
= control target key end

     0   :  { %s10501_s0 = inlined_call_operand.hbm [shape: f32[2,4,8192], index: 0, kind: input, shape index: {}]   ;;  %s10502_s1 = inlined_call_operand.hbm [shape: f32[2,4,8192], index: 1, kind: input, shape index: {}]   ;;  %s10503_s2 = inlined_call_operand.hbm [shape: f32[2,128], index: 2, kind: input, shape index: {}]   ;;  %s10504_s3 = inlined_call_operand.hbm [shape: bf16[8192,256], index: 3, kind: input, shape index: {}]   ;;  %s10505_s4 = inlined_call_operand.hbm [shape: bf16[2,128,1024], index: 4, kind: input, shape index: {}]   ;;  %s10506_s5 = inlined_call_operand.hbm [shape: f32[167,128], index: 5, kind: input, shape index: {}]   ;;  %s10507_s6 = inlined_call_operand.hbm [shape: f32[2,128], index: 6, kind: output, shape index: {}]  }
   0x1   :  { %10515 = sst [smem:[#allocation41_spill]] %s10501_s0 }
   0x2   :  { %10516 = sst [smem:[#allocation42_spill]] %s10503_s2 }
   0x3   :  { %10517 = sst [smem:[#allocation43_spill]] %s10505_s4 }
   0x4   :  { %10518 = sst [smem:[#allocation44_spill]] %s10506_s5 }
   0x5   :  { %11 = vsyncpa [#allocation4], 0 }
   0x6   :  { %13 = vsyncpa [#allocation4 + $0x1], 0 }
   0x7   :  { %14 = vsyncpa [#allocation7], 0 }
   0x8   :  { %16 = vsyncpa [#allocation7 + $0x1], 0 }
   0x9   :  { %17 = vsyncpa [#allocation10], 0 }
   0xa   :  { %19 = vsyncpa [#allocation10 + $0x1], 0 }
   0xb   :  { %20 = vsyncpa [#allocation13], 0 }
   0xc   :  { %21 = vsyncpa [#allocation5], 0  ;;  %s8560_s21 = smov 0   ;;  %s8562_s22 = smov 0  }
   0xd   :  { %s8564_s23 = smov 0   ;;  %s8566_s24 = smov 0  }
   0xe LB: > { %s8579_s25 = sadd.s32 4294967295, %s8502_s24   ;;  %s8582_s26 = sadd.s32 1, %s8502_s24   ;;  %s8502_s24 = sphi %s8566_s24, %s10599_s24   ;;  %s8498_s23 = sphi %s8564_s23, %s10598_s23   ;;  %s8494_s22 = sphi %s8562_s22, %s10597_s22   ;;  %s8490_s21 = sphi %s8560_s21, %s10596_s21  }
   0xf   : > { %s31_s27 = ssub.s32 %s8502_s24, %s8582_s26  ;;  %s34_s28 = sadd.s32 1, %s8498_s23 }
  0x10   : > { %p32_p0 = scmp.eq.s32.totalorder %s31_s27, 0  ;;  %p41_p1 = scmp.ne.s32.totalorder %s8498_s23, %s8494_s22 }
  0x11   : > { %p42_p2 = scmp.eq.s32.totalorder %s8502_s24, 0  ;;  %p47_p3 = scmp.ne.s32.totalorder %s8494_s22, %s8490_s21 }
  0x12   : > { %s8592_s29 = scalar_select %p32_p0, %s8498_s23, %s34_s28  }
  0x13   : > { %p8594_p4 = por %p42_p2, %p41_p1  ;;  %p48_p5 = scmp.eq.s32.totalorder %s8579_s25, 0 }
  0x14   : > { %10519 = sst [smem:[#allocation22_spill]] %s8592_s29  ;;  %p6048_p6 = scmp.ge.s32.totalorder %s8502_s24, 1 }
  0x15   : > { %p194_p7 = scmp.lt.s32.totalorder %s8502_s24, 5  ;;  %p8603_p8 = por %p48_p5, %p47_p3 }
  0x16   : > { %p6049_p9 = scmp.ne.s32.totalorder %s8579_s25, 0  ;;  %s10523_s2 = sld [smem:[#allocation42_spill]] }
  0x17   : > { %p8608_p10 = pnand %p6048_p6, %p194_p7  ;;  %s8504_s12 = smov [#allocation8]  }
  0x18   : > { %s208_s13 = sshll.u32 %s8504_s12, 4  ;;  %p8109_p13 = scmp.lt.s32.totalorder %s8502_s24, 4  ;;  %s209_s13 = int_to_ptr.vmem [resolvable:$true] %s208_s13 }
  0x19   : > { %p8086_p11 = pneg %p8608_p10  ;;  %s10525_s4 = sld [smem:[#allocation43_spill]] }
  0x1a   : > { %p8629_p0 = pnand %p8109_p13, %p8594_p4  ;;  %s8505_s19 = smov [#allocation11]  }
  0x1b   : > { %p8619_p12 = pnand %p8086_p11, %p48_p5  ;;  %s219_s20 = sshll.u32 %s8505_s19, 4  ;;  %s220_s20 = int_to_ptr.vmem [resolvable:$true] %s219_s20 }
  0x1c   : > { %s206_s11 = sshll.u32 %s10523_s2, 4  ;;  %s8506_s21 = smov 512   ;;  %s207_s11 = int_to_ptr.hbm [resolvable:$true] %s206_s11 }
  0x1d   : > { %8089 = dma.hbm_to_vmem [thread:$0]  (!%p8619_p12), %s207_s11, 32, %s209_s13, [#allocation7]  }
  0x1e   : > { %s8507_s27 = smov 32   ;;  %s10527_s5 = sld [smem:[#allocation44_spill]] }
  0x1f   : > { %s217_s17 = sshll.u32 %s10525_s4, 4  ;;  %s8508_s10 = smov [#allocation12]   ;;  %s218_s17 = int_to_ptr.hbm [resolvable:$true] %s217_s17 }
  0x20   : > { %8092 = dma.hbm_to_vmem [thread:$0]  (!%p8619_p12), %s218_s17, 16384, %s220_s20, [#allocation10], %s8506_s21, %s8506_s21, %s8507_s27  }
  0x21   : > { %s233_s12 = sshll.u32 %s8508_s10, 4  ;;  %s8641_s11 = sand.u32 1, %s8498_s23   ;;  %s234_s12 = int_to_ptr.vmem [resolvable:$true] %s233_s12 }
  0x22   : > { %s10508_s13 = smov 128   ;;  %s10509_s15 = smov 8  }
  0x23   : > { %s6053_s16 = sshll.u32 %s8641_s11, 7  ;;  %s7676_s17 = sshll.u32 %s8502_s24, 6 }
  0x24   : > { %s231_s30 = sshll.u32 %s10527_s5, 4  ;;  %s10528_s0 = sld [smem:[#allocation41_spill]]  ;;  %s232_s30 = int_to_ptr.hbm [resolvable:$true] %s231_s30 }
  0x25   : > { %8095 = dma.hbm_to_vmem [thread:$0]  (!%p8619_p12), %s232_s30, 2688, %s234_s12, [#allocation13], %s10508_s13, %s10508_s13, %s10509_s15  }
  0x26   : > { %s251_s27 = scalar_lea.vmem [#allocation3], %s6053_s16  ;;  %s248_s10 = scalar_lea.sflag [#allocation4], %s8641_s11 }
  0x27   : > { %s259_s28 = sshll.u32 %s251_s27, 4  ;;  %p8330_p2 = pneg %p8629_p0  ;;  %s260_s28 = int_to_ptr.vmem [resolvable:$true] %s259_s28 }
  0x2a   : > { %s256_s21 = scalar_lea.hbm %s10528_s0, %s7676_s17  ;;  %s8333_s19 = scalar_lea.hbm %s10528_s0, 512 }
  0x2b   : > { %s257_s9 = sshll.u32 %s256_s21, 4  ;;  %s258_s9 = int_to_ptr.hbm [resolvable:$true] %s257_s9 }
  0x2c   : > { %s8326_s14 = sshra.s32 %s258_s9, 4  ;;  %s8327_s14 = int_to_ptr.hbm [resolvable:$true] %s8326_s14 }
  0x2d   : > { %s8328_s2 = scalar_lea.hbm %s8327_s14, 128  ;;  %p8334_p6 = scmp.lt.s32.totalorder %s8327_s14, %s10528_s0 }
  0x2e   : > { %p8329_p1 = scmp.ne.s32.totalorder %s8327_s14, %s8328_s2  ;;  %p8335_p7 = scmp.lt.s32.totalorder %s8333_s19, %s8328_s2 }
  0x30   : > { %p8331_p3 = pnand %p8330_p2, %p8329_p1  ;;  %p8336_p11 = por %p8335_p7, %p8334_p6 }
  0x32   : > { %p8332_p4 = pneg %p8331_p3 }
  0x34   : > { %p8337_p12 = pnand %p8336_p11, %p8332_p4 }
  0x36   : > { %8340 = shalt.err (!%p8337_p12)
}
  0x37   : > { %s8511_s21 = smov 4096   ;;  %s8512_s13 = smov 1024  }
  0x38   : > { %s8513_s15 = smov 64   ;;  %s278_s2 = scalar_lea.hbm %s10502_s1, %s7676_s17 }
  0x39   : > { %8099 = dma.hbm_to_vmem [thread:$0]  (!%p8629_p0), %s258_s9, 2048, %s260_s28, %s248_s10, %s8511_s21, %s8512_s13, %s8513_s15  }
  0x3a   : > { %s279_s14 = sshll.u32 %s278_s2, 4  ;;  %s273_s19 = scalar_lea.vmem [#allocation6], %s6053_s16  ;;  %s280_s14 = int_to_ptr.hbm [resolvable:$true] %s279_s14 }
  0x3b   : > { %s281_s20 = sshll.u32 %s273_s19, 4  ;;  %s269_s27 = sand.u32 1, %s8502_s24   ;;  %s282_s20 = int_to_ptr.vmem [resolvable:$true] %s281_s20 }
  0x3c   : > { %s6059_s0 = sshll.u32 %s8641_s11, 11  ;;  %s270_s4 = scalar_lea.sflag [#allocation7], %s269_s27 }
  0x3d   : > { %s8356_s5 = sshra.s32 %s280_s14, 4  ;;  %s8363_s17 = scalar_lea.hbm %s10502_s1, 512  ;;  %s8357_s5 = int_to_ptr.hbm [resolvable:$true] %s8356_s5 }
  0x3e   : > { %s8358_s29 = scalar_lea.hbm %s8357_s5, 128  ;;  %p8364_p4 = scmp.lt.s32.totalorder %s8357_s5, %s10502_s1 }
  0x3f   : > { %p8359_p13 = scmp.ne.s32.totalorder %s8357_s5, %s8358_s29  ;;  %p8365_p6 = scmp.lt.s32.totalorder %s8363_s17, %s8358_s29 }
  0x41   : > { %p8361_p1 = pnand %p8359_p13, %p8330_p2  ;;  %p8366_p7 = por %p8365_p6, %p8364_p4 }
  0x43   : > { %p8362_p3 = pneg %p8361_p1 }
  0x45   : > { %p8367_p11 = pnand %p8366_p7, %p8362_p3 }
  0x47   : > { %8370 = shalt.err (!%p8367_p11)
}
  0x48   : > { %8102 = dma.hbm_to_vmem [thread:$0]  (!%p8629_p0), %s280_s14, 2048, %s282_s20, %s270_s4, %s8511_s21, %s8512_s13, %s8513_s15  }
  0x49   : > { %s7679_s11 = sshll.u32 %s8502_s24, 11  ;;  %s295_s19 = scalar_lea.vmem [#allocation9], %s6059_s0 }
  0x4a   : > { %s301_s2 = scalar_lea.hbm %s10504_s3, %s7679_s11  ;;  %s304_s28 = sshll.u32 %s295_s19, 4  ;;  %s305_s28 = int_to_ptr.vmem [resolvable:$true] %s304_s28 }
  0x4b   : > { %s302_s9 = sshll.u32 %s301_s2, 4  ;;  %s292_s5 = scalar_lea.sflag [#allocation10], %s269_s27  ;;  %s303_s9 = int_to_ptr.hbm [resolvable:$true] %s302_s9 }
  0x4c   : > { %s8386_s29 = sshra.s32 %s303_s9, 4  ;;  %s8393_s13 = scalar_lea.hbm %s10504_s3, 8192  ;;  %s8387_s29 = int_to_ptr.hbm [resolvable:$true] %s8386_s29 }
  0x4d   : > { %s8388_s17 = scalar_lea.hbm %s8387_s29, 2048  ;;  %p8394_p3 = scmp.lt.s32.totalorder %s8387_s29, %s10504_s3 }
  0x4e   : > { %p8389_p12 = scmp.ne.s32.totalorder %s8387_s29, %s8388_s17  ;;  %p8395_p4 = scmp.lt.s32.totalorder %s8393_s13, %s8388_s17 }
  0x50   : > { %p8391_p13 = pnand %p8389_p12, %p8330_p2  ;;  %p8396_p6 = por %p8395_p4, %p8394_p3 }
  0x52   : > { %p8392_p1 = pneg %p8391_p13 }
  0x54   : > { %p8397_p7 = pnand %p8396_p6, %p8392_p1 }
  0x56   : > { %8400 = shalt.err (!%p8397_p7)
}
  0x57   : > { %s10529_s0 = smov 8   ;;  %s10530_s14 = smov 128  }
  0x58   : > { %8105 = dma.hbm_to_vmem [thread:$0]  (!%p8629_p0), %s303_s9, 32768, %s305_s28, %s292_s5, %s10530_s14, %s10530_s14, %s10529_s0  }
  0x59   : > { %316 = sbr.rel (%p8608_p10) target bundleno = 5107 (0x13f3), region = 44 }
  0x5e   : > { %s318_s20 = sand.u32 1, %s8494_s22  }
  0x5f   : > { %s6064_s27 = sshll.u32 %s318_s20, 7  ;;  %s319_s10 = scalar_lea.sflag [#allocation4], %s318_s20 }
  0x60   : > { %s8714_s16 = scalar_lea.vmem [#allocation3], %s6064_s27 }
  0x61   : > { %8461 = dma.done.wait (%p8603_p8), %s319_s10, 2048  }
  0x62   : > { %8463 = vsyncadd (%p8603_p8), %s319_s10, 4294965248  ;;  %s328_s18 = sand.u32 1, %s8579_s25   ;;  %s8721_s30 = scalar_lea.vmem [#allocation6], %s6064_s27 }
  0x63   : > { %s329_s11 = scalar_lea.sflag [#allocation7], %s328_s18 }
  0x64   : > { %8465 = dma.done.wait (%p8603_p8), %s329_s11, 2048  }
  0x65   : > { %8467 = vsyncadd (%p8603_p8), %s329_s11, 4294965248 }
  0x66   : > { %8469 = dma.done.wait (%p48_p5), [#allocation7], 32  }
  0x67   : > { %8471 = vsyncadd (%p48_p5), [#allocation7], 4294967264  ;;  %s6067_s8 = sshll.u32 %s318_s20, 11  ;;  %s344_s12 = scalar_lea.sflag [#allocation10], %s328_s18 }
  0x68   : > { %s8731_s2 = scalar_lea.vmem [#allocation9], %s6067_s8 }
  0x69   : > { %8473 = dma.done.wait (%p8603_p8), %s344_s12, 32768  }
  0x6a   : > { %8475 = vsyncadd (%p8603_p8), %s344_s12, 4294934528 }
  0x6b   : > { %8477 = dma.done.wait (%p48_p5), [#allocation10], 16384  }
  0x6c   : > { %8479 = vsyncadd (%p48_p5), [#allocation10], 4294950912 }
  0x6d   : > { %8481 = dma.done.wait (%p48_p5), [#allocation13], 2688  }
  0x6e   : > { %8483 = vsyncadd (%p48_p5), [#allocation13], 4294964608  ;;  %398 = sbr.rel (%p6049_p9) target bundleno = 117 (0x75), region = 72 }
  0x73   : > { %v8514_v0 = vmov 0.0  }
  0x74   : > { %399 = vst [vmem:[#allocation2] sm:$0xff] %v8514_v0 }
  0x75 PF: > { %v6129_v1 = vld [vmem:[%s8731_s2 + $0x70] sm:$0xf]  ;;  %v7695_v2 = vld [vmem:[%s8731_s2 + $0x74] sm:$0xf0]  ;;  %v6121_v12 = vld [vmem:[%s8731_s2 + $0x60] sm:$0xf] }
  0x76   : > { %v6193_v3 = vld [vmem:[%s8731_s2 + $0xf0] sm:$0xf]  ;;  %v6130_v4 = vor.u32 %v7695_v2, %v6129_v1  ;;  %v7711_v5 = vld [vmem:[%s8731_s2 + $0xf4] sm:$0xf0]  ;;  %v7693_v14 = vld [vmem:[%s8731_s2 + $0x64] sm:$0xf0] }
  0x77   : > { %v6257_v6 = vld [vmem:[%s8731_s2 + $0x170] sm:$0xf]  ;;  %v7727_v7 = vld [vmem:[%s8731_s2 + $0x174] sm:$0xf0]  ;;  %v6194_v8 = vor.u32 %v7711_v5, %v6193_v3  ;;  %v6185_v15 = vld [vmem:[%s8731_s2 + $0xe0] sm:$0xf]  ;;  %v6122_v17 = vor.u32 %v7693_v14, %v6121_v12 }
  0x78   : > { %v6258_v9 = vor.u32 %v7727_v7, %v6257_v6  ;;  %v6321_v10 = vld [vmem:[%s8731_s2 + $0x1f0] sm:$0xf]  ;;  %v7743_v11 = vld [vmem:[%s8731_s2 + $0x1f4] sm:$0xf0]  ;;  %2850 = vmatpush.bf16.msra.mxu0 %v6130_v4  ;;  %v7709_v16 = vld [vmem:[%s8731_s2 + $0xe4] sm:$0xf0] }
  0x79   : > { %v6322_v13 = vor.u32 %v7743_v11, %v6321_v10  ;;  %2863 = vmatpush.bf16.msra.mxu1 %v6194_v8  ;;  %v6186_v18 = vor.u32 %v7709_v16, %v6185_v15  ;;  %v6249_v19 = vld [vmem:[%s8731_s2 + $0x160] sm:$0xf]  ;;  %v7725_v20 = vld [vmem:[%s8731_s2 + $0x164] sm:$0xf0]  ;;  %v6113_v24 = vld [vmem:[%s8731_s2 + $0x50] sm:$0xf] }
  0x7a   : > { %2876 = vmatpush.bf16.msra.mxu2 %v6258_v9  ;;  %v6313_v21 = vld [vmem:[%s8731_s2 + $0x1e0] sm:$0xf]  ;;  %v6250_v22 = vor.u32 %v7725_v20, %v6249_v19  ;;  %v7741_v23 = vld [vmem:[%s8731_s2 + $0x1e4] sm:$0xf0]  ;;  %v7691_v25 = vld [vmem:[%s8731_s2 + $0x54] sm:$0xf0] }
  0x7b   : > { %2889 = vmatpush.bf16.msra.mxu3 %v6322_v13  ;;  %v6314_v26 = vor.u32 %v7741_v23, %v6313_v21  ;;  %v6177_v27 = vld [vmem:[%s8731_s2 + $0xd0] sm:$0xf]  ;;  %v7707_v28 = vld [vmem:[%s8731_s2 + $0xd4] sm:$0xf0]  ;;  %v6114_v30 = vor.u32 %v7691_v25, %v6113_v24  ;;  %v6105_v36 = vld [vmem:[%s8731_s2 + $0x40] sm:$0xf] }
  0x7c   : > { %v6241_v29 = vld [vmem:[%s8731_s2 + $0x150] sm:$0xf]  ;;  %2851 = vmatpush.bf16.msra.mxu0 %v6122_v17  ;;  %v7723_v31 = vld [vmem:[%s8731_s2 + $0x154] sm:$0xf0]  ;;  %v6178_v34 = vor.u32 %v7707_v28, %v6177_v27  ;;  %v7689_v37 = vld [vmem:[%s8731_s2 + $0x44] sm:$0xf0] }
  0x7d   : > { %v6305_v32 = vld [vmem:[%s8731_s2 + $0x1d0] sm:$0xf]  ;;  %v7739_v33 = vld [vmem:[%s8731_s2 + $0x1d4] sm:$0xf0]  ;;  %2864 = vmatpush.bf16.msra.mxu1 %v6186_v18  ;;  %v6242_v35 = vor.u32 %v7723_v31, %v6241_v29  ;;  %v6169_v38 = vld [vmem:[%s8731_s2 + $0xc0] sm:$0xf]  ;;  %v6106_v45 = vor.u32 %v7689_v37, %v6105_v36 }
  0x7e   : > { %2877 = vmatpush.bf16.msra.mxu2 %v6250_v22  ;;  %v6306_v39 = vor.u32 %v7739_v33, %v6305_v32  ;;  %v7705_v40 = vld [vmem:[%s8731_s2 + $0xc4] sm:$0xf0]  ;;  %v6233_v41 = vld [vmem:[%s8731_s2 + $0x140] sm:$0xf]  ;;  %v6097_v48 = vld [vmem:[%s8731_s2 + $0x30] sm:$0xf] }
  0x7f   : > { %2890 = vmatpush.bf16.msra.mxu3 %v6314_v26  ;;  %v7721_v42 = vld [vmem:[%s8731_s2 + $0x144] sm:$0xf0]  ;;  %v6297_v43 = vld [vmem:[%s8731_s2 + $0x1c0] sm:$0xf]  ;;  %v6170_v46 = vor.u32 %v7705_v40, %v6169_v38  ;;  %v7687_v49 = vld [vmem:[%s8731_s2 + $0x34] sm:$0xf0] }
  0x80   : > { %v7737_v44 = vld [vmem:[%s8731_s2 + $0x1c4] sm:$0xf0]  ;;  %2852 = vmatpush.bf16.msra.mxu0 %v6114_v30  ;;  %v6234_v47 = vor.u32 %v7721_v42, %v6233_v41  ;;  %v6161_v50 = vld [vmem:[%s8731_s2 + $0xb0] sm:$0xf]  ;;  %v7703_v52 = vld [vmem:[%s8731_s2 + $0xb4] sm:$0xf0]  ;;  %v6098_v57 = vor.u32 %v7687_v49, %v6097_v48 }
  0x81   : > { %2865 = vmatpush.bf16.msra.mxu1 %v6178_v34  ;;  %v6298_v51 = vor.u32 %v7737_v44, %v6297_v43  ;;  %v6225_v53 = vld [vmem:[%s8731_s2 + $0x130] sm:$0xf]  ;;  %v7719_v54 = vld [vmem:[%s8731_s2 + $0x134] sm:$0xf0]  ;;  %v6162_v58 = vor.u32 %v7703_v52, %v6161_v50  ;;  %v6089_v60 = vld [vmem:[%s8731_s2 + $0x20] sm:$0xf] }
  0x82   : > { %2878 = vmatpush.bf16.msra.mxu2 %v6242_v35  ;;  %v6289_v55 = vld [vmem:[%s8731_s2 + $0x1b0] sm:$0xf]  ;;  %v7735_v56 = vld [vmem:[%s8731_s2 + $0x1b4] sm:$0xf0]  ;;  %v6226_v59 = vor.u32 %v7719_v54, %v6225_v53  ;;  %v7685_v61 = vld [vmem:[%s8731_s2 + $0x24] sm:$0xf0] }
  0x83   : > { %2891 = vmatpush.bf16.msra.mxu3 %v6306_v39  ;;  %v6153_v62 = vld [vmem:[%s8731_s2 + $0xa0] sm:$0xf]  ;;  %v6290_v63 = vor.u32 %v7735_v56, %v6289_v55  ;;  %v7701_v0 = vld [vmem:[%s8731_s2 + $0xa4] sm:$0xf0]  ;;  %v6090_v5 = vor.u32 %v7685_v61, %v6089_v60  ;;  %v6081_v8 = vld [vmem:[%s8731_s2 + $0x10] sm:$0xf] }
  0x84   : > { %2853 = vmatpush.bf16.msra.mxu0 %v6106_v45  ;;  %v6217_v1 = vld [vmem:[%s8731_s2 + $0x120] sm:$0xf]  ;;  %v7717_v2 = vld [vmem:[%s8731_s2 + $0x124] sm:$0xf0]  ;;  %v6154_v6 = vor.u32 %v7701_v0, %v6153_v62  ;;  %v7683_v9 = vld [vmem:[%s8731_s2 + $0x14] sm:$0xf0] }
  0x85   : > { %2866 = vmatpush.bf16.msra.mxu1 %v6170_v46  ;;  %v6281_v3 = vld [vmem:[%s8731_s2 + $0x1a0] sm:$0xf]  ;;  %v7733_v4 = vld [vmem:[%s8731_s2 + $0x1a4] sm:$0xf0]  ;;  %v6218_v7 = vor.u32 %v7717_v2, %v6217_v1  ;;  %v6145_v10 = vld [vmem:[%s8731_s2 + $0x90] sm:$0xf]  ;;  %v6082_v17 = vor.u32 %v7683_v9, %v6081_v8 }
  0x86   : > { %2879 = vmatpush.bf16.msra.mxu2 %v6234_v47  ;;  %v6282_v11 = vor.u32 %v7733_v4, %v6281_v3  ;;  %v7699_v12 = vld [vmem:[%s8731_s2 + $0x94] sm:$0xf0]  ;;  %v6209_v13 = vld [vmem:[%s8731_s2 + $0x110] sm:$0xf]  ;;  %v6073_v18 = vld [vmem:[%s8731_s2] sm:$0xf] }
  0x87   : > { %2892 = vmatpush.bf16.msra.mxu3 %v6298_v51  ;;  %v7715_v14 = vld [vmem:[%s8731_s2 + $0x114] sm:$0xf0]  ;;  %v6273_v15 = vld [vmem:[%s8731_s2 + $0x190] sm:$0xf]  ;;  %v7681_v19 = vld [vmem:[%s8731_s2 + $0x4] sm:$0xf0]  ;;  %v6146_v20 = vor.u32 %v7699_v12, %v6145_v10 }
  0x88   : > { %2854 = vmatpush.bf16.msra.mxu0 %v6098_v57  ;;  %v7731_v16 = vld [vmem:[%s8731_s2 + $0x194] sm:$0xf0]  ;;  %v6210_v21 = vor.u32 %v7715_v14, %v6209_v13  ;;  %v6137_v22 = vld [vmem:[%s8731_s2 + $0x80] sm:$0xf]  ;;  %v7697_v23 = vld [vmem:[%s8731_s2 + $0x84] sm:$0xf0]  ;;  %v6074_v32 = vor.u32 %v7681_v19, %v6073_v18 }
  0x89   : > { %2867 = vmatpush.bf16.msra.mxu1 %v6162_v58  ;;  %v6201_v24 = vld [vmem:[%s8731_s2 + $0x100] sm:$0xf]  ;;  %v6274_v25 = vor.u32 %v7731_v16, %v6273_v15  ;;  %v7713_v26 = vld [vmem:[%s8731_s2 + $0x104] sm:$0xf0]  ;;  %v6385_v29 = vld [vmem:[%s8731_s2 + $0x270] sm:$0xf]  ;;  %v6138_v36 = vor.u32 %v7697_v23, %v6137_v22 }
  0x8a   : > { %2880 = vmatpush.bf16.msra.mxu2 %v6226_v59  ;;  %v6265_v27 = vld [vmem:[%s8731_s2 + $0x180] sm:$0xf]  ;;  %v7729_v28 = vld [vmem:[%s8731_s2 + $0x184] sm:$0xf0]  ;;  %v7759_v30 = vld [vmem:[%s8731_s2 + $0x274] sm:$0xf0]  ;;  %v6202_v37 = vor.u32 %v7713_v26, %v6201_v24 }
  0x8b   : > { %2893 = vmatpush.bf16.msra.mxu3 %v6290_v63  ;;  %v6449_v31 = vld [vmem:[%s8731_s2 + $0x2f0] sm:$0xf]  ;;  %v7775_v33 = vld [vmem:[%s8731_s2 + $0x2f4] sm:$0xf0]  ;;  %v6266_v40 = vor.u32 %v7729_v28, %v6265_v27  ;;  %v6386_v41 = vor.u32 %v7759_v30, %v6385_v29  ;;  %v6377_v44 = vld [vmem:[%s8731_s2 + $0x260] sm:$0xf] }
  0x8c   : > { %2855 = vmatpush.bf16.msra.mxu0 %v6090_v5  ;;  %v6513_v34 = vld [vmem:[%s8731_s2 + $0x370] sm:$0xf]  ;;  %v7791_v35 = vld [vmem:[%s8731_s2 + $0x374] sm:$0xf0]  ;;  %v6450_v42 = vor.u32 %v7775_v33, %v6449_v31  ;;  %v7757_v45 = vld [vmem:[%s8731_s2 + $0x264] sm:$0xf0] }
  0x8d   : > { %2868 = vmatpush.bf16.msra.mxu1 %v6154_v6  ;;  %v6577_v38 = vld [vmem:[%s8731_s2 + $0x3f0] sm:$0xf]  ;;  %v7807_v39 = vld [vmem:[%s8731_s2 + $0x3f4] sm:$0xf0]  ;;  %v6514_v43 = vor.u32 %v7791_v35, %v6513_v34  ;;  %v6441_v46 = vld [vmem:[%s8731_s2 + $0x2e0] sm:$0xf]  ;;  %v6378_v53 = vor.u32 %v7757_v45, %v6377_v44 }
  0x8e   : > { %2881 = vmatpush.bf16.msra.mxu2 %v6218_v7  ;;  %v6578_v47 = vor.u32 %v7807_v39, %v6577_v38  ;;  %v7773_v48 = vld [vmem:[%s8731_s2 + $0x2e4] sm:$0xf0]  ;;  %v6505_v49 = vld [vmem:[%s8731_s2 + $0x360] sm:$0xf]  ;;  %v6369_v56 = vld [vmem:[%s8731_s2 + $0x250] sm:$0xf] }
  0x8f   : > { %2894 = vmatpush.bf16.msra.mxu3 %v6282_v11  ;;  %v7789_v50 = vld [vmem:[%s8731_s2 + $0x364] sm:$0xf0]  ;;  %v6569_v51 = vld [vmem:[%s8731_s2 + $0x3e0] sm:$0xf]  ;;  %v6442_v54 = vor.u32 %v7773_v48, %v6441_v46  ;;  %v7755_v57 = vld [vmem:[%s8731_s2 + $0x254] sm:$0xf0] }
  0x90   : > { %2856 = vmatpush.bf16.msra.mxu0 %v6082_v17  ;;  %v7805_v52 = vld [vmem:[%s8731_s2 + $0x3e4] sm:$0xf0]  ;;  %v6506_v55 = vor.u32 %v7789_v50, %v6505_v49  ;;  %v6433_v58 = vld [vmem:[%s8731_s2 + $0x2d0] sm:$0xf]  ;;  %v7771_v60 = vld [vmem:[%s8731_s2 + $0x2d4] sm:$0xf0]  ;;  %v6370_v1 = vor.u32 %v7755_v57, %v6369_v56 }
  0x91   : > { %2869 = vmatpush.bf16.msra.mxu1 %v6146_v20  ;;  %v6570_v59 = vor.u32 %v7805_v52, %v6569_v51  ;;  %v6497_v61 = vld [vmem:[%s8731_s2 + $0x350] sm:$0xf]  ;;  %v7787_v62 = vld [vmem:[%s8731_s2 + $0x354] sm:$0xf0]  ;;  %v6434_v2 = vor.u32 %v7771_v60, %v6433_v58  ;;  %v6361_v4 = vld [vmem:[%s8731_s2 + $0x240] sm:$0xf] }
  0x92   : > { %2882 = vmatpush.bf16.msra.mxu2 %v6210_v21  ;;  %v6561_v63 = vld [vmem:[%s8731_s2 + $0x3d0] sm:$0xf]  ;;  %v7803_v0 = vld [vmem:[%s8731_s2 + $0x3d4] sm:$0xf0]  ;;  %v6498_v3 = vor.u32 %v7787_v62, %v6497_v61  ;;  %v7753_v5 = vld [vmem:[%s8731_s2 + $0x244] sm:$0xf0] }
  0x93   : > { %2895 = vmatpush.bf16.msra.mxu3 %v6274_v25  ;;  %v6425_v6 = vld [vmem:[%s8731_s2 + $0x2c0] sm:$0xf]  ;;  %v6562_v7 = vor.u32 %v7803_v0, %v6561_v63  ;;  %v7769_v8 = vld [vmem:[%s8731_s2 + $0x2c4] sm:$0xf0]  ;;  %v6353_v13 = vld [vmem:[%s8731_s2 + $0x230] sm:$0xf]  ;;  %v6362_v14 = vor.u32 %v7753_v5, %v6361_v4 }
  0x94   : > { %2857 = vmatpush.bf16.msra.mxu0 %v6074_v32  ;;  %v6489_v9 = vld [vmem:[%s8731_s2 + $0x340] sm:$0xf]  ;;  %v7785_v10 = vld [vmem:[%s8731_s2 + $0x344] sm:$0xf0]  ;;  %v7751_v15 = vld [vmem:[%s8731_s2 + $0x234] sm:$0xf0]  ;;  %v6426_v18 = vor.u32 %v7769_v8, %v6425_v6 }
  0x95   : > { %2870 = vmatpush.bf16.msra.mxu1 %v6138_v36  ;;  %v6553_v11 = vld [vmem:[%s8731_s2 + $0x3c0] sm:$0xf]  ;;  %v7801_v12 = vld [vmem:[%s8731_s2 + $0x3c4] sm:$0xf0]  ;;  %v6417_v16 = vld [vmem:[%s8731_s2 + $0x2b0] sm:$0xf]  ;;  %v6490_v19 = vor.u32 %v7785_v10, %v6489_v9  ;;  %v6354_v29 = vor.u32 %v7751_v15, %v6353_v13 }
  0x96   : > { %2883 = vmatpush.bf16.msra.mxu2 %v6202_v37  ;;  %v7767_v17 = vld [vmem:[%s8731_s2 + $0x2b4] sm:$0xf0]  ;;  %v6481_v20 = vld [vmem:[%s8731_s2 + $0x330] sm:$0xf]  ;;  %v400_v22 = vld [vmem:[%s8714_s16] sm:$0xff]  ;;  %v6554_v23 = vor.u32 %v7801_v12, %v6553_v11  ;;  %vm515_vm0 = vcmask 1043456  }
  0x97   : > { %2896 = vmatpush.bf16.msra.mxu3 %v6266_v40  ;;  %v7783_v21 = vld [vmem:[%s8731_s2 + $0x334] sm:$0xf0]  ;;  %v6545_v24 = vld [vmem:[%s8731_s2 + $0x3b0] sm:$0xf]  ;;  %432 = vst [vmem:[#allocation1] ss:$2 sm:$0xff] %v400_v22  ;;  %v6418_v33 = vor.u32 %v7767_v17, %v6417_v16 }
  0x98   : > { %2902 = vmatpush.bf16.msrb.mxu0 %v6386_v41  ;;  %v7799_v25 = vld [vmem:[%s8731_s2 + $0x3b4] sm:$0xf0]  ;;  %v6345_v26 = vld [vmem:[%s8731_s2 + $0x220] sm:$0xf]  ;;  %v7749_v27 = vld [vmem:[%s8731_s2 + $0x224] sm:$0xf0]  ;;  %v6482_v34 = vor.u32 %v7783_v21, %v6481_v20 }
  0x99   : > { %2915 = vmatpush.bf16.msrb.mxu1 %v6450_v42  ;;  %v401_v28 = vld [vmem:[%s8714_s16 + $0x8] sm:$0xff]  ;;  %v6409_v30 = vld [vmem:[%s8731_s2 + $0x2a0] sm:$0xf]  ;;  %v402_v37 = vld [vmem:[%s8714_s16 + $0x10] sm:$0xff]  ;;  %v6546_v38 = vor.u32 %v7799_v25, %v6545_v24  ;;  %v6346_v44 = vor.u32 %v7749_v27, %v6345_v26  ;;  %v8515_v11 = vmov 4.0   ;;  %vm1182_vm2 = vcmask 1041409  }
  0x9a   : > { %2928 = vmatpush.bf16.msrb.mxu2 %v6514_v43  ;;  %v7765_v31 = vld [vmem:[%s8731_s2 + $0x2a4] sm:$0xf0]  ;;  %v6473_v32 = vld [vmem:[%s8731_s2 + $0x320] sm:$0xf]  ;;  %434 = vst [vmem:[#allocation1 + $0x10] ss:$2 sm:$0xff] %v401_v28  ;;  %8168 = vrcp.f32 %v8515_v11 }
  0x9b   : > { %2941 = vmatpush.bf16.msrb.mxu3 %v6578_v47  ;;  %v7781_v35 = vld [vmem:[%s8731_s2 + $0x324] sm:$0xf0]  ;;  %v6537_v36 = vld [vmem:[%s8731_s2 + $0x3a0] sm:$0xf]  ;;  %436 = vst [vmem:[#allocation1 + $0x20] ss:$2 sm:$0xff] %v402_v37  ;;  %v6410_v49 = vor.u32 %v7765_v31, %v6409_v30 }
  0x9c   : > { %2903 = vmatpush.bf16.msrb.mxu0 %v6378_v53  ;;  %v7797_v39 = vld [vmem:[%s8731_s2 + $0x3a4] sm:$0xf0]  ;;  %v403_v40 = vld [vmem:[%s8714_s16 + $0x18] sm:$0xff]  ;;  %v6337_v41 = vld [vmem:[%s8731_s2 + $0x210] sm:$0xf]  ;;  %v6474_v50 = vor.u32 %v7781_v35, %v6473_v32  ;;  %vm1247_vm3 = vcmask 1043459  }
  0x9d   : > { %2916 = vmatpush.bf16.msrb.mxu1 %v6442_v54  ;;  %v7747_v42 = vld [vmem:[%s8731_s2 + $0x214] sm:$0xf0]  ;;  %v404_v43 = vld [vmem:[%s8714_s16 + $0x20] sm:$0xff]  ;;  %438 = vst [vmem:[#allocation1 + $0x30] ss:$2 sm:$0xff] %v403_v40  ;;  %v6538_v54 = vor.u32 %v7797_v39, %v6537_v36  ;;  %v405_v56 = vld [vmem:[%s8714_s16 + $0x28] sm:$0xff] }
  0x9e   : > { %2929 = vmatpush.bf16.msrb.mxu2 %v6506_v55  ;;  %v6401_v45 = vld [vmem:[%s8731_s2 + $0x290] sm:$0xf]  ;;  %v7763_v46 = vld [vmem:[%s8731_s2 + $0x294] sm:$0xf0]  ;;  %v6329_v57 = vld [vmem:[%s8731_s2 + $0x200] sm:$0xf]  ;;  %v6338_v60 = vor.u32 %v7747_v42, %v6337_v41 }
  0x9f   : > { %2942 = vmatpush.bf16.msrb.mxu3 %v6570_v59  ;;  %v6465_v47 = vld [vmem:[%s8731_s2 + $0x310] sm:$0xf]  ;;  %v7779_v48 = vld [vmem:[%s8731_s2 + $0x314] sm:$0xf0]  ;;  %v7745_v58 = vld [vmem:[%s8731_s2 + $0x204] sm:$0xf0] }
  0xa0   : > { %2904 = vmatpush.bf16.msrb.mxu0 %v6370_v1  ;;  %v6529_v51 = vld [vmem:[%s8731_s2 + $0x390] sm:$0xf]  ;;  %v8871_v53 = vld.sshfl [vmem:[#allocation1 + $0x8] sm:$0xff pattern:$0x75316420]  ;;  %v6466_v4 = vor.u32 %v7779_v48, %v6465_v47  ;;  %v408_v10 = vld [vmem:[%s8714_s16 + $0x40] sm:$0xff]  ;;  %v6330_v13 = vor.u32 %v7745_v58, %v6329_v57  ;;  %v8909_v26 = vpop.eup %8168 }
  0xa1   : > { %2917 = vmatpush.bf16.msrb.mxu1 %v6434_v2  ;;  %v439_v52 = vld.sshfl [vmem:[#allocation1] sm:$0xff pattern:$0x75316420]  ;;  %v7795_v55 = vld [vmem:[%s8731_s2 + $0x394] sm:$0xf0]  ;;  %v409_v21 = vld [vmem:[%s8714_s16 + $0x48] sm:$0xff]  ;;  %vm745_vm1 = vweird.f32 %v8909_v26 }
  0xa2   : > { %2930 = vmatpush.bf16.msrb.mxu2 %v6498_v3  ;;  %447 = vst [vmem:[#allocation1] ss:$2 sm:$0xff] %v404_v43  ;;  %v8877_v59 = vld.sshfl [vmem:[#allocation1 + $0x10] sm:$0xff pattern:$0x75316420]  ;;  %v406_v2 = vld [vmem:[%s8714_s16 + $0x30] sm:$0xff]  ;;  %v6402_v3 = vor.u32 %v7763_v46, %v6401_v45 }
  0xa3   : > { %2943 = vmatpush.bf16.msrb.mxu3 %v6562_v7  ;;  %v6393_v61 = vld [vmem:[%s8731_s2 + $0x280] sm:$0xf]  ;;  %v7761_v62 = vld [vmem:[%s8731_s2 + $0x284] sm:$0xf0]  ;;  %v6530_v7 = vor.u32 %v7795_v55, %v6529_v51  ;;  %v407_v12 = vld [vmem:[%s8714_s16 + $0x38] sm:$0xff]  ;;  %v516_v22 = vsel %vm515_vm0, %v439_v52, 0.0 }
  0xa4   : > { %2905 = vmatpush.bf16.msrb.mxu0 %v6362_v14  ;;  %v6457_v63 = vld [vmem:[%s8731_s2 + $0x300] sm:$0xf]  ;;  %v7777_v0 = vld [vmem:[%s8731_s2 + $0x304] sm:$0xf0]  ;;  %v6394_v16 = vor.u32 %v7761_v62, %v6393_v61  ;;  %v517_v30 = vrot.slane %v516_v22, 4  ;;  %v741_v31 = vmul.f32 4.0, %v8909_v26 }
  0xa5   : > { %2918 = vmatpush.bf16.msrb.mxu1 %v6426_v18  ;;  %v8883_v1 = vld.sshfl [vmem:[#allocation1 + $0x18] sm:$0xff pattern:$0x75316420]  ;;  %v6521_v5 = vld [vmem:[%s8731_s2 + $0x380] sm:$0xf]  ;;  %v6458_v17 = vor.u32 %v7777_v0, %v6457_v63  ;;  %v523_v36 = vsel %vm515_vm0, %v8871_v53, 0.0 }
  0xa6   : > { %2931 = vmatpush.bf16.msrb.mxu2 %v6490_v19  ;;  %v7793_v6 = vld [vmem:[%s8731_s2 + $0x384] sm:$0xf0]  ;;  %448 = vst [vmem:[#allocation1 + $0x10] ss:$2 sm:$0xff] %v405_v56  ;;  %v518_v39 = vadd.f32 %v517_v30, %v516_v22  ;;  %v524_v41 = vrot.slane %v523_v36, 4  ;;  %v537_v53 = vsel %vm515_vm0, %v8883_v1, 0.0 }
  0xa7   : > { %2944 = vmatpush.bf16.msrb.mxu3 %v6554_v23  ;;  %v8888_v8 = vld.sshfl [vmem:[#allocation1 + $0x20] sm:$0xff pattern:$0x75316420]  ;;  %v8890_v9 = vld.sshfl [vmem:[#allocation1 + $0x28] sm:$0xff pattern:$0x75316420]  ;;  %v6522_v20 = vor.u32 %v7793_v6, %v6521_v5 }
  0xa8   : > { %2906 = vmatpush.bf16.msrb.mxu0 %v6354_v29  ;;  %449 = vst [vmem:[#allocation1 + $0x20] ss:$2 sm:$0xff] %v406_v2  ;;  %v8894_v14 = vld.sshfl [vmem:[#allocation1 + $0x30] sm:$0xff pattern:$0x75316420]  ;;  %v410_v23 = vld [vmem:[%s8714_s16 + $0x50] sm:$0xff]  ;;  %v525_v47 = vadd.f32 %v524_v41, %v523_v36 }
  0xa9   : > { %2919 = vmatpush.bf16.msrb.mxu1 %v6418_v33  ;;  %v8896_v15 = vld.sshfl [vmem:[#allocation1 + $0x38] sm:$0xff pattern:$0x75316420]  ;;  %v8898_v18 = vld.sshfl [vmem:[#allocation1] sm:$0xff pattern:$0x75316420] }
  0xaa   : > { %2932 = vmatpush.bf16.msrb.mxu2 %v6482_v34  ;;  %10531 = vst [vmem:[#allocation23_spill] sm:$0xff] %v8898_v18  ;;  %v8900_v19 = vld.sshfl [vmem:[#allocation1 + $0x8] sm:$0xff pattern:$0x75316420]  ;;  %v412_v29 = vld [vmem:[%s8714_s16 + $0x60] sm:$0xff]  ;;  %v413_v32 = vld [vmem:[%s8714_s16 + $0x68] sm:$0xff] }
  0xab   : > { %2945 = vmatpush.bf16.msrb.mxu3 %v6546_v38  ;;  %10532 = vst [vmem:[#allocation24_spill] sm:$0xff] %v8900_v19  ;;  %v411_v38 = vld [vmem:[%s8714_s16 + $0x58] sm:$0xff]  ;;  %v519_v55 = vrot.slane %v518_v39, 2  ;;  %v742_v57 = vsub.f32 1.0, %v741_v31  ;;  %v779_v58 = vld [vmem:[%s8721_s30] sm:$0xff]  ;;  %v414_v61 = vld [vmem:[%s8714_s16 + $0x70] sm:$0xff] }
  0xac   : > { %2907 = vmatpush.bf16.msrb.mxu0 %v6346_v44  ;;  %459 = vst [vmem:[#allocation1] ss:$2 sm:$0xff] %v408_v10  ;;  %v526_v62 = vrot.slane %v525_v47, 2  ;;  %v780_v63 = vld [vmem:[%s8721_s30 + $0x8] sm:$0xff]  ;;  %v538_v0 = vrot.slane %v537_v53, 4  ;;  %vm1280_vm4 = vcmask 1041408  }
  0xad   : > { %2920 = vmatpush.bf16.msrb.mxu1 %v6410_v49  ;;  %450 = vst [vmem:[#allocation1 + $0x30] ss:$2 sm:$0xff] %v407_v12  ;;  %v8905_v24 = vld.sshfl [vmem:[#allocation1 + $0x10] sm:$0xff pattern:$0x75316420]  ;;  %v530_v49 = vsel %vm515_vm0, %v8877_v59, 0.0 }
  0xae   : > { %2933 = vmatpush.bf16.msrb.mxu2 %v6474_v50  ;;  %10533 = vst [vmem:[#allocation25_spill] sm:$0xff] %v8905_v24  ;;  %v8907_v25 = vld.sshfl [vmem:[#allocation1 + $0x18] sm:$0xff pattern:$0x75316420]  ;;  %v531_v51 = vrot.slane %v530_v49, 4  ;;  %v782_v19 = vld [vmem:[%s8721_s30 + $0x18] sm:$0xff] }
  0xaf   : > { %2946 = vmatpush.bf16.msrb.mxu3 %v6538_v54  ;;  %10534 = vst [vmem:[#allocation26_spill] sm:$0xff] %v8907_v25  ;;  %v8911_v27 = vld.sshfl [vmem:[#allocation1 + $0x20] sm:$0xff pattern:$0x75316420]  ;;  %p7095_p5 = scmp.ne.s32.totalorder %s8579_s25, 3 }
  0xb0   : > { %2908 = vmatpush.bf16.msrb.mxu0 %v6338_v60  ;;  %460 = vst [vmem:[#allocation1 + $0x10] ss:$2 sm:$0xff] %v409_v21  ;;  %v8913_v28 = vld.sshfl [vmem:[#allocation1 + $0x28] sm:$0xff pattern:$0x75316420]  ;;  %v532_v59 = vadd.f32 %v531_v51, %v530_v49  ;;  %v781_v25 = vld [vmem:[%s8721_s30 + $0x10] sm:$0xff] }
  0xb1   : > { %2921 = vmatpush.bf16.msrb.mxu1 %v6402_v3  ;;  %10535 = vst [vmem:[#allocation27_spill] sm:$0xff] %v8911_v27  ;;  %s8517_s7 = smov (!%p7095_p5), 80   ;;  %s8518_s19 = smov (!%p7095_p5), 96  }
  0xb2   : > { %2934 = vmatpush.bf16.msrb.mxu2 %v6466_v4  ;;  %10536 = vst [vmem:[#allocation28_spill] sm:$0xff] %v8913_v28  ;;  %v533_v11 = vrot.slane %v532_v59, 2  ;;  %v9063_v28 = vld [vmem:[%s8731_s2 + $0x450] sm:$0xf]  ;;  %s8519_s28 = smov (!%p7095_p5), 112   ;;  %s8520_s9 = smov (!%p7095_p5), 32  }
  0xb3   : > { %2947 = vmatpush.bf16.msrb.mxu3 %v6530_v7  ;;  %461 = vst [vmem:[#allocation1 + $0x20] ss:$2 sm:$0xff] %v410_v23  ;;  %v463_v33 = vld.sshfl [vmem:[#allocation1] sm:$0xff pattern:$0x75316420]  ;;  %v539_v7 = vadd.f32 %v538_v0, %v537_v53  ;;  %v743_v23 = vmul.f32 %v8909_v26, %v742_v57  ;;  %s8521_s5 = smov (!%p7095_p5), 64  }
  0xb4   : > { %2909 = vmatpush.bf16.msrb.mxu0 %v6330_v13  ;;  %v464_v34 = vld.sshfl [vmem:[#allocation1 + $0x8] sm:$0xff pattern:$0x75316420]  ;;  %v628_v35 = vsel %vm515_vm0, %v463_v33, 0.0  ;;  %s8522_s29 = smov (!%p7095_p5), 48   ;;  %s8523_s17 = smov (!%p7095_p5), 16  }
  0xb5   : > { %2922 = vmatpush.bf16.msrb.mxu1 %v6394_v16  ;;  %471 = vst [vmem:[#allocation1] ss:$2 sm:$0xff] %v412_v29  ;;  %v635_v37 = vsel %vm515_vm0, %v464_v34, 0.0  ;;  %v629_v40 = vrot.slane %v628_v35, 4  ;;  %v415_v13 = vld [vmem:[%s8714_s16 + $0x78] sm:$0xff]  ;;  %v520_v16 = vadd.f32 %v519_v55, %v518_v39  ;;  %v783_v34 = vld [vmem:[%s8721_s30 + $0x20] sm:$0xff] }
  0xb6   : > { %2935 = vmatpush.bf16.msrb.mxu2 %v6458_v17  ;;  %v636_v42 = vrot.slane %v635_v37, 4  ;;  %v8923_v43 = vld.sshfl [vmem:[#allocation1 + $0x30] sm:$0xff pattern:$0x75316420] }
  0xb7   : > { %2948 = vmatpush.bf16.msrb.mxu3 %v6522_v20  ;;  %10537 = vst [vmem:[#allocation29_spill] sm:$0xff] %v8923_v43  ;;  %v465_v44 = vld.sshfl [vmem:[#allocation1 + $0x10] sm:$0xff pattern:$0x75316420]  ;;  %v630_v46 = vadd.f32 %v629_v40, %v628_v35  ;;  %v527_v20 = vadd.f32 %v526_v62, %v525_v47  ;;  %v534_v35 = vadd.f32 %v533_v11, %v532_v59 }
  0xb8   : > { %v466_v45 = vld.sshfl [vmem:[#allocation1 + $0x18] sm:$0xff pattern:$0x75316420]  ;;  %v637_v48 = vadd.f32 %v636_v42, %v635_v37  ;;  %v642_v52 = vsel %vm515_vm0, %v465_v44, 0.0  ;;  %v521_v37 = vrot.slane %v520_v16, 1  ;;  %v744_v40 = vadd.f32 %v8909_v26, %v743_v23 }
  0xb9   : > { %472 = vst [vmem:[#allocation1 + $0x10] ss:$2 sm:$0xff] %v413_v32  ;;  %v8927_v50 = vld.sshfl [vmem:[#allocation1 + $0x38] sm:$0xff pattern:$0x75316420]  ;;  %v649_v54 = vsel %vm515_vm0, %v466_v45, 0.0 }
  0xba   : > { %10538 = vst [vmem:[#allocation30_spill] sm:$0xff] %v8927_v50  ;;  %v631_v56 = vrot.slane %v630_v46, 2  ;;  %v643_v60 = vrot.slane %v642_v52, 4  ;;  %v650_v2 = vrot.slane %v649_v54, 4  ;;  %v638_v6 = vrot.slane %v637_v48, 2 }
  0xbb   : > { %462 = vst [vmem:[#allocation1 + $0x30] ss:$2 sm:$0xff] %v411_v38  ;;  %v8936_v3 = vld.sshfl [vmem:[#allocation1 + $0x20] sm:$0xff pattern:$0x75316420]  ;;  %v540_v32 = vrot.slane %v539_v7, 2  ;;  %v522_v55 = vadd.f32 %v521_v37, %v520_v16  ;;  %v8964_v59 = vsel %vm745_vm1, %v8909_v26, %v744_v40 }
  0xbc   : > { %v8938_v4 = vld.sshfl [vmem:[#allocation1] sm:$0xff pattern:$0x75316420]  ;;  %v8940_v1 = vld.sshfl [vmem:[#allocation1 + $0x8] sm:$0xff pattern:$0x75316420]  ;;  %v644_v5 = vadd.f32 %v643_v60, %v642_v52  ;;  %v651_v12 = vadd.f32 %v650_v2, %v649_v54  ;;  %v632_v17 = vadd.f32 %v631_v56, %v630_v46  ;;  %v639_v31 = vadd.f32 %v638_v6, %v637_v48 }
  0xbd   : > { %10539 = vst [vmem:[#allocation31_spill] sm:$0xff] %v8938_v4  ;;  %v8942_v10 = vld.sshfl [vmem:[#allocation1 + $0x28] sm:$0xff pattern:$0x75316420]  ;;  %v528_v39 = vrot.slane %v527_v20, 1  ;;  %v784_v48 = vld [vmem:[%s8721_s30 + $0x28] sm:$0xff]  ;;  %v541_v49 = vadd.f32 %v540_v32, %v539_v7 }
  0xbe   : > { %10540 = vst [vmem:[#allocation32_spill] sm:$0xff] %v8940_v1  ;;  %v645_v29 = vrot.slane %v644_v5, 2  ;;  %v652_v36 = vrot.slane %v651_v12, 2  ;;  %v633_v38 = vrot.slane %v632_v17, 1  ;;  %v640_v46 = vrot.slane %v639_v31, 1 }
  0xbf   : > { %811 = vst [vmem:[#allocation1] ss:$2 sm:$0xff] %v779_v58  ;;  %v535_v53 = vrot.slane %v534_v35, 1  ;;  %v542_v0 = vrot.slane %v541_v49, 1  ;;  %v529_v16 = vadd.f32 %v528_v39, %v527_v20 }
  0xc0   : > { %473 = vst [vmem:[#allocation1 + $0x20] ss:$2 sm:$0xff] %v414_v61  ;;  %v8945_v21 = vld.sshfl [vmem:[#allocation1 + $0x10] sm:$0xff pattern:$0x75316420]  ;;  %v646_v44 = vadd.f32 %v645_v29, %v644_v5  ;;  %v653_v54 = vadd.f32 %v652_v36, %v651_v12  ;;  %v641_v23 = vadd.f32 %v640_v46, %v639_v31 }
  0xc1   : > { %10541 = vst [vmem:[#allocation33_spill] sm:$0xff] %v8945_v21  ;;  %v8947_v22 = vld.sshfl [vmem:[#allocation1 + $0x18] sm:$0xff pattern:$0x75316420]  ;;  %v787_v5 = vld [vmem:[%s8721_s30 + $0x40] sm:$0xff]  ;;  %v536_v36 = vadd.f32 %v535_v53, %v534_v35  ;;  %v748_v39 = vmul.f32 %v8964_v59, %v529_v16 }
  0xc2   : > { %10542 = vst [vmem:[#allocation34_spill] sm:$0xff] %v8947_v22  ;;  %v8950_v30 = vld.sshfl [vmem:[#allocation1 + $0x30] sm:$0xff pattern:$0x75316420]  ;;  %v647_v61 = vrot.slane %v646_v44, 1  ;;  %v654_v11 = vrot.slane %v653_v54, 1 }
  0xc3   : > { %813 = vst [vmem:[#allocation1 + $0x10] ss:$2 sm:$0xff] %v780_v63  ;;  %v8952_v33 = vld.sshfl [vmem:[#allocation1 + $0x38] sm:$0xff pattern:$0x75316420] }
  0xc4   : > { %474 = vst [vmem:[#allocation1 + $0x30] ss:$2 sm:$0xff] %v415_v13  ;;  %v634_v13 = vadd.f32 %v633_v38, %v632_v17  ;;  %v648_v37 = vadd.f32 %v647_v61, %v646_v44  ;;  %v543_v17 = vadd.f32 %v542_v0, %v541_v49  ;;  %v655_v20 = vadd.f32 %v654_v11, %v653_v54  ;;  %v8981_v49 = vld [vmem:[%s8731_s2 + $0x470] sm:$0xf] }
  0xc5   : > { %v747_v38 = vmul.f32 %v8964_v59, %v522_v55  ;;  %v8987_v55 = vld [vmem:[%s8731_s2 + $0x474] sm:$0xf0]  ;;  %v9004_v0 = vld [vmem:[%s8731_s2 + $0x5f0] sm:$0xf] }
  0xc6   : > { %v818_v41 = vld.sshfl [vmem:[#allocation1] sm:$0xff pattern:$0x75316420]  ;;  %v819_v42 = vld.sshfl [vmem:[#allocation1 + $0x8] sm:$0xff pattern:$0x75316420]  ;;  %v763_v35 = vmul.f32 %v8964_v59, %v634_v13  ;;  %v765_v53 = vmul.f32 %v8964_v59, %v648_v37  ;;  %v750_v61 = vmul.f32 %v8964_v59, %v543_v17 }
  0xc7   : > { %826 = vst [vmem:[#allocation1] ss:$2 sm:$0xff] %v783_v34  ;;  %v894_v45 = vsel %vm515_vm0, %v818_v41, 0.0  ;;  %v901_v47 = vsel %vm515_vm0, %v819_v42, 0.0  ;;  %v788_v42 = vld [vmem:[%s8721_s30 + $0x48] sm:$0xff] }
  0xc8   : > { %v895_v51 = vrot.slane %v894_v45, 4  ;;  %v902_v52 = vrot.slane %v901_v47, 4  ;;  %v9016_v13 = vld [vmem:[%s8731_s2 + $0x464] sm:$0xf0] }
  0xc9   : > { %v9091_v22 = vld.sshfl [vmem:[#allocation1 + $0x20] sm:$0xff pattern:$0x75316420] }
  0xca   : > { %v820_v56 = vld.sshfl [vmem:[#allocation1 + $0x10] sm:$0xff pattern:$0x75316420]  ;;  %v821_v57 = vld.sshfl [vmem:[#allocation1 + $0x18] sm:$0xff pattern:$0x75316420]  ;;  %v896_v58 = vadd.f32 %v895_v51, %v894_v45  ;;  %v903_v60 = vadd.f32 %v902_v52, %v901_v47  ;;  %v764_v51 = vmul.f32 %v8964_v59, %v641_v23  ;;  %v749_v52 = vmul.f32 %v8964_v59, %v536_v36 }
  0xcb   : > { %827 = vst [vmem:[#allocation1 + $0x10] ss:$2 sm:$0xff] %v784_v48  ;;  %v908_v62 = vsel %vm515_vm0, %v820_v56, 0.0  ;;  %v915_v2 = vsel %vm515_vm0, %v821_v57, 0.0  ;;  %v8990_v56 = vld [vmem:[%s8731_s2 + $0x4f0] sm:$0xf] }
  0xcc   : > { %v909_v63 = vrot.slane %v908_v62, 4  ;;  %v897_v6 = vrot.slane %v896_v58, 2  ;;  %v904_v7 = vrot.slane %v903_v60, 2  ;;  %v916_v12 = vrot.slane %v915_v2, 4  ;;  %10547 = vst [vmem:[#allocation39_spill] sm:$0xff] %v9091_v22 }
  0xcd   : > { %v9022_v36 = vsel %vm1182_vm2, %v765_v53, %v749_v52  ;;  %v9053_v53 = vld [vmem:[%s8731_s2 + $0x5e4] sm:$0xf0] }
  0xce   : > { %v910_v29 = vadd.f32 %v909_v63, %v908_v62  ;;  %v8968_v32 = vld.sshfl [vmem:[#allocation1] sm:$0xff pattern:$0x75316420]  ;;  %v8970_v34 = vld.sshfl [vmem:[#allocation1 + $0x8] sm:$0xff pattern:$0x75316420]  ;;  %v898_v26 = vadd.f32 %v897_v6, %v896_v58  ;;  %v917_v40 = vadd.f32 %v916_v12, %v915_v2  ;;  %v905_v41 = vadd.f32 %v904_v7, %v903_v60 }
  0xcf   : > { %10543 = vst [vmem:[#allocation35_spill] sm:$0xff] %v8968_v32  ;;  %v8993_v58 = vld [vmem:[%s8731_s2 + $0x4f4] sm:$0xf0]  ;;  %v8996_v60 = vld [vmem:[%s8731_s2 + $0x570] sm:$0xf]  ;;  %v766_v62 = vmul.f32 %v8964_v59, %v655_v20  ;;  %v9010_v6 = vsel %vm1182_vm2, %v763_v35, %v747_v38 }
  0xd0   : > { %10544 = vst [vmem:[#allocation36_spill] sm:$0xff] %v8970_v34  ;;  %v911_v45 = vrot.slane %v910_v29, 2  ;;  %v899_v47 = vrot.slane %v898_v26, 1  ;;  %v918_v31 = vrot.slane %v917_v40, 2  ;;  %v906_v57 = vrot.slane %v905_v41, 1 }
  0xd1   : > { %838 = vst [vmem:[#allocation1] ss:$2 sm:$0xff] %v787_v5  ;;  %v9001_v63 = vld [vmem:[%s8731_s2 + $0x574] sm:$0xf0]  ;;  %v9013_v12 = vld [vmem:[%s8731_s2 + $0x460] sm:$0xf] }
  0xd2   : > { %v8976_v44 = vld.sshfl [vmem:[#allocation1 + $0x10] sm:$0xff pattern:$0x75316420]  ;;  %v8978_v46 = vld.sshfl [vmem:[#allocation1 + $0x18] sm:$0xff pattern:$0x75316420]  ;;  %v912_v48 = vadd.f32 %v911_v45, %v910_v29  ;;  %v919_v54 = vadd.f32 %v918_v31, %v917_v40  ;;  %v900_v5 = vadd.f32 %v899_v47, %v898_v26  ;;  %v9019_v29 = vsel %vm1182_vm2, %v764_v51, %v748_v39 }
  0xd3   : > { %10545 = vst [vmem:[#allocation37_spill] sm:$0xff] %v8976_v44  ;;  %v9007_v2 = vld [vmem:[%s8731_s2 + $0x5f4] sm:$0xf0]  ;;  %v9029_v40 = vld [vmem:[%s8731_s2 + $0x4e0] sm:$0xf]  ;;  %v907_v47 = vadd.f32 %v906_v57, %v905_v41  ;;  %v9045_v51 = vsel %vm1182_vm2, %v766_v62, %v750_v61 }
  0xd4   : > { %10546 = vst [vmem:[#allocation38_spill] sm:$0xff] %v8978_v46  ;;  %v913_v7 = vrot.slane %v912_v48, 1  ;;  %v920_v11 = vrot.slane %v919_v54, 1  ;;  %v9039_v31 = vld [vmem:[%s8731_s2 + $0x560] sm:$0xf]  ;;  %v9056_v57 = vmul.f32 %v900_v5, %v8964_v59 }
  0xd5   : > { %839 = vst [vmem:[#allocation1 + $0x10] ss:$2 sm:$0xff] %v788_v42  ;;  %v9032_v42 = vld [vmem:[%s8731_s2 + $0x4e4] sm:$0xf0]  ;;  %v9050_v41 = vld [vmem:[%s8731_s2 + $0x5e0] sm:$0xf] }
  0xd6   : > { %v9042_v38 = vld [vmem:[%s8731_s2 + $0x564] sm:$0xf0]  ;;  %v921_v37 = vadd.f32 %v920_v11, %v919_v54  ;;  %v9066_v5 = vld [vmem:[%s8731_s2 + $0x454] sm:$0xf0] }
  0xd7   : > { %v9085_v61 = vld [vmem:[%s8731_s2 + $0x554] sm:$0xf0] }
  0xd8   : > { %v842_v16 = vld.sshfl [vmem:[#allocation1] sm:$0xff pattern:$0x75316420]  ;;  %v843_v23 = vld.sshfl [vmem:[#allocation1 + $0x8] sm:$0xff pattern:$0x75316420]  ;;  %v1121_v46 = vmul.f32 %v921_v37, %v8964_v59 }
  0xd9   : > { %v1006_v45 = vsel %vm515_vm0, %v842_v16, 0.0  ;;  %v1013_v17 = vsel %vm515_vm0, %v843_v23, 0.0  ;;  %v914_v23 = vadd.f32 %v913_v7, %v912_v48  ;;  %v1119_v48 = vmul.f32 %v907_v47, %v8964_v59 }
  0xda   : > { %v1007_v35 = vrot.slane %v1006_v45, 4  ;;  %v1014_v39 = vrot.slane %v1013_v17, 4  ;;  %v544_v37 = vsel %vm515_vm0, %v8888_v8, 0.0  ;;  %v9111_v8 = vld.sshfl [vmem:[#allocation1 + $0x38] sm:$0xff pattern:$0x75316420] }
  0xdb   : > { %v9088_v11 = vmul.f32 %v914_v23, %v8964_v59  ;;  %v558_v23 = vsel %vm515_vm0, %v8894_v14, 0.0 }
  0xdc   : > { %v844_v16 = vld.sshfl [vmem:[#allocation1 + $0x10] sm:$0xff pattern:$0x75316420]  ;;  %v845_v20 = vld.sshfl [vmem:[#allocation1 + $0x18] sm:$0xff pattern:$0x75316420]  ;;  %v1008_v62 = vadd.f32 %v1007_v35, %v1006_v45  ;;  %v1015_v26 = vadd.f32 %v1014_v39, %v1013_v17 }
  0xdd   : > { %v1020_v52 = vsel %vm515_vm0, %v844_v16, 0.0  ;;  %v1027_v50 = vsel %vm515_vm0, %v845_v20, 0.0  ;;  %v9072_v45 = vld [vmem:[%s8731_s2 + $0x4d0] sm:$0xf]  ;;  %v9075_v17 = vld [vmem:[%s8731_s2 + $0x4d4] sm:$0xf0] }
  0xde   : > { %v1021_v7 = vrot.slane %v1020_v52, 4  ;;  %v1028_v54 = vrot.slane %v1027_v50, 4  ;;  %v1009_v35 = vrot.slane %v1008_v62, 2  ;;  %v1016_v20 = vrot.slane %v1015_v26, 2  ;;  %v9082_v16 = vld [vmem:[%s8731_s2 + $0x550] sm:$0xf] }
  0xdf   : > { %v9107_v39 = vld.sshfl [vmem:[#allocation1 + $0x30] sm:$0xff pattern:$0x75316420]  ;;  %v559_v24 = vrot.slane %v558_v23, 4 }
  0xe0   : > { %v1022_v43 = vadd.f32 %v1021_v7, %v1020_v52  ;;  %v1029_v27 = vadd.f32 %v1028_v54, %v1027_v50  ;;  %v1010_v34 = vadd.f32 %v1009_v35, %v1008_v62  ;;  %v1017_v1 = vadd.f32 %v1016_v20, %v1015_v26  ;;  %v9101_v50 = vld.sshfl [vmem:[#allocation1 + $0x28] sm:$0xff pattern:$0x75316420]  ;;  %817 = vst [vmem:[#allocation1 + $0x30] ss:$2 sm:$0xff] %v782_v19 }
  0xe1   : > { %10548 = vst [vmem:[#allocation40_spill] sm:$0xff] %v9101_v50  ;;  %v545_v26 = vrot.slane %v544_v37, 4  ;;  %v656_v54 = vsel %vm515_vm0, %v8936_v3, 0.0  ;;  %v560_v3 = vadd.f32 %v559_v24, %v558_v23  ;;  %v9128_v23 = vld [vmem:[%s8731_s2 + $0x5d0] sm:$0xf] }
  0xe2   : > { %v1023_v44 = vrot.slane %v1022_v43, 2  ;;  %v1030_v52 = vrot.slane %v1029_v27, 2  ;;  %v1011_v7 = vrot.slane %v1010_v34, 1  ;;  %v1018_v62 = vrot.slane %v1017_v1, 1  ;;  %815 = vst [vmem:[#allocation1 + $0x20] ss:$2 sm:$0xff] %v781_v25 }
  0xe3   : > { %v657_v47 = vrot.slane %v656_v54, 4  ;;  %v546_v21 = vadd.f32 %v545_v26, %v544_v37  ;;  %v670_v25 = vsel %vm515_vm0, %v8950_v30, 0.0 }
  0xe4   : > { %v1024_v35 = vadd.f32 %v1023_v44, %v1022_v43  ;;  %v1031_v20 = vadd.f32 %v1030_v52, %v1029_v27  ;;  %v1012_v22 = vadd.f32 %v1011_v7, %v1010_v34  ;;  %v1019_v50 = vadd.f32 %v1018_v62, %v1017_v1  ;;  %v785_v52 = vld [vmem:[%s8721_s30 + $0x30] sm:$0xff]  ;;  %v9140_v62 = vld [vmem:[%s8731_s2 + $0x440] sm:$0xf] }
  0xe5   : > { %v658_v18 = vadd.f32 %v657_v47, %v656_v54  ;;  %v547_v14 = vrot.slane %v546_v21, 2  ;;  %v671_v37 = vrot.slane %v670_v25, 4  ;;  %v561_v7 = vrot.slane %v560_v3, 2 }
  0xe6   : > { %v1025_v32 = vrot.slane %v1024_v35, 1  ;;  %v1032_v4 = vrot.slane %v1031_v20, 1  ;;  %v1134_v27 = vmul.f32 %v1012_v22, %v8964_v59  ;;  %v1135_v43 = vmul.f32 %v1019_v50, %v8964_v59 }
  0xe7   : > { %v659_v44 = vrot.slane %v658_v18, 2  ;;  %v548_v19 = vadd.f32 %v547_v14, %v546_v21  ;;  %v562_v14 = vadd.f32 %v561_v7, %v560_v3  ;;  %v9176_v7 = vld [vmem:[%s8731_s2 + $0x544] sm:$0xf0] }
  0xe8   : > { %v1026_v1 = vadd.f32 %v1025_v32, %v1024_v35  ;;  %v1033_v34 = vadd.f32 %v1032_v4, %v1031_v20  ;;  %v1248_v47 = vsel %vm1247_vm3, %v1134_v27, %v9056_v57  ;;  %v1249_v30 = vsel %vm1247_vm3, %v1135_v43, %v1119_v48  ;;  %v9131_v57 = vld [vmem:[%s8731_s2 + $0x5d4] sm:$0xf0]  ;;  %v9146_v20 = vld [vmem:[%s8731_s2 + $0x444] sm:$0xf0]  ;;  %v9149_v27 = vld [vmem:[%s8731_s2 + $0x4c0] sm:$0xf] }
  0xe9   : > { %v1281_v22 = vsel %vm1280_vm4, %v9010_v6, %v1248_v47  ;;  %v1282_v24 = vsel %vm1280_vm4, %v9019_v29, %v1249_v30  ;;  %v822_v48 = vld.sshfl [vmem:[#allocation1 + $0x20] sm:$0xff pattern:$0x75316420]  ;;  %v9133_v21 = vld.sshfl [vmem:[#allocation1 + $0x28] sm:$0xff pattern:$0x75316420]  ;;  %v660_v26 = vadd.f32 %v659_v44, %v658_v18  ;;  %v10549_v30 = vor.u32 %v8987_v55, %v8981_v49 }
  0xea   : > { %v1136_v4 = vmul.f32 %v1026_v1, %v8964_v59  ;;  %v1137_v32 = vmul.f32 %v1033_v34, %v8964_v59  ;;  %v9135_v50 = vpack.c.bf16 %v1281_v22, %v1281_v22  ;;  %v9137_v6 = vpack.c.bf16 %v1282_v24, %v1282_v24  ;;  %828 = vst [vmem:[#allocation1 + $0x20] ss:$2 sm:$0xff] %v785_v52  ;;  %v786_v1 = vld [vmem:[%s8721_s30 + $0x38] sm:$0xff]  ;;  %v824_v52 = vld.sshfl [vmem:[#allocation1 + $0x30] sm:$0xff pattern:$0x75316420] }
  0xeb   : > { %v549_v29 = vrot.slane %v548_v19, 1  ;;  %v922_v43 = vsel %vm515_vm0, %v822_v48, 0.0  ;;  %v661_v44 = vrot.slane %v660_v26, 1  ;;  %v563_v22 = vrot.slane %v562_v14, 1  ;;  %v9183_v49 = vld [vmem:[%s8731_s2 + $0x5c0] sm:$0xf] }
  0xec   : > { %v1250_v54 = vsel %vm1247_vm3, %v1136_v4, %v9088_v11  ;;  %v1251_v35 = vsel %vm1247_vm3, %v1137_v32, %v1121_v46  ;;  %2858 = vmatmul.bf16.vlgmr.msra.gmra.mxu0 %v9135_v50  ;;  %2871 = vmatmul.bf16.vlgmr.msra.gmra.mxu1 %v9137_v6  ;;  %v9160_v11 = vld [vmem:[%s8731_s2 + $0x4c4] sm:$0xf0]  ;;  %v6818_v4 = vor.u32 %v9131_v57, %v9128_v23  ;;  %v936_v32 = vsel %vm515_vm0, %v824_v52, 0.0  ;;  %v9209_v52 = vld [vmem:[%s8731_s2 + $0x434] sm:$0xf0] }
  0xed   : > { %v1283_v18 = vsel %vm1280_vm4, %v9022_v36, %v1250_v54  ;;  %v1284_v46 = vsel %vm1280_vm4, %v9045_v51, %v1251_v35  ;;  %v550_v34 = vadd.f32 %v549_v29, %v548_v19  ;;  %2954 = vmatpush.bf16.msra.mxu0 %v10549_v30  ;;  %v10550_v36 = vor.u32 %v8993_v58, %v8990_v56  ;;  %v9173_v51 = vld [vmem:[%s8731_s2 + $0x540] sm:$0xf]  ;;  %v9178_v24 = vld.sshfl [vmem:[#allocation1 + $0x38] sm:$0xff pattern:$0x75316420]  ;;  %v789_v29 = vld [vmem:[%s8721_s30 + $0x50] sm:$0xff] }
  0xee   : > { %v9162_v47 = vpack.c.bf16 %v1283_v18, %v1283_v18  ;;  %v9164_v3 = vpack.c.bf16 %v1284_v46, %v1284_v46  ;;  %v923_v19 = vrot.slane %v922_v43, 4  ;;  %v9186_v55 = vld [vmem:[%s8731_s2 + $0x5c4] sm:$0xf0]  ;;  %v662_v56 = vadd.f32 %v661_v44, %v660_v26  ;;  %829 = vst [vmem:[#allocation1 + $0x30] ss:$2 sm:$0xff] %v786_v1 }
  0xef   : > { %2967 = vmatpush.bf16.msra.mxu1 %v10550_v36  ;;  %v672_v58 = vadd.f32 %v671_v37, %v670_v25  ;;  %v6618_v48 = vor.u32 %v9146_v20, %v9140_v62  ;;  %v937_v35 = vrot.slane %v936_v32, 4  ;;  %v9195_v18 = vld [vmem:[%s8731_s2 + $0x430] sm:$0xf]  ;;  %v551_v25 = vsel %vm515_vm0, %v8890_v9, 0.0  ;;  %v791_v37 = vld [vmem:[%s8721_s30 + $0x60] sm:$0xff] }
  0xf0   : > { %2884 = vmatmul.bf16.vlgmr.msra.gmra.mxu2 %v9162_v47  ;;  %2897 = vmatmul.bf16.vlgmr.msra.gmra.mxu3 %v9164_v3  ;;  %v924_v54 = vadd.f32 %v923_v19, %v922_v43  ;;  %v10551_v26 = vor.u32 %v9001_v63, %v8996_v60  ;;  %v10552_v1 = vor.u32 %v9007_v2, %v9004_v0  ;;  %v9212_v30 = vld [vmem:[%s8731_s2 + $0x4b0] sm:$0xf]  ;;  %v552_v9 = vrot.slane %v551_v25, 4  ;;  %v790_v19 = vld [vmem:[%s8721_s30 + $0x58] sm:$0xff] }
  0xf1   : > { %v6682_v46 = vor.u32 %v9160_v11, %v9149_v27  ;;  %v564_v44 = vadd.f32 %v563_v22, %v562_v14  ;;  %v673_v43 = vrot.slane %v672_v58, 2  ;;  %v10553_v60 = vor.u32 %v9016_v13, %v9013_v12  ;;  %v9222_v27 = vld.sshfl [vmem:[#allocation1 + $0x20] sm:$0xff pattern:$0x75316420]  ;;  %850 = vst [vmem:[#allocation1] ss:$2 sm:$0xff] %v791_v37 }
  0xf2   : > { %2980 = vmatpush.bf16.msra.mxu2 %v10551_v26  ;;  %2993 = vmatpush.bf16.msra.mxu3 %v10552_v1  ;;  %v10554_v63 = vor.u32 %v9032_v42, %v9029_v40  ;;  %v751_v0 = vmul.f32 %v8964_v59, %v550_v34  ;;  %v767_v2 = vmul.f32 %v8964_v59, %v662_v56  ;;  %v9224_v14 = vld.sshfl [vmem:[#allocation1 + $0x28] sm:$0xff pattern:$0x75316420]  ;;  %v925_v12 = vrot.slane %v924_v54, 2 }
  0xf3   : > { %2955 = vmatpush.bf16.msra.mxu0 %v10553_v60  ;;  %v938_v11 = vadd.f32 %v937_v35, %v936_v32  ;;  %v6746_v36 = vor.u32 %v9176_v7, %v9173_v51  ;;  %840 = vst [vmem:[#allocation1 + $0x20] ss:$2 sm:$0xff] %v789_v29  ;;  %v674_v13 = vadd.f32 %v673_v43, %v672_v58  ;;  %v9229_v40 = vld [vmem:[%s8731_s2 + $0x4b4] sm:$0xf0]  ;;  %v663_v51 = vsel %vm515_vm0, %v8942_v10, 0.0  ;;  %v792_v7 = vld [vmem:[%s8721_s30 + $0x68] sm:$0xff] }
  0xf4   : > { %2968 = vmatpush.bf16.msra.mxu1 %v10554_v63  ;;  %v553_v42 = vadd.f32 %v552_v9, %v551_v25  ;;  %v6810_v34 = vor.u32 %v9186_v55, %v9183_v49  ;;  %v6610_v56 = vor.u32 %v9209_v52, %v9195_v18  ;;  %v10555_v32 = vor.u32 %v9042_v38, %v9039_v31  ;;  %v9247_v55 = vld [vmem:[%s8731_s2 + $0x530] sm:$0xf]  ;;  %v9250_v18 = vld [vmem:[%s8731_s2 + $0x534] sm:$0xf0] }
  0xf5   : > { %v939_v22 = vrot.slane %v938_v11, 2  ;;  %v10556_v58 = vor.u32 %v9053_v53, %v9050_v41  ;;  %v926_v29 = vadd.f32 %v925_v12, %v924_v54  ;;  %v675_v35 = vrot.slane %v674_v13, 1  ;;  %v9253_v25 = vld [vmem:[%s8731_s2 + $0x5b0] sm:$0xf]  ;;  %851 = vst [vmem:[#allocation1 + $0x10] ss:$2 sm:$0xff] %v792_v7 }
  0xf6   : > { %2981 = vmatpush.bf16.msra.mxu2 %v10555_v32  ;;  %v753_v49 = vmul.f32 %v8964_v59, %v564_v44  ;;  %v554_v10 = vrot.slane %v553_v42, 2  ;;  %v10557_v31 = vor.u32 %v9066_v5, %v9063_v28  ;;  %v10558_v38 = vor.u32 %v9075_v17, %v9072_v45  ;;  %v9264_v53 = vld.sshfl [vmem:[#allocation1 + $0x30] sm:$0xff pattern:$0x75316420]  ;;  %v7863_v28 = vld [vmem:[%s8731_s2 + $0x5b4] sm:$0xf0] }
  0xf7   : > { %2994 = vmatpush.bf16.msra.mxu3 %v10556_v58  ;;  %v9262_v41 = vsel %vm1182_vm2, %v767_v2, %v751_v0  ;;  %v9266_v54 = vld.sshfl [vmem:[#allocation1 + $0x38] sm:$0xff pattern:$0x75316420]  ;;  %v940_v26 = vadd.f32 %v939_v22, %v938_v11  ;;  %v6674_v1 = vor.u32 %v9229_v40, %v9212_v30  ;;  %v927_v37 = vrot.slane %v926_v29, 1 }
  0xf8   : > { %2956 = vmatpush.bf16.msra.mxu0 %v10557_v31  ;;  %2969 = vmatpush.bf16.msra.mxu1 %v10558_v38  ;;  %v676_v44 = vadd.f32 %v675_v35, %v674_v13  ;;  %841 = vst [vmem:[#allocation1 + $0x30] ss:$2 sm:$0xff] %v790_v19  ;;  %v555_v5 = vadd.f32 %v554_v10, %v553_v42  ;;  %v664_v43 = vrot.slane %v663_v51, 4  ;;  %v929_v45 = vsel %vm515_vm0, %v9133_v21, 0.0 }
  0xf9   : > { %v941_v52 = vrot.slane %v940_v26, 1  ;;  %v565_v17 = vsel %vm515_vm0, %v8896_v15, 0.0  ;;  %v677_v9 = vsel %vm515_vm0, %v8952_v33, 0.0  ;;  %v10559_v30 = vor.u32 %v9085_v61, %v9082_v16 }
  0xfa   : > { %v928_v60 = vadd.f32 %v927_v37, %v926_v29  ;;  %v769_v63 = vmul.f32 %v8964_v59, %v676_v44  ;;  %v556_v0 = vrot.slane %v555_v5, 1  ;;  %v665_v21 = vadd.f32 %v664_v43, %v663_v51  ;;  %v846_v15 = vld.sshfl [vmem:[#allocation1 + $0x20] sm:$0xff pattern:$0x75316420] }
  0xfb   : > { %2982 = vmatpush.bf16.msra.mxu2 %v10559_v30  ;;  %2995 = vmatpush.bf16.msra.mxu3 %v6818_v4  ;;  %v942_v33 = vadd.f32 %v941_v52, %v940_v26  ;;  %v6738_v61 = vor.u32 %v9250_v18, %v9247_v55  ;;  %v6802_v16 = vor.u32 %v7863_v28, %v9253_v25  ;;  %v847_v2 = vld.sshfl [vmem:[#allocation1 + $0x28] sm:$0xff pattern:$0x75316420]  ;;  %v1034_v23 = vsel %vm515_vm0, %v846_v15, 0.0 }
  0xfc   : > { %2957 = vmatpush.bf16.msra.mxu0 %v6618_v48  ;;  %2970 = vmatpush.bf16.msra.mxu1 %v6682_v46  ;;  %v9292_v57 = vmul.f32 %v928_v60, %v8964_v59  ;;  %v9295_v4 = vsel %vm1182_vm2, %v769_v63, %v753_v49  ;;  %v557_v11 = vadd.f32 %v556_v0, %v555_v5  ;;  %v1035_v62 = vrot.slane %v1034_v23, 4 }
  0xfd   : > { %v9298_v20 = vmul.f32 %v942_v33, %v8964_v59  ;;  %v666_v48 = vrot.slane %v665_v21, 2  ;;  %v930_v46 = vrot.slane %v929_v45, 4  ;;  %v1041_v13 = vsel %vm515_vm0, %v847_v2, 0.0  ;;  %v7813_v2 = vld [vmem:[%s8731_s2 + $0x424] sm:$0xf0] }
  0xfe   : > { %v752_v12 = vmul.f32 %v8964_v59, %v557_v11  ;;  %v566_v40 = vrot.slane %v565_v17, 4  ;;  %v678_v42 = vrot.slane %v677_v9, 4  ;;  %v1036_v19 = vadd.f32 %v1035_v62, %v1034_v23 }
  0xff   : > { %2983 = vmatpush.bf16.msra.mxu2 %v6746_v36  ;;  %2996 = vmatpush.bf16.msra.mxu3 %v6810_v34  ;;  %v848_v22 = vld.sshfl [vmem:[#allocation1 + $0x30] sm:$0xff pattern:$0x75316420]  ;;  %v667_v51 = vadd.f32 %v666_v48, %v665_v21  ;;  %v931_v7 = vadd.f32 %v930_v46, %v929_v45  ;;  %v1042_v32 = vrot.slane %v1041_v13, 4  ;;  %v943_v36 = vsel %vm515_vm0, %v9178_v24, 0.0 }
 0x100   : > { %2958 = vmatpush.bf16.msra.mxu0 %v6610_v56  ;;  %2971 = vmatpush.bf16.msra.mxu1 %v6674_v1  ;;  %v1048_v58 = vsel %vm515_vm0, %v848_v22, 0.0  ;;  %v567_v29 = vadd.f32 %v566_v40, %v565_v17  ;;  %v679_v35 = vadd.f32 %v678_v42, %v677_v9  ;;  %v1037_v34 = vrot.slane %v1036_v19, 2  ;;  %v849_v63 = vld.sshfl [vmem:[#allocation1 + $0x38] sm:$0xff pattern:$0x75316420] }
 0x101   : > { %v1049_v49 = vrot.slane %v1048_v58, 4  ;;  %v668_v55 = vrot.slane %v667_v51, 1  ;;  %v932_v18 = vrot.slane %v931_v7, 2  ;;  %v1043_v25 = vadd.f32 %v1042_v32, %v1041_v13  ;;  %v6665_v46 = vld [vmem:[%s8731_s2 + $0x4a0] sm:$0xf] }
 0x102   : > { %v568_v10 = vrot.slane %v567_v29, 2  ;;  %v680_v56 = vrot.slane %v679_v35, 2  ;;  %v944_v31 = vrot.slane %v943_v36, 4  ;;  %v1038_v38 = vadd.f32 %v1037_v34, %v1036_v19  ;;  %v7829_v13 = vld [vmem:[%s8731_s2 + $0x4a4] sm:$0xf0] }
 0x103   : > { %2984 = vmatpush.bf16.msra.mxu2 %v6738_v61  ;;  %2997 = vmatpush.bf16.msra.mxu3 %v6802_v16  ;;  %v1050_v26 = vadd.f32 %v1049_v49, %v1048_v58  ;;  %v669_v1 = vadd.f32 %v668_v55, %v667_v51  ;;  %v933_v37 = vadd.f32 %v932_v18, %v931_v7  ;;  %v1044_v44 = vrot.slane %v1043_v25, 2  ;;  %v6601_v16 = vld [vmem:[%s8731_s2 + $0x420] sm:$0xf]  ;;  %v7845_v51 = vld [vmem:[%s8731_s2 + $0x524] sm:$0xf0] }
 0x104   : > { %v569_v28 = vadd.f32 %v568_v10, %v567_v29  ;;  %v681_v5 = vadd.f32 %v680_v56, %v679_v35  ;;  %v945_v24 = vadd.f32 %v944_v31, %v943_v36  ;;  %v1039_v43 = vrot.slane %v1038_v38, 1  ;;  %v6793_v7 = vld [vmem:[%s8731_s2 + $0x5a0] sm:$0xf]  ;;  %v7861_v32 = vld [vmem:[%s8731_s2 + $0x5a4] sm:$0xf0] }
 0x105   : > { %v1051_v52 = vrot.slane %v1050_v26, 2  ;;  %v768_v45 = vmul.f32 %v8964_v59, %v669_v1  ;;  %v934_v17 = vrot.slane %v933_v37, 1  ;;  %v1045_v9 = vadd.f32 %v1044_v44, %v1043_v25  ;;  %v6593_v34 = vld [vmem:[%s8731_s2 + $0x410] sm:$0xf]  ;;  %v7811_v49 = vld [vmem:[%s8731_s2 + $0x414] sm:$0xf0] }
 0x106   : > { %v570_v30 = vrot.slane %v569_v28, 1  ;;  %v682_v60 = vrot.slane %v681_v5, 1  ;;  %v946_v0 = vrot.slane %v945_v24, 2  ;;  %v1040_v21 = vadd.f32 %v1039_v43, %v1038_v38  ;;  %v6657_v56 = vld [vmem:[%s8731_s2 + $0x490] sm:$0xf] }
 0x107   : > { %v1052_v15 = vadd.f32 %v1051_v52, %v1050_v26  ;;  %v935_v33 = vadd.f32 %v934_v17, %v933_v37  ;;  %v1188_v61 = vsel %vm1182_vm2, %v768_v45, %v752_v12  ;;  %v1046_v23 = vrot.slane %v1045_v9, 1  ;;  %v6729_v12 = vld [vmem:[%s8731_s2 + $0x520] sm:$0xf]  ;;  %v7827_v31 = vld [vmem:[%s8731_s2 + $0x494] sm:$0xf0] }
 0x108   : > { %v571_v11 = vadd.f32 %v570_v30, %v569_v28  ;;  %v683_v62 = vadd.f32 %v682_v60, %v681_v5  ;;  %v947_v48 = vadd.f32 %v946_v0, %v945_v24  ;;  %v1138_v40 = vmul.f32 %v1040_v21, %v8964_v59  ;;  %v7843_v44 = vld [vmem:[%s8731_s2 + $0x514] sm:$0xf0]  ;;  %v6785_v28 = vld [vmem:[%s8731_s2 + $0x590] sm:$0xf]  ;;  %v6585_v45 = vld [vmem:[%s8731_s2 + $0x400] sm:$0xf] }
 0x109   : > { %v1053_v42 = vrot.slane %v1052_v15, 1  ;;  %v1123_v19 = vmul.f32 %v935_v33, %v8964_v59  ;;  %v1055_v22 = vsel %vm515_vm0, %v849_v63, 0.0  ;;  %v1047_v58 = vadd.f32 %v1046_v23, %v1045_v9  ;;  %v7859_v5 = vld [vmem:[%s8731_s2 + $0x594] sm:$0xf0]  ;;  %v7809_v17 = vld [vmem:[%s8731_s2 + $0x404] sm:$0xf0] }
 0x10a   : > { %v754_v29 = vmul.f32 %v8964_v59, %v571_v11  ;;  %v770_v35 = vmul.f32 %v8964_v59, %v683_v62  ;;  %v948_v36 = vrot.slane %v947_v48, 1  ;;  %v1252_v55 = vsel %vm1247_vm3, %v1138_v40, %v9292_v57  ;;  %v6721_v57 = vld [vmem:[%s8731_s2 + $0x510] sm:$0xf]  ;;  %v9342_v9 = vld [vmem:[%s8731_s2 + $0x480] sm:$0xf] }
 0x10b   : > { %v1054_v18 = vadd.f32 %v1053_v42, %v1052_v15  ;;  %v1056_v25 = vrot.slane %v1055_v22, 4  ;;  %v6602_v10 = vor.u32 %v7813_v2, %v6601_v16  ;;  %v1285_v38 = vsel %vm1280_vm4, %v9262_v41, %v1252_v55  ;;  %v9345_v30 = vld [vmem:[%s8731_s2 + $0x484] sm:$0xf0]  ;;  %v9348_v60 = vld [vmem:[%s8731_s2 + $0x500] sm:$0xf] }
 0x10c   : > { %v1139_v26 = vmul.f32 %v1047_v58, %v8964_v59  ;;  %v949_v1 = vadd.f32 %v948_v36, %v947_v48  ;;  %v9330_v37 = vsel %vm1182_vm2, %v770_v35, %v754_v29  ;;  %v9336_v24 = vpack.c.bf16 %v1285_v38, %v1285_v38  ;;  %v9351_v63 = vld [vmem:[%s8731_s2 + $0x504] sm:$0xf0]  ;;  %v9354_v0 = vld [vmem:[%s8731_s2 + $0x580] sm:$0xf]  ;;  %v6897_v23 = vld [vmem:[%s8731_s2 + $0x670] sm:$0xf] }
 0x10d   : > { %v1140_v43 = vmul.f32 %v1054_v18, %v8964_v59  ;;  %v1057_v41 = vadd.f32 %v1056_v25, %v1055_v22  ;;  %2959 = vmatpush.bf16.msra.mxu0 %v6602_v10  ;;  %v6666_v52 = vor.u32 %v7829_v13, %v6665_v46  ;;  %v6730_v33 = vor.u32 %v7845_v51, %v6729_v12  ;;  %v7857_v2 = vld [vmem:[%s8731_s2 + $0x584] sm:$0xf0]  ;;  %v7887_v11 = vld [vmem:[%s8731_s2 + $0x674] sm:$0xf0]  ;;  %v6961_v40 = vld [vmem:[%s8731_s2 + $0x6f0] sm:$0xf] }
 0x10e   : > { %v1253_v21 = vsel %vm1247_vm3, %v1139_v26, %v1123_v19  ;;  %v9358_v15 = vmul.f32 %v949_v1, %v8964_v59  ;;  %v6794_v16 = vor.u32 %v7861_v32, %v6793_v7  ;;  %2910 = vmatmul.bf16.vlgmr.msrb.gmra.mxu0 %v9336_v24  ;;  %v6594_v13 = vor.u32 %v7811_v49, %v6593_v34  ;;  %v7903_v42 = vld [vmem:[%s8731_s2 + $0x6f4] sm:$0xf0]  ;;  %v7025_v51 = vld [vmem:[%s8731_s2 + $0x770] sm:$0xf] }
 0x10f   : > { %v1254_v62 = vsel %vm1247_vm3, %v1140_v43, %v9298_v20  ;;  %v1286_v48 = vsel %vm1280_vm4, %v1188_v61, %v1253_v21  ;;  %v1058_v46 = vrot.slane %v1057_v41, 2  ;;  %2972 = vmatpush.bf16.msra.mxu1 %v6666_v52  ;;  %2985 = vmatpush.bf16.msra.mxu2 %v6730_v33  ;;  %v6658_v12 = vor.u32 %v7827_v31, %v6657_v56  ;;  %v7919_v7 = vld [vmem:[%s8731_s2 + $0x774] sm:$0xf0]  ;;  %v10560_v20 = vld [vmem:[#allocation23_spill] sm:$0xff] }
 0x110   : > { %v1287_v19 = vsel %vm1280_vm4, %v9295_v4, %v1254_v62  ;;  %v9371_v22 = vpack.c.bf16 %v1286_v48, %v1286_v48  ;;  %2998 = vmatpush.bf16.msra.mxu3 %v6794_v16  ;;  %v572_v61 = vsel %vm515_vm0, %v10560_v20, 0.0  ;;  %v6722_v29 = vor.u32 %v7843_v44, %v6721_v57  ;;  %v9380_v36 = vld [vmem:[%s8731_s2 + $0x7f0] sm:$0xf]  ;;  %v9383_v34 = vld [vmem:[%s8731_s2 + $0x7f4] sm:$0xf0] }
 0x111   : > { %v9377_v32 = vpack.c.bf16 %v1287_v19, %v1287_v19  ;;  %v1059_v58 = vadd.f32 %v1058_v46, %v1057_v41  ;;  %2960 = vmatpush.bf16.msra.mxu0 %v6594_v13  ;;  %v6786_v35 = vor.u32 %v7859_v5, %v6785_v28  ;;  %v6586_v4 = vor.u32 %v7809_v17, %v6585_v45  ;;  %v854_v25 = vld.sshfl [vmem:[#allocation1] sm:$0xff pattern:$0x75316420]  ;;  %v10565_v48 = vld [vmem:[#allocation37_spill] sm:$0xff] }
 0x112   : > { %2923 = vmatmul.bf16.vlgmr.msrb.gmra.mxu1 %v9371_v22  ;;  %v6650_v49 = vor.u32 %v9345_v30, %v9342_v9  ;;  %v6714_v55 = vor.u32 %v9351_v63, %v9348_v60  ;;  %v6778_v18 = vor.u32 %v7857_v2, %v9354_v0  ;;  %v6898_v56 = vor.u32 %v7887_v11, %v6897_v23  ;;  %v10561_v57 = vld [vmem:[#allocation31_spill] sm:$0xff]  ;;  %v10563_v30 = vld [vmem:[#allocation25_spill] sm:$0xff] }
 0x113   : > { %2936 = vmatmul.bf16.vlgmr.msrb.gmra.mxu2 %v9377_v32  ;;  %v1060_v10 = vrot.slane %v1059_v58, 1  ;;  %2973 = vmatpush.bf16.msra.mxu1 %v6658_v12  ;;  %v6962_v31 = vor.u32 %v7903_v42, %v6961_v40  ;;  %v7026_v38 = vor.u32 %v7919_v7, %v7025_v51  ;;  %v7090_v26 = vor.u32 %v9383_v34, %v9380_v36  ;;  %v10562_v28 = vld [vmem:[#allocation35_spill] sm:$0xff]  ;;  %v10564_v63 = vld [vmem:[#allocation33_spill] sm:$0xff] }
 0x114   : > { %2986 = vmatpush.bf16.msra.mxu2 %v6722_v29  ;;  %2999 = vmatpush.bf16.msra.mxu3 %v6786_v35  ;;  %v573_v1 = vrot.slane %v572_v61, 4  ;;  %v684_v44 = vsel %vm515_vm0, %v10561_v57, 0.0  ;;  %v950_v5 = vsel %vm515_vm0, %v10562_v28, 0.0  ;;  %v1062_v45 = vsel %vm515_vm0, %v854_v25, 0.0 }
 0x115   : > { %v1061_v43 = vadd.f32 %v1060_v10, %v1059_v58  ;;  %2961 = vmatpush.bf16.msra.mxu0 %v6586_v4  ;;  %v685_v41 = vrot.slane %v684_v44, 4  ;;  %v951_v52 = vrot.slane %v950_v5, 4  ;;  %v1063_v9 = vrot.slane %v1062_v45, 4 }
 0x116   : > { %v574_v17 = vadd.f32 %v573_v1, %v572_v61  ;;  %v586_v60 = vsel %vm515_vm0, %v10563_v30, 0.0  ;;  %v698_v0 = vsel %vm515_vm0, %v10564_v63, 0.0  ;;  %v964_v46 = vsel %vm515_vm0, %v10565_v48, 0.0  ;;  %v856_v61 = vld.sshfl [vmem:[#allocation1 + $0x10] sm:$0xff pattern:$0x75316420] }
 0x117   : > { %v1141_v21 = vmul.f32 %v1061_v43, %v8964_v59  ;;  %2974 = vmatpush.bf16.msra.mxu1 %v6650_v49  ;;  %v686_v33 = vadd.f32 %v685_v41, %v684_v44  ;;  %v952_v16 = vadd.f32 %v951_v52, %v950_v5  ;;  %v587_v2 = vrot.slane %v586_v60, 4  ;;  %v6889_v5 = vld [vmem:[%s8731_s2 + $0x660] sm:$0xf]  ;;  %v7885_v43 = vld [vmem:[%s8731_s2 + $0x664] sm:$0xf0] }
 0x118   : > { %2987 = vmatpush.bf16.msra.mxu2 %v6714_v55  ;;  %3000 = vmatpush.bf16.msra.mxu3 %v6778_v18  ;;  %v575_v23 = vrot.slane %v574_v17, 2  ;;  %v1064_v11 = vadd.f32 %v1063_v9, %v1062_v45  ;;  %v699_v62 = vrot.slane %v698_v0, 4  ;;  %v965_v49 = vrot.slane %v964_v46, 4  ;;  %v7901_v9 = vld [vmem:[%s8731_s2 + $0x6e4] sm:$0xf0] }
 0x119   : > { %3006 = vmatpush.bf16.msrb.mxu0 %v6898_v56  ;;  %v1255_v13 = vsel %vm1247_vm3, %v1141_v21, %v9358_v15  ;;  %v687_v40 = vrot.slane %v686_v33, 2  ;;  %v953_v42 = vrot.slane %v952_v16, 2  ;;  %v588_v19 = vadd.f32 %v587_v2, %v586_v60  ;;  %v7017_v21 = vld [vmem:[%s8731_s2 + $0x760] sm:$0xf]  ;;  %v7933_v48 = vld [vmem:[%s8731_s2 + $0x7e4] sm:$0xf0] }
 0x11a   : > { %v1288_v12 = vsel %vm1280_vm4, %v9330_v37, %v1255_v13  ;;  %v576_v51 = vadd.f32 %v575_v23, %v574_v17  ;;  %v1065_v7 = vrot.slane %v1064_v11, 2  ;;  %v700_v20 = vadd.f32 %v699_v62, %v698_v0  ;;  %v6953_v17 = vld [vmem:[%s8731_s2 + $0x6e0] sm:$0xf] }
 0x11b   : > { %3019 = vmatpush.bf16.msrb.mxu1 %v6962_v31  ;;  %v9410_v58 = vpack.c.bf16 %v1288_v12, %v1288_v12  ;;  %v688_v29 = vadd.f32 %v687_v40, %v686_v33  ;;  %v954_v35 = vadd.f32 %v953_v42, %v952_v16  ;;  %v589_v36 = vrot.slane %v588_v19, 2  ;;  %v7917_v33 = vld [vmem:[%s8731_s2 + $0x764] sm:$0xf0]  ;;  %v7081_v62 = vld [vmem:[%s8731_s2 + $0x7e0] sm:$0xf] }
 0x11c   : > { %3032 = vmatpush.bf16.msrb.mxu2 %v7026_v38  ;;  %v577_v34 = vrot.slane %v576_v51, 1  ;;  %v1066_v4 = vadd.f32 %v1065_v7, %v1064_v11  ;;  %v701_v15 = vrot.slane %v700_v20, 2  ;;  %v1076_v25 = vsel %vm515_vm0, %v856_v61, 0.0  ;;  %v855_v61 = vld.sshfl [vmem:[#allocation1 + $0x8] sm:$0xff pattern:$0x75316420] }
 0x11d   : > { %2949 = vmatmul.bf16.vlgmr.msrb.gmra.mxu3 %v9410_v58  ;;  %v689_v55 = vrot.slane %v688_v29, 1  ;;  %v955_v18 = vrot.slane %v954_v35, 1  ;;  %v590_v37 = vadd.f32 %v589_v36, %v588_v19  ;;  %v966_v38 = vadd.f32 %v965_v49, %v964_v46  ;;  %v793_v19 = vld [vmem:[%s8721_s30 + $0x70] sm:$0xff] }
 0x11e   : > { %3045 = vmatpush.bf16.msrb.mxu3 %v7090_v26  ;;  %v578_v10 = vadd.f32 %v577_v34, %v576_v51  ;;  %v1067_v56 = vrot.slane %v1066_v4, 1  ;;  %v702_v31 = vadd.f32 %v701_v15, %v700_v20  ;;  %v1077_v28 = vrot.slane %v1076_v25, 4  ;;  %852 = vst [vmem:[#allocation1 + $0x20] ss:$2 sm:$0xff] %v793_v19  ;;  %v10566_v34 = vld [vmem:[#allocation24_spill] sm:$0xff] }
 0x11f   : > { %v690_v1 = vadd.f32 %v689_v55, %v688_v29  ;;  %v956_v57 = vadd.f32 %v955_v18, %v954_v35  ;;  %v591_v44 = vrot.slane %v590_v37, 1  ;;  %v967_v26 = vrot.slane %v966_v38, 2 }
 0x120   : > { %v755_v41 = vmul.f32 %v8964_v59, %v578_v10  ;;  %v1068_v52 = vadd.f32 %v1067_v56, %v1066_v4  ;;  %v703_v45 = vrot.slane %v702_v31, 1  ;;  %v1078_v0 = vadd.f32 %v1077_v28, %v1076_v25  ;;  %v10567_v25 = vld [vmem:[#allocation32_spill] sm:$0xff] }
 0x121   : > { %v771_v30 = vmul.f32 %v8964_v59, %v690_v1  ;;  %v1126_v60 = vmul.f32 %v956_v57, %v8964_v59  ;;  %v592_v63 = vadd.f32 %v591_v44, %v590_v37  ;;  %v968_v23 = vadd.f32 %v967_v26, %v966_v38  ;;  %v10568_v56 = vld [vmem:[#allocation36_spill] sm:$0xff] }
 0x122   : > { %v1142_v16 = vmul.f32 %v1068_v52, %v8964_v59  ;;  %v704_v2 = vadd.f32 %v703_v45, %v702_v31  ;;  %v6890_v11 = vor.u32 %v7885_v43, %v6889_v5  ;;  %v1079_v40 = vrot.slane %v1078_v0, 2  ;;  %v10570_v45 = vld [vmem:[#allocation34_spill] sm:$0xff] }
 0x123   : > { %v1191_v46 = vsel %vm1182_vm2, %v771_v30, %v755_v41  ;;  %v757_v13 = vmul.f32 %v8964_v59, %v592_v63  ;;  %v6954_v42 = vor.u32 %v7901_v9, %v6953_v17  ;;  %v969_v7 = vrot.slane %v968_v23, 1  ;;  %v10569_v41 = vld [vmem:[#allocation26_spill] sm:$0xff] }
 0x124   : > { %v1256_v12 = vsel %vm1247_vm3, %v1142_v16, %v1126_v60  ;;  %v773_v51 = vmul.f32 %v8964_v59, %v704_v2  ;;  %3007 = vmatpush.bf16.msrb.mxu0 %v6890_v11  ;;  %v7018_v20 = vor.u32 %v7917_v33, %v7017_v21  ;;  %v1080_v35 = vadd.f32 %v1079_v40, %v1078_v0  ;;  %v10571_v33 = vld [vmem:[#allocation38_spill] sm:$0xff] }
 0x125   : > { %v1289_v29 = vsel %vm1280_vm4, %v1191_v46, %v1256_v12  ;;  %3020 = vmatpush.bf16.msrb.mxu1 %v6954_v42  ;;  %v7082_v36 = vor.u32 %v7933_v48, %v7081_v62  ;;  %v579_v4 = vsel %vm515_vm0, %v10566_v34, 0.0  ;;  %v970_v49 = vadd.f32 %v969_v7, %v968_v23  ;;  %v857_v7 = vld.sshfl [vmem:[#allocation1 + $0x18] sm:$0xff pattern:$0x75316420] }
 0x126   : > { %v9434_v15 = vpack.c.bf16 %v1289_v29, %v1289_v29  ;;  %v1193_v55 = vsel %vm1182_vm2, %v773_v51, %v757_v13  ;;  %3033 = vmatpush.bf16.msrb.mxu2 %v7018_v20  ;;  %v580_v18 = vrot.slane %v579_v4, 4  ;;  %v1081_v37 = vrot.slane %v1080_v35, 1 }
 0x127   : > { %3046 = vmatpush.bf16.msrb.mxu3 %v7082_v36  ;;  %v691_v10 = vsel %vm515_vm0, %v10567_v25, 0.0  ;;  %v957_v31 = vsel %vm515_vm0, %v10568_v56, 0.0  ;;  %v1069_v38 = vsel %vm515_vm0, %v855_v61, 0.0  ;;  %v1128_v1 = vmul.f32 %v970_v49, %v8964_v59 }
 0x128   : > { %2962 = vmatmul.bf16.vlgmr.msra.gmra.mxu0 %v9434_v15  ;;  %v581_v57 = vadd.f32 %v580_v18, %v579_v4  ;;  %v692_v44 = vrot.slane %v691_v10, 4  ;;  %v958_v28 = vrot.slane %v957_v31, 4  ;;  %v1082_v5 = vadd.f32 %v1081_v37, %v1080_v35  ;;  %v6881_v18 = vld [vmem:[%s8731_s2 + $0x650] sm:$0xf]  ;;  %v7883_v37 = vld [vmem:[%s8731_s2 + $0x654] sm:$0xf0] }
 0x129   : > { %v1070_v43 = vrot.slane %v1069_v38, 4  ;;  %v593_v52 = vsel %vm515_vm0, %v10569_v41, 0.0  ;;  %v705_v26 = vsel %vm515_vm0, %v10570_v45, 0.0  ;;  %v971_v16 = vsel %vm515_vm0, %v10571_v33, 0.0  ;;  %v9474_v33 = vld [vmem:[%s8731_s2 + $0x644] sm:$0xf0] }
 0x12a   : > { %v582_v17 = vrot.slane %v581_v57, 2  ;;  %v693_v9 = vadd.f32 %v692_v44, %v691_v10  ;;  %v959_v30 = vadd.f32 %v958_v28, %v957_v31  ;;  %v594_v60 = vrot.slane %v593_v52, 4  ;;  %v6945_v31 = vld [vmem:[%s8731_s2 + $0x6d0] sm:$0xf] }
 0x12b   : > { %v1144_v63 = vmul.f32 %v1082_v5, %v8964_v59  ;;  %v1071_v0 = vadd.f32 %v1070_v43, %v1069_v38  ;;  %v706_v21 = vrot.slane %v705_v26, 4  ;;  %v972_v40 = vrot.slane %v971_v16, 4  ;;  %v7899_v38 = vld [vmem:[%s8731_s2 + $0x6d4] sm:$0xf0]  ;;  %v7009_v5 = vld [vmem:[%s8731_s2 + $0x750] sm:$0xf] }
 0x12c   : > { %v583_v2 = vadd.f32 %v582_v17, %v581_v57  ;;  %v694_v23 = vrot.slane %v693_v9, 2  ;;  %v960_v11 = vrot.slane %v959_v30, 2  ;;  %v595_v62 = vadd.f32 %v594_v60, %v593_v52  ;;  %v7915_v43 = vld [vmem:[%s8731_s2 + $0x754] sm:$0xf0]  ;;  %v9465_v17 = vld [vmem:[%s8731_s2 + $0x7d0] sm:$0xf] }
 0x12d   : > { %v1258_v48 = vsel %vm1247_vm3, %v1144_v63, %v1128_v1  ;;  %v1072_v46 = vrot.slane %v1071_v0, 2  ;;  %v707_v13 = vadd.f32 %v706_v21, %v705_v26  ;;  %v973_v49 = vadd.f32 %v972_v40, %v971_v16  ;;  %v9471_v21 = vld [vmem:[%s8731_s2 + $0x640] sm:$0xf] }
 0x12e   : > { %v1291_v42 = vsel %vm1280_vm4, %v1193_v55, %v1258_v48  ;;  %v584_v19 = vrot.slane %v583_v2, 1  ;;  %v695_v12 = vadd.f32 %v694_v23, %v693_v9  ;;  %v961_v51 = vadd.f32 %v960_v11, %v959_v30  ;;  %v9481_v48 = vld [vmem:[%s8731_s2 + $0x6c4] sm:$0xf0]  ;;  %v9490_v40 = vld [vmem:[%s8731_s2 + $0x7c0] sm:$0xf] }
 0x12f   : > { %v9453_v20 = vpack.c.bf16 %v1291_v42, %v1291_v42  ;;  %v1073_v61 = vadd.f32 %v1072_v46, %v1071_v0  ;;  %v596_v29 = vrot.slane %v595_v62, 2  ;;  %v708_v35 = vrot.slane %v707_v13, 2  ;;  %v7931_v0 = vld [vmem:[%s8731_s2 + $0x7d4] sm:$0xf0]  ;;  %v9484_v46 = vld [vmem:[%s8731_s2 + $0x740] sm:$0xf] }
 0x130   : > { %v585_v36 = vadd.f32 %v584_v19, %v583_v2  ;;  %v696_v34 = vrot.slane %v695_v12, 1  ;;  %v962_v4 = vrot.slane %v961_v51, 1  ;;  %v1083_v56 = vsel %vm515_vm0, %v857_v7, 0.0  ;;  %v9493_v42 = vld [vmem:[%s8731_s2 + $0x7c4] sm:$0xf0] }
 0x131   : > { %2988 = vmatmul.bf16.vlgmr.msra.gmra.mxu2 %v9453_v20  ;;  %v1074_v55 = vrot.slane %v1073_v61, 1  ;;  %v597_v25 = vadd.f32 %v596_v29, %v595_v62  ;;  %v709_v10 = vadd.f32 %v708_v35, %v707_v13  ;;  %v974_v28 = vrot.slane %v973_v49, 2  ;;  %v9478_v62 = vld [vmem:[%s8731_s2 + $0x6c0] sm:$0xf]  ;;  %v9487_v13 = vld [vmem:[%s8731_s2 + $0x744] sm:$0xf0] }
 0x132   : > { %v697_v1 = vadd.f32 %v696_v34, %v695_v12  ;;  %v756_v57 = vmul.f32 %v8964_v59, %v585_v36  ;;  %v963_v44 = vadd.f32 %v962_v4, %v961_v51  ;;  %v1084_v26 = vrot.slane %v1083_v56, 4  ;;  %v9500_v29 = vld [vmem:[%s8731_s2 + $0x634] sm:$0xf0]  ;;  %v9503_v35 = vld [vmem:[%s8731_s2 + $0x6b0] sm:$0xf] }
 0x133   : > { %v1075_v41 = vadd.f32 %v1074_v55, %v1073_v61  ;;  %v598_v52 = vrot.slane %v597_v25, 1  ;;  %v710_v45 = vrot.slane %v709_v10, 1  ;;  %v975_v60 = vadd.f32 %v974_v28, %v973_v49  ;;  %v9497_v61 = vld [vmem:[%s8731_s2 + $0x630] sm:$0xf]  ;;  %v9506_v36 = vld [vmem:[%s8731_s2 + $0x6b4] sm:$0xf0] }
 0x134   : > { %v772_v9 = vmul.f32 %v8964_v59, %v697_v1  ;;  %v1127_v30 = vmul.f32 %v963_v44, %v8964_v59  ;;  %v6882_v63 = vor.u32 %v7883_v37, %v6881_v18  ;;  %v1085_v11 = vadd.f32 %v1084_v26, %v1083_v56  ;;  %v9509_v34 = vld [vmem:[%s8731_s2 + $0x730] sm:$0xf]  ;;  %v9512_v4 = vld [vmem:[%s8731_s2 + $0x734] sm:$0xf0]  ;;  %v9524_v56 = vld [vmem:[%s8731_s2 + $0x620] sm:$0xf] }
 0x135   : > { %v1143_v16 = vmul.f32 %v1075_v41, %v8964_v59  ;;  %v599_v2 = vadd.f32 %v598_v52, %v597_v25  ;;  %v711_v23 = vadd.f32 %v710_v45, %v709_v10  ;;  %v976_v12 = vrot.slane %v975_v60, 1  ;;  %v9518_v25 = vld [vmem:[%s8731_s2 + $0x7b0] sm:$0xf]  ;;  %v9521_v10 = vld [vmem:[%s8731_s2 + $0x7b4] sm:$0xf0] }
 0x136   : > { %v1192_v19 = vsel %vm1182_vm2, %v772_v9, %v756_v57  ;;  %3008 = vmatpush.bf16.msrb.mxu0 %v6882_v63  ;;  %v6946_v51 = vor.u32 %v7899_v38, %v6945_v31  ;;  %v7010_v7 = vor.u32 %v7915_v43, %v7009_v5  ;;  %v1086_v55 = vrot.slane %v1085_v11, 2  ;;  %v9527_v31 = vld [vmem:[%s8731_s2 + $0x624] sm:$0xf0]  ;;  %v9530_v38 = vld [vmem:[%s8731_s2 + $0x6a0] sm:$0xf] }
 0x137   : > { %v1257_v49 = vsel %vm1247_vm3, %v1143_v16, %v1127_v30  ;;  %v758_v18 = vmul.f32 %v8964_v59, %v599_v2  ;;  %v774_v37 = vmul.f32 %v8964_v59, %v711_v23  ;;  %v9533_v1 = vld [vmem:[%s8731_s2 + $0x6a4] sm:$0xf0]  ;;  %v977_v44 = vadd.f32 %v976_v12, %v975_v60  ;;  %v9538_v5 = vld [vmem:[%s8731_s2 + $0x720] sm:$0xf]  ;;  %v9550_v45 = vld [vmem:[%s8731_s2 + $0x610] sm:$0xf] }
 0x138   : > { %v1290_v57 = vsel %vm1280_vm4, %v1192_v19, %v1257_v49  ;;  %3021 = vmatpush.bf16.msrb.mxu1 %v6946_v51  ;;  %3034 = vmatpush.bf16.msrb.mxu2 %v7010_v7  ;;  %v7074_v28 = vor.u32 %v7931_v0, %v9465_v17  ;;  %v9541_v43 = vld [vmem:[%s8731_s2 + $0x724] sm:$0xf0]  ;;  %v9544_v41 = vld [vmem:[%s8731_s2 + $0x7a0] sm:$0xf]  ;;  %v9553_v26 = vld [vmem:[%s8731_s2 + $0x614] sm:$0xf0]  ;;  %v1087_v30 = vadd.f32 %v1086_v55, %v1085_v11 }
 0x139   : > { %v9547_v52 = vld [vmem:[%s8731_s2 + $0x7a4] sm:$0xf0]  ;;  %v9555_v9 = vpack.c.bf16 %v1290_v57, %v1290_v57  ;;  %v9558_v17 = vsel %vm1182_vm2, %v774_v37, %v758_v18  ;;  %v6874_v60 = vor.u32 %v9474_v33, %v9471_v21  ;;  %v9563_v63 = vld [vmem:[%s8731_s2 + $0x690] sm:$0xf]  ;;  %v9566_v0 = vld [vmem:[%s8731_s2 + $0x694] sm:$0xf0]  ;;  %v1129_v21 = vmul.f32 %v977_v44, %v8964_v59 }
 0x13a   : > { %v9569_v16 = vld [vmem:[%s8731_s2 + $0x710] sm:$0xf]  ;;  %v9572_v2 = vld [vmem:[%s8731_s2 + $0x714] sm:$0xf0]  ;;  %v9581_v19 = vld [vmem:[%s8731_s2 + $0x600] sm:$0xf]  ;;  %3047 = vmatpush.bf16.msrb.mxu3 %v7074_v28  ;;  %v6938_v33 = vor.u32 %v9481_v48, %v9478_v62  ;;  %v7002_v51 = vor.u32 %v9487_v13, %v9484_v46  ;;  %v7066_v7 = vor.u32 %v9493_v42, %v9490_v40  ;;  %v6866_v48 = vor.u32 %v9500_v29, %v9497_v61 }
 0x13b   : > { %v9575_v23 = vld [vmem:[%s8731_s2 + $0x790] sm:$0xf]  ;;  %v9578_v11 = vld [vmem:[%s8731_s2 + $0x794] sm:$0xf0]  ;;  %v9584_v12 = vld [vmem:[%s8731_s2 + $0x604] sm:$0xf0]  ;;  %2975 = vmatmul.bf16.vlgmr.msra.gmra.mxu1 %v9555_v9  ;;  %3009 = vmatpush.bf16.msrb.mxu0 %v6874_v60  ;;  %v6930_v46 = vor.u32 %v9506_v36, %v9503_v35  ;;  %v6994_v13 = vor.u32 %v9512_v4, %v9509_v34  ;;  %v7058_v57 = vor.u32 %v9521_v10, %v9518_v25 }
 0x13c   : > { %v9594_v49 = vld [vmem:[%s8731_s2 + $0x680] sm:$0xf]  ;;  %v9597_v18 = vld [vmem:[%s8731_s2 + $0x684] sm:$0xf0]  ;;  %v1088_v62 = vrot.slane %v1087_v30, 1  ;;  %3022 = vmatpush.bf16.msrb.mxu1 %v6938_v33  ;;  %3035 = vmatpush.bf16.msrb.mxu2 %v7002_v51  ;;  %v6858_v61 = vor.u32 %v9527_v31, %v9524_v56  ;;  %v6922_v29 = vor.u32 %v9533_v1, %v9530_v38  ;;  %v6986_v44 = vor.u32 %v9541_v43, %v9538_v5 }
 0x13d   : > { %v9600_v37 = vld [vmem:[%s8731_s2 + $0x700] sm:$0xf]  ;;  %v9603_v55 = vld [vmem:[%s8731_s2 + $0x704] sm:$0xf0]  ;;  %v9625_v35 = vld [vmem:[%s8731_s2 + $0x74] sm:$0xf]  ;;  %v7050_v25 = vor.u32 %v9547_v52, %v9544_v41  ;;  %v6850_v10 = vor.u32 %v9553_v26, %v9550_v45  ;;  %v6914_v1 = vor.u32 %v9566_v0, %v9563_v63  ;;  %v6978_v28 = vor.u32 %v9572_v2, %v9569_v16 }
 0x13e   : > { %v9613_v40 = vld [vmem:[%s8731_s2 + $0x780] sm:$0xf]  ;;  %v9616_v42 = vld [vmem:[%s8731_s2 + $0x784] sm:$0xf0]  ;;  %v9628_v36 = vld [vmem:[%s8731_s2 + $0x78] sm:$0xf0]  ;;  %v1089_v4 = vadd.f32 %v1088_v62, %v1087_v30  ;;  %3048 = vmatpush.bf16.msrb.mxu3 %v7066_v7 }
 0x13f   : > { %v9631_v34 = vld [vmem:[%s8731_s2 + $0xf4] sm:$0xf]  ;;  %v9640_v56 = vld [vmem:[%s8731_s2 + $0xf8] sm:$0xf0]  ;;  %3010 = vmatpush.bf16.msrb.mxu0 %v6866_v48  ;;  %v10572_v51 = vld [vmem:[#allocation27_spill] sm:$0xff]  ;;  %v978_v33 = vsel %vm515_vm0, %v9222_v27, 0.0 }
 0x140   : > { %v9643_v31 = vld [vmem:[%s8731_s2 + $0x174] sm:$0xf]  ;;  %v9646_v38 = vld [vmem:[%s8731_s2 + $0x178] sm:$0xf0]  ;;  %v1145_v26 = vmul.f32 %v1089_v4, %v8964_v59  ;;  %3023 = vmatpush.bf16.msrb.mxu1 %v6930_v46  ;;  %3036 = vmatpush.bf16.msrb.mxu2 %v6994_v13  ;;  %v600_v7 = vsel %vm515_vm0, %v10572_v51, 0.0  ;;  %v10573_v46 = vld [vmem:[#allocation39_spill] sm:$0xff] }
 0x141   : > { %v9657_v41 = vld [vmem:[%s8731_s2 + $0x1f4] sm:$0xf]  ;;  %v9660_v52 = vld [vmem:[%s8731_s2 + $0x1f8] sm:$0xf0]  ;;  %v601_v4 = vrot.slane %v600_v7, 4  ;;  %v712_v13 = vsel %vm515_vm0, %v10573_v46, 0.0 }
 0x142   : > { %v794_v45 = vld [vmem:[%s8721_s30 + $0x78] sm:$0xff]  ;;  %v858_v0 = vld.sshfl [vmem:[#allocation1 + $0x20] sm:$0xff pattern:$0x75316420]  ;;  %v1259_v62 = vsel %vm1247_vm3, %v1145_v26, %v1129_v21  ;;  %3049 = vmatpush.bf16.msrb.mxu3 %v7058_v57  ;;  %v713_v2 = vrot.slane %v712_v13, 4  ;;  %v979_v26 = vrot.slane %v978_v33, 4 }
 0x143   : > { %853 = vst [vmem:[#allocation1 + $0x30] ss:$2 sm:$0xff] %v794_v45  ;;  %v1292_v63 = vsel %vm1280_vm4, %v9558_v17, %v1259_v62  ;;  %v1090_v51 = vsel %vm515_vm0, %v858_v0, 0.0  ;;  %3011 = vmatpush.bf16.msrb.mxu0 %v6858_v61  ;;  %v602_v21 = vadd.f32 %v601_v4, %v600_v7  ;;  %v10575_v45 = vld [vmem:[#allocation29_spill] sm:$0xff]  ;;  %v726_v17 = vsel %vm515_vm0, %v9107_v39, 0.0 }
 0x144   : > { %v9688_v16 = vpack.c.bf16 %v1292_v63, %v1292_v63  ;;  %v1091_v48 = vrot.slane %v1090_v51, 4  ;;  %3024 = vmatpush.bf16.msrb.mxu1 %v6922_v29  ;;  %3037 = vmatpush.bf16.msrb.mxu2 %v6986_v44  ;;  %v714_v46 = vadd.f32 %v713_v2, %v712_v13  ;;  %v614_v60 = vsel %vm515_vm0, %v10575_v45, 0.0  ;;  %v10576_v2 = vld [vmem:[#allocation28_spill] sm:$0xff] }
 0x145   : > { %v992_v27 = vsel %vm515_vm0, %v9264_v53, 0.0  ;;  %v603_v57 = vrot.slane %v602_v21, 2  ;;  %v980_v63 = vadd.f32 %v979_v26, %v978_v33  ;;  %v615_v0 = vrot.slane %v614_v60, 4 }
 0x146   : > { %10574 = vst [vmem:[#allocation23_spill] sm:$0xff] %v9688_v16  ;;  %3001 = vmatmul.bf16.vlgmr.msra.gmra.mxu3 %v9688_v16  ;;  %v1092_v61 = vadd.f32 %v1091_v48, %v1090_v51  ;;  %v715_v7 = vrot.slane %v714_v46, 2  ;;  %v727_v29 = vrot.slane %v726_v17, 4  ;;  %v993_v44 = vrot.slane %v992_v27, 4 }
 0x147   : > { %3050 = vmatpush.bf16.msrb.mxu3 %v7050_v25  ;;  %v607_v62 = vsel %vm515_vm0, %v10576_v2, 0.0  ;;  %3012 = vmatpush.bf16.msrb.mxu0 %v6850_v10  ;;  %v604_v4 = vadd.f32 %v603_v57, %v602_v21  ;;  %v981_v13 = vrot.slane %v980_v63, 2  ;;  %v616_v45 = vadd.f32 %v615_v0, %v614_v60 }
 0x148   : > { %v1093_v39 = vrot.slane %v1092_v61, 2  ;;  %3025 = vmatpush.bf16.msrb.mxu1 %v6914_v1  ;;  %3038 = vmatpush.bf16.msrb.mxu2 %v6978_v28  ;;  %v716_v53 = vadd.f32 %v715_v7, %v714_v46  ;;  %v728_v30 = vadd.f32 %v727_v29, %v726_v17  ;;  %v994_v33 = vadd.f32 %v993_v44, %v992_v27 }
 0x149   : > { %v608_v48 = vrot.slane %v607_v62, 4  ;;  %v605_v51 = vrot.slane %v604_v4, 1  ;;  %v982_v25 = vadd.f32 %v981_v13, %v980_v63  ;;  %v617_v5 = vrot.slane %v616_v45, 2 }
 0x14a   : > { %v860_v43 = vld.sshfl [vmem:[#allocation1 + $0x30] sm:$0xff pattern:$0x75316420]  ;;  %v1094_v26 = vadd.f32 %v1093_v39, %v1092_v61  ;;  %v10577_v16 = vor.u32 %v9578_v11, %v9575_v23  ;;  %v717_v10 = vrot.slane %v716_v53, 1  ;;  %v729_v21 = vrot.slane %v728_v30, 2 }
 0x14b   : > { %v995_v57 = vrot.slane %v994_v33, 2  ;;  %v1104_v60 = vsel %vm515_vm0, %v860_v43, 0.0  ;;  %v10578_v1 = vor.u32 %v9584_v12, %v9581_v19  ;;  %v606_v28 = vadd.f32 %v605_v51, %v604_v4 }
 0x14c   : > { %3051 = vmatpush.bf16.msrb.mxu3 %v10577_v16  ;;  %v983_v46 = vrot.slane %v982_v25, 1  ;;  %v1095_v17 = vrot.slane %v1094_v26, 1  ;;  %v618_v27 = vadd.f32 %v617_v5, %v616_v45  ;;  %v10579_v63 = vor.u32 %v9597_v18, %v9594_v49  ;;  %v10586_v45 = vld [vmem:[#allocation40_spill] sm:$0xff] }
 0x14d   : > { %3013 = vmatpush.bf16.msrb.mxu0 %v10578_v1  ;;  %v10580_v23 = vor.u32 %v9603_v55, %v9600_v37  ;;  %v718_v11 = vadd.f32 %v717_v10, %v716_v53  ;;  %v730_v16 = vadd.f32 %v729_v21, %v728_v30  ;;  %v996_v61 = vadd.f32 %v995_v57, %v994_v33 }
 0x14e   : > { %3026 = vmatpush.bf16.msrb.mxu1 %v10579_v63  ;;  %v1105_v43 = vrot.slane %v1104_v60, 4  ;;  %v10581_v19 = vor.u32 %v9625_v35, %v9628_v36  ;;  %v10582_v12 = vor.u32 %v9631_v34, %v9640_v56  ;;  %v759_v5 = vmul.f32 %v8964_v59, %v606_v28 }
 0x14f   : > { %3039 = vmatpush.bf16.msrb.mxu2 %v10580_v23  ;;  %v984_v49 = vadd.f32 %v983_v46, %v982_v25  ;;  %v1096_v18 = vadd.f32 %v1095_v17, %v1094_v26  ;;  %v619_v0 = vrot.slane %v618_v27, 1  ;;  %v10583_v37 = vor.u32 %v9616_v42, %v9613_v40 }
 0x150   : > { %v10584_v55 = vor.u32 %v9643_v31, %v9646_v38  ;;  %v775_v35 = vmul.f32 %v8964_v59, %v718_v11  ;;  %v731_v36 = vrot.slane %v730_v16, 1  ;;  %v997_v30 = vrot.slane %v996_v61, 1 }
 0x151   : > { %3058 = vmatpush.bf16.msra.mxu0 %v10581_v19  ;;  %3052 = vmatpush.bf16.msrb.mxu3 %v10583_v37  ;;  %v1106_v7 = vadd.f32 %v1105_v43, %v1104_v60  ;;  %v10585_v34 = vor.u32 %v9657_v41, %v9660_v52  ;;  %v1130_v56 = vmul.f32 %v984_v49, %v8964_v59  ;;  %v719_v41 = vsel %vm515_vm0, %v10586_v45, 0.0  ;;  %v859_v52 = vld.sshfl [vmem:[#allocation1 + $0x28] sm:$0xff pattern:$0x75316420] }
 0x152   : > { %3071 = vmatpush.bf16.msra.mxu1 %v10582_v12  ;;  %v1146_v29 = vmul.f32 %v1096_v18, %v8964_v59  ;;  %v620_v44 = vadd.f32 %v619_v0, %v618_v27  ;;  %v609_v40 = vadd.f32 %v608_v48, %v607_v62  ;;  %v1195_v42 = vsel %vm1182_vm2, %v775_v35, %v759_v5  ;;  %v10587_v27 = vld [vmem:[#allocation30_spill] sm:$0xff] }
 0x153   : > { %3084 = vmatpush.bf16.msra.mxu2 %v10584_v55  ;;  %v732_v2 = vadd.f32 %v731_v36, %v730_v16  ;;  %v998_v31 = vadd.f32 %v997_v30, %v996_v61  ;;  %v1107_v38 = vrot.slane %v1106_v7, 2  ;;  %v720_v26 = vrot.slane %v719_v41, 4 }
 0x154   : > { %v1260_v4 = vsel %vm1247_vm3, %v1146_v29, %v1130_v56  ;;  %v761_v13 = vmul.f32 %v8964_v59, %v620_v44  ;;  %v610_v39 = vrot.slane %v609_v40, 2  ;;  %v985_v10 = vsel %vm515_vm0, %v9224_v14, 0.0 }
 0x155   : > { %3097 = vmatpush.bf16.msra.mxu3 %v10585_v34  ;;  %v1293_v53 = vsel %vm1280_vm4, %v1195_v42, %v1260_v4  ;;  %v777_v33 = vmul.f32 %v8964_v59, %v732_v2  ;;  %v1108_v51 = vadd.f32 %v1107_v38, %v1106_v7  ;;  %v1132_v62 = vmul.f32 %v998_v31, %v8964_v59  ;;  %v861_v34 = vld.sshfl [vmem:[#allocation1 + $0x38] sm:$0xff pattern:$0x75316420] }
 0x156   : > { %v9739_v48 = vpack.c.bf16 %v1293_v53, %v1293_v53  ;;  %v611_v25 = vadd.f32 %v610_v39, %v609_v40  ;;  %v986_v60 = vrot.slane %v985_v10, 4  ;;  %v1097_v1 = vsel %vm515_vm0, %v859_v52, 0.0  ;;  %v7692_v4 = vld [vmem:[%s8731_s2 + $0x64] sm:$0xf] }
 0x157   : > { %v1109_v21 = vrot.slane %v1108_v51, 1  ;;  %v1197_v57 = vsel %vm1182_vm2, %v777_v33, %v761_v13  ;;  %v721_v46 = vadd.f32 %v720_v26, %v719_v41  ;;  %v1098_v17 = vrot.slane %v1097_v1, 4  ;;  %v6123_v13 = vld [vmem:[%s8731_s2 + $0x68] sm:$0xf0]  ;;  %v7708_v53 = vld [vmem:[%s8731_s2 + $0xe4] sm:$0xf] }
 0x158   : > { %3014 = vmatmul.bf16.vlgmr.msrb.gmra.mxu0 %v9739_v48  ;;  %v612_v28 = vrot.slane %v611_v25, 1  ;;  %v621_v63 = vsel %vm515_vm0, %v10587_v27, 0.0  ;;  %v987_v11 = vadd.f32 %v986_v60, %v985_v10  ;;  %v733_v14 = vsel %vm515_vm0, %v9111_v8, 0.0  ;;  %v6187_v33 = vld [vmem:[%s8731_s2 + $0xe8] sm:$0xf0] }
 0x159   : > { %v1110_v23 = vadd.f32 %v1109_v21, %v1108_v51  ;;  %v622_v16 = vrot.slane %v621_v63, 4  ;;  %v722_v43 = vrot.slane %v721_v46, 2  ;;  %v1099_v19 = vadd.f32 %v1098_v17, %v1097_v1  ;;  %v7724_v10 = vld [vmem:[%s8731_s2 + $0x164] sm:$0xf] }
 0x15a   : > { %v613_v61 = vadd.f32 %v612_v28, %v611_v25  ;;  %v734_v12 = vrot.slane %v733_v14, 4  ;;  %v988_v49 = vrot.slane %v987_v11, 2  ;;  %v999_v0 = vsel %vm515_vm0, %v9266_v54, 0.0  ;;  %v6251_v28 = vld [vmem:[%s8731_s2 + $0x168] sm:$0xf0] }
 0x15b   : > { %v1148_v5 = vmul.f32 %v1110_v23, %v8964_v59  ;;  %v623_v18 = vadd.f32 %v622_v16, %v621_v63  ;;  %v723_v37 = vadd.f32 %v722_v43, %v721_v46  ;;  %v1100_v35 = vrot.slane %v1099_v19, 2  ;;  %v7740_v46 = vld [vmem:[%s8731_s2 + $0x1e4] sm:$0xf]  ;;  %v6315_v23 = vld [vmem:[%s8731_s2 + $0x1e8] sm:$0xf0] }
 0x15c   : > { %v760_v55 = vmul.f32 %v8964_v59, %v613_v61  ;;  %v735_v36 = vadd.f32 %v734_v12, %v733_v14  ;;  %v989_v30 = vadd.f32 %v988_v49, %v987_v11  ;;  %v1000_v56 = vrot.slane %v999_v0, 4  ;;  %v7690_v11 = vld [vmem:[%s8731_s2 + $0x54] sm:$0xf]  ;;  %v6115_v16 = vld [vmem:[%s8731_s2 + $0x58] sm:$0xf0] }
 0x15d   : > { %v1262_v8 = vsel %vm1247_vm3, %v1148_v5, %v1132_v62  ;;  %v624_v7 = vrot.slane %v623_v18, 2  ;;  %v724_v44 = vrot.slane %v723_v37, 1  ;;  %v1101_v40 = vadd.f32 %v1100_v35, %v1099_v19  ;;  %v7706_v12 = vld [vmem:[%s8731_s2 + $0xd4] sm:$0xf]  ;;  %v6179_v5 = vld [vmem:[%s8731_s2 + $0xd8] sm:$0xf0] }
 0x15e   : > { %v1295_v29 = vsel %vm1280_vm4, %v1197_v57, %v1262_v8  ;;  %v736_v54 = vrot.slane %v735_v36, 2  ;;  %v990_v2 = vrot.slane %v989_v30, 1  ;;  %v1001_v38 = vadd.f32 %v1000_v56, %v999_v0  ;;  %v7722_v49 = vld [vmem:[%s8731_s2 + $0x154] sm:$0xf]  ;;  %v7688_v56 = vld [vmem:[%s8731_s2 + $0x44] sm:$0xf] }
 0x15f   : > { %v9756_v42 = vpack.c.bf16 %v1295_v29, %v1295_v29  ;;  %v625_v31 = vadd.f32 %v624_v7, %v623_v18  ;;  %v725_v39 = vadd.f32 %v724_v44, %v723_v37  ;;  %v1102_v45 = vrot.slane %v1101_v40, 1  ;;  %v7738_v8 = vld [vmem:[%s8731_s2 + $0x1d4] sm:$0xf]  ;;  %v6107_v29 = vld [vmem:[%s8731_s2 + $0x48] sm:$0xf0] }
 0x160   : > { %v737_v41 = vadd.f32 %v736_v54, %v735_v36  ;;  %v1111_v52 = vsel %vm515_vm0, %v861_v34, 0.0  ;;  %v991_v51 = vadd.f32 %v990_v2, %v989_v30  ;;  %v1002_v25 = vrot.slane %v1001_v38, 2  ;;  %v6243_v36 = vld [vmem:[%s8731_s2 + $0x158] sm:$0xf0] }
 0x161   : > { %3040 = vmatmul.bf16.vlgmr.msrb.gmra.mxu2 %v9756_v42  ;;  %v626_v62 = vrot.slane %v625_v31, 1  ;;  %v1112_v26 = vrot.slane %v1111_v52, 4  ;;  %v776_v21 = vmul.f32 %v8964_v59, %v725_v39  ;;  %v1103_v57 = vadd.f32 %v1102_v45, %v1101_v40  ;;  %v6307_v34 = vld [vmem:[%s8731_s2 + $0x1d8] sm:$0xf0] }
 0x162   : > { %v738_v60 = vrot.slane %v737_v41, 1  ;;  %v6126_v1 = vor.u32 %v7692_v4, %v6123_v13  ;;  %v1131_v17 = vmul.f32 %v991_v51, %v8964_v59  ;;  %v1003_v27 = vadd.f32 %v1002_v25, %v1001_v38  ;;  %v6171_v38 = vld [vmem:[%s8731_s2 + $0xc8] sm:$0xf0]  ;;  %v7720_v4 = vld [vmem:[%s8731_s2 + $0x144] sm:$0xf] }
 0x163   : > { %v1113_v63 = vadd.f32 %v1112_v26, %v1111_v52  ;;  %v1147_v14 = vmul.f32 %v1103_v57, %v8964_v59  ;;  %v1196_v61 = vsel %vm1182_vm2, %v776_v21, %v760_v55  ;;  %v627_v43 = vadd.f32 %v626_v62, %v625_v31  ;;  %v7704_v31 = vld [vmem:[%s8731_s2 + $0xc4] sm:$0xf]  ;;  %v7686_v26 = vld [vmem:[%s8731_s2 + $0x34] sm:$0xf] }
 0x164   : > { %3059 = vmatpush.bf16.msra.mxu0 %v6126_v1  ;;  %v6190_v19 = vor.u32 %v7708_v53, %v6187_v33  ;;  %v739_v18 = vadd.f32 %v738_v60, %v737_v41  ;;  %v1004_v0 = vrot.slane %v1003_v27, 1  ;;  %v6254_v35 = vor.u32 %v7724_v10, %v6251_v28  ;;  %v6235_v41 = vld [vmem:[%s8731_s2 + $0x148] sm:$0xf0]  ;;  %v7736_v52 = vld [vmem:[%s8731_s2 + $0x1c4] sm:$0xf] }
 0x165   : > { %v1114_v37 = vrot.slane %v1113_v63, 2  ;;  %v1261_v55 = vsel %vm1247_vm3, %v1147_v14, %v1131_v17  ;;  %v6318_v30 = vor.u32 %v7740_v46, %v6315_v23  ;;  %v6118_v7 = vor.u32 %v7690_v11, %v6115_v16  ;;  %v6299_v53 = vld [vmem:[%s8731_s2 + $0x1c8] sm:$0xf0]  ;;  %v6099_v10 = vld [vmem:[%s8731_s2 + $0x38] sm:$0xf0] }
 0x166   : > { %3072 = vmatpush.bf16.msra.mxu1 %v6190_v19  ;;  %v1294_v44 = vsel %vm1280_vm4, %v1196_v61, %v1261_v55  ;;  %v1005_v40 = vadd.f32 %v1004_v0, %v1003_v27  ;;  %3085 = vmatpush.bf16.msra.mxu2 %v6254_v35  ;;  %v6182_v2 = vor.u32 %v7706_v12, %v6179_v5  ;;  %v7702_v17 = vld [vmem:[%s8731_s2 + $0xb4] sm:$0xf]  ;;  %v6163_v27 = vld [vmem:[%s8731_s2 + $0xb8] sm:$0xf0]  ;;  %v6091_v19 = vld [vmem:[%s8731_s2 + $0x28] sm:$0xf0] }
 0x167   : > { %v1115_v54 = vadd.f32 %v1114_v37, %v1113_v63  ;;  %v9787_v13 = vpack.c.bf16 %v1294_v44, %v1294_v44  ;;  %v762_v39 = vmul.f32 %v8964_v59, %v627_v43  ;;  %3098 = vmatpush.bf16.msra.mxu3 %v6318_v30  ;;  %v6246_v45 = vor.u32 %v7722_v49, %v6243_v36  ;;  %v7718_v63 = vld [vmem:[%s8731_s2 + $0x134] sm:$0xf]  ;;  %v6227_v16 = vld [vmem:[%s8731_s2 + $0x138] sm:$0xf0]  ;;  %v7684_v43 = vld [vmem:[%s8731_s2 + $0x24] sm:$0xf] }
 0x168   : > { %3060 = vmatpush.bf16.msra.mxu0 %v6118_v7  ;;  %v778_v33 = vmul.f32 %v8964_v59, %v739_v18  ;;  %v6310_v62 = vor.u32 %v7738_v8, %v6307_v34  ;;  %v6110_v25 = vor.u32 %v7688_v56, %v6107_v29  ;;  %v1133_v21 = vmul.f32 %v1005_v40, %v8964_v59  ;;  %v7734_v14 = vld [vmem:[%s8731_s2 + $0x1b4] sm:$0xf]  ;;  %v6291_v61 = vld [vmem:[%s8731_s2 + $0x1b8] sm:$0xf0]  ;;  %v7700_v0 = vld [vmem:[%s8731_s2 + $0xa4] sm:$0xf] }
 0x169   : > { %v1116_v51 = vrot.slane %v1115_v54, 1  ;;  %3027 = vmatmul.bf16.vlgmr.msrb.gmra.mxu1 %v9787_v13  ;;  %v6174_v60 = vor.u32 %v7704_v31, %v6171_v38  ;;  %v6238_v1 = vor.u32 %v7720_v4, %v6235_v41  ;;  %v6302_v28 = vor.u32 %v7736_v52, %v6299_v53  ;;  %v6155_v37 = vld [vmem:[%s8731_s2 + $0xa8] sm:$0xf0]  ;;  %v7716_v35 = vld [vmem:[%s8731_s2 + $0x124] sm:$0xf] }
 0x16a   : > { %3073 = vmatpush.bf16.msra.mxu1 %v6182_v2  ;;  %3086 = vmatpush.bf16.msra.mxu2 %v6246_v45  ;;  %v6102_v46 = vor.u32 %v7686_v26, %v6099_v10  ;;  %v1198_v11 = vsel %vm1182_vm2, %v778_v33, %v762_v39  ;;  %v6230_v49 = vor.u32 %v7718_v63, %v6227_v16  ;;  %v6219_v55 = vld [vmem:[%s8731_s2 + $0x128] sm:$0xf0]  ;;  %v7732_v30 = vld [vmem:[%s8731_s2 + $0x1a4] sm:$0xf]  ;;  %v7682_v34 = vld [vmem:[%s8731_s2 + $0x14] sm:$0xf] }
 0x16b   : > { %v1117_v57 = vadd.f32 %v1116_v51, %v1115_v54  ;;  %3099 = vmatpush.bf16.msra.mxu3 %v6310_v62  ;;  %v6294_v18 = vor.u32 %v7734_v14, %v6291_v61  ;;  %v6094_v8 = vor.u32 %v7684_v43, %v6091_v19  ;;  %v6283_v7 = vld [vmem:[%s8731_s2 + $0x1a8] sm:$0xf0]  ;;  %v6083_v56 = vld [vmem:[%s8731_s2 + $0x18] sm:$0xf0]  ;;  %v6158_v29 = vor.u32 %v7700_v0, %v6155_v37  ;;  %v7698_v54 = vld [vmem:[%s8731_s2 + $0x94] sm:$0xf] }
 0x16c   : > { %3061 = vmatpush.bf16.msra.mxu0 %v6110_v25  ;;  %v6222_v44 = vor.u32 %v7716_v35, %v6219_v55  ;;  %v6286_v40 = vor.u32 %v7732_v30, %v6283_v7  ;;  %v6147_v2 = vld [vmem:[%s8731_s2 + $0x98] sm:$0xf0]  ;;  %v7714_v31 = vld [vmem:[%s8731_s2 + $0x114] sm:$0xf]  ;;  %v6086_v38 = vor.u32 %v7682_v34, %v6083_v56  ;;  %v7680_v41 = vld [vmem:[%s8731_s2 + $0x4] sm:$0xf] }
 0x16d   : > { %v1149_v23 = vmul.f32 %v1117_v57, %v8964_v59  ;;  %v6166_v59 = vor.u32 %v7702_v17, %v6163_v27  ;;  %v6211_v4 = vld [vmem:[%s8731_s2 + $0x118] sm:$0xf0]  ;;  %v7730_v39 = vld [vmem:[%s8731_s2 + $0x194] sm:$0xf]  ;;  %v6075_v52 = vld [vmem:[%s8731_s2 + $0x8] sm:$0xf0]  ;;  %v6150_v33 = vor.u32 %v7698_v54, %v6147_v2 }
 0x16e   : > { %3074 = vmatpush.bf16.msra.mxu1 %v6174_v60  ;;  %3087 = vmatpush.bf16.msra.mxu2 %v6238_v1  ;;  %v6275_v45 = vld [vmem:[%s8731_s2 + $0x198] sm:$0xf0]  ;;  %v7696_v53 = vld [vmem:[%s8731_s2 + $0x84] sm:$0xf]  ;;  %v6139_v51 = vld [vmem:[%s8731_s2 + $0x88] sm:$0xf0]  ;;  %v6214_v26 = vor.u32 %v7714_v31, %v6211_v4  ;;  %v6078_v1 = vor.u32 %v7680_v41, %v6075_v52 }
 0x16f   : > { %v1263_v12 = vsel %vm1247_vm3, %v1149_v23, %v1133_v21  ;;  %3100 = vmatpush.bf16.msra.mxu3 %v6302_v28  ;;  %v7758_v62 = vld [vmem:[%s8731_s2 + $0x274] sm:$0xf]  ;;  %v6387_v25 = vld [vmem:[%s8731_s2 + $0x278] sm:$0xf0]  ;;  %v6278_v10 = vor.u32 %v7730_v39, %v6275_v45  ;;  %v7712_v21 = vld [vmem:[%s8731_s2 + $0x104] sm:$0xf]  ;;  %v6142_v16 = vor.u32 %v7696_v53, %v6139_v51 }
 0x170   : > { %v1296_v5 = vsel %vm1280_vm4, %v1198_v11, %v1263_v12  ;;  %3062 = vmatpush.bf16.msra.mxu0 %v6102_v46  ;;  %v6203_v57 = vld [vmem:[%s8731_s2 + $0x108] sm:$0xf0]  ;;  %v7728_v60 = vld [vmem:[%s8731_s2 + $0x184] sm:$0xf]  ;;  %v7774_v46 = vld [vmem:[%s8731_s2 + $0x2f4] sm:$0xf]  ;;  %v6390_v27 = vor.u32 %v7758_v62, %v6387_v25 }
 0x171   : > { %v9813_v36 = vpack.c.bf16 %v1296_v5, %v1296_v5  ;;  %v6267_v28 = vld [vmem:[%s8731_s2 + $0x188] sm:$0xf0]  ;;  %v6451_v17 = vld [vmem:[%s8731_s2 + $0x2f8] sm:$0xf0]  ;;  %v7790_v63 = vld [vmem:[%s8731_s2 + $0x374] sm:$0xf]  ;;  %v6206_v19 = vor.u32 %v7712_v21, %v6203_v57  ;;  %v2859_v21 = vpop.f32.mrf.mxu0  ;;  %v2872_v57 = vpop.f32.mrf.mxu1 }
 0x172   : > { %3075 = vmatpush.bf16.msra.mxu1 %v6166_v59  ;;  %3088 = vmatpush.bf16.msra.mxu2 %v6230_v49  ;;  %v6515_v23 = vld [vmem:[%s8731_s2 + $0x378] sm:$0xf0]  ;;  %v7806_v11 = vld [vmem:[%s8731_s2 + $0x3f4] sm:$0xf]  ;;  %v7756_v61 = vld [vmem:[%s8731_s2 + $0x264] sm:$0xf]  ;;  %v6270_v12 = vor.u32 %v7728_v60, %v6267_v28  ;;  %v6454_v59 = vor.u32 %v7774_v46, %v6451_v17  ;;  %v2873_v60 = vadd.f32 %v2872_v57, %v2859_v21 }
 0x173   : > { %3053 = vmatmul.bf16.vlgmr.msrb.gmra.mxu3 %v9813_v36  ;;  %v6579_v14 = vld [vmem:[%s8731_s2 + $0x3f8] sm:$0xf0]  ;;  %v6379_v43 = vld [vmem:[%s8731_s2 + $0x268] sm:$0xf0]  ;;  %v6518_v5 = vor.u32 %v7790_v63, %v6515_v23  ;;  %v7772_v49 = vld [vmem:[%s8731_s2 + $0x2e4] sm:$0xf] }
 0x174   : > { %3101 = vmatpush.bf16.msra.mxu3 %v6294_v18  ;;  %3063 = vmatpush.bf16.msra.mxu0 %v6094_v8  ;;  %v6443_v18 = vld [vmem:[%s8731_s2 + $0x2e8] sm:$0xf0]  ;;  %v6582_v0 = vor.u32 %v7806_v11, %v6579_v14  ;;  %v6382_v37 = vor.u32 %v7756_v61, %v6379_v43  ;;  %v7788_v35 = vld [vmem:[%s8731_s2 + $0x364] sm:$0xf]  ;;  %v7754_v7 = vld [vmem:[%s8731_s2 + $0x254] sm:$0xf] }
 0x175   : > { %v6507_v8 = vld [vmem:[%s8731_s2 + $0x368] sm:$0xf0]  ;;  %v7804_v55 = vld [vmem:[%s8731_s2 + $0x3e4] sm:$0xf]  ;;  %v6371_v34 = vld [vmem:[%s8731_s2 + $0x258] sm:$0xf0]  ;;  %v6446_v56 = vor.u32 %v7772_v49, %v6443_v18 }
 0x176   : > { %3076 = vmatpush.bf16.msra.mxu1 %v6158_v29  ;;  %3089 = vmatpush.bf16.msra.mxu2 %v6222_v44  ;;  %v6571_v30 = vld [vmem:[%s8731_s2 + $0x3e8] sm:$0xf0]  ;;  %v6510_v29 = vor.u32 %v7788_v35, %v6507_v8  ;;  %v7770_v44 = vld [vmem:[%s8731_s2 + $0x2d4] sm:$0xf]  ;;  %v6374_v2 = vor.u32 %v7754_v7, %v6371_v34  ;;  %v6563_v39 = vld [vmem:[%s8731_s2 + $0x3d8] sm:$0xf0] }
 0x177   : > { %v6574_v54 = vor.u32 %v7804_v55, %v6571_v30  ;;  %v7786_v31 = vld [vmem:[%s8731_s2 + $0x354] sm:$0xf]  ;;  %v7752_v45 = vld [vmem:[%s8731_s2 + $0x244] sm:$0xf]  ;;  %v6363_v41 = vld [vmem:[%s8731_s2 + $0x248] sm:$0xf0] }
 0x178   : > { %3102 = vmatpush.bf16.msra.mxu3 %v6286_v40  ;;  %3064 = vmatpush.bf16.msra.mxu0 %v6086_v38  ;;  %v6435_v40 = vld [vmem:[%s8731_s2 + $0x2d8] sm:$0xf0]  ;;  %v7802_v4 = vld [vmem:[%s8731_s2 + $0x3d4] sm:$0xf]  ;;  %v6427_v51 = vld [vmem:[%s8731_s2 + $0x2c8] sm:$0xf0]  ;;  %v6366_v62 = vor.u32 %v7752_v45, %v6363_v41 }
 0x179   : > { %v6499_v38 = vld [vmem:[%s8731_s2 + $0x358] sm:$0xf0]  ;;  %v6438_v52 = vor.u32 %v7770_v44, %v6435_v40  ;;  %v6491_v25 = vld [vmem:[%s8731_s2 + $0x348] sm:$0xf0]  ;;  %v7766_v46 = vld [vmem:[%s8731_s2 + $0x2b4] sm:$0xf]  ;;  %v2861_v44 = vpop.f32.mrf.mxu0  ;;  %v2874_v40 = vpop.f32.mrf.mxu1 }
 0x17a   : > { %3077 = vmatpush.bf16.msra.mxu1 %v6150_v33  ;;  %3090 = vmatpush.bf16.msra.mxu2 %v6214_v26  ;;  %v6502_v53 = vor.u32 %v7786_v31, %v6499_v38  ;;  %v7768_v33 = vld [vmem:[%s8731_s2 + $0x2c4] sm:$0xf]  ;;  %v6419_v17 = vld [vmem:[%s8731_s2 + $0x2b8] sm:$0xf0]  ;;  %v7782_v23 = vld [vmem:[%s8731_s2 + $0x334] sm:$0xf] }
 0x17b   : > { %v7800_v26 = vld [vmem:[%s8731_s2 + $0x3c4] sm:$0xf]  ;;  %v6483_v11 = vld [vmem:[%s8731_s2 + $0x338] sm:$0xf0]  ;;  %v6347_v43 = vld [vmem:[%s8731_s2 + $0x228] sm:$0xf0] }
 0x17c   : > { %3103 = vmatpush.bf16.msra.mxu3 %v6278_v10  ;;  %3065 = vmatpush.bf16.msra.mxu0 %v6078_v1  ;;  %v7750_v10 = vld [vmem:[%s8731_s2 + $0x234] sm:$0xf]  ;;  %v6430_v1 = vor.u32 %v7768_v33, %v6427_v51  ;;  %v6547_v14 = vld [vmem:[%s8731_s2 + $0x3b8] sm:$0xf0]  ;;  %v7748_v61 = vld [vmem:[%s8731_s2 + $0x224] sm:$0xf]  ;;  %v6486_v49 = vor.u32 %v7782_v23, %v6483_v11 }
 0x17d   : > { %v7764_v18 = vld [vmem:[%s8731_s2 + $0x2a4] sm:$0xf]  ;;  %v6350_v35 = vor.u32 %v7748_v61, %v6347_v43  ;;  %v6475_v55 = vld [vmem:[%s8731_s2 + $0x328] sm:$0xf0]  ;;  %v7762_v31 = vld [vmem:[%s8731_s2 + $0x294] sm:$0xf] }
 0x17e   : > { %3078 = vmatpush.bf16.msra.mxu1 %v6142_v16  ;;  %3091 = vmatpush.bf16.msra.mxu2 %v6206_v19  ;;  %v7798_v16 = vld [vmem:[%s8731_s2 + $0x3b4] sm:$0xf]  ;;  %v2885_v19 = vpop.f32.mrf.mxu2  ;;  %v7780_v8 = vld [vmem:[%s8731_s2 + $0x324] sm:$0xf]  ;;  %v6539_v34 = vld [vmem:[%s8731_s2 + $0x3a8] sm:$0xf0] }
 0x17f   : > { %3066 = vmatmul.bf16.vlgmr.msra.gmra.mxu0 %v9135_v50  ;;  %v7784_v50 = vld [vmem:[%s8731_s2 + $0x344] sm:$0xf]  ;;  %v6403_v38 = vld [vmem:[%s8731_s2 + $0x298] sm:$0xf0]  ;;  %v7778_v45 = vld [vmem:[%s8731_s2 + $0x314] sm:$0xf] }
 0x180   : > { %3110 = vmatpush.bf16.msrb.mxu0 %v6390_v27  ;;  %3104 = vmatpush.bf16.msra.mxu3 %v6270_v12  ;;  %v6494_v28 = vor.u32 %v7784_v50, %v6491_v25  ;;  %v2898_v12 = vpop.f32.mrf.mxu3  ;;  %v7796_v30 = vld [vmem:[%s8731_s2 + $0x3a4] sm:$0xf]  ;;  %v6467_v41 = vld [vmem:[%s8731_s2 + $0x318] sm:$0xf0]  ;;  %v6331_v51 = vld [vmem:[%s8731_s2 + $0x208] sm:$0xf0] }
 0x181   : > { %3092 = vmatmul.bf16.vlgmr.msra.gmra.mxu2 %v9162_v47  ;;  %3079 = vmatmul.bf16.vlgmr.msra.gmra.mxu1 %v9137_v6  ;;  %v6566_v47 = vor.u32 %v7802_v4, %v6563_v39  ;;  %v6355_v6 = vld [vmem:[%s8731_s2 + $0x238] sm:$0xf0]  ;;  %v6542_v4 = vor.u32 %v7796_v30, %v6539_v34  ;;  %v7744_v33 = vld [vmem:[%s8731_s2 + $0x204] sm:$0xf]  ;;  %v7822_v50 = vld [vmem:[%s8731_s2 + $0x474] sm:$0xf] }
 0x182   : > { %3123 = vmatpush.bf16.msrb.mxu1 %v6454_v59  ;;  %3136 = vmatpush.bf16.msrb.mxu2 %v6518_v5  ;;  %v6358_v63 = vor.u32 %v7750_v10, %v6355_v6  ;;  %v2886_v59 = vadd.f32 %v2885_v19, %v2873_v60  ;;  %v6422_v5 = vor.u32 %v7766_v46, %v6419_v17  ;;  %v6643_v25 = vld [vmem:[%s8731_s2 + $0x478] sm:$0xf0]  ;;  %v7760_v10 = vld [vmem:[%s8731_s2 + $0x284] sm:$0xf]  ;;  %v6395_v6 = vld [vmem:[%s8731_s2 + $0x288] sm:$0xf0] }
 0x183   : > { %3105 = vmatmul.bf16.vlgmr.msra.gmra.mxu3 %v9164_v3  ;;  %v6555_v3 = vld [vmem:[%s8731_s2 + $0x3c8] sm:$0xf0]  ;;  %v7776_v21 = vld [vmem:[%s8731_s2 + $0x304] sm:$0xf]  ;;  %v6334_v60 = vor.u32 %v7744_v33, %v6331_v51  ;;  %v6646_v17 = vor.u32 %v7822_v50, %v6643_v25  ;;  %v7854_v23 = vld [vmem:[%s8731_s2 + $0x574] sm:$0xf] }
 0x184   : > { %3149 = vmatpush.bf16.msrb.mxu3 %v6582_v0  ;;  %3111 = vmatpush.bf16.msrb.mxu0 %v6382_v37  ;;  %v6558_v27 = vor.u32 %v7800_v26, %v6555_v3  ;;  %v6411_v0 = vld [vmem:[%s8731_s2 + $0x2a8] sm:$0xf0]  ;;  %v6550_v37 = vor.u32 %v7798_v16, %v6547_v14  ;;  %v2899_v7 = vadd.f32 %v2898_v12, %v2886_v59  ;;  %v6771_v14 = vld [vmem:[%s8731_s2 + $0x578] sm:$0xf0]  ;;  %v7870_v61 = vld [vmem:[%s8731_s2 + $0x5f4] sm:$0xf] }
 0x185   : > { %v6406_v26 = vor.u32 %v7762_v31, %v6403_v38  ;;  %v6470_v3 = vor.u32 %v7778_v45, %v6467_v41  ;;  %v6523_v46 = vld [vmem:[%s8731_s2 + $0x388] sm:$0xf0]  ;;  %v6835_v43 = vld [vmem:[%s8731_s2 + $0x5f8] sm:$0xf0]  ;;  %v6398_v12 = vor.u32 %v7760_v10, %v6395_v6  ;;  %v7818_v40 = vld [vmem:[%s8731_s2 + $0x454] sm:$0xf] }
 0x186   : > { %3124 = vmatpush.bf16.msrb.mxu1 %v6446_v56  ;;  %3137 = vmatpush.bf16.msrb.mxu2 %v6510_v29  ;;  %v7746_v56 = vld [vmem:[%s8731_s2 + $0x214] sm:$0xf]  ;;  %v6339_v29 = vld [vmem:[%s8731_s2 + $0x218] sm:$0xf0]  ;;  %v6699_v30 = vld [vmem:[%s8731_s2 + $0x4e8] sm:$0xf0] }
 0x187   : > { %v6342_v39 = vor.u32 %v7746_v56, %v6339_v29  ;;  %v6763_v56 = vld [vmem:[%s8731_s2 + $0x568] sm:$0xf0]  ;;  %v7868_v29 = vld [vmem:[%s8731_s2 + $0x5e4] sm:$0xf]  ;;  %v7834_v45 = vld [vmem:[%s8731_s2 + $0x4d4] sm:$0xf] }
 0x188   : > { %3150 = vmatpush.bf16.msrb.mxu3 %v6574_v54  ;;  %3112 = vmatpush.bf16.msrb.mxu0 %v6374_v2  ;;  %v6414_v54 = vor.u32 %v7764_v18, %v6411_v0  ;;  %v6478_v2 = vor.u32 %v7780_v8, %v6475_v55  ;;  %v6838_v8 = vor.u32 %v7870_v61, %v6835_v43  ;;  %v7836_v55 = vld [vmem:[%s8731_s2 + $0x4e4] sm:$0xf]  ;;  %v6827_v44 = vld [vmem:[%s8731_s2 + $0x5e8] sm:$0xf0]  ;;  %v6691_v41 = vld [vmem:[%s8731_s2 + $0x4d8] sm:$0xf0] }
 0x189   : > { %v6702_v31 = vor.u32 %v7836_v55, %v6699_v30  ;;  %v6819_v50 = vld [vmem:[%s8731_s2 + $0x5d8] sm:$0xf0]  ;;  %v7816_v25 = vld [vmem:[%s8731_s2 + $0x444] sm:$0xf]  ;;  %v7846_v61 = vld [vmem:[%s8731_s2 + $0x534] sm:$0xf] }
 0x18a   : > { %3125 = vmatpush.bf16.msrb.mxu1 %v6438_v52  ;;  %3138 = vmatpush.bf16.msrb.mxu2 %v6502_v53  ;;  %v7794_v52 = vld [vmem:[%s8731_s2 + $0x394] sm:$0xf]  ;;  %v6531_v53 = vld [vmem:[%s8731_s2 + $0x398] sm:$0xf0]  ;;  %v7832_v6 = vld [vmem:[%s8731_s2 + $0x4c4] sm:$0xf] }
 0x18b   : > { %v6534_v57 = vor.u32 %v7794_v52, %v6531_v53  ;;  %v2911_v11 = vpop.f32.mrf.mxu0  ;;  %v7850_v52 = vld [vmem:[%s8731_s2 + $0x554] sm:$0xf]  ;;  %v7828_v55 = vld [vmem:[%s8731_s2 + $0x4a4] sm:$0xf]  ;;  %v6667_v30 = vld [vmem:[%s8731_s2 + $0x4a8] sm:$0xf0] }
 0x18c   : > { %3151 = vmatpush.bf16.msrb.mxu3 %v6566_v47  ;;  %3113 = vmatpush.bf16.msrb.mxu0 %v6366_v62  ;;  %v2887_v47 = vpop.f32.mrf.mxu2  ;;  %v2900_v62 = vpop.f32.mrf.mxu3  ;;  %v2912_v19 = vadd.f32 %v2911_v11, %v2899_v7  ;;  %v7852_v7 = vld [vmem:[%s8731_s2 + $0x564] sm:$0xf] }
 0x18d   : > { %v6755_v47 = vld [vmem:[%s8731_s2 + $0x558] sm:$0xf0]  ;;  %v7866_v62 = vld [vmem:[%s8731_s2 + $0x5d4] sm:$0xf] }
 0x18e   : > { %3126 = vmatpush.bf16.msrb.mxu1 %v6430_v1  ;;  %3139 = vmatpush.bf16.msrb.mxu2 %v6494_v28  ;;  %v6459_v1 = vld [vmem:[%s8731_s2 + $0x308] sm:$0xf0]  ;;  %v7792_v28 = vld [vmem:[%s8731_s2 + $0x384] sm:$0xf]  ;;  %v6822_v10 = vor.u32 %v7866_v62, %v6819_v50 }
 0x18f   : > { %v2924_v16 = vpop.f32.mrf.mxu1  ;;  %v6462_v59 = vor.u32 %v7776_v21, %v6459_v1  ;;  %v6526_v18 = vor.u32 %v7792_v28, %v6523_v46  ;;  %v6683_v21 = vld [vmem:[%s8731_s2 + $0x4c8] sm:$0xf0]  ;;  %v7864_v1 = vld [vmem:[%s8731_s2 + $0x5c4] sm:$0xf] }
 0x190   : > { %3152 = vmatpush.bf16.msrb.mxu3 %v6558_v27  ;;  %3114 = vmatpush.bf16.msrb.mxu0 %v6358_v63  ;;  %v7838_v27 = vld [vmem:[%s8731_s2 + $0x4f4] sm:$0xf]  ;;  %v6707_v63 = vld [vmem:[%s8731_s2 + $0x4f8] sm:$0xf0]  ;;  %v6811_v28 = vld [vmem:[%s8731_s2 + $0x5c8] sm:$0xf0] }
 0x191   : > { %v6710_v0 = vor.u32 %v7838_v27, %v6707_v63  ;;  %v6611_v27 = vld [vmem:[%s8731_s2 + $0x438] sm:$0xf0]  ;;  %v6814_v11 = vor.u32 %v7864_v1, %v6811_v28  ;;  %v7808_v62 = vld [vmem:[%s8731_s2 + $0x404] sm:$0xf]  ;;  %v6587_v50 = vld [vmem:[%s8731_s2 + $0x408] sm:$0xf0] }
 0x192   : > { %3127 = vmatpush.bf16.msrb.mxu1 %v6422_v5  ;;  %3140 = vmatpush.bf16.msrb.mxu2 %v6486_v49  ;;  %v7820_v5 = vld [vmem:[%s8731_s2 + $0x464] sm:$0xf]  ;;  %v6635_v49 = vld [vmem:[%s8731_s2 + $0x468] sm:$0xf0]  ;;  %v7902_v28 = vld [vmem:[%s8731_s2 + $0x6f4] sm:$0xf] }
 0x193   : > { %v6638_v34 = vor.u32 %v7820_v5, %v6635_v49  ;;  %v2913_v53 = vpop.f32.mrf.mxu0  ;;  %v7812_v49 = vld [vmem:[%s8731_s2 + $0x424] sm:$0xf]  ;;  %v6779_v1 = vld [vmem:[%s8731_s2 + $0x588] sm:$0xf0] }
 0x194   : > { %3153 = vmatpush.bf16.msrb.mxu3 %v6550_v37  ;;  %3115 = vmatpush.bf16.msrb.mxu0 %v6350_v35  ;;  %v2925_v37 = vadd.f32 %v2924_v16, %v2912_v19  ;;  %v6774_v35 = vor.u32 %v7854_v23, %v6771_v14  ;;  %v6686_v23 = vor.u32 %v7832_v6, %v6683_v21  ;;  %v7830_v16 = vld [vmem:[%s8731_s2 + $0x4b4] sm:$0xf]  ;;  %v6675_v14 = vld [vmem:[%s8731_s2 + $0x4b8] sm:$0xf0]  ;;  %v6651_v21 = vld [vmem:[%s8731_s2 + $0x488] sm:$0xf0] }
 0x195   : > { %v6739_v19 = vld [vmem:[%s8731_s2 + $0x538] sm:$0xf0] }
 0x196   : > { %3128 = vmatpush.bf16.msrb.mxu1 %v6414_v54  ;;  %3141 = vmatpush.bf16.msrb.mxu2 %v6478_v2  ;;  %v6627_v54 = vld [vmem:[%s8731_s2 + $0x458] sm:$0xf0]  ;;  %v2937_v2 = vpop.f32.mrf.mxu2 }
 0x197   : > { %v2938_v38 = vadd.f32 %v2937_v2, %v2925_v37  ;;  %v2926_v33 = vpop.f32.mrf.mxu1  ;;  %v6630_v51 = vor.u32 %v7818_v40, %v6627_v54  ;;  %v6678_v37 = vor.u32 %v7830_v16, %v6675_v14  ;;  %v6795_v40 = vld [vmem:[%s8731_s2 + $0x5a8] sm:$0xf0]  ;;  %v7810_v54 = vld [vmem:[%s8731_s2 + $0x414] sm:$0xf]  ;;  %v6595_v2 = vld [vmem:[%s8731_s2 + $0x418] sm:$0xf0] }
 0x198   : > { %3154 = vmatpush.bf16.msrb.mxu3 %v6542_v4  ;;  %3116 = vmatpush.bf16.msrb.mxu0 %v6342_v39  ;;  %v6766_v4 = vor.u32 %v7852_v7, %v6763_v56  ;;  %v6830_v39 = vor.u32 %v7868_v29, %v6827_v44  ;;  %v7844_v7 = vld [vmem:[%s8731_s2 + $0x524] sm:$0xf]  ;;  %v6731_v29 = vld [vmem:[%s8731_s2 + $0x528] sm:$0xf0]  ;;  %v6723_v53 = vld [vmem:[%s8731_s2 + $0x518] sm:$0xf0] }
 0x199   : > { %v7860_v44 = vld [vmem:[%s8731_s2 + $0x5a4] sm:$0xf]  ;;  %v7858_v33 = vld [vmem:[%s8731_s2 + $0x594] sm:$0xf] }
 0x19a   : > { %3129 = vmatpush.bf16.msrb.mxu1 %v6406_v26  ;;  %3142 = vmatpush.bf16.msrb.mxu2 %v6470_v3  ;;  %v6619_v26 = vld [vmem:[%s8731_s2 + $0x448] sm:$0xf0]  ;;  %v6694_v3 = vor.u32 %v7834_v45, %v6691_v41  ;;  %v6659_v45 = vld [vmem:[%s8731_s2 + $0x498] sm:$0xf0]  ;;  %v7842_v41 = vld [vmem:[%s8731_s2 + $0x514] sm:$0xf] }
 0x19c   : > { %3155 = vmatpush.bf16.msrb.mxu3 %v6534_v57  ;;  %3117 = vmatpush.bf16.msrb.mxu0 %v6334_v60  ;;  %v7848_v57 = vld [vmem:[%s8731_s2 + $0x544] sm:$0xf] }
 0x19e   : > { %3130 = vmatpush.bf16.msrb.mxu1 %v6398_v12  ;;  %3143 = vmatpush.bf16.msrb.mxu2 %v6462_v59  ;;  %v2939_v63 = vpop.f32.mrf.mxu2  ;;  %v7862_v12 = vld [vmem:[%s8731_s2 + $0x5b4] sm:$0xf]  ;;  %v6803_v59 = vld [vmem:[%s8731_s2 + $0x5b8] sm:$0xf0] }
 0x19f   : > { %3118 = vmatmul.bf16.vlgmr.msrb.gmra.mxu0 %v9336_v24  ;;  %v6622_v24 = vor.u32 %v7816_v25, %v6619_v26  ;;  %v7824_v26 = vld [vmem:[%s8731_s2 + $0x484] sm:$0xf]  ;;  %v7027_v63 = vld [vmem:[%s8731_s2 + $0x778] sm:$0xf0] }
 0x1a0   : > { %3162 = vmatpush.bf16.msra.mxu0 %v6646_v17  ;;  %3156 = vmatpush.bf16.msrb.mxu3 %v6526_v18  ;;  %v2950_v60 = vpop.f32.mrf.mxu3  ;;  %v7814_v17 = vld [vmem:[%s8731_s2 + $0x434] sm:$0xf]  ;;  %v6603_v18 = vld [vmem:[%s8731_s2 + $0x428] sm:$0xf0] }
 0x1a1   : > { %3144 = vmatmul.bf16.vlgmr.msrb.gmra.mxu2 %v9377_v32  ;;  %v6758_v32 = vor.u32 %v7850_v52, %v6755_v47  ;;  %3131 = vmatmul.bf16.vlgmr.msrb.gmra.mxu1 %v9371_v22  ;;  %v2951_v46 = vadd.f32 %v2950_v60, %v2938_v38  ;;  %v6614_v43 = vor.u32 %v7814_v17, %v6611_v27  ;;  %v6715_v60 = vld [vmem:[%s8731_s2 + $0x508] sm:$0xf0]  ;;  %v6963_v17 = vld [vmem:[%s8731_s2 + $0x6f8] sm:$0xf0]  ;;  %v7918_v27 = vld [vmem:[%s8731_s2 + $0x774] sm:$0xf] }
 0x1a2   : > { %3175 = vmatpush.bf16.msra.mxu1 %v6710_v0  ;;  %3188 = vmatpush.bf16.msra.mxu2 %v6774_v35  ;;  %v6742_v35 = vor.u32 %v7846_v61, %v6739_v19  ;;  %v6606_v56 = vor.u32 %v7812_v49, %v6603_v18  ;;  %v6734_v38 = vor.u32 %v7844_v7, %v6731_v29  ;;  %v6955_v18 = vld [vmem:[%s8731_s2 + $0x6e8] sm:$0xf0]  ;;  %v7882_v29 = vld [vmem:[%s8731_s2 + $0x654] sm:$0xf] }
 0x1a3   : > { %3157 = vmatmul.bf16.vlgmr.msrb.gmra.mxu3 %v9410_v58  ;;  %v6747_v58 = vld [vmem:[%s8731_s2 + $0x548] sm:$0xf0]  ;;  %v6598_v52 = vor.u32 %v7810_v54, %v6595_v2  ;;  %v7030_v19 = vor.u32 %v7918_v27, %v7027_v63  ;;  %v7059_v27 = vld [vmem:[%s8731_s2 + $0x7b8] sm:$0xf0] }
 0x1a4   : > { %3201 = vmatpush.bf16.msra.mxu3 %v6838_v8  ;;  %3163 = vmatpush.bf16.msra.mxu0 %v6638_v34  ;;  %v6750_v22 = vor.u32 %v7848_v57, %v6747_v58  ;;  %v6806_v8 = vor.u32 %v7862_v12, %v6803_v59  ;;  %v7840_v57 = vld [vmem:[%s8731_s2 + $0x504] sm:$0xf]  ;;  %v6891_v59 = vld [vmem:[%s8731_s2 + $0x668] sm:$0xf0] }
 0x1a5   : > { %v2963_v5 = vpop.f32.mrf.mxu0  ;;  %v7856_v58 = vld [vmem:[%s8731_s2 + $0x584] sm:$0xf]  ;;  %v6718_v16 = vor.u32 %v7840_v57, %v6715_v60  ;;  %v7878_v57 = vld [vmem:[%s8731_s2 + $0x634] sm:$0xf]  ;;  %v6867_v60 = vld [vmem:[%s8731_s2 + $0x638] sm:$0xf0] }
 0x1a6   : > { %3176 = vmatpush.bf16.msra.mxu1 %v6702_v31  ;;  %3189 = vmatpush.bf16.msra.mxu2 %v6766_v4  ;;  %v9949_v0 = vadd.f32 %v2963_v5, %v2951_v46  ;;  %v6670_v31 = vor.u32 %v7828_v55, %v6667_v30  ;;  %v6798_v4 = vor.u32 %v7860_v44, %v6795_v40  ;;  %v7884_v12 = vld [vmem:[%s8731_s2 + $0x664] sm:$0xf]  ;;  %v7083_v55 = vld [vmem:[%s8731_s2 + $0x7e8] sm:$0xf0]  ;;  %v6883_v44 = vld [vmem:[%s8731_s2 + $0x658] sm:$0xf0] }
 0x1a7   : > { %v6782_v14 = vor.u32 %v7856_v58, %v6779_v1  ;;  %v7900_v5 = vld [vmem:[%s8731_s2 + $0x6e4] sm:$0xf]  ;;  %v6894_v30 = vor.u32 %v7884_v12, %v6891_v59  ;;  %v7898_v40 = vld [vmem:[%s8731_s2 + $0x6d4] sm:$0xf]  ;;  %v6931_v1 = vld [vmem:[%s8731_s2 + $0x6b8] sm:$0xf0]  ;;  %v6870_v63 = vor.u32 %v7878_v57, %v6867_v60 }
 0x1a8   : > { %3202 = vmatpush.bf16.msra.mxu3 %v6830_v39  ;;  %3164 = vmatpush.bf16.msra.mxu0 %v6630_v51  ;;  %v2952_v34 = vpop.f32.mrf.mxu3  ;;  %v7826_v39 = vld [vmem:[%s8731_s2 + $0x494] sm:$0xf]  ;;  %v6787_v51 = vld [vmem:[%s8731_s2 + $0x598] sm:$0xf0]  ;;  %v6987_v12 = vld [vmem:[%s8731_s2 + $0x728] sm:$0xf0] }
 0x1a9   : > { %v6662_v25 = vor.u32 %v7826_v39, %v6659_v45  ;;  %v6790_v6 = vor.u32 %v7858_v33, %v6787_v51  ;;  %v6958_v34 = vor.u32 %v7900_v5, %v6955_v18  ;;  %v7930_v39 = vld [vmem:[%s8731_s2 + $0x7d4] sm:$0xf]  ;;  %v7075_v45 = vld [vmem:[%s8731_s2 + $0x7d8] sm:$0xf0]  ;;  %v6875_v51 = vld [vmem:[%s8731_s2 + $0x648] sm:$0xf0] }
 0x1aa   : > { %3177 = vmatpush.bf16.msra.mxu1 %v6694_v3  ;;  %3190 = vmatpush.bf16.msra.mxu2 %v6758_v32  ;;  %v7886_v3 = vld [vmem:[%s8731_s2 + $0x674] sm:$0xf]  ;;  %v6899_v32 = vld [vmem:[%s8731_s2 + $0x678] sm:$0xf0]  ;;  %v7924_v59 = vld [vmem:[%s8731_s2 + $0x7a4] sm:$0xf] }
 0x1ab   : > { %v6902_v46 = vor.u32 %v7886_v3, %v6899_v32  ;;  %v7067_v3 = vld [vmem:[%s8731_s2 + $0x7c8] sm:$0xf0] }
 0x1ac   : > { %3203 = vmatpush.bf16.msra.mxu3 %v6822_v10  ;;  %3165 = vmatpush.bf16.msra.mxu0 %v6622_v24  ;;  %v6726_v10 = vor.u32 %v7842_v41, %v6723_v53  ;;  %v6590_v24 = vor.u32 %v7808_v62, %v6587_v50  ;;  %v6939_v62 = vld [vmem:[%s8731_s2 + $0x6c8] sm:$0xf0]  ;;  %v7912_v50 = vld [vmem:[%s8731_s2 + $0x744] sm:$0xf] }
 0x1ad   : > { %v2965_v47 = vpop.f32.mrf.mxu0  ;;  %v7051_v5 = vld [vmem:[%s8731_s2 + $0x7a8] sm:$0xf0] }
 0x1ae   : > { %3178 = vmatpush.bf16.msra.mxu1 %v6686_v23  ;;  %3191 = vmatpush.bf16.msra.mxu2 %v6750_v22  ;;  %v6654_v23 = vor.u32 %v7824_v26, %v6651_v21  ;;  %v7934_v22 = vld [vmem:[%s8731_s2 + $0x7f4] sm:$0xf]  ;;  %v7078_v47 = vor.u32 %v7930_v39, %v7075_v45  ;;  %v7928_v26 = vld [vmem:[%s8731_s2 + $0x7c4] sm:$0xf]  ;;  %v6843_v39 = vld [vmem:[%s8731_s2 + $0x608] sm:$0xf0] }
 0x1af   : > { %v7070_v58 = vor.u32 %v7928_v26, %v7067_v3  ;;  %v7888_v45 = vld [vmem:[%s8731_s2 + $0x684] sm:$0xf] }
 0x1b0   : > { %3204 = vmatpush.bf16.msra.mxu3 %v6814_v11  ;;  %3166 = vmatpush.bf16.msra.mxu0 %v6614_v43  ;;  %v7091_v11 = vld [vmem:[%s8731_s2 + $0x7f8] sm:$0xf0]  ;;  %v6966_v43 = vor.u32 %v7902_v28, %v6963_v17  ;;  %v7910_v28 = vld [vmem:[%s8731_s2 + $0x734] sm:$0xf] }
 0x1b1   : > { %v7094_v49 = vor.u32 %v7934_v22, %v7091_v11  ;;  %v7926_v17 = vld [vmem:[%s8731_s2 + $0x7b4] sm:$0xf]  ;;  %v7876_v11 = vld [vmem:[%s8731_s2 + $0x624] sm:$0xf] }
 0x1b2   : > { %3179 = vmatpush.bf16.msra.mxu1 %v6678_v37  ;;  %3192 = vmatpush.bf16.msra.mxu2 %v6742_v35  ;;  %v7916_v37 = vld [vmem:[%s8731_s2 + $0x764] sm:$0xf]  ;;  %v7019_v35 = vld [vmem:[%s8731_s2 + $0x768] sm:$0xf0] }
 0x1b4   : > { %3205 = vmatpush.bf16.msra.mxu3 %v6806_v8  ;;  %3167 = vmatpush.bf16.msra.mxu0 %v6606_v56  ;;  %v2989_v61 = vpop.f32.mrf.mxu2  ;;  %v7932_v8 = vld [vmem:[%s8731_s2 + $0x7e4] sm:$0xf]  ;;  %v7022_v56 = vor.u32 %v7916_v37, %v7019_v35 }
 0x1b5   : > { %v7086_v2 = vor.u32 %v7932_v8, %v7083_v55  ;;  %v7874_v55 = vld [vmem:[%s8731_s2 + $0x614] sm:$0xf] }
 0x1b6   : > { %3180 = vmatpush.bf16.msra.mxu1 %v6670_v31  ;;  %3193 = vmatpush.bf16.msra.mxu2 %v6734_v38  ;;  %v6947_v31 = vld [vmem:[%s8731_s2 + $0x6d8] sm:$0xf0]  ;;  %v7914_v38 = vld [vmem:[%s8731_s2 + $0x754] sm:$0xf] }
 0x1b7   : > { %v6950_v53 = vor.u32 %v7898_v40, %v6947_v31  ;;  %v7922_v40 = vld [vmem:[%s8731_s2 + $0x794] sm:$0xf] }
 0x1b8   : > { %3206 = vmatpush.bf16.msra.mxu3 %v6798_v4  ;;  %3168 = vmatpush.bf16.msra.mxu0 %v6598_v52  ;;  %v2976_v7 = vpop.f32.mrf.mxu1  ;;  %v7011_v4 = vld [vmem:[%s8731_s2 + $0x758] sm:$0xf0] }
 0x1b9   : > { %v2977_v54 = vadd.f32 %v2976_v7, %v9949_v0  ;;  %v10588_v0 = vld [vmem:[#allocation23_spill] sm:$0xff]  ;;  %v7014_v33 = vor.u32 %v7914_v38, %v7011_v4  ;;  %v7890_v7 = vld [vmem:[%s8731_s2 + $0x694] sm:$0xf]  ;;  %v7872_v4 = vld [vmem:[%s8731_s2 + $0x604] sm:$0xf] }
 0x1ba   : > { %3181 = vmatpush.bf16.msra.mxu1 %v6662_v25  ;;  %3194 = vmatpush.bf16.msra.mxu2 %v6726_v10  ;;  %v7003_v25 = vld [vmem:[%s8731_s2 + $0x748] sm:$0xf0] }
 0x1bb   : > { %v2990_v41 = vadd.f32 %v2989_v61, %v2977_v54  ;;  %v7006_v21 = vor.u32 %v7912_v50, %v7003_v25  ;;  %v7062_v61 = vor.u32 %v7926_v17, %v7059_v27  ;;  %v7043_v54 = vld [vmem:[%s8731_s2 + $0x798] sm:$0xf0] }
 0x1bc   : > { %3207 = vmatpush.bf16.msra.mxu3 %v6790_v6  ;;  %3169 = vmatpush.bf16.msra.mxu0 %v6590_v24  ;;  %v2991_v52 = vpop.f32.mrf.mxu2  ;;  %v7894_v24 = vld [vmem:[%s8731_s2 + $0x6b4] sm:$0xf] }
 0x1bd   : > { %v6971_v52 = vld [vmem:[%s8731_s2 + $0x708] sm:$0xf0] }
 0x1be   : > { %3182 = vmatpush.bf16.msra.mxu1 %v6654_v23  ;;  %3195 = vmatpush.bf16.msra.mxu2 %v6718_v16  ;;  %v6934_v23 = vor.u32 %v7894_v24, %v6931_v1  ;;  %v6859_v16 = vld [vmem:[%s8731_s2 + $0x628] sm:$0xf0] }
 0x1bf   : > { %3170 = vmatmul.bf16.vlgmr.msra.gmra.mxu0 %v9434_v15  ;;  %v6886_v15 = vor.u32 %v7882_v29, %v6883_v44  ;;  %v6862_v18 = vor.u32 %v7876_v11, %v6859_v16  ;;  %v7906_v29 = vld [vmem:[%s8731_s2 + $0x714] sm:$0xf]  ;;  %v6979_v44 = vld [vmem:[%s8731_s2 + $0x718] sm:$0xf0] }
 0x1c0   : > { %3214 = vmatpush.bf16.msrb.mxu0 %v6902_v46  ;;  %3208 = vmatpush.bf16.msra.mxu3 %v6782_v14  ;;  %v2978_v10 = vpop.f32.mrf.mxu1  ;;  %v6995_v46 = vld [vmem:[%s8731_s2 + $0x738] sm:$0xf0]  ;;  %v7892_v14 = vld [vmem:[%s8731_s2 + $0x6a4] sm:$0xf]  ;;  %v6982_v38 = vor.u32 %v7906_v29, %v6979_v44 }
 0x1c1   : > { %3196 = vmatmul.bf16.vlgmr.msra.gmra.mxu2 %v9453_v20  ;;  %3183 = vmatmul.bf16.vlgmr.msra.gmra.mxu1 %v9555_v9  ;;  %v7880_v20 = vld [vmem:[%s8731_s2 + $0x644] sm:$0xf]  ;;  %v6998_v22 = vor.u32 %v7910_v28, %v6995_v46 }
 0x1c2   : > { %3227 = vmatpush.bf16.msrb.mxu1 %v6966_v43  ;;  %3240 = vmatpush.bf16.msrb.mxu2 %v7030_v19  ;;  %v7896_v9 = vld [vmem:[%s8731_s2 + $0x6c4] sm:$0xf]  ;;  %v6878_v32 = vor.u32 %v7880_v20, %v6875_v51  ;;  %v6923_v43 = vld [vmem:[%s8731_s2 + $0x6a8] sm:$0xf0]  ;;  %v6846_v20 = vor.u32 %v7872_v4, %v6843_v39 }
 0x1c3   : > { %3209 = vmatmul.bf16.vlgmr.msra.gmra.mxu3 %v10588_v0  ;;  %v6942_v6 = vor.u32 %v7896_v9, %v6939_v62  ;;  %v7908_v19 = vld [vmem:[%s8731_s2 + $0x724] sm:$0xf]  ;;  %v6926_v35 = vor.u32 %v7892_v14, %v6923_v43  ;;  %v6907_v0 = vld [vmem:[%s8731_s2 + $0x688] sm:$0xf0] }
 0x1c4   : > { %3253 = vmatpush.bf16.msrb.mxu3 %v7094_v49  ;;  %3215 = vmatpush.bf16.msrb.mxu0 %v6894_v30  ;;  %v6990_v8 = vor.u32 %v7908_v19, %v6987_v12  ;;  %v6851_v30 = vld [vmem:[%s8731_s2 + $0x618] sm:$0xf0]  ;;  %v6910_v9 = vor.u32 %v7888_v45, %v6907_v0 }
 0x1c6   : > { %3228 = vmatpush.bf16.msrb.mxu1 %v6958_v34  ;;  %3241 = vmatpush.bf16.msrb.mxu2 %v7022_v56  ;;  %v7054_v34 = vor.u32 %v7924_v59, %v7051_v5  ;;  %v6915_v56 = vld [vmem:[%s8731_s2 + $0x698] sm:$0xf0] }
 0x1c7   : > { %v6918_v31 = vor.u32 %v7890_v7, %v6915_v56 }
 0x1c8   : > { %3254 = vmatpush.bf16.msrb.mxu3 %v7086_v2  ;;  %3216 = vmatpush.bf16.msrb.mxu0 %v6886_v15  ;;  %v6854_v2 = vor.u32 %v7874_v55, %v6851_v30  ;;  %v7904_v15 = vld [vmem:[%s8731_s2 + $0x704] sm:$0xf] }
 0x1c9   : > { %v3002_v49 = vpop.f32.mrf.mxu3 }
 0x1ca   : > { %3229 = vmatpush.bf16.msrb.mxu1 %v6950_v53  ;;  %3242 = vmatpush.bf16.msrb.mxu2 %v7014_v33  ;;  %v3003_v37 = vadd.f32 %v3002_v49, %v2990_v41  ;;  %v7046_v41 = vor.u32 %v7922_v40, %v7043_v54  ;;  %v7920_v53 = vld [vmem:[%s8731_s2 + $0x784] sm:$0xf]  ;;  %v7035_v33 = vld [vmem:[%s8731_s2 + $0x788] sm:$0xf0] }
 0x1cb   : > { %v7038_v62 = vor.u32 %v7920_v53, %v7035_v33  ;;  %v1313_v53 = vld [vmem:[#allocation2] sm:$0xff] }
 0x1cc   : > { %3255 = vmatpush.bf16.msrb.mxu3 %v7078_v47  ;;  %3217 = vmatpush.bf16.msrb.mxu0 %v6878_v32  ;;  %v6974_v47 = vor.u32 %v7904_v15, %v6971_v52 }
 0x1ce   : > { %3230 = vmatpush.bf16.msrb.mxu1 %v6942_v6  ;;  %3243 = vmatpush.bf16.msrb.mxu2 %v7006_v21 }
 0x1d0   : > { %3256 = vmatpush.bf16.msrb.mxu3 %v7070_v58  ;;  %3218 = vmatpush.bf16.msrb.mxu0 %v6870_v63 }
 0x1d1   : > { %v3004_v51 = vpop.f32.mrf.mxu3 }
 0x1d2   : > { %3231 = vmatpush.bf16.msrb.mxu1 %v6934_v23  ;;  %3244 = vmatpush.bf16.msrb.mxu2 %v6998_v22 }
 0x1d4   : > { %3257 = vmatpush.bf16.msrb.mxu3 %v7062_v61  ;;  %3219 = vmatpush.bf16.msrb.mxu0 %v6862_v18 }
 0x1d5   : > { %v3015_v50 = vpop.f32.mrf.mxu0 }
 0x1d6   : > { %3232 = vmatpush.bf16.msrb.mxu1 %v6926_v35  ;;  %3245 = vmatpush.bf16.msrb.mxu2 %v6990_v8  ;;  %v3016_v25 = vadd.f32 %v3015_v50, %v3003_v37 }
 0x1d8   : > { %3258 = vmatpush.bf16.msrb.mxu3 %v7054_v34  ;;  %3220 = vmatpush.bf16.msrb.mxu0 %v6854_v2 }
 0x1da   : > { %3233 = vmatpush.bf16.msrb.mxu1 %v6918_v31  ;;  %3246 = vmatpush.bf16.msrb.mxu2 %v6982_v38 }
 0x1dc   : > { %3259 = vmatpush.bf16.msrb.mxu3 %v7046_v41  ;;  %3221 = vmatpush.bf16.msrb.mxu0 %v6846_v20 }
 0x1dd   : > { %v3017_v26 = vpop.f32.mrf.mxu0 }
 0x1de   : > { %3234 = vmatpush.bf16.msrb.mxu1 %v6910_v9  ;;  %3247 = vmatpush.bf16.msrb.mxu2 %v6974_v47 }
 0x1df   : > { %3222 = vmatmul.bf16.vlgmr.msrb.gmra.mxu0 %v9739_v48 }
 0x1e0   : > { %3260 = vmatpush.bf16.msrb.mxu3 %v7038_v62 }
 0x1e1   : > { %3235 = vmatmul.bf16.vlgmr.msrb.gmra.mxu1 %v9787_v13  ;;  %3248 = vmatmul.bf16.vlgmr.msrb.gmra.mxu2 %v9756_v42 }
 0x1e3   : > { %3261 = vmatmul.bf16.vlgmr.msrb.gmra.mxu3 %v9813_v36 }
 0x1e4   : > { %v3041_v3 = vpop.f32.mrf.mxu2 }
 0x1e6   : > { %v3028_v32 = vpop.f32.mrf.mxu1 }
 0x1e7   : > { %v3029_v10 = vadd.f32 %v3028_v32, %v3016_v25 }
 0x1e9   : > { %v3042_v6 = vadd.f32 %v3041_v3, %v3029_v10 }
 0x1ec   : > { %v3043_v21 = vpop.f32.mrf.mxu2 }
 0x1ee   : > { %v3030_v57 = vpop.f32.mrf.mxu1 }
 0x1f6   : > { %v3054_v60 = vpop.f32.mrf.mxu3 }
 0x1f7   : > { %v3055_v24 = vadd.f32 %v3054_v60, %v3042_v6 }
 0x1fc   : > { %v3067_v1 = vpop.f32.mrf.mxu0 }
 0x1fe   : > { %v3056_v58 = vpop.f32.mrf.mxu3  ;;  %v3080_v28 = vpop.f32.mrf.mxu1 }
 0x1ff   : > { %v3081_v46 = vadd.f32 %v3080_v28, %v3067_v1 }
 0x204   : > { %v3093_v48 = vpop.f32.mrf.mxu2  ;;  %v3069_v27 = vpop.f32.mrf.mxu0 }
 0x205   : > { %v3094_v17 = vadd.f32 %v3093_v48, %v3081_v46 }
 0x206   : > { %v3106_v13 = vpop.f32.mrf.mxu3  ;;  %v3082_v63 = vpop.f32.mrf.mxu1 }
 0x207   : > { %v3107_v42 = vadd.f32 %v3106_v13, %v3094_v17 }
 0x20c   : > { %v3095_v36 = vpop.f32.mrf.mxu2 }
 0x20e   : > { %v3108_v23 = vpop.f32.mrf.mxu3 }
 0x21c   : > { %v3119_v22 = vpop.f32.mrf.mxu0 }
 0x21d   : > { %v3120_v49 = vadd.f32 %v3119_v22, %v3107_v42 }
 0x21e   : > { %v3132_v11 = vpop.f32.mrf.mxu1 }
 0x21f   : > { %v3133_v8 = vadd.f32 %v3132_v11, %v3120_v49 }
 0x224   : > { %v3145_v16 = vpop.f32.mrf.mxu2  ;;  %v3121_v61 = vpop.f32.mrf.mxu0 }
 0x225   : > { %v3146_v30 = vadd.f32 %v3145_v16, %v3133_v8 }
 0x226   : > { %v3158_v14 = vpop.f32.mrf.mxu3  ;;  %v3134_v43 = vpop.f32.mrf.mxu1 }
 0x227   : > { %v3159_v56 = vadd.f32 %v3158_v14, %v3146_v30 }
 0x22c   : > { %v3147_v19 = vpop.f32.mrf.mxu2 }
 0x22e   : > { %v3160_v12 = vpop.f32.mrf.mxu3 }
 0x23c   : > { %v3171_v59 = vpop.f32.mrf.mxu0 }
 0x23d   : > { %v3172_v29 = vadd.f32 %v3171_v59, %v3159_v56 }
 0x23e   : > { %v3184_v5 = vpop.f32.mrf.mxu1 }
 0x23f   : > { %v3185_v44 = vadd.f32 %v3184_v5, %v3172_v29 }
 0x244   : > { %v3197_v18 = vpop.f32.mrf.mxu2  ;;  %v3173_v35 = vpop.f32.mrf.mxu0 }
 0x245   : > { %v3198_v40 = vadd.f32 %v3197_v18, %v3185_v44 }
 0x246   : > { %v3210_v37 = vpop.f32.mrf.mxu3  ;;  %v3186_v55 = vpop.f32.mrf.mxu1 }
 0x247   : > { %v3211_v54 = vadd.f32 %v3210_v37, %v3198_v40 }
 0x24c   : > { %v3199_v7 = vpop.f32.mrf.mxu2 }
 0x24e   : > { %v3212_v34 = vpop.f32.mrf.mxu3 }
 0x25c   : > { %v3223_v2 = vpop.f32.mrf.mxu0 }
 0x25d   : > { %v3224_v38 = vadd.f32 %v3223_v2, %v3211_v54 }
 0x25e   : > { %v3236_v31 = vpop.f32.mrf.mxu1 }
 0x25f   : > { %v3237_v4 = vadd.f32 %v3236_v31, %v3224_v38 }
 0x264   : > { %v3249_v39 = vpop.f32.mrf.mxu2  ;;  %v3225_v0 = vpop.f32.mrf.mxu0 }
 0x265   : > { %v3250_v45 = vadd.f32 %v3249_v39, %v3237_v4 }
 0x266   : > { %v3262_v41 = vpop.f32.mrf.mxu3  ;;  %v3238_v15 = vpop.f32.mrf.mxu1 }
 0x267   : > { %v3263_v52 = vadd.f32 %v3262_v41, %v3250_v45 }
 0x269   : > { %v3268_v33 = vrot.slane %v3263_v52, 4 }
 0x26a   : > { %3276 = sbr.rel (%p7095_p5) target bundleno = 5102 (0x13ee), region = 76 }
 0x26b   : > { %v3269_v20 = vsel %vm515_vm0, %v3055_v24, %v3268_v33 }
 0x26c   : > { %v3271_v51 = vadd.f32 %v3269_v20, %v1313_v53  ;;  %v3251_v9 = vpop.f32.mrf.mxu2 }
 0x26e   : > { %v3264_v47 = vpop.f32.mrf.mxu3  ;;  %3272 = vst [vmem:[#allocation2] sm:$0xff] %v3271_v51 }
 0x26f   : > { %v10048_v62 = vld [vmem:[#allocation12] sm:$0xff]  ;;  %v3306_v25 = vld [vmem:[#allocation8] sm:$0x3]  ;;  %vm3312_vm5 = vcmask 1045504   ;;  %v8516_v58 = vmov 128.0   ;;  %vm3592_vm10 = vcmask 130048  }
 0x270   : > { %v3299_v26 = vperm.slane %v10048_v62, 0  ;;  %v3301_v3 = vperm.slane %v10048_v62, 1  ;;  %v3308_v10 = vrot.slane %v3306_v25, 4  ;;  %8170 = vrcp.f32 %v8516_v58  ;;  %v7182_v22 = vld [vmem:[#allocation11 + $0x1c0] sm:$0xf] }
 0x271   : > { %v7996_v11 = vld [vmem:[#allocation11 + $0x1dc] sm:$0xf0]  ;;  %v7992_v16 = vld [vmem:[#allocation11 + $0x1c4] sm:$0xf]  ;;  %v7190_v43 = vld [vmem:[#allocation11 + $0x1c8] sm:$0xf] }
 0x272   : > { %v7183_v14 = vor.u32 %v7996_v11, %v7182_v22  ;;  %v7184_v61 = vld [vmem:[#allocation11 + $0x1e0] sm:$0xf0]  ;;  %v7997_v19 = vld [vmem:[#allocation11 + $0x1e4] sm:$0xf0]  ;;  %v7170_v5 = vld [vmem:[#allocation11 + $0x180] sm:$0xf] }
 0x273   : > { %v7187_v12 = vor.u32 %v7992_v16, %v7184_v61  ;;  %v7191_v59 = vor.u32 %v7997_v19, %v7190_v43  ;;  %v7988_v49 = vld [vmem:[#allocation11 + $0x19c] sm:$0xf0]  ;;  %v7984_v18 = vld [vmem:[#allocation11 + $0x184] sm:$0xf]  ;;  %v7178_v8 = vld [vmem:[#allocation11 + $0x188] sm:$0xf] }
 0x274   : > { %3543 = vmatpush.bf16.msra.mxu0 %v7183_v14  ;;  %v7171_v37 = vor.u32 %v7988_v49, %v7170_v5  ;;  %v7172_v35 = vld [vmem:[#allocation11 + $0x1a0] sm:$0xf0]  ;;  %v7989_v55 = vld [vmem:[#allocation11 + $0x1a4] sm:$0xf0]  ;;  %v7158_v34 = vld [vmem:[#allocation11 + $0x140] sm:$0xf] }
 0x275   : > { %v3298_v50 = vld [vmem:[#allocation2] sm:$0xff]  ;;  %3556 = vmatpush.bf16.msra.mxu1 %v7187_v12  ;;  %3569 = vmatpush.bf16.msra.mxu2 %v7191_v59  ;;  %v7175_v30 = vor.u32 %v7984_v18, %v7172_v35  ;;  %v7179_v7 = vor.u32 %v7989_v55, %v7178_v8  ;;  %v7980_v56 = vld [vmem:[#allocation11 + $0x15c] sm:$0xf0]  ;;  %v7976_v29 = vld [vmem:[#allocation11 + $0x144] sm:$0xf]  ;;  %vm3839_vm11 = vcmask 48128  }
 0x276   : > { %v3303_v32 = vrot.slane %v3298_v50, 4  ;;  %v3300_v6 = vadd.f32 %v3299_v26, %v3298_v50  ;;  %v8171_v1 = vpop.eup %8170  ;;  %v7159_v44 = vor.u32 %v7980_v56, %v7158_v34  ;;  %v7160_v40 = vld [vmem:[#allocation11 + $0x160] sm:$0xf0]  ;;  %v7166_v54 = vld [vmem:[#allocation11 + $0x148] sm:$0xf] }
 0x277   : > { %v3317_v28 = vmul.f32 128.0, %v8171_v1  ;;  %vm3321_vm6 = vweird.f32 %v8171_v1  ;;  %v7981_v2 = vld [vmem:[#allocation11 + $0x164] sm:$0xf0]  ;;  %v7163_v31 = vor.u32 %v7976_v29, %v7160_v40  ;;  %v7146_v4 = vld [vmem:[#allocation11 + $0x100] sm:$0xf] }
 0x278   : > { %v3305_v21 = vadd.f32 %v3303_v32, %v3301_v3  ;;  %3544 = vmatpush.bf16.msra.mxu0 %v7171_v37  ;;  %v7167_v38 = vor.u32 %v7981_v2, %v7166_v54  ;;  %v7972_v39 = vld [vmem:[#allocation11 + $0x11c] sm:$0xf0]  ;;  %v7968_v45 = vld [vmem:[#allocation11 + $0x104] sm:$0xf]  ;;  %v7154_v15 = vld [vmem:[#allocation11 + $0x108] sm:$0xf] }
 0x279   : > { %v3318_v46 = vsub.f32 1.0, %v3317_v28  ;;  %3557 = vmatpush.bf16.msra.mxu1 %v7175_v30  ;;  %3570 = vmatpush.bf16.msra.mxu2 %v7179_v7  ;;  %v7147_v41 = vor.u32 %v7972_v39, %v7146_v4  ;;  %v7148_v0 = vld [vmem:[#allocation11 + $0x120] sm:$0xf0]  ;;  %v7973_v52 = vld [vmem:[#allocation11 + $0x124] sm:$0xf0] }
 0x27a   : > { %v3310_v57 = vsel %vm1280_vm4, %v3300_v6, %v3305_v21  ;;  %v7151_v53 = vor.u32 %v7968_v45, %v7148_v0  ;;  %v7155_v33 = vor.u32 %v7973_v52, %v7154_v15  ;;  %v7134_v20 = vld [vmem:[#allocation11 + $0xc0] sm:$0xf]  ;;  %v7960_v9 = vld [vmem:[#allocation11 + $0xc4] sm:$0xf]  ;;  %v7142_v25 = vld [vmem:[#allocation11 + $0xc8] sm:$0xf] }
 0x27b   : > { %v3311_v60 = vsel %vm515_vm0, %v3310_v57, %v3308_v10  ;;  %v3319_v48 = vmul.f32 %v8171_v1, %v3318_v46  ;;  %v7964_v51 = vld [vmem:[#allocation11 + $0xdc] sm:$0xf0]  ;;  %v7136_v50 = vld [vmem:[#allocation11 + $0xe0] sm:$0xf0]  ;;  %v7965_v26 = vld [vmem:[#allocation11 + $0xe4] sm:$0xf0] }
 0x27c   : > { %v3313_v24 = vsel %vm3312_vm5, %v3311_v60, 0.0  ;;  %3545 = vmatpush.bf16.msra.mxu0 %v7159_v44  ;;  %v7135_v47 = vor.u32 %v7964_v51, %v7134_v20  ;;  %v7139_v3 = vor.u32 %v7960_v9, %v7136_v50  ;;  %v7143_v32 = vor.u32 %v7965_v26, %v7142_v25  ;;  %v7122_v10 = vld [vmem:[#allocation11 + $0x80] sm:$0xf]  ;;  %v7952_v21 = vld [vmem:[#allocation11 + $0x84] sm:$0xf]  ;;  %v10064_v56 = vld [vmem:[#allocation12 + $0x8] sm:$0xff] }
 0x27d   : > { %3314 = vadd.xlane.f32.xlu0 %v3313_v24  ;;  %v3320_v17 = vadd.f32 %v8171_v1, %v3319_v48  ;;  %3558 = vmatpush.bf16.msra.mxu1 %v7163_v31  ;;  %v7956_v6 = vld [vmem:[#allocation11 + $0x9c] sm:$0xf0]  ;;  %v7130_v24 = vld [vmem:[#allocation11 + $0x88] sm:$0xf]  ;;  %v7936_v61 = vld [vmem:[#allocation11 + $0x4] sm:$0xf] }
 0x27e   : > { %3571 = vmatpush.bf16.msra.mxu2 %v7167_v38  ;;  %v7123_v57 = vor.u32 %v7956_v6, %v7122_v10  ;;  %v7957_v58 = vld [vmem:[#allocation11 + $0xa4] sm:$0xf0]  ;;  %v7110_v46 = vld [vmem:[#allocation11 + $0x40] sm:$0xf]  ;;  %v7100_v19 = vld [vmem:[#allocation11 + $0x20] sm:$0xf0] }
 0x27f   : > { %v10055_v13 = vsel %vm3321_vm6, %v8171_v1, %v3320_v17  ;;  %v7131_v28 = vor.u32 %v7957_v58, %v7130_v24  ;;  %v7948_v48 = vld [vmem:[#allocation11 + $0x5c] sm:$0xf0]  ;;  %v7944_v17 = vld [vmem:[#allocation11 + $0x44] sm:$0xf]  ;;  %v7106_v12 = vld [vmem:[#allocation11 + $0x8] sm:$0xf]  ;;  %v7103_v5 = vor.u32 %v7936_v61, %v7100_v19 }
 0x280   : > { %3546 = vmatpush.bf16.msra.mxu0 %v7147_v41  ;;  %v7098_v16 = vld [vmem:[#allocation11] sm:$0xf]  ;;  %v7941_v59 = vld [vmem:[#allocation11 + $0x24] sm:$0xf0]  ;;  %v3342_v44 = vperm.slane %v10064_v56, 0  ;;  %v3344_v2 = vperm.slane %v10064_v56, 1 }
 0x281   : > { %3559 = vmatpush.bf16.msra.mxu1 %v7151_v53  ;;  %v7940_v14 = vld [vmem:[#allocation11 + $0x1c] sm:$0xf0]  ;;  %v7107_v49 = vor.u32 %v7941_v59, %v7106_v12  ;;  %v3347_v38 = vrot.slane %v10048_v62, 2  ;;  %v3585_v41 = vperm.slane %v10064_v56, 4  ;;  %v3587_v9 = vperm.slane %v10064_v56, 5 }
 0x282   : > { %3572 = vmatpush.bf16.msra.mxu2 %v7155_v33  ;;  %v7099_v43 = vor.u32 %v7940_v14, %v7098_v16 }
 0x284   : > { %3547 = vmatpush.bf16.msra.mxu0 %v7135_v47 }
 0x285   : > { %3560 = vmatpush.bf16.msra.mxu1 %v7139_v3 }
 0x286   : > { %3573 = vmatpush.bf16.msra.mxu2 %v7143_v32 }
 0x288   : > { %3548 = vmatpush.bf16.msra.mxu0 %v7123_v57 }
 0x28a   : > { %3574 = vmatpush.bf16.msra.mxu2 %v7131_v28 }
 0x2f0   : > { %v3315_v27 = vpop.xlane.xlu0 %3314 }
 0x2f1   : > { %v3323_v42 = vmul.f32 %v10055_v13, %v3315_v27  ;;  %v7111_v27 = vor.u32 %v7948_v48, %v7110_v46 }
 0x2f3   : > { %v10058_v63 = vsub.f32 %v3311_v60, %v3323_v42  ;;  %v7124_v60 = vld [vmem:[#allocation11 + $0xa0] sm:$0xf0]  ;;  %3549 = vmatpush.bf16.msra.mxu0 %v7111_v27 }
 0x2f4   : > { %v7127_v1 = vor.u32 %v7952_v21, %v7124_v60  ;;  %v7112_v42 = vld [vmem:[#allocation11 + $0x60] sm:$0xf0] }
 0x2f5   : > { %v3325_v36 = vmul.f32 %v10058_v63, %v10058_v63  ;;  %v7115_v22 = vor.u32 %v7944_v17, %v7112_v42  ;;  %v3281_v17 = vld [vmem:[#allocation12 + $0x20] sm:$0xff] }
 0x2f6   : > { %3561 = vmatpush.bf16.msra.mxu1 %v7127_v1  ;;  %v10118_v27 = vrot.slane %v3281_v17, 1 }
 0x2f7   : > { %v3326_v23 = vsel %vm3312_vm5, %v3325_v36, 0.0  ;;  %v7118_v36 = vld [vmem:[#allocation11 + $0x48] sm:$0xf]  ;;  %3550 = vmatpush.bf16.msra.mxu0 %v7099_v43 }
 0x2f8   : > { %3327 = vadd.xlane.f32.xlu0 %v3326_v23  ;;  %v7949_v23 = vld [vmem:[#allocation11 + $0x64] sm:$0xf0] }
 0x2f9   : > { %v7119_v11 = vor.u32 %v7949_v23, %v7118_v36 }
 0x2fa   : > { %3562 = vmatpush.bf16.msra.mxu1 %v7115_v22 }
 0x2fb   : > { %3575 = vmatpush.bf16.msra.mxu2 %v7119_v11 }
 0x2fe   : > { %3563 = vmatpush.bf16.msra.mxu1 %v7103_v5 }
 0x2ff   : > { %3576 = vmatpush.bf16.msra.mxu2 %v7107_v49 }
 0x36b   : > { %v3328_v18 = vpop.xlane.xlu0 %3327 }
 0x36c   : > { %v3329_v37 = vmul.f32 %v3328_v18, %v10055_v13 }
 0x36e   : > { %v3330_v35 = vadd.f32 1e-05, %v3329_v37 }
 0x370   : > { %8172 = vrsqrt.f32 %v3330_v35  ;;  %vm3337_vm8 = vweird.f32 %v3330_v35 }
 0x376   : > { %v8173_v8 = vpop.eup %8172 }
 0x377   : > { %v3332_v55 = vmul.f32 %v8173_v8, %v3330_v35  ;;  %vm3338_vm7 = vweird.f32 %v8173_v8 }
 0x378   : > { %vm3339_vm9 = vmor %vm3337_vm8, %vm3338_vm7 }
 0x379   : > { %v3333_v30 = vmul.f32 %v8173_v8, %v3332_v55 }
 0x37b   : > { %v3334_v7 = vmul.f32 0.5, %v3333_v30 }
 0x37d   : > { %v3335_v34 = vsub.f32 1.5, %v3334_v7 }
 0x37f   : > { %v3336_v29 = vmul.f32 %v8173_v8, %v3335_v34 }
 0x381   : > { %v3340_v40 = vsel %vm3339_vm9, %v8173_v8, %v3336_v29 }
 0x382   : > { %v3341_v54 = vmul.f32 %v3340_v40, %v10058_v63  ;;  %v3582_v63 = vperm.slane %v10064_v56, 3 }
 0x384   : > { %v3343_v31 = vmul.f32 %v3342_v44, %v3341_v54 }
 0x386   : > { %v3345_v4 = vadd.f32 %v3344_v2, %v3343_v31 }
 0x388   : > { %v10074_v39 = vadd.f32 %v3347_v38, %v3345_v4 }
 0x38a   : > { %v3414_v45 = vpack.c.bf16 %v10074_v39, %v10074_v39 }
 0x38c   : > { %3551 = vmatmul.bf16.vlgmr.msra.gmra.mxu0 %v3414_v45  ;;  %3564 = vmatmul.bf16.vlgmr.msra.gmra.mxu1 %v3414_v45 }
 0x38d   : > { %3577 = vmatmul.bf16.vlgmr.msra.gmra.mxu2 %v3414_v45 }
 0x409   : > { %v3552_v0 = vpop.f32.mrf.mxu0  ;;  %v3565_v15 = vpop.f32.mrf.mxu1 }
 0x40a   : > { %v3583_v52 = vadd.f32 %v3582_v63, %v3552_v0  ;;  %v3586_v53 = vadd.f32 %v3585_v41, %v3565_v15 }
 0x40c   : > { %v3584_v62 = vmul.f32 0.25, %v3583_v52  ;;  %3677 = vrot.lane.b32.xlu0 %v3586_v53, %s8517_s7  ;;  %3649 = vrot.lane.b32.xlu2 %v3586_v53, %s8518_s19 }
 0x40d   : > { %3621 = vrot.lane.b32.xlu1 %v3586_v53, %s8519_s28  ;;  %7192 = vmatpush.xpose.msk.msrb.mxu1 %vm3592_vm10, %v3586_v53 }
 0x410   : > { %v3578_v33 = vpop.f32.mrf.mxu2  ;;  %7193 = vmatmul.msk.f32.vlgmr.msrb.gmra.mxu1 %vm3592_vm10, %v3584_v62 }
 0x411   : > { %v3554_v20 = vpop.f32.mrf.mxu0  ;;  %v3567_v51 = vpop.f32.mrf.mxu1  ;;  %v10089_v50 = vadd.f32 %v3587_v9, %v3578_v33 }
 0x414   : > { %3759 = vrot.lane.b32.xlu0 %v3584_v62, %s8520_s9  ;;  %3647 = vrot.lane.b32.xlu2 %v3584_v62, %s8518_s19 }
 0x415   : > { %3619 = vrot.lane.b32.xlu1 %v3584_v62, %s8519_s28 }
 0x418   : > { %v3580_v47 = vpop.f32.mrf.mxu2 }
 0x41c   : > { %4014 = vrot.lane.b32.xlu0 %v10089_v50, %s8519_s28  ;;  %3705 = vrot.lane.b32.xlu2 %v3586_v53, %s8521_s5 }
 0x41d   : > { %3675 = vrot.lane.b32.xlu1 %v3584_v62, %s8517_s7 }
 0x424   : > { %3733 = vrot.lane.b32.xlu2 %v3586_v53, %s8522_s29 }
 0x425   : > { %3703 = vrot.lane.b32.xlu1 %v3584_v62, %s8521_s5 }
 0x42c   : > { %3761 = vrot.lane.b32.xlu2 %v3586_v53, %s8520_s9 }
 0x42d   : > { %3731 = vrot.lane.b32.xlu1 %v3584_v62, %s8522_s29 }
 0x434   : > { %3787 = vrot.lane.b32.xlu2 %v3584_v62, %s8523_s17 }
 0x435   : > { %3789 = vrot.lane.b32.xlu1 %v3586_v53, %s8523_s17 }
 0x466   : > { %v3650_v25 = vpop.permute.xlu2 %3649 }
 0x46e   : > { %v3648_v26 = vpop.permute.xlu2 %3647 }
 0x476   : > { %v3706_v3 = vpop.permute.xlu2 %3705 }
 0x47e   : > { %v3734_v32 = vpop.permute.xlu2 %3733  ;;  %v3678_v10 = vpop.permute.xlu0 %3677 }
 0x47f   : > { %v3622_v6 = vpop.permute.xlu1 %3621 }
 0x480   : > { %7194 = vmatpush.xpose.msk.msra.mxu3 %vm3592_vm10, %v3622_v6 }
 0x484   : > { %7196 = vmatpush.xpose.msk.msrb.mxu3 %vm3592_vm10, %v3650_v25 }
 0x486   : > { %v3762_v21 = vpop.permute.xlu2 %3761  ;;  %v3760_v60 = vpop.permute.xlu0 %3759 }
 0x487   : > { %v3620_v57 = vpop.permute.xlu1 %3619  ;;  %7204 = vmatpush.xpose.msk.msrb.mxu0 %vm3592_vm10, %v3762_v21 }
 0x488   : > { %7195 = vmatmul.msk.f32.vlgmr.msra.gmra.mxu3 %vm3592_vm10, %v3620_v57 }
 0x489   : > { %7198 = vmatpush.xpose.msk.msra.mxu3 %vm3592_vm10, %v3678_v10 }
 0x48a   : > { %7205 = vmatmul.msk.f32.vlgmr.msrb.gmra.mxu0 %vm3592_vm10, %v3760_v60 }
 0x48b   : > { %7208 = vmatpush.msk.msra.mxu0 %vm3312_vm5, %v10089_v50 }
 0x48d   : > { %v3616_v42 = vpop.f32.mrf.mxu1 }
 0x48e   : > { %v4015_v28 = vpop.permute.xlu0 %4014  ;;  %v3788_v48 = vpop.permute.xlu2 %3787  ;;  %v3617_v22 = vadd.f32 %v3616_v42, %v10118_v27 }
 0x48f   : > { %v3676_v24 = vpop.permute.xlu1 %3675 }
 0x490   : > { %7197 = vmatmul.msk.f32.vlgmr.msrb.gmra.mxu3 %vm3592_vm10, %v3648_v26 }
 0x491   : > { %7200 = vmatpush.xpose.msk.msrb.mxu3 %vm3592_vm10, %v3706_v3 }
 0x497   : > { %v3704_v58 = vpop.permute.xlu1 %3703 }
 0x498   : > { %7199 = vmatmul.msk.f32.vlgmr.msra.gmra.mxu3 %vm3592_vm10, %v3676_v24 }
 0x499   : > { %7202 = vmatpush.xpose.msk.msra.mxu3 %vm3592_vm10, %v3734_v32 }
 0x49f   : > { %v3732_v1 = vpop.permute.xlu1 %3731 }
 0x4a0   : > { %7201 = vmatmul.msk.f32.vlgmr.msrb.gmra.mxu3 %vm3592_vm10, %v3704_v58 }
 0x4a1   : > { %7210 = vmatpush.msk.msrb.mxu3 %vm3312_vm5, %v4015_v28 }
 0x4a7   : > { %v3790_v46 = vpop.permute.xlu1 %3789 }
 0x4a8   : > { %7203 = vmatmul.msk.f32.vlgmr.msra.gmra.mxu3 %vm3592_vm10, %v3732_v1  ;;  %7206 = vmatpush.xpose.msk.msra.mxu1 %vm3592_vm10, %v3790_v46 }
 0x4ab   : > { %7207 = vmatmul.msk.f32.vlgmr.msra.gmra.mxu1 %vm3592_vm10, %v3788_v48 }
 0x507   : > { %v3784_v35 = vpop.f32.mrf.mxu0 }
 0x508   : > { %v3785_v8 = vadd.f32 %v3784_v35, %v10118_v27 }
 0x50a   : > { %v3828_v7 = vrot.slane %v3785_v8, 4 }
 0x50b   : > { %v3644_v36 = vpop.f32.mrf.mxu3 }
 0x50c   : > { %v3645_v23 = vadd.f32 %v3644_v36, %v10118_v27 }
 0x50e   : > { %v3816_v11 = vrot.slane %v3645_v23, 2 }
 0x510   : > { %v3833_v16 = vsel %vm3312_vm5, %v3617_v22, %v3816_v11 }
 0x511   : > { %v3840_v14 = vsel %vm3839_vm11, %v3833_v16, -inf }
 0x512   : > { %3841 = vmax.xlane.f32.xlu0 %v3840_v14 }
 0x513   : > { %v3672_v61 = vpop.f32.mrf.mxu3 }
 0x514   : > { %v3673_v43 = vadd.f32 %v3672_v61, %v10118_v27 }
 0x516   : > { %v3819_v59 = vrot.slane %v3673_v43, 4 }
 0x518   : > { %v3834_v15 = vsel %vm515_vm0, %v3816_v11, %v3819_v59 }
 0x519   : > { %v3843_v52 = vsel %vm3839_vm11, %v3834_v15, -inf }
 0x51b   : > { %v3700_v19 = vpop.f32.mrf.mxu3 }
 0x51c   : > { %v3701_v12 = vadd.f32 %v3700_v19, %v10118_v27 }
 0x51e   : > { %v3822_v5 = vrot.slane %v3701_v12, 6 }
 0x520   : > { %v3835_v49 = vsel %vm1280_vm4, %v3819_v59, %v3822_v5 }
 0x521   : > { %v3846_v18 = vsel %vm3839_vm11, %v3835_v49, -inf }
 0x522   : > { %3847 = vmax.xlane.f32.xlu2 %v3846_v18 }
 0x523   : > { %v3728_v37 = vpop.f32.mrf.mxu3 }
 0x524   : > { %v3729_v31 = vadd.f32 %v3728_v37, %v10118_v27 }
 0x528   : > { %v3812_v55 = vpop.f32.mrf.mxu1 }
 0x529   : > { %v3813_v30 = vadd.f32 %v3812_v55, %v10118_v27 }
 0x52b   : > { %v3831_v34 = vrot.slane %v3813_v30, 6  ;;  %v3756_v29 = vpop.f32.mrf.mxu3 }
 0x52c   : > { %v3757_v40 = vadd.f32 %v3756_v29, %v10118_v27 }
 0x52d   : > { %v3838_v54 = vsel %vm1280_vm4, %v3828_v7, %v3831_v34 }
 0x52e   : > { %v3825_v38 = vrot.slane %v3757_v40, 2  ;;  %v3855_v4 = vsel %vm3839_vm11, %v3838_v54, -inf }
 0x52f   : > { %3856 = vmax.xlane.f32.xlu1 %v3855_v4 }
 0x530   : > { %v3836_v45 = vsel %vm3312_vm5, %v3729_v31, %v3825_v38  ;;  %v3837_v63 = vsel %vm515_vm0, %v3825_v38, %v3828_v7 }
 0x531   : > { %v3849_v41 = vsel %vm3839_vm11, %v3836_v45, -inf  ;;  %v3852_v0 = vsel %vm3839_vm11, %v3837_v63, -inf }
 0x532   : > { %3850 = vmax.xlane.f32.xlu0 %v3849_v41  ;;  %3853 = vmax.xlane.f32.xlu2 %v3852_v0 }
 0x537   : > { %3844 = vmax.xlane.f32.xlu1 %v3843_v52 }
 0x546   : > { %4071 = vrot.lane.b32.xlu0 %v10089_v50, %s8517_s7 }
 0x54a   : > { %4044 = vrot.lane.b32.xlu2 %v10089_v50, %s8518_s19 }
 0x550   : > { %4097 = vrot.lane.b32.xlu1 %v10089_v50, %s8521_s5 }
 0x585   : > { %v3842_v53 = vpop.xlane.xlu0 %3841 }
 0x586   : > { %v3858_v62 = vsub.f32 %v3833_v16, %v3842_v53 }
 0x588   : > { %v3864_v33 = vmul.f32 1.442695, %v3858_v62 }
 0x58a   : > { %8174 = vpow2.f32 %v3864_v33 }
 0x590   : > { %v10146_v20 = vpop.eup %8174 }
 0x591   : > { %v3876_v51 = vsel %vm3839_vm11, %v10146_v20, 0.0 }
 0x592   : > { %3877 = vadd.xlane.f32.xlu0 %v3876_v51 }
 0x595   : > { %v3848_v9 = vpop.xlane.xlu2 %3847 }
 0x596   : > { %v3860_v26 = vsub.f32 %v3835_v49, %v3848_v9 }
 0x598   : > { %v3868_v57 = vmul.f32 1.442695, %v3860_v26 }
 0x5a2   : > { %v3857_v47 = vpop.xlane.xlu1 %3856 }
 0x5a3   : > { %v3863_v25 = vsub.f32 %v3838_v54, %v3857_v47 }
 0x5a5   : > { %v3874_v3 = vmul.f32 1.442695, %v3863_v25  ;;  %v3851_v32 = vpop.xlane.xlu0 %3850  ;;  %v3854_v10 = vpop.xlane.xlu2 %3853 }
 0x5a6   : > { %v3861_v6 = vsub.f32 %v3836_v45, %v3851_v32  ;;  %v3862_v1 = vsub.f32 %v3837_v63, %v3854_v10 }
 0x5a7   : > { %8176 = vpow2.f32 %v3874_v3 }
 0x5a8   : > { %v3870_v21 = vmul.f32 1.442695, %v3861_v6  ;;  %v3872_v42 = vmul.f32 1.442695, %v3862_v1 }
 0x5aa   : > { %8178 = vpow2.f32 %v3870_v21  ;;  %v3845_v60 = vpop.xlane.xlu1 %3844 }
 0x5ab   : > { %v3859_v24 = vsub.f32 %v3834_v15, %v3845_v60  ;;  %8180 = vpow2.f32 %v3868_v57 }
 0x5ad   : > { %v10150_v58 = vpop.eup %8176  ;;  %v3866_v28 = vmul.f32 1.442695, %v3859_v24  ;;  %v4045_v46 = vpop.permute.xlu2 %4044 }
 0x5ae   : > { %7212 = vmatpush.msk.msrb.mxu0 %vm3312_vm5, %v4045_v46  ;;  %v3891_v48 = vsel %vm3839_vm11, %v10150_v58, 0.0 }
 0x5af   : > { %8182 = vpow2.f32 %v3866_v28  ;;  %3892 = vadd.xlane.f32.xlu1 %v3891_v48 }
 0x5b0   : > { %v10155_v17 = vpop.eup %8178  ;;  %8184 = vpow2.f32 %v3872_v42 }
 0x5b1   : > { %v3885_v36 = vsel %vm3839_vm11, %v10155_v17, 0.0  ;;  %v10159_v23 = vpop.eup %8180 }
 0x5b2   : > { %3886 = vadd.xlane.f32.xlu0 %v3885_v36  ;;  %v3882_v11 = vsel %vm3839_vm11, %v10159_v23, 0.0 }
 0x5b5   : > { %v10161_v22 = vpop.eup %8182 }
 0x5b6   : > { %v3879_v16 = vsel %vm3839_vm11, %v10161_v22, 0.0  ;;  %v10168_v61 = vpop.eup %8184 }
 0x5b7   : > { %3883 = vadd.xlane.f32.xlu1 %v3882_v11  ;;  %3880 = vadd.xlane.f32.xlu2 %v3879_v16  ;;  %v3888_v43 = vsel %vm3839_vm11, %v10168_v61, 0.0 }
 0x5b8   : > { %v4072_v14 = vpop.permute.xlu0 %4071 }
 0x5b9   : > { %7214 = vmatpush.msk.msrb.mxu1 %vm3312_vm5, %v4072_v14 }
 0x5bf   : > { %3889 = vadd.xlane.f32.xlu2 %v3888_v43 }
 0x5c2   : > { %v4098_v19 = vpop.permute.xlu1 %4097 }
 0x5c3   : > { %7216 = vmatpush.msk.msrb.mxu2 %vm3312_vm5, %v4098_v19 }
 0x5c6   : > { %4158 = vrot.lane.b32.xlu0 %v10089_v50, %s8520_s9 }
 0x5d0   : > { %4185 = vrot.lane.b32.xlu1 %v10089_v50, %s8523_s17 }
 0x5d7   : > { %4128 = vrot.lane.b32.xlu2 %v10089_v50, %s8522_s29 }
 0x605   : > { %v3878_v12 = vpop.xlane.xlu0 %3877 }
 0x606   : > { %8186 = vrcp.f32 %v3878_v12  ;;  %v3905_v18 = vand.u32 2147483648, %v3878_v12  ;;  %v3903_v35 = vand.u32 2147483647, %v3878_v12  ;;  %vm3899_vm13 = vweird.f32 %v3878_v12 }
 0x608   : > { %v3906_v55 = vor.u32 1.1754944e-38, %v3905_v18  ;;  %vm3904_vm15 = vcmp.eq.f32.partialorder %v3903_v35, 8.507059e+37 }
 0x60c   : > { %v8187_v59 = vpop.eup %8186 }
 0x60d   : > { %v3895_v5 = vmul.f32 %v8187_v59, %v3878_v12  ;;  %vm3900_vm12 = vweird.f32 %v8187_v59 }
 0x60e   : > { %vm3901_vm14 = vmor %vm3899_vm13, %vm3900_vm12 }
 0x60f   : > { %v3896_v49 = vsub.f32 1.0, %v3895_v5 }
 0x611   : > { %v3897_v37 = vmul.f32 %v8187_v59, %v3896_v49 }
 0x613   : > { %v3898_v8 = vadd.f32 %v8187_v59, %v3897_v37 }
 0x615   : > { %v3902_v30 = vsel %vm3901_vm14, %v8187_v59, %v3898_v8 }
 0x616   : > { %v3907_v7 = vsel %vm3904_vm15, %v3906_v55, %v3902_v30 }
 0x617   : > { %v10180_v34 = vmul.f32 %v10146_v20, %v3907_v7 }
 0x619   : > { %7209 = vmatmul.msk.f32.vlgmr.msra.gmra.mxu0 %vm3839_vm11, %v10180_v34 }
 0x622   : > { %v10184_v50 = vpop.xlane.xlu1 %3892 }
 0x623   : > { %8188 = vrcp.f32 %v10184_v50  ;;  %vm3974_vm1 = vweird.f32 %v10184_v50  ;;  %v3980_v20 = vand.u32 2147483648, %v10184_v50  ;;  %v3978_v36 = vand.u32 2147483647, %v10184_v50 }
 0x625   : > { %v3887_v29 = vpop.xlane.xlu0 %3886  ;;  %v3981_v14 = vor.u32 1.1754944e-38, %v3980_v20 }
 0x626   : > { %8190 = vrcp.f32 %v3887_v29  ;;  %v3948_v0 = vand.u32 2147483647, %v3887_v29  ;;  %v3950_v15 = vand.u32 2147483648, %v3887_v29  ;;  %vm3944_vm3 = vweird.f32 %v3887_v29 }
 0x628   : > { %vm3949_vm6 = vcmp.eq.f32.partialorder %v3948_v0, 8.507059e+37  ;;  %v3951_v25 = vor.u32 1.1754944e-38, %v3950_v15 }
 0x629   : > { %v10187_v40 = vpop.eup %8188 }
 0x62a   : > { %v3970_v54 = vmul.f32 %v10187_v40, %v10184_v50  ;;  %v3884_v31 = vpop.xlane.xlu1 %3883  ;;  %v3881_v38 = vpop.xlane.xlu2 %3880  ;;  %vm3975_vm7 = vweird.f32 %v10187_v40 }
 0x62b   : > { %8192 = vrcp.f32 %v3884_v31  ;;  %v3933_v32 = vand.u32 2147483647, %v3884_v31  ;;  %v3935_v10 = vand.u32 2147483648, %v3884_v31  ;;  %v3920_v21 = vand.u32 2147483648, %v3881_v38  ;;  %vm10206_vm13 = vmor %vm3974_vm1, %vm3975_vm7 }
 0x62c   : > { %v8191_v4 = vpop.eup %8190  ;;  %8194 = vrcp.f32 %v3881_v38  ;;  %v3971_v63 = vsub.f32 1.0, %v3970_v54  ;;  %v3918_v46 = vand.u32 2147483647, %v3881_v38  ;;  %vm3929_vm14 = vweird.f32 %v3884_v31 }
 0x62d   : > { %v3940_v45 = vmul.f32 %v8191_v4, %v3887_v29  ;;  %vm3945_vm2 = vweird.f32 %v8191_v4  ;;  %v3936_v43 = vor.u32 1.1754944e-38, %v3935_v10  ;;  %vm3934_vm1 = vcmp.eq.f32.partialorder %v3933_v32, 8.507059e+37 }
 0x62e   : > { %v3972_v33 = vmul.f32 %v10187_v40, %v3971_v63  ;;  %vm3946_vm8 = vmor %vm3944_vm3, %vm3945_vm2  ;;  %vm3914_vm2 = vweird.f32 %v3881_v38  ;;  %v3921_v5 = vor.u32 1.1754944e-38, %v3920_v21  ;;  %vm3979_vm7 = vcmp.eq.f32.partialorder %v3978_v36, 8.507059e+37  ;;  %v7244_v36 = vld [vmem:[#allocation11 + $0x168] sm:$0xf0] }
 0x62f   : > { %v3941_v41 = vsub.f32 1.0, %v3940_v45  ;;  %v4011_v29 = vrot.slane %v10180_v34, 6 }
 0x630   : > { %v3973_v60 = vadd.f32 %v10187_v40, %v3972_v33 }
 0x631   : > { %v8193_v52 = vpop.eup %8192  ;;  %v3942_v53 = vmul.f32 %v8191_v4, %v3941_v41 }
 0x632   : > { %v8195_v62 = vpop.eup %8194  ;;  %v3925_v51 = vmul.f32 %v8193_v52, %v3884_v31  ;;  %v10194_v9 = vpop.xlane.xlu2 %3889  ;;  %vm3930_vm9 = vweird.f32 %v8193_v52  ;;  %v3977_v12 = vsel %vm10206_vm13, %v10187_v40, %v3973_v60  ;;  %v7993_v60 = vld [vmem:[#allocation11 + $0x1cc] sm:$0xf] }
 0x633   : > { %v3943_v47 = vadd.f32 %v8191_v4, %v3942_v53  ;;  %v3910_v26 = vmul.f32 %v8195_v62, %v3881_v38  ;;  %8196 = vrcp.f32 %v10194_v9  ;;  %vm3915_vm12 = vweird.f32 %v8195_v62  ;;  %vm3931_vm15 = vmor %vm3929_vm14, %vm3930_vm9 }
 0x634   : > { %v3926_v3 = vsub.f32 1.0, %v3925_v51  ;;  %vm3916_vm3 = vmor %vm3914_vm2, %vm3915_vm12  ;;  %v3982_v30 = vsel %vm3979_vm7, %v3981_v14, %v3977_v12  ;;  %v3963_v40 = vand.u32 2147483647, %v10194_v9  ;;  %v3965_v54 = vand.u32 2147483648, %v10194_v9  ;;  %v7240_v14 = vld [vmem:[#allocation11 + $0x128] sm:$0xf0] }
 0x635   : > { %v3911_v6 = vsub.f32 1.0, %v3910_v26  ;;  %v3947_v57 = vsel %vm3946_vm8, %v8191_v4, %v3943_v47  ;;  %vm3959_vm9 = vweird.f32 %v10194_v9  ;;  %v3983_v34 = vmul.f32 %v10150_v58, %v3982_v30 }
 0x636   : > { %v3927_v24 = vmul.f32 %v8193_v52, %v3926_v3  ;;  %v3952_v1 = vsel %vm3949_vm6, %v3951_v25, %v3947_v57  ;;  %vm3919_vm6 = vcmp.eq.f32.partialorder %v3918_v46, 8.507059e+37  ;;  %v3966_v0 = vor.u32 1.1754944e-38, %v3965_v54  ;;  %v7248_v46 = vld [vmem:[#allocation11 + $0x1a8] sm:$0xf0] }
 0x637   : > { %v3912_v28 = vmul.f32 %v8195_v62, %v3911_v6  ;;  %v10200_v48 = vmul.f32 %v10155_v17, %v3952_v1  ;;  %vm3964_vm13 = vcmp.eq.f32.partialorder %v3963_v40, 8.507059e+37  ;;  %v4184_v33 = vrot.slane %v3983_v34, 2 }
 0x638   : > { %v3928_v11 = vadd.f32 %v8193_v52, %v3927_v24  ;;  %v4159_v16 = vpop.permute.xlu0 %4158  ;;  %v4156_v58 = vrot.slane %v3983_v34, 4  ;;  %v7252_v24 = vld [vmem:[#allocation11 + $0x1e8] sm:$0xf0]  ;;  %vm4240_vm14 = vcmask 261120   ;;  %vm10514_vm2 = vcmask 523264  }
 0x639   : > { %v3913_v19 = vadd.f32 %v8195_v62, %v3912_v28  ;;  %7217 = vmatmul.msk.f32.vlgmr.msrb.gmra.mxu2 %vm3839_vm11, %v10200_v48  ;;  %7220 = vmatpush.msk.msra.mxu0 %vm3312_vm5, %v4159_v16  ;;  %v8197_v17 = vpop.eup %8196  ;;  %v4125_v20 = vrot.slane %v10200_v48, 6  ;;  %v7255_v1 = vor.u32 %v7993_v60, %v7252_v24  ;;  %v7985_v28 = vld [vmem:[#allocation11 + $0x18c] sm:$0xf]  ;;  %v7308_v24 = vld [vmem:[#allocation11 + $0x1b0] sm:$0xf0] }
 0x63a   : > { %v3932_v59 = vsel %vm3931_vm15, %v8193_v52, %v3928_v11  ;;  %v4129_v49 = vpop.permute.xlu2 %4128  ;;  %v3955_v35 = vmul.f32 %v8197_v17, %v10194_v9  ;;  %vm3960_vm8 = vweird.f32 %v8197_v17  ;;  %v7977_v48 = vld [vmem:[#allocation11 + $0x14c] sm:$0xf]  ;;  %v7251_v42 = vor.u32 %v7985_v28, %v7248_v46  ;;  %v7298_v28 = vld [vmem:[#allocation11 + $0x150] sm:$0xf] }
 0x63b   : > { %v3937_v18 = vsel %vm3934_vm1, %v3936_v43, %v3932_v59  ;;  %v3917_v37 = vsel %vm3916_vm3, %v8195_v62, %v3913_v19  ;;  %7218 = vmatpush.msk.msra.mxu3 %vm3312_vm5, %v4129_v49  ;;  %vm3961_vm12 = vmor %vm3959_vm9, %vm3960_vm8  ;;  %4286 = vmatpush.bf16.msra.mxu2 %v7255_v1  ;;  %v7247_v11 = vor.u32 %v7977_v48, %v7244_v36  ;;  %v7969_v16 = vld [vmem:[#allocation11 + $0x10c] sm:$0xf]  ;;  %vm4242_vm15 = vcmask 392192   ;;  %v7982_v46 = vld [vmem:[#allocation11 + $0x16c] sm:$0xf0] }
 0x63c   : > { %v3938_v8 = vmul.f32 %v10159_v23, %v3937_v18  ;;  %v3922_v55 = vsel %vm3919_vm6, %v3921_v5, %v3917_v37  ;;  %v3956_v7 = vsub.f32 1.0, %v3955_v35  ;;  %v7243_v43 = vor.u32 %v7969_v16, %v7240_v14  ;;  %v7961_v19 = vld [vmem:[#allocation11 + $0xcc] sm:$0xf]  ;;  %v7978_v48 = vld [vmem:[#allocation11 + $0x154] sm:$0xf] }
 0x63d   : > { %v3923_v50 = vmul.f32 %v10161_v22, %v3922_v55  ;;  %v7953_v59 = vld [vmem:[#allocation11 + $0x8c] sm:$0xf]  ;;  %vm10513_vm1 = vcmask 654336   ;;  %vm10512_vm3 = vcmask 785408   ;;  %vm10511_vm6 = vcmask 916480  }
 0x63e   : > { %v4070_v31 = vrot.slane %v3938_v8, 2  ;;  %v4042_v38 = vrot.slane %v3938_v8, 4  ;;  %v3957_v4 = vmul.f32 %v8197_v17, %v3956_v7  ;;  %v7232_v5 = vld [vmem:[#allocation11 + $0xa8] sm:$0xf0]  ;;  %v7300_v36 = vld [vmem:[#allocation11 + $0x170] sm:$0xf0] }
 0x63f   : > { %v4012_v45 = vrot.slane %v3923_v50, 6  ;;  %v4041_v63 = vrot.slane %v3923_v50, 4  ;;  %4287 = vmatpush.bf16.msra.mxu2 %v7251_v42  ;;  %v7945_v49 = vld [vmem:[#allocation11 + $0x4c] sm:$0xf]  ;;  %v7235_v18 = vor.u32 %v7953_v59, %v7232_v5  ;;  %v7299_v42 = vor.u32 %v7982_v46, %v7298_v28  ;;  %v7290_v16 = vld [vmem:[#allocation11 + $0x110] sm:$0xf] }
 0x640   : > { %7215 = vmatmul.msk.f32.vlgmr.msrb.gmra.mxu1 %vm3839_vm11, %v4070_v31  ;;  %v3958_v23 = vadd.f32 %v8197_v17, %v3957_v4  ;;  %v7228_v37 = vld [vmem:[#allocation11 + $0x68] sm:$0xf0]  ;;  %v7974_v14 = vld [vmem:[#allocation11 + $0x12c] sm:$0xf0]  ;;  %v7370_v46 = vld [vmem:[#allocation11 + $0x118] sm:$0xf] }
 0x641   : > { %v4013_v41 = vsel %vm1280_vm4, %v4011_v29, %v4012_v45  ;;  %v4043_v22 = vsel %vm515_vm0, %v4041_v63, %v4042_v38  ;;  %v7231_v35 = vor.u32 %v7945_v49, %v7228_v37  ;;  %v7937_v8 = vld [vmem:[#allocation11 + $0xc] sm:$0xf]  ;;  %v7282_v59 = vld [vmem:[#allocation11 + $0xd0] sm:$0xf]  ;;  %v7962_v49 = vld [vmem:[#allocation11 + $0xd4] sm:$0xf] }
 0x642   : > { %7211 = vmatmul.msk.f32.vlgmr.msrb.gmra.mxu3 %vm3839_vm11, %v4013_v41  ;;  %7213 = vmatmul.msk.f32.vlgmr.msrb.gmra.mxu0 %vm3839_vm11, %v4043_v22  ;;  %v4186_v15 = vpop.permute.xlu1 %4185  ;;  %v3962_v52 = vsel %vm3961_vm12, %v8197_v17, %v3958_v23  ;;  %v7236_v17 = vld [vmem:[#allocation11 + $0xe8] sm:$0xf0]  ;;  %v7966_v5 = vld [vmem:[#allocation11 + $0xec] sm:$0xf0]  ;;  %v7284_v37 = vld [vmem:[#allocation11 + $0xf0] sm:$0xf0] }
 0x643   : > { %7222 = vmatpush.msk.msra.mxu1 %vm3312_vm5, %v4186_v15  ;;  %v3967_v53 = vsel %vm3964_vm13, %v3966_v0, %v3962_v52  ;;  %4288 = vmatpush.bf16.msra.mxu2 %v7247_v11  ;;  %v7239_v12 = vor.u32 %v7961_v19, %v7236_v17  ;;  %v7224_v55 = vld [vmem:[#allocation11 + $0x28] sm:$0xf0]  ;;  %v4253_v15 = vperm.slane %v10064_v56, 6  ;;  %v7303_v11 = vor.u32 %v7978_v48, %v7300_v36  ;;  %v7292_v17 = vld [vmem:[#allocation11 + $0x130] sm:$0xf0] }
 0x644   : > { %v3968_v62 = vmul.f32 %v10168_v61, %v3967_v53  ;;  %v7227_v30 = vor.u32 %v7937_v8, %v7224_v55  ;;  %v7291_v19 = vor.u32 %v7974_v14, %v7290_v16  ;;  %v7274_v8 = vld [vmem:[#allocation11 + $0x90] sm:$0xf]  ;;  %v7975_v48 = vld [vmem:[#allocation11 + $0x134] sm:$0xf0]  ;;  %v7332_v16 = vld [vmem:[#allocation11 + $0xf8] sm:$0xf0] }
 0x645   : > { %v7958_v55 = vld [vmem:[#allocation11 + $0xac] sm:$0xf0]  ;;  %v7371_v14 = vor.u32 %v7975_v48, %v7370_v46 }
 0x646   : > { %v4126_v51 = vrot.slane %v3968_v62, 6  ;;  %v4155_v9 = vrot.slane %v3968_v62, 4 }
 0x647   : > { %4289 = vmatpush.bf16.msra.mxu2 %v7243_v43  ;;  %v7970_v43 = vld [vmem:[#allocation11 + $0x114] sm:$0xf] }
 0x648   : > { %7223 = vmatmul.msk.f32.vlgmr.msra.gmra.mxu1 %vm3839_vm11, %v4184_v33  ;;  %v4127_v47 = vsel %vm1280_vm4, %v4125_v20, %v4126_v51  ;;  %v4157_v25 = vsel %vm515_vm0, %v4155_v9, %v4156_v58  ;;  %v7314_v51 = vld [vmem:[#allocation11 + $0x1d0] sm:$0xf]  ;;  %v7994_v58 = vld [vmem:[#allocation11 + $0x1d4] sm:$0xf] }
 0x649   : > { %v7998_v9 = vld [vmem:[#allocation11 + $0x1ec] sm:$0xf0] }
 0x64a   : > { %7219 = vmatmul.msk.f32.vlgmr.msra.gmra.mxu3 %vm3839_vm11, %v4127_v47  ;;  %7221 = vmatmul.msk.f32.vlgmr.msra.gmra.mxu0 %vm3839_vm11, %v4157_v25  ;;  %v7315_v47 = vor.u32 %v7998_v9, %v7314_v51  ;;  %v7316_v25 = vld [vmem:[#allocation11 + $0x1f0] sm:$0xf0]  ;;  %v7382_v51 = vld [vmem:[#allocation11 + $0x1d8] sm:$0xf] }
 0x64b   : > { %4290 = vmatpush.bf16.msra.mxu2 %v7239_v12  ;;  %v7295_v12 = vor.u32 %v7970_v43, %v7292_v17  ;;  %v7999_v9 = vld [vmem:[#allocation11 + $0x1f4] sm:$0xf0] }
 0x64c   : > { %4412 = vmatpush.bf16.msrb.mxu3 %v7315_v47  ;;  %v7383_v47 = vor.u32 %v7999_v9, %v7382_v51  ;;  %v7967_v17 = vld [vmem:[#allocation11 + $0xf4] sm:$0xf0] }
 0x64f   : > { %4291 = vmatpush.bf16.msra.mxu2 %v7235_v18  ;;  %v7283_v18 = vor.u32 %v7966_v5, %v7282_v59  ;;  %v7955_v5 = vld [vmem:[#allocation11 + $0x9c] sm:$0xf] }
 0x653   : > { %4292 = vmatpush.bf16.msra.mxu2 %v7231_v35  ;;  %v7287_v35 = vor.u32 %v7962_v49, %v7284_v37  ;;  %v7328_v49 = vld [vmem:[#allocation11 + $0xb8] sm:$0xf0] }
 0x657   : > { %4293 = vmatpush.bf16.msra.mxu2 %v7227_v30  ;;  %v7954_v30 = vld [vmem:[#allocation11 + $0x94] sm:$0xf] }
 0x65b   : > { %4535 = vmatpush.bf16.msrb.mxu2 %v7383_v47 }
 0x696   : > { %v4007_v26 = vpop.f32.mrf.mxu0 }
 0x6bc   : > { %v4121_v6 = vpop.f32.mrf.mxu2 }
 0x6bd   : > { %v4094_v3 = vpop.f32.mrf.mxu1 }
 0x6be   : > { %4220 = vrot.lane.b32.xlu1 %v4094_v3, %s8522_s29 }
 0x6bf   : > { %v4067_v61 = vpop.f32.mrf.mxu0 }
 0x6c0   : > { %4216 = vrot.lane.b32.xlu0 %v4067_v61, %s8520_s9 }
 0x6c5   : > { %v4037_v32 = vpop.f32.mrf.mxu3  ;;  %v4208_v57 = vpop.f32.mrf.mxu1 }
 0x6c6   : > { %4212 = vrot.lane.b32.xlu2 %v4037_v32, %s8523_s17 }
 0x6c7   : > { %v4181_v10 = vpop.f32.mrf.mxu0 }
 0x6c8   : > { %4232 = vrot.lane.b32.xlu1 %v4181_v10, %s8518_s19 }
 0x6cd   : > { %v4151_v21 = vpop.f32.mrf.mxu3 }
 0x6ce   : > { %4224 = vrot.lane.b32.xlu2 %v4121_v6, %s8521_s5  ;;  %4228 = vrot.lane.b32.xlu0 %v4151_v21, %s8517_s7  ;;  %v7306_v6 = vld [vmem:[#allocation11 + $0x190] sm:$0xf] }
 0x6cf   : > { %v7990_v21 = vld [vmem:[#allocation11 + $0x1ac] sm:$0xf0] }
 0x6d0   : > { %v7307_v60 = vor.u32 %v7990_v21, %v7306_v6  ;;  %v7374_v21 = vld [vmem:[#allocation11 + $0x158] sm:$0xf] }
 0x6d2   : > { %4413 = vmatpush.bf16.msrb.mxu3 %v7307_v60 }
 0x6d6   : > { %4236 = vrot.lane.b32.xlu2 %v4208_v57, %s8519_s28  ;;  %v7986_v57 = vld [vmem:[#allocation11 + $0x194] sm:$0xf]  ;;  %4414 = vmatpush.bf16.msrb.mxu3 %v7299_v42 }
 0x6d7   : > { %v7311_v1 = vor.u32 %v7986_v57, %v7308_v24  ;;  %v7983_v57 = vld [vmem:[#allocation11 + $0x174] sm:$0xf0]  ;;  %v7971_v24 = vld [vmem:[#allocation11 + $0x11c] sm:$0xf] }
 0x6d8   : > { %v7375_v28 = vor.u32 %v7983_v57, %v7374_v21 }
 0x6da   : > { %4415 = vmatpush.bf16.msrb.mxu3 %v7291_v19  ;;  %v7366_v19 = vld [vmem:[#allocation11 + $0xd8] sm:$0xf] }
 0x6de   : > { %4416 = vmatpush.bf16.msrb.mxu3 %v7283_v18  ;;  %v7367_v18 = vor.u32 %v7967_v17, %v7366_v19  ;;  %v8056_v19 = vld [vmem:[#allocation11 + $0x3c4] sm:$0xf] }
 0x720   : > { %v4213_v7 = vpop.permute.xlu2 %4212 }
 0x721   : > { %v4239_v54 = vsel %vm3592_vm10, %v4007_v26, %v4213_v7  ;;  %v7319_v26 = vor.u32 %v7994_v58, %v7316_v25  ;;  %v7275_v7 = vor.u32 %v7958_v55, %v7274_v8  ;;  %v7378_v25 = vld [vmem:[#allocation11 + $0x198] sm:$0xf]  ;;  %v10264_v8 = vld [vmem:[#allocation12 + $0x10] sm:$0xff]  ;;  %v7331_v55 = vor.u32 %v7955_v5, %v7328_v49  ;;  %v8061_v5 = vld [vmem:[#allocation11 + $0x3e4] sm:$0xf0] }
 0x722   : > { %v4327_v51 = vrot.slane %v10264_v8, 1 }
 0x723   : > { %4425 = vmatpush.bf16.msrb.mxu0 %v7319_v26  ;;  %4417 = vmatpush.bf16.msrb.mxu3 %v7275_v7  ;;  %v4322_v7 = vperm.slane %v10264_v8, 2 }
 0x724   : > { %v4331_v9 = vperm.slane %v4327_v51, 7 }
 0x727   : > { %4426 = vmatpush.bf16.msrb.mxu0 %v7311_v1  ;;  %v7336_v1 = vld [vmem:[#allocation11 + $0x138] sm:$0xf0] }
 0x728   : > { %v4225_v40 = vpop.permute.xlu2 %4224  ;;  %v7339_v42 = vor.u32 %v7971_v24, %v7336_v1 }
 0x72b   : > { %4427 = vmatpush.bf16.msrb.mxu0 %v7303_v11  ;;  %v7963_v11 = vld [vmem:[#allocation11 + $0xdc] sm:$0xf] }
 0x72c   : > { %v7335_v59 = vor.u32 %v7963_v11, %v7332_v16 }
 0x72f   : > { %4428 = vmatpush.bf16.msrb.mxu0 %v7295_v12 }
 0x730   : > { %v4221_v50 = vpop.permute.xlu1 %4220  ;;  %v4237_v41 = vpop.permute.xlu2 %4236 }
 0x732   : > { %v4217_v29 = vpop.permute.xlu0 %4216 }
 0x733   : > { %v4241_v31 = vsel %vm4240_vm14, %v4239_v54, %v4217_v29  ;;  %4429 = vmatpush.bf16.msrb.mxu0 %v7287_v35  ;;  %v7950_v54 = vld [vmem:[#allocation11 + $0x6c] sm:$0xf0] }
 0x734   : > { %v4243_v38 = vsel %vm4242_vm15, %v4241_v31, %v4221_v50  ;;  %v7276_v50 = vld [vmem:[#allocation11 + $0xb0] sm:$0xf0] }
 0x735   : > { %v4245_v45 = vsel %vm10514_vm2, %v4243_v38, %v4225_v40  ;;  %v7279_v29 = vor.u32 %v7954_v30, %v7276_v50  ;;  %v7266_v40 = vld [vmem:[#allocation11 + $0x50] sm:$0xf]  ;;  %v7946_v31 = vld [vmem:[#allocation11 + $0x54] sm:$0xf] }
 0x736   : > { %v7267_v38 = vor.u32 %v7950_v54, %v7266_v40  ;;  %v4324_v40 = vperm.slane %v10264_v8, 3 }
 0x737   : > { %4430 = vmatpush.bf16.msrb.mxu0 %v7279_v29 }
 0x738   : > { %4418 = vmatpush.bf16.msrb.mxu3 %v7267_v38 }
 0x73a   : > { %v4233_v63 = vpop.permute.xlu1 %4232 }
 0x740   : > { %v4229_v4 = vpop.permute.xlu0 %4228 }
 0x741   : > { %v4247_v23 = vsel %vm10513_vm1, %v4245_v45, %v4229_v4  ;;  %v7268_v4 = vld [vmem:[#allocation11 + $0x70] sm:$0xf0]  ;;  %v7258_v45 = vld [vmem:[#allocation11 + $0x10] sm:$0xf] }
 0x742   : > { %v4249_v22 = vsel %vm10512_vm3, %v4247_v23, %v4233_v63  ;;  %v7942_v63 = vld [vmem:[#allocation11 + $0x2c] sm:$0xf0]  ;;  %v7271_v23 = vor.u32 %v7946_v31, %v7268_v4  ;;  %v7947_v4 = vld [vmem:[#allocation11 + $0x5c] sm:$0xf] }
 0x743   : > { %v4251_v34 = vsel %vm10511_vm6, %v4249_v22, %v4237_v41  ;;  %v7938_v41 = vld [vmem:[#allocation11 + $0x14] sm:$0xf] }
 0x744   : > { %v4252_v0 = vpack.c.bf16 %v4251_v34, %v4251_v34  ;;  %v7260_v22 = vld [vmem:[#allocation11 + $0x30] sm:$0xf0]  ;;  %v7259_v34 = vor.u32 %v7942_v63, %v7258_v45  ;;  %4431 = vmatpush.bf16.msrb.mxu0 %v7271_v23  ;;  %v7324_v45 = vld [vmem:[#allocation11 + $0x78] sm:$0xf0]  ;;  %v7362_v23 = vld [vmem:[#allocation11 + $0x98] sm:$0xf] }
 0x745   : > { %v7327_v63 = vor.u32 %v7947_v4, %v7324_v45  ;;  %v8053_v4 = vld [vmem:[#allocation11 + $0x3a4] sm:$0xf0] }
 0x746   : > { %4294 = vmatmul.bf16.vlgmr.msra.gmra.mxu2 %v4252_v0  ;;  %v7263_v0 = vor.u32 %v7938_v41, %v7260_v22  ;;  %4419 = vmatpush.bf16.msrb.mxu3 %v7259_v34  ;;  %v7959_v41 = vld [vmem:[#allocation11 + $0xb4] sm:$0xf0]  ;;  %v7939_v34 = vld [vmem:[#allocation11 + $0x1c] sm:$0xf] }
 0x747   : > { %v7363_v22 = vor.u32 %v7959_v41, %v7362_v23  ;;  %v7446_v23 = vld [vmem:[#allocation11 + $0x340] sm:$0xf] }
 0x748   : > { %4432 = vmatpush.bf16.msrb.mxu0 %v7263_v0  ;;  %v7320_v0 = vld [vmem:[#allocation11 + $0x38] sm:$0xf0]  ;;  %v8044_v41 = vld [vmem:[#allocation11 + $0x35c] sm:$0xf0] }
 0x7c9   : > { %v4295_v52 = vpop.f32.mrf.mxu2 }
 0x7ca   : > { %v4296_v53 = vadd.f32 %v4295_v52, %v4253_v15  ;;  %v7995_v15 = vld [vmem:[#allocation11 + $0x1dc] sm:$0xf] }
 0x7cb   : > { %v7348_v52 = vld [vmem:[#allocation11 + $0x1f8] sm:$0xf0] }
 0x7cc   : > { %v4299_v62 = vadd.f32 %v4296_v53, %v10074_v39  ;;  %v7987_v53 = vld [vmem:[#allocation11 + $0x19c] sm:$0xf] }
 0x7ce   : > { %v4300_v33 = vsel %vm3312_vm5, %v4299_v62, 0.0 }
 0x7cf   : > { %4301 = vadd.xlane.f32.xlu0 %v4300_v33  ;;  %v7351_v33 = vor.u32 %v7995_v15, %v7348_v52  ;;  %v7323_v15 = vor.u32 %v7939_v34, %v7320_v0  ;;  %v7358_v52 = vld [vmem:[#allocation11 + $0x58] sm:$0xf]  ;;  %v7447_v34 = vor.u32 %v8044_v41, %v7446_v23  ;;  %v7448_v0 = vld [vmem:[#allocation11 + $0x360] sm:$0xf0] }
 0x7d1   : > { %v4297_v20 = vpop.f32.mrf.mxu2  ;;  %4490 = vmatpush.bf16.msrb.mxu1 %v7351_v33  ;;  %v7943_v33 = vld [vmem:[#allocation11 + $0x34] sm:$0xf0] }
 0x7d2   : > { %v7344_v20 = vld [vmem:[#allocation11 + $0x1b8] sm:$0xf0] }
 0x7d3   : > { %v7347_v26 = vor.u32 %v7987_v53, %v7344_v20 }
 0x7d5   : > { %4491 = vmatpush.bf16.msrb.mxu1 %v7347_v26  ;;  %v8232_v26 = vld [vmem:[#allocation12 + $0x8] sm:$0xff] }
 0x842   : > { %v4302_v3 = vpop.xlane.xlu0 %4301 }
 0x843   : > { %v4303_v61 = vmul.f32 %v4302_v3, %v10055_v13  ;;  %v7991_v3 = vld [vmem:[#allocation11 + $0x1b4] sm:$0xf0] }
 0x844   : > { %v7379_v6 = vor.u32 %v7991_v3, %v7378_v25  ;;  %v4330_v3 = vperm.slane %v8232_v26, 7 }
 0x845   : > { %v10258_v32 = vsub.f32 %v4299_v62, %v4303_v61 }
 0x846   : > { %4536 = vmatpush.bf16.msrb.mxu2 %v7379_v6 }
 0x847   : > { %v4305_v39 = vmul.f32 %v10258_v32, %v10258_v32 }
 0x849   : > { %v4306_v10 = vsel %vm3312_vm5, %v4305_v39, 0.0  ;;  %v7979_v39 = vld [vmem:[#allocation11 + $0x15c] sm:$0xf] }
 0x84a   : > { %4307 = vadd.xlane.f32.xlu1 %v4306_v10  ;;  %v7340_v10 = vld [vmem:[#allocation11 + $0x178] sm:$0xf0]  ;;  %4537 = vmatpush.bf16.msrb.mxu2 %v7375_v28  ;;  %v4548_v28 = vperm.slane %v10264_v8, 1 }
 0x84b   : > { %v7343_v60 = vor.u32 %v7979_v39, %v7340_v10 }
 0x84d   : > { %4492 = vmatpush.bf16.msrb.mxu1 %v7343_v60 }
 0x84e   : > { %4538 = vmatpush.bf16.msrb.mxu2 %v7371_v14  ;;  %v7470_v14 = vld [vmem:[#allocation11 + $0x3c0] sm:$0xf] }
 0x851   : > { %4493 = vmatpush.bf16.msrb.mxu1 %v7339_v42 }
 0x852   : > { %4539 = vmatpush.bf16.msrb.mxu2 %v7367_v18 }
 0x855   : > { %4494 = vmatpush.bf16.msrb.mxu1 %v7335_v59  ;;  %v7478_v59 = vld [vmem:[#allocation11 + $0x3c8] sm:$0xf] }
 0x856   : > { %4540 = vmatpush.bf16.msrb.mxu2 %v7363_v22  ;;  %v7479_v18 = vor.u32 %v8061_v5, %v7478_v59  ;;  %v8040_v22 = vld [vmem:[#allocation11 + $0x344] sm:$0xf]  ;;  %v7406_v5 = vld [vmem:[#allocation11 + $0x248] sm:$0xf] }
 0x857   : > { %v7400_v59 = vld [vmem:[#allocation11 + $0x260] sm:$0xf0] }
 0x859   : > { %4495 = vmatpush.bf16.msrb.mxu1 %v7331_v55 }
 0x85d   : > { %4496 = vmatpush.bf16.msrb.mxu1 %v7327_v63 }
 0x861   : > { %4497 = vmatpush.bf16.msrb.mxu1 %v7323_v15  ;;  %v7454_v15 = vld [vmem:[#allocation11 + $0x348] sm:$0xf] }
 0x865   : > { %4797 = vmatpush.bf16.msra.mxu1 %v7479_v18 }
 0x8bd   : > { %v4308_v62 = vpop.xlane.xlu1 %4307 }
 0x8be   : > { %v4309_v58 = vmul.f32 %v4308_v62, %v10055_v13  ;;  %v7354_v62 = vld [vmem:[#allocation11 + $0x18] sm:$0xf] }
 0x8bf   : > { %v7355_v20 = vor.u32 %v7943_v33, %v7354_v62  ;;  %v7434_v62 = vld [vmem:[#allocation11 + $0x300] sm:$0xf] }
 0x8c0   : > { %v4310_v61 = vadd.f32 1e-05, %v4309_v58  ;;  %v8036_v33 = vld [vmem:[#allocation11 + $0x31c] sm:$0xf0] }
 0x8c1   : > { %v7435_v51 = vor.u32 %v8036_v33, %v7434_v62  ;;  %v4575_v62 = vperm.slane %v10264_v8, 5 }
 0x8c2   : > { %8198 = vrsqrt.f32 %v4310_v61  ;;  %vm4317_vm8 = vweird.f32 %v4310_v61 }
 0x8c8   : > { %v8199_v36 = vpop.eup %8198 }
 0x8c9   : > { %v4312_v43 = vmul.f32 %v8199_v36, %v4310_v61  ;;  %vm4318_vm7 = vweird.f32 %v8199_v36 }
 0x8ca   : > { %vm4319_vm9 = vmor %vm4317_vm8, %vm4318_vm7 }
 0x8cb   : > { %v4313_v12 = vmul.f32 %v8199_v36, %v4312_v43  ;;  %v8060_v43 = vld [vmem:[#allocation11 + $0x3dc] sm:$0xf0] }
 0x8cc   : > { %v7471_v17 = vor.u32 %v8060_v43, %v7470_v14  ;;  %v7398_v43 = vld [vmem:[#allocation11 + $0x240] sm:$0xf] }
 0x8cd   : > { %v4314_v37 = vmul.f32 0.5, %v4313_v12  ;;  %v7472_v12 = vld [vmem:[#allocation11 + $0x3e0] sm:$0xf0] }
 0x8ce   : > { %v7475_v49 = vor.u32 %v8056_v19, %v7472_v12  ;;  %4771 = vmatpush.bf16.msra.mxu3 %v7471_v17  ;;  %v8012_v19 = vld [vmem:[#allocation11 + $0x25c] sm:$0xf0]  ;;  %v8008_v17 = vld [vmem:[#allocation11 + $0x244] sm:$0xf] }
 0x8cf   : > { %v4315_v35 = vsub.f32 1.5, %v4314_v37  ;;  %v7399_v12 = vor.u32 %v8012_v19, %v7398_v43  ;;  %v7403_v18 = vor.u32 %v8008_v17, %v7400_v59 }
 0x8d0   : > { %4784 = vmatpush.bf16.msra.mxu0 %v7475_v49  ;;  %v8013_v49 = vld [vmem:[#allocation11 + $0x264] sm:$0xf0] }
 0x8d1   : > { %v4316_v30 = vmul.f32 %v8199_v36, %v4315_v35 }
 0x8d3   : > { %v4320_v50 = vsel %vm4319_vm9, %v8199_v36, %v4316_v30 }
 0x8d4   : > { %v4321_v29 = vmul.f32 %v4320_v50, %v10258_v32  ;;  %v7951_v32 = vld [vmem:[#allocation11 + $0x74] sm:$0xf0]  ;;  %v7458_v50 = vld [vmem:[#allocation11 + $0x380] sm:$0xf] }
 0x8d5   : > { %v7359_v53 = vor.u32 %v7951_v32, %v7358_v52  ;;  %v8045_v52 = vld [vmem:[#allocation11 + $0x364] sm:$0xf0]  ;;  %v7451_v32 = vor.u32 %v8040_v22, %v7448_v0 }
 0x8d6   : > { %v4323_v54 = vmul.f32 %v4322_v7, %v4321_v29  ;;  %v8052_v29 = vld [vmem:[#allocation11 + $0x39c] sm:$0xf0] }
 0x8d7   : > { %4541 = vmatpush.bf16.msrb.mxu2 %v7359_v53  ;;  %v7455_v53 = vor.u32 %v8045_v52, %v7454_v15  ;;  %v4573_v52 = vperm.slane %v10264_v8, 4 }
 0x8d8   : > { %v4325_v31 = vadd.f32 %v4324_v40, %v4323_v54  ;;  %v8048_v40 = vld [vmem:[#allocation11 + $0x384] sm:$0xf]  ;;  %v7459_v54 = vor.u32 %v8052_v29, %v7458_v50 }
 0x8d9   : > { %v7388_v29 = vld [vmem:[#allocation11 + $0x220] sm:$0xf0] }
 0x8da   : > { %v4329_v38 = vpack.c.bf16 %v4325_v31, %v4325_v31  ;;  %4772 = vmatpush.bf16.msra.mxu3 %v7459_v54  ;;  %v8005_v54 = vld [vmem:[#allocation11 + $0x224] sm:$0xf0] }
 0x8db   : > { %4542 = vmatpush.bf16.msrb.mxu2 %v7355_v20  ;;  %v8032_v20 = vld [vmem:[#allocation11 + $0x304] sm:$0xf] }
 0x8dc   : > { %4420 = vmatmul.bf16.vlgmr.msrb.gmra.mxu3 %v4329_v38  ;;  %4433 = vmatmul.bf16.vlgmr.msrb.gmra.mxu0 %v4329_v38  ;;  %v7466_v38 = vld [vmem:[#allocation11 + $0x388] sm:$0xf] }
 0x8dd   : > { %v7467_v63 = vor.u32 %v8053_v4, %v7466_v38 }
 0x8de   : > { %4773 = vmatpush.bf16.msra.mxu3 %v7447_v34 }
 0x8df   : > { %4798 = vmatpush.bf16.msra.mxu1 %v7467_v63 }
 0x8e2   : > { %4774 = vmatpush.bf16.msra.mxu3 %v7435_v51 }
 0x8e3   : > { %4799 = vmatpush.bf16.msra.mxu1 %v7455_v53 }
 0x959   : > { %v4434_v58 = vpop.f32.mrf.mxu0 }
 0x95a   : > { %v4435_v47 = vadd.f32 %v4434_v58, %v4331_v9  ;;  %v7436_v9 = vld [vmem:[#allocation11 + $0x320] sm:$0xf0]  ;;  %v7442_v58 = vld [vmem:[#allocation11 + $0x308] sm:$0xf] }
 0x95c   : > { %v4439_v25 = vmax.f32 %v4435_v47, 0.0  ;;  %v8037_v47 = vld [vmem:[#allocation11 + $0x324] sm:$0xf0] }
 0x95d   : > { %v7443_v26 = vor.u32 %v8037_v47, %v7442_v58 }
 0x95e   : > { %v4441_v61 = vpack.c.bf16 %v4439_v25, %v4439_v25  ;;  %v7439_v25 = vor.u32 %v8032_v20, %v7436_v9  ;;  %v4813_v9 = vperm.slane %v10264_v8, 7 }
 0x95f   : > { %v4421_v39 = vpop.f32.mrf.mxu3  ;;  %4800 = vmatpush.bf16.msra.mxu1 %v7443_v26 }
 0x960   : > { %v4422_v10 = vadd.f32 %v4421_v39, %v4330_v3  ;;  %4498 = vmatmul.bf16.vlgmr.msrb.gmra.mxu1 %v4441_v61  ;;  %v7422_v3 = vld [vmem:[#allocation11 + $0x2c0] sm:$0xf]  ;;  %v8024_v39 = vld [vmem:[#allocation11 + $0x2c4] sm:$0xf] }
 0x961   : > { %v4436_v6 = vpop.f32.mrf.mxu0  ;;  %v8028_v61 = vld [vmem:[#allocation11 + $0x2dc] sm:$0xf0] }
 0x962   : > { %v4438_v21 = vmax.f32 %v4422_v10, 0.0  ;;  %v7423_v10 = vor.u32 %v8028_v61, %v7422_v3  ;;  %v7424_v6 = vld [vmem:[#allocation11 + $0x2e0] sm:$0xf0] }
 0x964   : > { %v4440_v57 = vpack.c.bf16 %v4438_v21, %v4438_v21  ;;  %v7430_v21 = vld [vmem:[#allocation11 + $0x2c8] sm:$0xf]  ;;  %4775 = vmatpush.bf16.msra.mxu3 %v7423_v10 }
 0x966   : > { %4543 = vmatmul.bf16.vlgmr.msrb.gmra.mxu2 %v4440_v57  ;;  %v8029_v57 = vld [vmem:[#allocation11 + $0x2e4] sm:$0xf0] }
 0x967   : > { %v4423_v60 = vpop.f32.mrf.mxu3 }
 0x968   : > { %v7427_v60 = vor.u32 %v8024_v39, %v7424_v6 }
 0x9dd   : > { %v4499_v24 = vpop.f32.mrf.mxu1 }
 0x9e5   : > { %v4501_v1 = vpop.f32.mrf.mxu1 }
 0x9e6   : > { %v7410_v1 = vld [vmem:[#allocation11 + $0x280] sm:$0xf] }
 0x9e9   : > { %v4544_v46 = vpop.f32.mrf.mxu2 }
 0x9ea   : > { %v4545_v48 = vadd.f32 %v4544_v46, %v4499_v24  ;;  %v7431_v24 = vor.u32 %v8029_v57, %v7430_v21  ;;  %v8016_v46 = vld [vmem:[#allocation11 + $0x284] sm:$0xf] }
 0x9ec   : > { %v4549_v42 = vadd.f32 %v4548_v28, %v4545_v48  ;;  %4801 = vmatpush.bf16.msra.mxu1 %v7431_v24  ;;  %v8020_v28 = vld [vmem:[#allocation11 + $0x29c] sm:$0xf0] }
 0x9ed   : > { %v7411_v48 = vor.u32 %v8020_v28, %v7410_v1 }
 0x9ee   : > { %v4550_v36 = vadd.f32 %v4549_v42, %v4325_v31  ;;  %v7460_v31 = vld [vmem:[#allocation11 + $0x3a0] sm:$0xf0] }
 0x9ef   : > { %v7463_v45 = vor.u32 %v8048_v40, %v7460_v31  ;;  %v7412_v42 = vld [vmem:[#allocation11 + $0x2a0] sm:$0xf0]  ;;  %4776 = vmatpush.bf16.msra.mxu3 %v7411_v48  ;;  %v7394_v40 = vld [vmem:[#allocation11 + $0x208] sm:$0xf] }
 0x9f0   : > { %v4551_v11 = vsel %vm3312_vm5, %v4550_v36, 0.0  ;;  %v7395_v38 = vor.u32 %v8005_v54, %v7394_v40 }
 0x9f1   : > { %v4546_v16 = vpop.f32.mrf.mxu2  ;;  %4552 = vadd.xlane.f32.xlu2 %v4551_v11  ;;  %4785 = vmatpush.bf16.msra.mxu0 %v7463_v45  ;;  %v8021_v11 = vld [vmem:[#allocation11 + $0x2a4] sm:$0xf0] }
 0x9f2   : > { %v7415_v16 = vor.u32 %v8016_v46, %v7412_v42 }
 0x9f3   : > { %4777 = vmatpush.bf16.msra.mxu3 %v7399_v12 }
 0x9f5   : > { %4786 = vmatpush.bf16.msra.mxu0 %v7451_v32 }
 0x9f9   : > { %4787 = vmatpush.bf16.msra.mxu0 %v7439_v25 }
 0x9fd   : > { %4788 = vmatpush.bf16.msra.mxu0 %v7427_v60 }
 0xa01   : > { %4789 = vmatpush.bf16.msra.mxu0 %v7415_v16 }
 0xa05   : > { %4790 = vmatpush.bf16.msra.mxu0 %v7403_v18 }
 0xa64   : > { %v4553_v37 = vpop.xlane.xlu2 %4552 }
 0xa65   : > { %v4554_v35 = vmul.f32 %v4553_v37, %v10055_v13  ;;  %v7407_v37 = vor.u32 %v8013_v49, %v7406_v5 }
 0xa67   : > { %v10273_v55 = vsub.f32 %v4550_v36, %v4554_v35  ;;  %v7418_v36 = vld [vmem:[#allocation11 + $0x288] sm:$0xf]  ;;  %v7386_v35 = vld [vmem:[#allocation11 + $0x200] sm:$0xf] }
 0xa68   : > { %v7419_v14 = vor.u32 %v8021_v11, %v7418_v36 }
 0xa69   : > { %v4556_v30 = vmul.f32 %v10273_v55, %v10273_v55 }
 0xa6a   : > { %4802 = vmatpush.bf16.msra.mxu1 %v7419_v14 }
 0xa6b   : > { %v4557_v7 = vsel %vm3312_vm5, %v4556_v30, 0.0  ;;  %v8004_v30 = vld [vmem:[#allocation11 + $0x21c] sm:$0xf0] }
 0xa6c   : > { %4558 = vadd.xlane.f32.xlu0 %v4557_v7  ;;  %v8000_v7 = vld [vmem:[#allocation11 + $0x204] sm:$0xf]  ;;  %v7387_v50 = vor.u32 %v8004_v30, %v7386_v35 }
 0xa6d   : > { %v7391_v31 = vor.u32 %v8000_v7, %v7388_v29 }
 0xa6e   : > { %4803 = vmatpush.bf16.msra.mxu1 %v7407_v37  ;;  %4778 = vmatpush.bf16.msra.mxu3 %v7387_v50 }
 0xa6f   : > { %4791 = vmatpush.bf16.msra.mxu0 %v7391_v31 }
 0xa72   : > { %4804 = vmatpush.bf16.msra.mxu1 %v7395_v38 }
 0xadf   : > { %v4559_v4 = vpop.xlane.xlu0 %4558 }
 0xae0   : > { %v4560_v45 = vmul.f32 %v4559_v4, %v10055_v13 }
 0xae2   : > { %v4561_v63 = vadd.f32 1e-05, %v4560_v45 }
 0xae4   : > { %8200 = vrsqrt.f32 %v4561_v63  ;;  %vm4568_vm13 = vweird.f32 %v4561_v63 }
 0xaea   : > { %v8201_v23 = vpop.eup %8200 }
 0xaeb   : > { %v4563_v41 = vmul.f32 %v8201_v23, %v4561_v63  ;;  %vm4569_vm12 = vweird.f32 %v8201_v23 }
 0xaec   : > { %vm4570_vm7 = vmor %vm4568_vm13, %vm4569_vm12 }
 0xaed   : > { %v4564_v22 = vmul.f32 %v8201_v23, %v4563_v41 }
 0xaef   : > { %v4565_v34 = vmul.f32 0.5, %v4564_v22 }
 0xaf1   : > { %v4566_v0 = vsub.f32 1.5, %v4565_v34 }
 0xaf3   : > { %v4567_v15 = vmul.f32 %v8201_v23, %v4566_v0 }
 0xaf5   : > { %v4571_v32 = vsel %vm4570_vm7, %v8201_v23, %v4567_v15 }
 0xaf6   : > { %v4572_v53 = vmul.f32 %v4571_v32, %v10273_v55  ;;  %v4810_v55 = vperm.slane %v10264_v8, 6  ;;  %v10299_v8 = vld [vmem:[#allocation12 + $0x18] sm:$0xff] }
 0xaf7   : > { %v4815_v21 = vperm.slane %v10299_v8, 0 }
 0xaf8   : > { %v4574_v33 = vmul.f32 %v4573_v52, %v4572_v53 }
 0xafa   : > { %v10282_v20 = vadd.f32 %v4575_v62, %v4574_v33 }
 0xafc   : > { %v4642_v51 = vpack.c.bf16 %v10282_v20, %v10282_v20 }
 0xafe   : > { %4779 = vmatmul.bf16.vlgmr.msra.gmra.mxu3 %v4642_v51  ;;  %4792 = vmatmul.bf16.vlgmr.msra.gmra.mxu0 %v4642_v51 }
 0xaff   : > { %4805 = vmatmul.bf16.vlgmr.msra.gmra.mxu1 %v4642_v51 }
 0xb7b   : > { %v4793_v58 = vpop.f32.mrf.mxu0 }
 0xb7c   : > { %v4814_v47 = vadd.f32 %v4813_v9, %v4793_v58  ;;  %v4806_v25 = vpop.f32.mrf.mxu1 }
 0xb7d   : > { %v10305_v57 = vadd.f32 %v4815_v21, %v4806_v25 }
 0xb7e   : > { %4929 = vrot.lane.b32.xlu2 %v4814_v47, %s8521_s5  ;;  %4873 = vrot.lane.b32.xlu0 %v4814_v47, %s8518_s19 }
 0xb7f   : > { %4845 = vrot.lane.b32.xlu1 %v4814_v47, %s8519_s28  ;;  %7480 = vmatpush.xpose.msk.msra.mxu2 %vm3592_vm10, %v4814_v47 }
 0xb81   : > { %v4780_v26 = vpop.f32.mrf.mxu3 }
 0xb82   : > { %v4811_v3 = vadd.f32 %v4810_v55, %v4780_v26 }
 0xb83   : > { %v4795_v61 = vpop.f32.mrf.mxu0 }
 0xb84   : > { %v4812_v39 = vmul.f32 0.25, %v4811_v3  ;;  %v4808_v10 = vpop.f32.mrf.mxu1 }
 0xb86   : > { %4901 = vrot.lane.b32.xlu0 %v4814_v47, %s8517_s7  ;;  %4843 = vrot.lane.b32.xlu2 %v4812_v39, %s8519_s28 }
 0xb87   : > { %4957 = vrot.lane.b32.xlu1 %v4814_v47, %s8522_s29  ;;  %7481 = vmatmul.msk.f32.vlgmr.msra.gmra.mxu2 %vm3592_vm10, %v4812_v39 }
 0xb89   : > { %v4782_v6 = vpop.f32.mrf.mxu3 }
 0xb8e   : > { %4871 = vrot.lane.b32.xlu0 %v4812_v39, %s8518_s19  ;;  %4927 = vrot.lane.b32.xlu2 %v4812_v39, %s8521_s5 }
 0xb8f   : > { %4955 = vrot.lane.b32.xlu1 %v4812_v39, %s8522_s29 }
 0xb96   : > { %4899 = vrot.lane.b32.xlu0 %v4812_v39, %s8517_s7  ;;  %4983 = vrot.lane.b32.xlu2 %v4812_v39, %s8520_s9 }
 0xb97   : > { %4985 = vrot.lane.b32.xlu1 %v4814_v47, %s8520_s9 }
 0xb9e   : > { %5011 = vrot.lane.b32.xlu0 %v4812_v39, %s8523_s17  ;;  %5237 = vrot.lane.b32.xlu2 %v10305_v57, %s8519_s28 }
 0xb9f   : > { %5013 = vrot.lane.b32.xlu1 %v4814_v47, %s8523_s17 }
 0xbd8   : > { %v4930_v60 = vpop.permute.xlu2 %4929 }
 0xbd9   : > { %7488 = vmatpush.xpose.msk.msrb.mxu2 %vm3592_vm10, %v4930_v60 }
 0xbdd   : > { %7496 = vmatpush.msk.msra.mxu2 %vm3312_vm5, %v10305_v57 }
 0xbe0   : > { %v4844_v24 = vpop.permute.xlu2 %4843 }
 0xbe8   : > { %v4928_v1 = vpop.permute.xlu2 %4927 }
 0xbe9   : > { %7489 = vmatmul.msk.f32.vlgmr.msrb.gmra.mxu2 %vm3592_vm10, %v4928_v1 }
 0xbf0   : > { %v4874_v28 = vpop.permute.xlu0 %4873  ;;  %v4984_v46 = vpop.permute.xlu2 %4983 }
 0xbf1   : > { %v4846_v48 = vpop.permute.xlu1 %4845  ;;  %7484 = vmatpush.xpose.msk.msrb.mxu0 %vm3592_vm10, %v4874_v28 }
 0xbf2   : > { %7482 = vmatpush.xpose.msk.msrb.mxu3 %vm3592_vm10, %v4846_v48 }
 0xbf5   : > { %7483 = vmatmul.msk.f32.vlgmr.msrb.gmra.mxu3 %vm3592_vm10, %v4844_v24 }
 0xbf8   : > { %v4902_v42 = vpop.permute.xlu0 %4901  ;;  %v5238_v36 = vpop.permute.xlu2 %5237 }
 0xbf9   : > { %v4958_v11 = vpop.permute.xlu1 %4957  ;;  %7486 = vmatpush.xpose.msk.msrb.mxu1 %vm3592_vm10, %v4902_v42 }
 0xbfa   : > { %7490 = vmatpush.xpose.msk.msra.mxu3 %vm3592_vm10, %v4958_v11 }
 0xbfe   : > { %7498 = vmatpush.msk.msrb.mxu3 %vm3312_vm5, %v5238_v36 }
 0xc00   : > { %v4872_v16 = vpop.permute.xlu0 %4871 }
 0xc01   : > { %v4956_v14 = vpop.permute.xlu1 %4955  ;;  %7485 = vmatmul.msk.f32.vlgmr.msrb.gmra.mxu0 %vm3592_vm10, %v4872_v16 }
 0xc02   : > { %7491 = vmatmul.msk.f32.vlgmr.msra.gmra.mxu3 %vm3592_vm10, %v4956_v14 }
 0xc08   : > { %v4900_v43 = vpop.permute.xlu0 %4899 }
 0xc09   : > { %v4986_v19 = vpop.permute.xlu1 %4985  ;;  %7487 = vmatmul.msk.f32.vlgmr.msrb.gmra.mxu1 %vm3592_vm10, %v4900_v43 }
 0xc0a   : > { %7492 = vmatpush.xpose.msk.msra.mxu0 %vm3592_vm10, %v4986_v19  ;;  %v4840_v59 = vpop.f32.mrf.mxu2 }
 0xc0b   : > { %v4841_v18 = vadd.f32 %v4840_v59, %v10118_v27 }
 0xc0d   : > { %7493 = vmatmul.msk.f32.vlgmr.msra.gmra.mxu0 %vm3592_vm10, %v4984_v46 }
 0xc10   : > { %v5012_v12 = vpop.permute.xlu0 %5011 }
 0xc11   : > { %v5014_v17 = vpop.permute.xlu1 %5013 }
 0xc12   : > { %7494 = vmatpush.xpose.msk.msra.mxu1 %vm3592_vm10, %v5014_v17 }
 0xc15   : > { %7495 = vmatmul.msk.f32.vlgmr.msra.gmra.mxu1 %vm3592_vm10, %v5012_v12 }
 0xc6c   : > { %v4952_v31 = vpop.f32.mrf.mxu2 }
 0xc6d   : > { %v4953_v23 = vadd.f32 %v4952_v31, %v10118_v27 }
 0xc78   : > { %v4868_v5 = vpop.f32.mrf.mxu3 }
 0xc79   : > { %v4869_v49 = vadd.f32 %v4868_v5, %v10118_v27 }
 0xc7b   : > { %v5040_v37 = vrot.slane %v4869_v49, 2 }
 0xc7d   : > { %v5057_v35 = vsel %vm3312_vm5, %v4841_v18, %v5040_v37 }
 0xc7e   : > { %v4896_v30 = vpop.f32.mrf.mxu0  ;;  %v5063_v7 = vsel %vm3839_vm11, %v5057_v35, -inf }
 0xc7f   : > { %v4897_v50 = vadd.f32 %v4896_v30, %v10118_v27  ;;  %5064 = vmax.xlane.f32.xlu2 %v5063_v7 }
 0xc81   : > { %v5043_v29 = vrot.slane %v4897_v50, 4 }
 0xc83   : > { %v5058_v40 = vsel %vm515_vm0, %v5040_v37, %v5043_v29 }
 0xc84   : > { %v5066_v54 = vsel %vm3839_vm11, %v5058_v40, -inf }
 0xc85   : > { %v4980_v38 = vpop.f32.mrf.mxu3  ;;  %5067 = vmax.xlane.f32.xlu1 %v5066_v54 }
 0xc86   : > { %v4981_v4 = vadd.f32 %v4980_v38, %v10118_v27  ;;  %v4924_v45 = vpop.f32.mrf.mxu1 }
 0xc87   : > { %v4925_v63 = vadd.f32 %v4924_v45, %v10118_v27 }
 0xc88   : > { %v5049_v41 = vrot.slane %v4981_v4, 2 }
 0xc89   : > { %v5046_v22 = vrot.slane %v4925_v63, 6 }
 0xc8a   : > { %v5008_v34 = vpop.f32.mrf.mxu0  ;;  %v5060_v0 = vsel %vm3312_vm5, %v4953_v23, %v5049_v41 }
 0xc8b   : > { %v5009_v15 = vadd.f32 %v5008_v34, %v10118_v27  ;;  %v5072_v52 = vsel %vm3839_vm11, %v5060_v0, -inf  ;;  %v5059_v32 = vsel %vm1280_vm4, %v5043_v29, %v5046_v22 }
 0xc8c   : > { %5073 = vmax.xlane.f32.xlu2 %v5072_v52  ;;  %v5069_v53 = vsel %vm3839_vm11, %v5059_v32, -inf }
 0xc8d   : > { %v5052_v62 = vrot.slane %v5009_v15, 4  ;;  %5070 = vmax.xlane.f32.xlu0 %v5069_v53 }
 0xc8f   : > { %v5061_v33 = vsel %vm515_vm0, %v5049_v41, %v5052_v62 }
 0xc90   : > { %v5075_v51 = vsel %vm3839_vm11, %v5061_v33, -inf }
 0xc91   : > { %5076 = vmax.xlane.f32.xlu1 %v5075_v51 }
 0xc92   : > { %v5036_v9 = vpop.f32.mrf.mxu1 }
 0xc93   : > { %v5037_v58 = vadd.f32 %v5036_v9, %v10118_v27 }
 0xc95   : > { %v5055_v47 = vrot.slane %v5037_v58, 6 }
 0xc97   : > { %v5062_v25 = vsel %vm1280_vm4, %v5052_v62, %v5055_v47 }
 0xc98   : > { %v5078_v55 = vsel %vm3839_vm11, %v5062_v25, -inf }
 0xc99   : > { %5079 = vmax.xlane.f32.xlu0 %v5078_v55 }
 0xca4   : > { %5294 = vrot.lane.b32.xlu2 %v10305_v57, %s8517_s7 }
 0xcaa   : > { %5267 = vrot.lane.b32.xlu1 %v10305_v57, %s8518_s19 }
 0xcad   : > { %5320 = vrot.lane.b32.xlu0 %v10305_v57, %s8521_s5 }
 0xcf2   : > { %v5065_v26 = vpop.xlane.xlu2 %5064 }
 0xcf3   : > { %v5081_v3 = vsub.f32 %v5057_v35, %v5065_v26 }
 0xcf5   : > { %v5087_v61 = vmul.f32 1.442695, %v5081_v3 }
 0xcf7   : > { %8202 = vpow2.f32 %v5087_v61 }
 0xcf8   : > { %v5068_v27 = vpop.xlane.xlu1 %5067 }
 0xcf9   : > { %v5082_v39 = vsub.f32 %v5058_v40, %v5068_v27 }
 0xcfb   : > { %v5089_v10 = vmul.f32 1.442695, %v5082_v39 }
 0xcfd   : > { %v10354_v6 = vpop.eup %8202  ;;  %8204 = vpow2.f32 %v5089_v10 }
 0xcfe   : > { %v5099_v21 = vsel %vm3839_vm11, %v10354_v6, 0.0 }
 0xcff   : > { %5100 = vadd.xlane.f32.xlu2 %v5099_v21  ;;  %v5074_v60 = vpop.xlane.xlu2 %5073 }
 0xd00   : > { %v5084_v24 = vsub.f32 %v5060_v0, %v5074_v60  ;;  %v5071_v1 = vpop.xlane.xlu0 %5070 }
 0xd01   : > { %v5083_v28 = vsub.f32 %v5059_v32, %v5071_v1 }
 0xd02   : > { %v5093_v46 = vmul.f32 1.442695, %v5084_v24 }
 0xd03   : > { %v10358_v48 = vpop.eup %8204  ;;  %v5091_v42 = vmul.f32 1.442695, %v5083_v28 }
 0xd04   : > { %8206 = vpow2.f32 %v5093_v46  ;;  %v5077_v36 = vpop.xlane.xlu1 %5076  ;;  %v5102_v11 = vsel %vm3839_vm11, %v10358_v48, 0.0 }
 0xd05   : > { %8208 = vpow2.f32 %v5091_v42  ;;  %v5085_v16 = vsub.f32 %v5061_v33, %v5077_v36  ;;  %5103 = vadd.xlane.f32.xlu1 %v5102_v11 }
 0xd07   : > { %v5095_v14 = vmul.f32 1.442695, %v5085_v16  ;;  %v5295_v43 = vpop.permute.xlu2 %5294 }
 0xd08   : > { %7502 = vmatpush.msk.msrb.mxu1 %vm3312_vm5, %v5295_v43 }
 0xd09   : > { %8210 = vpow2.f32 %v5095_v14 }
 0xd0a   : > { %v10363_v19 = vpop.eup %8206 }
 0xd0b   : > { %v10365_v17 = vpop.eup %8208  ;;  %v5108_v12 = vsel %vm3839_vm11, %v10363_v19, 0.0 }
 0xd0c   : > { %v5080_v59 = vpop.xlane.xlu0 %5079  ;;  %5109 = vadd.xlane.f32.xlu2 %v5108_v12  ;;  %v5105_v5 = vsel %vm3839_vm11, %v10365_v17, 0.0 }
 0xd0d   : > { %v5086_v49 = vsub.f32 %v5062_v25, %v5080_v59  ;;  %5106 = vadd.xlane.f32.xlu0 %v5105_v5 }
 0xd0f   : > { %v10371_v18 = vpop.eup %8210  ;;  %v5097_v37 = vmul.f32 1.442695, %v5086_v49 }
 0xd10   : > { %v5111_v35 = vsel %vm3839_vm11, %v10371_v18, 0.0 }
 0xd11   : > { %8212 = vpow2.f32 %v5097_v37  ;;  %5112 = vadd.xlane.f32.xlu1 %v5111_v35 }
 0xd17   : > { %v10375_v30 = vpop.eup %8212 }
 0xd18   : > { %v5114_v7 = vsel %vm3839_vm11, %v10375_v30, 0.0 }
 0xd19   : > { %5115 = vadd.xlane.f32.xlu0 %v5114_v7 }
 0xd1c   : > { %v5268_v50 = vpop.permute.xlu1 %5267 }
 0xd1d   : > { %7500 = vmatpush.msk.msrb.mxu0 %vm3312_vm5, %v5268_v50 }
 0xd1f   : > { %v5321_v29 = vpop.permute.xlu0 %5320 }
 0xd20   : > { %7504 = vmatpush.msk.msrb.mxu2 %vm3312_vm5, %v5321_v29 }
 0xd24   : > { %5408 = vrot.lane.b32.xlu2 %v10305_v57, %s8523_s17 }
 0xd2a   : > { %5381 = vrot.lane.b32.xlu1 %v10305_v57, %s8520_s9 }
 0xd2d   : > { %5351 = vrot.lane.b32.xlu0 %v10305_v57, %s8522_s29 }
 0xd72   : > { %v5101_v40 = vpop.xlane.xlu2 %5100 }
 0xd73   : > { %8214 = vrcp.f32 %v5101_v40  ;;  %v5128_v45 = vand.u32 2147483648, %v5101_v40  ;;  %v5126_v23 = vand.u32 2147483647, %v5101_v40  ;;  %vm5122_vm9 = vweird.f32 %v5101_v40 }
 0xd75   : > { %v5129_v57 = vor.u32 1.1754944e-38, %v5128_v45  ;;  %vm5127_vm13 = vcmp.eq.f32.partialorder %v5126_v23, 8.507059e+37 }
 0xd78   : > { %v5104_v54 = vpop.xlane.xlu1 %5103 }
 0xd79   : > { %v8215_v31 = vpop.eup %8214  ;;  %8216 = vrcp.f32 %v5104_v54  ;;  %v5143_v62 = vand.u32 2147483648, %v5104_v54  ;;  %v5141_v51 = vand.u32 2147483647, %v5104_v54  ;;  %vm5137_vm6 = vweird.f32 %v5104_v54 }
 0xd7a   : > { %v5118_v38 = vmul.f32 %v8215_v31, %v5101_v40  ;;  %vm5123_vm8 = vweird.f32 %v8215_v31 }
 0xd7b   : > { %vm5124_vm12 = vmor %vm5122_vm9, %vm5123_vm8  ;;  %v5144_v26 = vor.u32 1.1754944e-38, %v5143_v62  ;;  %vm5142_vm9 = vcmp.eq.f32.partialorder %v5141_v51, 8.507059e+37 }
 0xd7c   : > { %v5119_v4 = vsub.f32 1.0, %v5118_v38 }
 0xd7e   : > { %v5120_v63 = vmul.f32 %v8215_v31, %v5119_v4 }
 0xd7f   : > { %v8217_v41 = vpop.eup %8216  ;;  %v5110_v22 = vpop.xlane.xlu2 %5109 }
 0xd80   : > { %v5121_v34 = vadd.f32 %v8215_v31, %v5120_v63  ;;  %v5133_v0 = vmul.f32 %v8217_v41, %v5104_v54  ;;  %8218 = vrcp.f32 %v5110_v22  ;;  %v5107_v15 = vpop.xlane.xlu0 %5106  ;;  %vm5138_vm7 = vweird.f32 %v8217_v41 }
 0xd81   : > { %8220 = vrcp.f32 %v5107_v15  ;;  %vm5139_vm8 = vmor %vm5137_vm6, %vm5138_vm7  ;;  %v5173_v21 = vand.u32 2147483648, %v5110_v22  ;;  %v5156_v1 = vand.u32 2147483647, %v5107_v15  ;;  %v5158_v36 = vand.u32 2147483648, %v5107_v15 }
 0xd82   : > { %v5125_v52 = vsel %vm5124_vm12, %v8215_v31, %v5121_v34  ;;  %v5134_v32 = vsub.f32 1.0, %v5133_v0  ;;  %vm5167_vm12 = vweird.f32 %v5110_v22 }
 0xd83   : > { %v5130_v53 = vsel %vm5127_vm13, %v5129_v57, %v5125_v52  ;;  %vm5152_vm13 = vweird.f32 %v5107_v15  ;;  %v5174_v5 = vor.u32 1.1754944e-38, %v5173_v21  ;;  %vm5157_vm3 = vcmp.eq.f32.partialorder %v5156_v1, 8.507059e+37 }
 0xd84   : > { %v5135_v33 = vmul.f32 %v8217_v41, %v5134_v32  ;;  %v10387_v9 = vpop.xlane.xlu1 %5112  ;;  %v5131_v58 = vmul.f32 %v10354_v6, %v5130_v53  ;;  %v5171_v6 = vand.u32 2147483647, %v5110_v22  ;;  %v5159_v7 = vor.u32 1.1754944e-38, %v5158_v36  ;;  %v8057_v36 = vld [vmem:[#allocation11 + $0x3cc] sm:$0xf] }
 0xd85   : > { %8222 = vrcp.f32 %v10387_v9  ;;  %v5186_v50 = vand.u32 2147483647, %v10387_v9  ;;  %v5188_v29 = vand.u32 2147483648, %v10387_v9 }
 0xd86   : > { %v8219_v47 = vpop.eup %8218  ;;  %v5136_v25 = vadd.f32 %v8217_v41, %v5135_v33  ;;  %7497 = vmatmul.msk.f32.vlgmr.msra.gmra.mxu2 %vm3839_vm11, %v5131_v58  ;;  %v5234_v11 = vrot.slane %v5131_v58, 6 }
 0xd87   : > { %v8221_v55 = vpop.eup %8220  ;;  %v5163_v3 = vmul.f32 %v8219_v47, %v5110_v22  ;;  %v5409_v61 = vpop.permute.xlu2 %5408  ;;  %vm5168_vm6 = vweird.f32 %v8219_v47 }
 0xd88   : > { %v5140_v27 = vsel %vm5139_vm8, %v8217_v41, %v5136_v25  ;;  %v5148_v39 = vmul.f32 %v8221_v55, %v5107_v15  ;;  %7510 = vmatpush.msk.msra.mxu1 %vm3312_vm5, %v5409_v61  ;;  %vm5153_vm7 = vweird.f32 %v8221_v55  ;;  %vm5172_vm8 = vcmp.eq.f32.partialorder %v5171_v6, 8.507059e+37 }
 0xd89   : > { %v5164_v10 = vsub.f32 1.0, %v5163_v3  ;;  %v5145_v60 = vsel %vm5142_vm9, %v5144_v26, %v5140_v27  ;;  %vm5169_vm9 = vmor %vm5167_vm12, %vm5168_vm6  ;;  %vm5182_vm12 = vweird.f32 %v10387_v9  ;;  %v5189_v41 = vor.u32 1.1754944e-38, %v5188_v29 }
 0xd8a   : > { %v5149_v24 = vsub.f32 1.0, %v5148_v39  ;;  %v5146_v28 = vmul.f32 %v10358_v48, %v5145_v60  ;;  %vm5154_vm1 = vmor %vm5152_vm13, %vm5153_vm7  ;;  %vm5187_vm6 = vcmp.eq.f32.partialorder %v5186_v50, 8.507059e+37  ;;  %v7524_v50 = vld [vmem:[#allocation11 + $0x2e8] sm:$0xf0] }
 0xd8b   : > { %v8223_v46 = vpop.eup %8222  ;;  %v5165_v42 = vmul.f32 %v8219_v47, %v5164_v10 }
 0xd8c   : > { %v5150_v16 = vmul.f32 %v8221_v55, %v5149_v24  ;;  %v5178_v14 = vmul.f32 %v8223_v46, %v10387_v9  ;;  %v5116_v43 = vpop.xlane.xlu0 %5115  ;;  %v5235_v12 = vrot.slane %v5146_v28, 6  ;;  %vm5183_vm2 = vweird.f32 %v8223_v46 }
 0xd8d   : > { %v5166_v59 = vadd.f32 %v8219_v47, %v5165_v42  ;;  %8224 = vrcp.f32 %v5116_v43  ;;  %vm5184_vm13 = vmor %vm5182_vm12, %vm5183_vm2  ;;  %v5264_v15 = vrot.slane %v5146_v28, 4  ;;  %v5201_v62 = vand.u32 2147483647, %v5116_v43 }
 0xd8e   : > { %v5151_v49 = vadd.f32 %v8221_v55, %v5150_v16  ;;  %v5179_v48 = vsub.f32 1.0, %v5178_v14  ;;  %v5236_v37 = vsel %vm1280_vm4, %v5234_v11, %v5235_v12  ;;  %vm5197_vm2 = vweird.f32 %v5116_v43  ;;  %v7540_v11 = vld [vmem:[#allocation11 + $0x3e8] sm:$0xf0] }
 0xd8f   : > { %v5170_v35 = vsel %vm5169_vm9, %v8219_v47, %v5166_v59  ;;  %7499 = vmatmul.msk.f32.vlgmr.msrb.gmra.mxu3 %vm3839_vm11, %v5236_v37  ;;  %vm5202_vm7 = vcmp.eq.f32.partialorder %v5201_v62, 8.507059e+37  ;;  %v8049_v16 = vld [vmem:[#allocation11 + $0x38c] sm:$0xf]  ;;  %v7543_v14 = vor.u32 %v8057_v36, %v7540_v11  ;;  %vm10594_vm9 = vcmask 916480   ;;  %v7596_v11 = vld [vmem:[#allocation11 + $0x3b0] sm:$0xf0] }
 0xd90   : > { %v5175_v40 = vsel %vm5172_vm8, %v5174_v5, %v5170_v35  ;;  %v5155_v54 = vsel %vm5154_vm1, %v8221_v55, %v5151_v49  ;;  %v5180_v31 = vmul.f32 %v8223_v46, %v5179_v48  ;;  %v8041_v59 = vld [vmem:[#allocation11 + $0x34c] sm:$0xf]  ;;  %vm10593_vm8 = vcmask 785408  }
 0xd91   : > { %v5160_v38 = vsel %vm5157_vm3, %v5159_v7, %v5155_v54  ;;  %v5176_v4 = vmul.f32 %v10363_v19, %v5175_v40  ;;  %v5203_v19 = vand.u32 2147483648, %v5116_v43  ;;  %5503 = vmatpush.bf16.msra.mxu2 %v7543_v14  ;;  %v7532_v5 = vld [vmem:[#allocation11 + $0x368] sm:$0xf0]  ;;  %v7586_v14 = vld [vmem:[#allocation11 + $0x350] sm:$0xf] }
 0xd92   : > { %v5161_v45 = vmul.f32 %v10365_v17, %v5160_v38  ;;  %v5181_v63 = vadd.f32 %v8223_v46, %v5180_v31  ;;  %v7535_v49 = vor.u32 %v8041_v59, %v7532_v5  ;;  %v8033_v48 = vld [vmem:[#allocation11 + $0x30c] sm:$0xf]  ;;  %v7588_v5 = vld [vmem:[#allocation11 + $0x370] sm:$0xf0] }
 0xd93   : > { %v8225_v23 = vpop.eup %8224  ;;  %7505 = vmatmul.msk.f32.vlgmr.msrb.gmra.mxu2 %vm3839_vm11, %v5176_v4  ;;  %v5204_v9 = vor.u32 1.1754944e-38, %v5203_v19  ;;  %v5348_v3 = vrot.slane %v5176_v4, 6  ;;  %v7528_v37 = vld [vmem:[#allocation11 + $0x328] sm:$0xf0] }
 0xd94   : > { %v5185_v22 = vsel %vm5184_vm13, %v8223_v46, %v5181_v63  ;;  %v5193_v34 = vmul.f32 %v8225_v23, %v5116_v43  ;;  %v5293_v0 = vrot.slane %v5161_v45, 2  ;;  %v5265_v57 = vrot.slane %v5161_v45, 4  ;;  %v7536_v43 = vld [vmem:[#allocation11 + $0x3a8] sm:$0xf0] }
 0xd95   : > { %v5190_v52 = vsel %vm5187_vm6, %v5189_v41, %v5185_v22  ;;  %vm5198_vm1 = vweird.f32 %v8225_v23  ;;  %v7539_v12 = vor.u32 %v8049_v16, %v7536_v43  ;;  %v8025_v35 = vld [vmem:[#allocation11 + $0x2cc] sm:$0xf]  ;;  %v7531_v7 = vor.u32 %v8033_v48, %v7528_v37  ;;  %v8046_v43 = vld [vmem:[#allocation11 + $0x36c] sm:$0xf0] }
 0xd96   : > { %v5194_v32 = vsub.f32 1.0, %v5193_v34  ;;  %7503 = vmatmul.msk.f32.vlgmr.msrb.gmra.mxu1 %vm3839_vm11, %v5293_v0  ;;  %v5266_v17 = vsel %vm515_vm0, %v5264_v15, %v5265_v57  ;;  %v5191_v33 = vmul.f32 %v10371_v18, %v5190_v52  ;;  %vm5199_vm3 = vmor %vm5197_vm2, %vm5198_vm1  ;;  %v7527_v29 = vor.u32 %v8025_v35, %v7524_v50  ;;  %v8017_v40 = vld [vmem:[#allocation11 + $0x28c] sm:$0xf]  ;;  %v7578_v48 = vld [vmem:[#allocation11 + $0x310] sm:$0xf] }
 0xd97   : > { %7501 = vmatmul.msk.f32.vlgmr.msrb.gmra.mxu0 %vm3839_vm11, %v5266_v17  ;;  %5504 = vmatpush.bf16.msra.mxu2 %v7539_v12  ;;  %v7520_v54 = vld [vmem:[#allocation11 + $0x2a8] sm:$0xf0]  ;;  %v8042_v12 = vld [vmem:[#allocation11 + $0x354] sm:$0xf]  ;;  %v7587_v59 = vor.u32 %v8046_v43, %v7586_v14  ;;  %v8038_v37 = vld [vmem:[#allocation11 + $0x32c] sm:$0xf0] }
 0xd98   : > { %v5195_v53 = vmul.f32 %v8225_v23, %v5194_v32  ;;  %v5349_v25 = vrot.slane %v5191_v33, 6  ;;  %v5378_v39 = vrot.slane %v5191_v33, 4  ;;  %v7523_v31 = vor.u32 %v8017_v40, %v7520_v54  ;;  %v8009_v38 = vld [vmem:[#allocation11 + $0x24c] sm:$0xf]  ;;  %v8034_v35 = vld [vmem:[#allocation11 + $0x314] sm:$0xf] }
 0xd99   : > { %v7516_v4 = vld [vmem:[#allocation11 + $0x268] sm:$0xf0]  ;;  %v7580_v50 = vld [vmem:[#allocation11 + $0x330] sm:$0xf0]  ;;  %v7570_v40 = vld [vmem:[#allocation11 + $0x2d0] sm:$0xf] }
 0xd9a   : > { %v5196_v51 = vadd.f32 %v8225_v23, %v5195_v53  ;;  %v5350_v27 = vsel %vm1280_vm4, %v5348_v3, %v5349_v25  ;;  %v7519_v45 = vor.u32 %v8009_v38, %v7516_v4  ;;  %v8001_v63 = vld [vmem:[#allocation11 + $0x20c] sm:$0xf]  ;;  %v8030_v54 = vld [vmem:[#allocation11 + $0x2ec] sm:$0xf0]  ;;  %v7572_v4 = vld [vmem:[#allocation11 + $0x2f0] sm:$0xf0] }
 0xd9b   : > { %5505 = vmatpush.bf16.msra.mxu2 %v7535_v49  ;;  %v7591_v49 = vor.u32 %v8042_v12, %v7588_v5  ;;  %v7571_v38 = vor.u32 %v8030_v54, %v7570_v40  ;;  %v7658_v43 = vld [vmem:[#allocation11 + $0x318] sm:$0xf]  ;;  %v8019_v54 = vld [vmem:[#allocation11 + $0x29c] sm:$0xf] }
 0xd9c   : > { %v5200_v58 = vsel %vm5199_vm3, %v8225_v23, %v5196_v51  ;;  %v5382_v47 = vpop.permute.xlu1 %5381  ;;  %v7512_v23 = vld [vmem:[#allocation11 + $0x228] sm:$0xf0]  ;;  %v8039_v12 = vld [vmem:[#allocation11 + $0x334] sm:$0xf0] }
 0xd9d   : > { %v5205_v55 = vsel %vm5202_vm7, %v5204_v9, %v5200_v58  ;;  %7508 = vmatpush.msk.msra.mxu0 %vm3312_vm5, %v5382_v47  ;;  %v7515_v41 = vor.u32 %v8001_v63, %v7512_v23  ;;  %v5470_v47 = vperm.slane %v10299_v8, 1  ;;  %v7562_v63 = vld [vmem:[#allocation11 + $0x290] sm:$0xf] }
 0xd9e   : > { %v5206_v26 = vmul.f32 %v10375_v30, %v5205_v55  ;;  %v8022_v23 = vld [vmem:[#allocation11 + $0x2ac] sm:$0xf0] }
 0xd9f   : > { %v5352_v61 = vpop.permute.xlu0 %5351  ;;  %5506 = vmatpush.bf16.msra.mxu2 %v7531_v7  ;;  %v7579_v7 = vor.u32 %v8038_v37, %v7578_v48  ;;  %v7620_v48 = vld [vmem:[#allocation11 + $0x2f8] sm:$0xf0]  ;;  %v7659_v37 = vor.u32 %v8039_v12, %v7658_v43 }
 0xda0   : > { %7506 = vmatpush.msk.msra.mxu3 %vm3312_vm5, %v5352_v61  ;;  %v5407_v18 = vrot.slane %v5206_v26, 2  ;;  %v5379_v10 = vrot.slane %v5206_v26, 4 }
 0xda1   : > { %7507 = vmatmul.msk.f32.vlgmr.msra.gmra.mxu3 %vm3839_vm11, %v5350_v27  ;;  %v7602_v27 = vld [vmem:[#allocation11 + $0x3d0] sm:$0xf] }
 0xda2   : > { %7511 = vmatmul.msk.f32.vlgmr.msra.gmra.mxu1 %vm3839_vm11, %v5407_v18  ;;  %v5380_v6 = vsel %vm515_vm0, %v5378_v39, %v5379_v10  ;;  %vm10591_vm0 = vcmask 523264   ;;  %v8062_v18 = vld [vmem:[#allocation11 + $0x3ec] sm:$0xf0]  ;;  %v8058_v39 = vld [vmem:[#allocation11 + $0x3d4] sm:$0xf] }
 0xda3   : > { %7509 = vmatmul.msk.f32.vlgmr.msra.gmra.mxu0 %vm3839_vm11, %v5380_v6  ;;  %5507 = vmatpush.bf16.msra.mxu2 %v7527_v29  ;;  %vm10592_vm11 = vcmask 654336   ;;  %v7603_v10 = vor.u32 %v8062_v18, %v7602_v27  ;;  %v7604_v6 = vld [vmem:[#allocation11 + $0x3f0] sm:$0xf0]  ;;  %v7583_v29 = vor.u32 %v8034_v35, %v7580_v50  ;;  %v7670_v27 = vld [vmem:[#allocation11 + $0x3d8] sm:$0xf] }
 0xda4   : > { %v8063_v18 = vld [vmem:[#allocation11 + $0x3f4] sm:$0xf0] }
 0xda5   : > { %5629 = vmatpush.bf16.msrb.mxu3 %v7603_v10  ;;  %v7671_v10 = vor.u32 %v8063_v18, %v7670_v27  ;;  %v8031_v50 = vld [vmem:[#allocation11 + $0x2f4] sm:$0xf0] }
 0xda7   : > { %5508 = vmatpush.bf16.msra.mxu2 %v7523_v31  ;;  %v8026_v31 = vld [vmem:[#allocation11 + $0x2d4] sm:$0xf] }
 0xdab   : > { %5509 = vmatpush.bf16.msra.mxu2 %v7519_v45  ;;  %v7575_v45 = vor.u32 %v8026_v31, %v7572_v4  ;;  %v7616_v31 = vld [vmem:[#allocation11 + $0x2b8] sm:$0xf0] }
 0xdaf   : > { %5510 = vmatpush.bf16.msra.mxu2 %v7515_v41  ;;  %v8018_v41 = vld [vmem:[#allocation11 + $0x294] sm:$0xf] }
 0xdb3   : > { %5752 = vmatpush.bf16.msrb.mxu2 %v7671_v10 }
 0xe09   : > { %v5230_v21 = vpop.f32.mrf.mxu2 }
 0xe12   : > { %v5260_v60 = vpop.f32.mrf.mxu3 }
 0xe13   : > { %v5317_v30 = vpop.f32.mrf.mxu1  ;;  %5435 = vrot.lane.b32.xlu0 %v5260_v60, %s8523_s17 }
 0xe14   : > { %5443 = vrot.lane.b32.xlu2 %v5317_v30, %s8522_s29  ;;  %v5290_v24 = vpop.f32.mrf.mxu0 }
 0xe15   : > { %5439 = vrot.lane.b32.xlu1 %v5290_v24, %s8520_s9 }
 0xe16   : > { %v5344_v1 = vpop.f32.mrf.mxu2 }
 0xe1b   : > { %5447 = vrot.lane.b32.xlu0 %v5344_v1, %s8521_s5 }
 0xe1f   : > { %v5431_v46 = vpop.f32.mrf.mxu1 }
 0xe20   : > { %v5404_v28 = vpop.f32.mrf.mxu0 }
 0xe21   : > { %5455 = vrot.lane.b32.xlu2 %v5404_v28, %s8518_s19  ;;  %v7594_v28 = vld [vmem:[#allocation11 + $0x390] sm:$0xf] }
 0xe23   : > { %5459 = vrot.lane.b32.xlu0 %v5431_v46, %s8519_s28  ;;  %v8054_v46 = vld [vmem:[#allocation11 + $0x3ac] sm:$0xf0] }
 0xe24   : > { %v5374_v42 = vpop.f32.mrf.mxu3  ;;  %v7595_v36 = vor.u32 %v8054_v46, %v7594_v28  ;;  %v7662_v46 = vld [vmem:[#allocation11 + $0x358] sm:$0xf] }
 0xe25   : > { %5451 = vrot.lane.b32.xlu1 %v5374_v42, %s8517_s7  ;;  %v8050_v42 = vld [vmem:[#allocation11 + $0x394] sm:$0xf] }
 0xe26   : > { %v7599_v16 = vor.u32 %v8050_v42, %v7596_v11  ;;  %5630 = vmatpush.bf16.msrb.mxu3 %v7595_v36  ;;  %v8047_v42 = vld [vmem:[#allocation11 + $0x374] sm:$0xf0]  ;;  %v8035_v11 = vld [vmem:[#allocation11 + $0x31c] sm:$0xf] }
 0xe27   : > { %v7663_v14 = vor.u32 %v8047_v42, %v7662_v46 }
 0xe2a   : > { %5631 = vmatpush.bf16.msrb.mxu3 %v7587_v59 }
 0xe2e   : > { %5632 = vmatpush.bf16.msrb.mxu3 %v7579_v7  ;;  %v7654_v7 = vld [vmem:[#allocation11 + $0x2d8] sm:$0xf] }
 0xe32   : > { %5633 = vmatpush.bf16.msrb.mxu3 %v7571_v38  ;;  %v7655_v38 = vor.u32 %v8031_v50, %v7654_v7 }
 0xe6e   : > { %v5444_v15 = vpop.permute.xlu2 %5443 }
 0xe7b   : > { %v5456_v53 = vpop.permute.xlu2 %5455 }
 0xe85   : > { %v5436_v22 = vpop.permute.xlu0 %5435 }
 0xe86   : > { %v5462_v57 = vsel %vm3592_vm10, %v5230_v21, %v5436_v22  ;;  %v7607_v21 = vor.u32 %v8058_v39, %v7604_v6  ;;  %v7563_v22 = vor.u32 %v8022_v23, %v7562_v63  ;;  %v7666_v6 = vld [vmem:[#allocation11 + $0x398] sm:$0xf]  ;;  %v7619_v63 = vor.u32 %v8019_v54, %v7616_v31 }
 0xe87   : > { %v5440_v34 = vpop.permute.xlu1 %5439 }
 0xe88   : > { %v5463_v52 = vsel %vm4240_vm14, %v5462_v57, %v5440_v34  ;;  %5642 = vmatpush.bf16.msrb.mxu0 %v7607_v21  ;;  %v7564_v34 = vld [vmem:[#allocation11 + $0x2b0] sm:$0xf0]  ;;  %5634 = vmatpush.bf16.msrb.mxu3 %v7563_v22  ;;  %v8014_v57 = vld [vmem:[#allocation11 + $0x26c] sm:$0xf0] }
 0xe89   : > { %v5464_v32 = vsel %vm4242_vm15, %v5463_v52, %v5444_v15  ;;  %v7554_v15 = vld [vmem:[#allocation11 + $0x250] sm:$0xf]  ;;  %v8010_v52 = vld [vmem:[#allocation11 + $0x254] sm:$0xf] }
 0xe8c   : > { %5643 = vmatpush.bf16.msrb.mxu0 %v7599_v16  ;;  %v7624_v16 = vld [vmem:[#allocation11 + $0x338] sm:$0xf0] }
 0xe8d   : > { %v5448_v0 = vpop.permute.xlu0 %5447  ;;  %v7627_v59 = vor.u32 %v8035_v11, %v7624_v16  ;;  %v5765_v11 = vperm.slane %v10299_v8, 4 }
 0xe8e   : > { %v5465_v19 = vsel %vm10591_vm0, %v5464_v32, %v5448_v0  ;;  %v7567_v0 = vor.u32 %v8018_v41, %v7564_v34  ;;  %v7555_v32 = vor.u32 %v8014_v57, %v7554_v15  ;;  %v5539_v41 = vperm.slane %v10299_v8, 5 }
 0xe90   : > { %5644 = vmatpush.bf16.msrb.mxu0 %v7591_v49  ;;  %5635 = vmatpush.bf16.msrb.mxu3 %v7555_v32  ;;  %v8027_v49 = vld [vmem:[#allocation11 + $0x2dc] sm:$0xf] }
 0xe91   : > { %v7623_v40 = vor.u32 %v8027_v49, %v7620_v48  ;;  %v8011_v32 = vld [vmem:[#allocation11 + $0x25c] sm:$0xf] }
 0xe94   : > { %5645 = vmatpush.bf16.msrb.mxu0 %v7583_v29 }
 0xe95   : > { %v5460_v33 = vpop.permute.xlu0 %5459 }
 0xe97   : > { %v5452_v17 = vpop.permute.xlu1 %5451 }
 0xe98   : > { %v5466_v62 = vsel %vm10592_vm11, %v5465_v19, %v5452_v17  ;;  %5646 = vmatpush.bf16.msrb.mxu0 %v7575_v45  ;;  %v7556_v19 = vld [vmem:[#allocation11 + $0x270] sm:$0xf0]  ;;  %v7546_v17 = vld [vmem:[#allocation11 + $0x210] sm:$0xf] }
 0xe99   : > { %v5467_v51 = vsel %vm10593_vm8, %v5466_v62, %v5456_v53  ;;  %v8006_v53 = vld [vmem:[#allocation11 + $0x22c] sm:$0xf0]  ;;  %v7559_v62 = vor.u32 %v8010_v52, %v7556_v19  ;;  %v7612_v19 = vld [vmem:[#allocation11 + $0x278] sm:$0xf0] }
 0xe9a   : > { %v5468_v9 = vsel %vm10594_vm9, %v5467_v51, %v5460_v33  ;;  %v8002_v33 = vld [vmem:[#allocation11 + $0x214] sm:$0xf] }
 0xe9b   : > { %v5469_v58 = vpack.c.bf16 %v5468_v9, %v5468_v9  ;;  %v7548_v51 = vld [vmem:[#allocation11 + $0x230] sm:$0xf0]  ;;  %v7547_v9 = vor.u32 %v8006_v53, %v7546_v17  ;;  %v7615_v17 = vor.u32 %v8011_v32, %v7612_v19  ;;  %v7650_v53 = vld [vmem:[#allocation11 + $0x298] sm:$0xf] }
 0xe9c   : > { %5647 = vmatpush.bf16.msrb.mxu0 %v7567_v0  ;;  %v5541_v0 = vperm.slane %v10299_v8, 6 }
 0xe9d   : > { %5511 = vmatmul.bf16.vlgmr.msra.gmra.mxu2 %v5469_v58  ;;  %v7551_v58 = vor.u32 %v8002_v33, %v7548_v51  ;;  %5636 = vmatpush.bf16.msrb.mxu3 %v7547_v9  ;;  %v8003_v51 = vld [vmem:[#allocation11 + $0x21c] sm:$0xf] }
 0xe9e   : > { %v7608_v9 = vld [vmem:[#allocation11 + $0x238] sm:$0xf0] }
 0xea0   : > { %5648 = vmatpush.bf16.msrb.mxu0 %v7559_v62  ;;  %v8023_v62 = vld [vmem:[#allocation11 + $0x2b4] sm:$0xf0] }
 0xea1   : > { %v7651_v33 = vor.u32 %v8023_v62, %v7650_v53 }
 0xea4   : > { %5649 = vmatpush.bf16.msrb.mxu0 %v7551_v58  ;;  %v7611_v58 = vor.u32 %v8003_v51, %v7608_v9  ;;  %v3297_v51 = vld [vmem:[#allocation12 + $0xa0] sm:$0x7f]  ;;  %v3295_v9 = vld [vmem:[#allocation12 + $0x90] sm:$0xff] }
 0xf20   : > { %v5512_v25 = vpop.f32.mrf.mxu2 }
 0xf21   : > { %v5513_v55 = vadd.f32 %v5512_v25, %v5470_v47  ;;  %v8059_v47 = vld [vmem:[#allocation11 + $0x3dc] sm:$0xf] }
 0xf22   : > { %v7636_v25 = vld [vmem:[#allocation11 + $0x3f8] sm:$0xf0] }
 0xf23   : > { %v5516_v26 = vadd.f32 %v5513_v55, %v10282_v20  ;;  %v8051_v55 = vld [vmem:[#allocation11 + $0x39c] sm:$0xf] }
 0xf25   : > { %v5517_v3 = vsel %vm3312_vm5, %v5516_v26, 0.0 }
 0xf26   : > { %5518 = vadd.xlane.f32.xlu1 %v5517_v3  ;;  %v7639_v3 = vor.u32 %v8059_v47, %v7636_v25  ;;  %v7646_v47 = vld [vmem:[#allocation11 + $0x258] sm:$0xf] }
 0xf28   : > { %v5514_v61 = vpop.f32.mrf.mxu2  ;;  %5707 = vmatpush.bf16.msrb.mxu1 %v7639_v3 }
 0xf29   : > { %v7632_v61 = vld [vmem:[#allocation11 + $0x3b8] sm:$0xf0] }
 0xf2a   : > { %v7635_v21 = vor.u32 %v8051_v55, %v7632_v61  ;;  %v7642_v55 = vld [vmem:[#allocation11 + $0x218] sm:$0xf]  ;;  %v5544_v61 = vrot.slane %v10299_v8, 1 }
 0xf2c   : > { %5708 = vmatpush.bf16.msrb.mxu1 %v7635_v21  ;;  %v5548_v27 = vperm.slane %v5544_v61, 2 }
 0xf99   : > { %v5519_v60 = vpop.xlane.xlu1 %5518 }
 0xf9a   : > { %v5520_v30 = vmul.f32 %v5519_v60, %v10055_v13  ;;  %v8055_v60 = vld [vmem:[#allocation11 + $0x3b4] sm:$0xf0] }
 0xf9b   : > { %v7667_v28 = vor.u32 %v8055_v60, %v7666_v6  ;;  %v5547_v6 = vperm.slane %v10299_v8, 2 }
 0xf9c   : > { %v10435_v24 = vsub.f32 %v5516_v26, %v5520_v30 }
 0xf9d   : > { %5753 = vmatpush.bf16.msrb.mxu2 %v7667_v28 }
 0xf9e   : > { %v5522_v20 = vmul.f32 %v10435_v24, %v10435_v24 }
 0xfa0   : > { %v5523_v1 = vsel %vm3312_vm5, %v5522_v20, 0.0  ;;  %v8043_v20 = vld [vmem:[#allocation11 + $0x35c] sm:$0xf] }
 0xfa1   : > { %5524 = vadd.xlane.f32.xlu2 %v5523_v1  ;;  %v7628_v1 = vld [vmem:[#allocation11 + $0x378] sm:$0xf0]  ;;  %5754 = vmatpush.bf16.msrb.mxu2 %v7663_v14 }
 0xfa2   : > { %v7631_v36 = vor.u32 %v8043_v20, %v7628_v1 }
 0xfa4   : > { %5709 = vmatpush.bf16.msrb.mxu1 %v7631_v36 }
 0xfa5   : > { %5755 = vmatpush.bf16.msrb.mxu2 %v7659_v37 }
 0xfa8   : > { %5710 = vmatpush.bf16.msrb.mxu1 %v7627_v59 }
 0xfa9   : > { %5756 = vmatpush.bf16.msrb.mxu2 %v7655_v38 }
 0xfac   : > { %5711 = vmatpush.bf16.msrb.mxu1 %v7623_v40 }
 0xfad   : > { %5757 = vmatpush.bf16.msrb.mxu2 %v7651_v33  ;;  %v3296_v33 = vld [vmem:[#allocation12 + $0x98] sm:$0xff] }
 0xfb0   : > { %5712 = vmatpush.bf16.msrb.mxu1 %v7619_v63  ;;  %v8233_v63 = vld [vmem:[#allocation12 + $0x18] sm:$0xff] }
 0xfb4   : > { %5713 = vmatpush.bf16.msrb.mxu1 %v7615_v17 }
 0xfb8   : > { %5714 = vmatpush.bf16.msrb.mxu1 %v7611_v58  ;;  %v5873_v58 = vrot.slane %v3296_v33, 7 }
0x1014   : > { %v5525_v26 = vpop.xlane.xlu2 %5524 }
0x1015   : > { %v5526_v39 = vmul.f32 %v5525_v26, %v10055_v13  ;;  %v8007_v26 = vld [vmem:[#allocation11 + $0x234] sm:$0xf0] }
0x1016   : > { %v7643_v3 = vor.u32 %v8007_v26, %v7642_v55 }
0x1017   : > { %v5527_v30 = vadd.f32 1e-05, %v5526_v39 }
0x1019   : > { %8226 = vrsqrt.f32 %v5527_v30  ;;  %vm5534_vm14 = vweird.f32 %v5527_v30 }
0x101f   : > { %v8227_v5 = vpop.eup %8226 }
0x1020   : > { %v5529_v35 = vmul.f32 %v8227_v5, %v5527_v30  ;;  %vm5535_vm10 = vweird.f32 %v8227_v5 }
0x1021   : > { %vm5536_vm15 = vmor %vm5534_vm14, %vm5535_vm10 }
0x1022   : > { %v5530_v29 = vmul.f32 %v8227_v5, %v5529_v35 }
0x1024   : > { %v5531_v4 = vmul.f32 0.5, %v5530_v29 }
0x1026   : > { %v5532_v45 = vsub.f32 1.5, %v5531_v4 }
0x1028   : > { %v5533_v23 = vmul.f32 %v8227_v5, %v5532_v45 }
0x102a   : > { %v5537_v22 = vsel %vm5536_vm15, %v8227_v5, %v5533_v23  ;;  %v5790_v23 = vperm.slane %v8233_v63, 7 }
0x102b   : > { %v5538_v34 = vmul.f32 %v5537_v22, %v10435_v24  ;;  %v8015_v24 = vld [vmem:[#allocation11 + $0x274] sm:$0xf0] }
0x102c   : > { %v7647_v25 = vor.u32 %v8015_v24, %v7646_v47  ;;  %v5875_v47 = vrot.slane %v3297_v51, 7  ;;  %v5871_v24 = vrot.slane %v3295_v9, 7 }
0x102d   : > { %v5540_v15 = vmul.f32 %v5539_v41, %v5538_v34  ;;  %v10451_v34 = vld [vmem:[#allocation12 + $0x20] sm:$0xff] }
0x102e   : > { %5758 = vmatpush.bf16.msrb.mxu2 %v7647_v25 }
0x102f   : > { %v5542_v57 = vadd.f32 %v5541_v0, %v5540_v15  ;;  %v5792_v0 = vperm.slane %v10451_v34, 0 }
0x1031   : > { %v5546_v52 = vpack.c.bf16 %v5542_v57, %v5542_v57 }
0x1032   : > { %5759 = vmatpush.bf16.msrb.mxu2 %v7643_v3 }
0x1033   : > { %5637 = vmatmul.bf16.vlgmr.msrb.gmra.mxu3 %v5546_v52  ;;  %5650 = vmatmul.bf16.vlgmr.msrb.gmra.mxu0 %v5546_v52 }
0x10b0   : > { %v5651_v18 = vpop.f32.mrf.mxu0 }
0x10b1   : > { %v5652_v39 = vadd.f32 %v5651_v18, %v5548_v27 }
0x10b3   : > { %v5656_v10 = vmax.f32 %v5652_v39, 0.0  ;;  %v3294_v39 = vld [vmem:[#allocation12 + $0x88] sm:$0xff] }
0x10b5   : > { %v5658_v21 = vpack.c.bf16 %v5656_v10, %v5656_v10  ;;  %v5869_v10 = vrot.slane %v3294_v39, 7 }
0x10b6   : > { %v5638_v60 = vpop.f32.mrf.mxu3 }
0x10b7   : > { %v5639_v30 = vadd.f32 %v5638_v60, %v5547_v6  ;;  %5715 = vmatmul.bf16.vlgmr.msrb.gmra.mxu1 %v5658_v21  ;;  %v3293_v6 = vld [vmem:[#allocation12 + $0x80] sm:$0xff] }
0x10b8   : > { %v5653_v20 = vpop.f32.mrf.mxu0  ;;  %v5867_v60 = vrot.slane %v3293_v6, 7 }
0x10b9   : > { %v5655_v1 = vmax.f32 %v5639_v30, 0.0  ;;  %v3292_v30 = vld [vmem:[#allocation12 + $0x78] sm:$0xff] }
0x10bb   : > { %v5657_v28 = vpack.c.bf16 %v5655_v1, %v5655_v1  ;;  %v5865_v1 = vrot.slane %v3292_v30, 7 }
0x10bd   : > { %5760 = vmatmul.bf16.vlgmr.msrb.gmra.mxu2 %v5657_v28  ;;  %v3291_v28 = vld [vmem:[#allocation12 + $0x70] sm:$0xff] }
0x10be   : > { %v5640_v46 = vpop.f32.mrf.mxu3 }
0x1134   : > { %v5716_v42 = vpop.f32.mrf.mxu1 }
0x113c   : > { %v5718_v36 = vpop.f32.mrf.mxu1 }
0x113d   : > { %v3290_v36 = vld [vmem:[#allocation12 + $0x68] sm:$0xff] }
0x1140   : > { %v5761_v16 = vpop.f32.mrf.mxu2 }
0x1141   : > { %v5762_v14 = vadd.f32 %v5761_v16, %v5716_v42  ;;  %v5863_v42 = vrot.slane %v3291_v28, 7  ;;  %v5861_v16 = vrot.slane %v3290_v36, 7 }
0x1143   : > { %v5766_v43 = vadd.f32 %v5765_v11, %v5762_v14  ;;  %v3289_v14 = vld [vmem:[#allocation12 + $0x60] sm:$0xff] }
0x1145   : > { %v5767_v12 = vadd.f32 %v5766_v43, %v5542_v57 }
0x1147   : > { %v5768_v59 = vsel %vm3312_vm5, %v5767_v12, 0.0 }
0x1148   : > { %v5763_v5 = vpop.f32.mrf.mxu2  ;;  %5769 = vadd.xlane.f32.xlu0 %v5768_v59  ;;  %v3288_v59 = vld [vmem:[#allocation12 + $0x58] sm:$0xff] }
0x11bb   : > { %v5770_v49 = vpop.xlane.xlu0 %5769 }
0x11bc   : > { %v5771_v48 = vmul.f32 %v5770_v49, %v10055_v13  ;;  %v5857_v49 = vrot.slane %v3288_v59, 7 }
0x11be   : > { %v5772_v37 = vsub.f32 %v5767_v12, %v5771_v48  ;;  %v5859_v12 = vrot.slane %v3289_v14, 7  ;;  %v3287_v48 = vld [vmem:[#allocation12 + $0x50] sm:$0xff] }
0x11c0   : > { %v5773_v35 = vmul.f32 %v5772_v37, %v5772_v37 }
0x11c2   : > { %v5774_v7 = vsel %vm3312_vm5, %v5773_v35, 0.0  ;;  %vm5843_vm5 = vcmask 1040384   ;;  %v5855_v35 = vrot.slane %v3287_v48, 7 }
0x11c3   : > { %5775 = vadd.xlane.f32.xlu1 %v5774_v7  ;;  %v5876_v25 = vsel %vm5843_vm5, %v5873_v58, %v5875_v47  ;;  %v5874_v55 = vsel %vm5843_vm5, %v5871_v24, %v5873_v58  ;;  %v5872_v21 = vsel %vm5843_vm5, %v5869_v10, %v5871_v24  ;;  %v5870_v20 = vsel %vm5843_vm5, %v5867_v60, %v5869_v10  ;;  %v3286_v7 = vld [vmem:[#allocation12 + $0x48] sm:$0xff] }
0x11c4   : > { %5893 = vmatpush.msra.mxu3 %v5876_v25  ;;  %v5868_v46 = vsel %vm5843_vm5, %v5865_v1, %v5867_v60  ;;  %v5866_v11 = vsel %vm5843_vm5, %v5863_v42, %v5865_v1  ;;  %v5864_v43 = vsel %vm5843_vm5, %v5861_v16, %v5863_v42  ;;  %v5862_v5 = vsel %vm5843_vm5, %v5859_v12, %v5861_v16  ;;  %v8235_v25 = vld [vmem:[#allocation12 + $0x8] sm:$0xff] }
0x11c6   : > { %5894 = vmatpush.msra.mxu3 %v5874_v55  ;;  %v5826_v55 = vperm.slane %v8235_v25, 2 }
0x11c8   : > { %5895 = vmatpush.msra.mxu3 %v5872_v21 }
0x11ca   : > { %5896 = vmatpush.msra.mxu3 %v5870_v20 }
0x11cc   : > { %5897 = vmatpush.msra.mxu3 %v5868_v46 }
0x11ce   : > { %5898 = vmatpush.msra.mxu3 %v5866_v11 }
0x11d0   : > { %5899 = vmatpush.msra.mxu3 %v5864_v43 }
0x11d2   : > { %5900 = vmatpush.msra.mxu3 %v5862_v5 }
0x1236   : > { %v5776_v50 = vpop.xlane.xlu1 %5775 }
0x1237   : > { %v5777_v29 = vmul.f32 %v5776_v50, %v10055_v13  ;;  %v5858_v50 = vsel %vm5843_vm5, %v5855_v35, %v5857_v49 }
0x1239   : > { %v5778_v8 = vadd.f32 1e-05, %v5777_v29  ;;  %v5853_v29 = vrot.slane %v3286_v7, 7 }
0x123b   : > { %8228 = vrsqrt.f32 %v5778_v8  ;;  %vm5785_vm13 = vweird.f32 %v5778_v8 }
0x1241   : > { %v8229_v40 = vpop.eup %8228 }
0x1242   : > { %v5780_v54 = vmul.f32 %v8229_v40, %v5778_v8  ;;  %vm5786_vm12 = vweird.f32 %v8229_v40  ;;  %v3285_v8 = vld [vmem:[#allocation12 + $0x40] sm:$0xff] }
0x1243   : > { %vm5787_vm6 = vmor %vm5785_vm13, %vm5786_vm12 }
0x1244   : > { %v5781_v31 = vmul.f32 %v8229_v40, %v5780_v54  ;;  %v5851_v54 = vrot.slane %v3285_v8, 7 }
0x1246   : > { %v5782_v38 = vmul.f32 0.5, %v5781_v31  ;;  %v3284_v31 = vld [vmem:[#allocation12 + $0x38] sm:$0xff] }
0x1248   : > { %v5783_v4 = vsub.f32 1.5, %v5782_v38  ;;  %v5854_v38 = vsel %vm5843_vm5, %v5851_v54, %v5853_v29 }
0x124a   : > { %v5784_v45 = vmul.f32 %v8229_v40, %v5783_v4  ;;  %v5849_v4 = vrot.slane %v3284_v31, 7 }
0x124c   : > { %v5788_v41 = vsel %vm5787_vm6, %v8229_v40, %v5784_v45  ;;  %v5856_v40 = vsel %vm5843_vm5, %v5853_v29, %v5855_v35  ;;  %v3283_v45 = vld [vmem:[#allocation12 + $0x30] sm:$0xff]  ;;  %v5852_v63 = vsel %vm5843_vm5, %v5849_v4, %v5851_v54 }
0x124d   : > { %v5789_v22 = vmul.f32 %v5788_v41, %v5772_v37  ;;  %v5860_v37 = vsel %vm5843_vm5, %v5857_v49, %v5859_v12  ;;  %v3282_v41 = vld [vmem:[#allocation12 + $0x28] sm:$0xff] }
0x124e   : > { %5901 = vmatpush.msra.mxu3 %v5860_v37 }
0x124f   : > { %v5791_v15 = vmul.f32 %v5790_v23, %v5789_v22  ;;  %v5847_v23 = vrot.slane %v3283_v45, 7  ;;  %v5844_v22 = vrot.slane %v10451_v34, 7 }
0x1250   : > { %5902 = vmatpush.msra.mxu3 %v5858_v50 }
0x1251   : > { %v5793_v57 = vadd.f32 %v5792_v0, %v5791_v15  ;;  %v5845_v0 = vrot.slane %v3282_v41, 7  ;;  %v5850_v15 = vsel %vm5843_vm5, %v5847_v23, %v5849_v4 }
0x1252   : > { %5903 = vmatpush.msra.mxu3 %v5856_v40 }
0x1253   : > { %v5795_v52 = vrot.slane %v5793_v57, 2  ;;  %v5798_v19 = vrot.slane %v5793_v57, 4 }
0x1254   : > { %5904 = vmatpush.msra.mxu3 %v5854_v38 }
0x1255   : > { %v5797_v32 = vadd.f32 %v5795_v52, %v5793_v57  ;;  %v5848_v57 = vsel %vm5843_vm5, %v5845_v0, %v5847_v23  ;;  %v5846_v52 = vsel %vm5843_vm5, %v5844_v22, %v5845_v0 }
0x1256   : > { %5905 = vmatpush.msra.mxu3 %v5852_v63 }
0x1257   : > { %v5800_v17 = vadd.f32 %v5798_v19, %v5797_v32 }
0x1258   : > { %5906 = vmatpush.msra.mxu3 %v5850_v15 }
0x1259   : > { %v5801_v53 = vmul.f32 0.33333334, %v5800_v17 }
0x125a   : > { %5907 = vmatpush.msra.mxu3 %v5848_v57 }
0x125b   : > { %v5802_v62 = vsel %vm1280_vm4, %v5801_v53, 0.0 }
0x125c   : > { %5803 = vadd.xlane.f32.xlu2 %v5802_v62  ;;  %5908 = vmatpush.msra.mxu3 %v5846_v52 }
0x12cf   : > { %v5804_v26 = vpop.xlane.xlu2 %5803 }
0x12d0   : > { %v5805_v3 = vmul.f32 %v5804_v26, %v10055_v13 }
0x12d2   : > { %v10458_v61 = vsub.f32 %v5801_v53, %v5805_v3 }
0x12d4   : > { %v5807_v27 = vmul.f32 %v10458_v61, %v10458_v61 }
0x12d6   : > { %v5808_v18 = vsel %vm1280_vm4, %v5807_v27, 0.0 }
0x12d7   : > { %5809 = vadd.xlane.f32.xlu0 %v5808_v18 }
0x134a   : > { %v5810_v32 = vpop.xlane.xlu0 %5809 }
0x134b   : > { %v5811_v19 = vmul.f32 %v5810_v32, %v10055_v13 }
0x134d   : > { %v5812_v17 = vadd.f32 1e-05, %v5811_v19 }
0x134f   : > { %8230 = vrsqrt.f32 %v5812_v17  ;;  %vm5819_vm1 = vweird.f32 %v5812_v17 }
0x1355   : > { %v8231_v53 = vpop.eup %8230 }
0x1356   : > { %v5814_v62 = vmul.f32 %v8231_v53, %v5812_v17  ;;  %vm5820_vm4 = vweird.f32 %v8231_v53 }
0x1357   : > { %vm5821_vm2 = vmor %vm5819_vm1, %vm5820_vm4 }
0x1358   : > { %v5815_v33 = vmul.f32 %v8231_v53, %v5814_v62 }
0x135a   : > { %v5816_v34 = vmul.f32 0.5, %v5815_v33 }
0x135c   : > { %v5817_v51 = vsub.f32 1.5, %v5816_v34 }
0x135e   : > { %v5818_v9 = vmul.f32 %v8231_v53, %v5817_v51 }
0x1360   : > { %v5822_v58 = vsel %vm5821_vm2, %v8231_v53, %v5818_v9 }
0x1361   : > { %v5823_v47 = vmul.f32 %v5822_v58, %v10458_v61 }
0x1363   : > { %v5824_v24 = vmul.f32 %v5823_v47, %v3342_v44 }
0x1365   : > { %v5825_v13 = vadd.f32 %v5824_v24, %v3344_v2 }
0x1367   : > { %5909 = vmatmul.f32.vlgmr.msra.gmra.mxu3 %v5825_v13 }
0x13ea   : > { %v5910_v26 = vpop.f32.mrf.mxu3 }
0x13eb   : > { %v5911_v3 = vadd.f32 %v5910_v26, %v5826_v55 }
0x13ed   : > { %5913 = vst [vmem:[#allocation14] sm:$0x3] %v5911_v3 }
0x13ee PF: > { %p8113_p8 = scmp.eq.s32.totalorder %s8579_s25, 3  ;;  %s8524_s4 = smov [#allocation14]  }
0x13ef   : > { %s5920_s24 = sshll.u32 %s8524_s4, 4  ;;  %s5922_s21 = sshll.u32 %s10507_s6, 4  ;;  %s5921_s24 = int_to_ptr.vmem [resolvable:$true] %s5920_s24  ;;  %s5923_s21 = int_to_ptr.hbm [resolvable:$true] %s5922_s21 }
0x13f0   : > { %8083 = dma.vmem_to_hbm [thread:$0]  (%p8113_p8), %s5921_s24, 32, %s5923_s21, [#allocation5]  }
0x13f1   : > { %8485 = dma.done.wait (%p8113_p8), [#allocation5], 32  }
0x13f2   : > { %8487 = vsyncadd (%p8113_p8), [#allocation5], 4294967264 }
0x13f3 PF: > { %s10595_s0 = sld [smem:[#allocation22_spill]]  ;;  %p24_p9 = scmp.ge.s32.totalorder %s8582_s26, 6  }
0x13f4   : > { %s10596_s21 = smov %s8494_s22  ;;  %s10597_s22 = smov %s8498_s23 }
0x13f5   : > { %s10599_s24 = smov %s8582_s26  ;;  %26 = sbr.rel (!%p24_p9) target bundleno = 14 (0xe), region = 134 }
0x13f9   : > { %s10598_s23 = smov %s10595_s0 }
0x13fa   :  { %5936 = vsyncpa [#allocation4], 1 }
0x13fb   :  { %5938 = vsyncpa [#allocation4 + $0x1], 1 }
0x13fc   :  { %5939 = vsyncpa [#allocation7], 1 }
0x13fd   :  { %5941 = vsyncpa [#allocation7 + $0x1], 1 }
0x13fe   :  { %5942 = vsyncpa [#allocation10], 1 }
0x13ff   :  { %5944 = vsyncpa [#allocation10 + $0x1], 1 }
0x1400   :  { %5945 = vsyncpa [#allocation13], 1 }
0x1401   :  { %5946 = vsyncpa [#allocation5], 1 }
0x1402   :  { %5948 = vsyncpa [#allocation5 + $0x1], 1 }

</bundles_post_ra>
